<compile_context>
chip_gen: v7x
topology: tpu7x:2x2x1
jax: 0.10.0
libtpu: 0.0.40
codegen_flags: <defaults>
</compile_context>

<pallas_src>
import functools

import jax
import jax.numpy as jnp
from jax.experimental import pallas as pl
from jax.experimental.pallas import tpu as pltpu

_VMEM_LIMIT = 48 * 1024 * 1024  # safe on v7x (64 MiB physical); retune toward ~96 MiB on v5e/v6e


def _round_up(v, m):
    return ((v + m - 1) // m) * m


# ---------------------------------------------------------------------------
# Shared helper: fold InstanceNorm stats + affine into one scale/shift pair.
# st_ref: (1, 2, Cp) f32 [sum, sumsq]; gb_ref: (2, Cp) f32 [gamma, beta]
# ---------------------------------------------------------------------------
def _affine_from_stats(st_ref, gb_ref, inv_m, eps):
    mu = st_ref[0, 0:1, :] * inv_m                     # (1, Cp)
    ex2 = st_ref[0, 1:2, :] * inv_m
    var = jnp.maximum(ex2 - mu * mu, 0.0)              # clamp: single-pass var can cancel < 0
    scale = gb_ref[0:1, :] * jax.lax.rsqrt(var + eps)
    shift = gb_ref[1:2, :] - mu * scale
    return scale, shift


# ---------------------------------------------------------------------------
# Kernel 1: conv1 (3x3x3, pad 1) + fused 1x1x1 shortcut conv.
# Emits raw (pre-norm) outputs in bf16 plus per-(sample, channel) sum/sumsq for both INs.
# Grid: (N, D) -- one output depth plane per step.
# ---------------------------------------------------------------------------
def _conv1_shortcut_kernel(x0_ref, x1_ref, x2_ref, w1_ref, wt_ref,
                           r1_ref, s_ref, st1_ref, st3_ref, acc_ref,
                           *, H, W, CIN, CP, HW):
    dd = pl.program_id(1)

    @pl.when(dd == 0)
    def _():
        st1_ref[...] = jnp.zeros_like(st1_ref)
        st3_ref[...] = jnp.zeros_like(st3_ref)

    # Three spatially pre-padded input planes (d, d+1, d+2 of the padded volume).
    slabs = (
        x0_ref[0, 0].reshape(H + 2, W + 2, CIN),
        x1_ref[0, 0].reshape(H + 2, W + 2, CIN),
        x2_ref[0, 0].reshape(H + 2, W + 2, CIN),
    )

    acc_ref[...] = jnp.zeros_like(acc_ref)
    for kd in range(3):                                  # 9-step unrolled tap-group loop,
        slab = slabs[kd]                                 # (kw, Cin) folded into K = 3*CIN
        for kh in range(3):
            rows = slab[kh:kh + H]                       # (H, W+2, CIN)
            op = jnp.concatenate(
                [rows[:, 0:W], rows[:, 1:W + 1], rows[:, 2:W + 2]],
                axis=-1).reshape(HW, 3 * CIN)            # (HW, 3*CIN)
            acc_ref[...] += jnp.dot(op, w1_ref[kd, kh],
                                    preferred_element_type=jnp.float32)
    acc = acc_ref[...]                                   # (HW, CP) f32

    # 1x1x1 shortcut conv on the (unpadded) center plane -- reuses the already-loaded x.
    xin = slabs[1][1:H + 1, 1:W + 1, :].reshape(HW, CIN)
    sacc = jnp.dot(xin, wt_ref[...], preferred_element_type=jnp.float32)

    # Accumulate InstanceNorm statistics across the depth grid axis (resident output blocks).
    st1_ref[0] += jnp.concatenate(
        [jnp.sum(acc, axis=0, keepdims=True),
         jnp.sum(acc * acc, axis=0, keepdims=True)], axis=0)
    st3_ref[0] += jnp.concatenate(
        [jnp.sum(sacc, axis=0, keepdims=True),
         jnp.sum(sacc * sacc, axis=0, keepdims=True)], axis=0)

    r1_ref[0, 0] = acc.astype(r1_ref.dtype)
    s_ref[0, 0] = sacc.astype(s_ref.dtype)


def _stage1(x_pad4, w1f, wtf, *, n, d, h, w, cin_p, cp):
    hw = h * w
    hp, wp = h + 2, w + 2
    kernel = functools.partial(_conv1_shortcut_kernel,
                               H=h, W=w, CIN=cin_p, CP=cp, HW=hw)

    def xspec(shift):
        return pl.BlockSpec((1, 1, hp * wp, cin_p),
                            lambda i, j: (i, j + shift, 0, 0))

    grid_spec = pltpu.PrefetchScalarGridSpec(
        num_scalar_prefetch=0,
        grid=(n, d),
        in_specs=[
            xspec(0), xspec(1), xspec(2),
            pl.BlockSpec((3, 3, 3 * cin_p, cp), lambda i, j: (0, 0, 0, 0)),
            pl.BlockSpec((cin_p, cp), lambda i, j: (0, 0)),
        ],
        out_specs=(
            pl.BlockSpec((1, 1, hw, cp), lambda i, j: (i, j, 0, 0)),   # raw conv1
            pl.BlockSpec((1, 1, hw, cp), lambda i, j: (i, j, 0, 0)),   # raw shortcut conv
            pl.BlockSpec((1, 2, cp), lambda i, j: (i, 0, 0)),          # conv1 sum/sumsq
            pl.BlockSpec((1, 2, cp), lambda i, j: (i, 0, 0)),          # shortcut sum/sumsq
        ),
        scratch_shapes=[pltpu.VMEM((hw, cp), jnp.float32)],
    )
    flops = int(2 * n * d * hw * (27 * cin_p + cin_p) * cp)
    bytes_accessed = int(3 * x_pad4.size * 2 + 2 * n * d * hw * cp * 2 + 4 * n * 2 * cp * 4)
    return pl.pallas_call(
        kernel,
        out_shape=(
            jax.ShapeDtypeStruct((n, d, hw, cp), jnp.bfloat16),
            jax.ShapeDtypeStruct((n, d, hw, cp), jnp.bfloat16),
            jax.ShapeDtypeStruct((n, 2, cp), jnp.float32),
            jax.ShapeDtypeStruct((n, 2, cp), jnp.float32),
        ),
        grid_spec=grid_spec,
        compiler_params=pltpu.CompilerParams(
            dimension_semantics=("parallel", "arbitrary"),
            vmem_limit_bytes=_VMEM_LIMIT),
        cost_estimate=pl.CostEstimate(flops=flops, transcendentals=0,
                                      bytes_accessed=bytes_accessed),
    )(x_pad4, x_pad4, x_pad4, w1f, wtf)


# ---------------------------------------------------------------------------
# Kernel 2: normalize conv1's raw output (IN1 + ReLU, folded scale/shift) on the fly,
# then conv2 (3x3x3, pad 1).  Emits raw conv2 output (bf16) + its sum/sumsq.
# Depth halo handled via clamped index maps + per-plane validity mask; H/W halo via a
# zero-initialized VMEM slab.
# ---------------------------------------------------------------------------
def _conv2_kernel(r1a_ref, r1b_ref, r1c_ref, st1_ref, gb1_ref, w2_ref,
                  r2_ref, st2_ref, slab_ref, acc_ref,
                  *, H, W, CP, HW, D, INV_M, EPS):
    dd = pl.program_id(1)

    @pl.when(dd == 0)
    def _():
        st2_ref[...] = jnp.zeros_like(st2_ref)

    scale, shift = _affine_from_stats(st1_ref, gb1_ref, INV_M, EPS)

    acc_ref[...] = jnp.zeros_like(acc_ref)
    slab_ref[...] = jnp.zeros_like(slab_ref)        # keeps the H/W halo at exactly zero

    plane_refs = (r1a_ref, r1b_ref, r1c_ref)
    for kd in range(3):
        src = dd - 1 + kd
        valid = ((src >= 0) & (src <= D - 1)).astype(jnp.float32)          # depth halo mask
        raw = plane_refs[kd][0, 0].astype(jnp.float32)                     # (HW, CP)
        o1 = jnp.maximum(raw * scale + shift, 0.0) * valid                 # IN1 + ReLU
        slab_ref[1:H + 1, 1:W + 1, :] = o1.reshape(H, W, CP).astype(slab_ref.dtype)
        slab = slab_ref[...]
        for kh in range(3):
            rows = slab[kh:kh + H]
            op = jnp.concatenate(
                [rows[:, 0:W], rows[:, 1:W + 1], rows[:, 2:W + 2]],
                axis=-1).reshape(HW, 3 * CP)
            acc_ref[...] += jnp.dot(op, w2_ref[kd, kh],
                                    preferred_element_type=jnp.float32)
    acc = acc_ref[...]

    st2_ref[0] += jnp.concatenate(
        [jnp.sum(acc, axis=0, keepdims=True),
         jnp.sum(acc * acc, axis=0, keepdims=True)], axis=0)
    r2_ref[0, 0] = acc.astype(r2_ref.dtype)


def _stage2(r1, st1, gb1, w2f, *, n, d, h, w, cp, eps):
    hw = h * w
    inv_m = 1.0 / float(d * hw)
    kernel = functools.partial(_conv2_kernel, H=h, W=w, CP=cp, HW=hw, D=d,
                               INV_M=inv_m, EPS=eps)

    def rspec(shift):
        def imap(i, j):
            src = jnp.maximum(jnp.minimum(j - 1 + shift, d - 1), 0)
            return (i, src, 0, 0)
        return pl.BlockSpec((1, 1, hw, cp), imap)

    grid_spec = pltpu.PrefetchScalarGridSpec(
        num_scalar_prefetch=0,
        grid=(n, d),
        in_specs=[
            rspec(0), rspec(1), rspec(2),
            pl.BlockSpec((1, 2, cp), lambda i, j: (i, 0, 0)),          # conv1 stats
            pl.BlockSpec((2, cp), lambda i, j: (0, 0)),                # gamma1/beta1
            pl.BlockSpec((3, 3, 3 * cp, cp), lambda i, j: (0, 0, 0, 0)),
        ],
        out_specs=(
            pl.BlockSpec((1, 1, hw, cp), lambda i, j: (i, j, 0, 0)),   # raw conv2
            pl.BlockSpec((1, 2, cp), lambda i, j: (i, 0, 0)),          # conv2 sum/sumsq
        ),
        scratch_shapes=[
            pltpu.VMEM((h + 2, w + 2, cp), jnp.bfloat16),              # zero-padded o1 slab
            pltpu.VMEM((hw, cp), jnp.float32),                         # conv accumulator
        ],
    )
    flops = int(2 * n * d * hw * 27 * cp * cp)
    bytes_accessed = int(4 * n * d * hw * cp * 2 + 27 * cp * cp * 2)
    return pl.pallas_call(
        kernel,
        out_shape=(
            jax.ShapeDtypeStruct((n, d, hw, cp), jnp.bfloat16),
            jax.ShapeDtypeStruct((n, 2, cp), jnp.float32),
        ),
        grid_spec=grid_spec,
        compiler_params=pltpu.CompilerParams(
            dimension_semantics=("parallel", "arbitrary"),
            vmem_limit_bytes=_VMEM_LIMIT),
        cost_estimate=pl.CostEstimate(flops=flops, transcendentals=0,
                                      bytes_accessed=bytes_accessed),
    )(r1, r1, r1, st1, gb1, w2f)


# ---------------------------------------------------------------------------
# Kernel 3: finalize -- ReLU(IN2(conv2_raw)) + ReLU(IN3(shortcut_raw)), fused residual add.
# ---------------------------------------------------------------------------
def _finalize_kernel(r2_ref, s_ref, st2_ref, st3_ref, gb2_ref, gb3_ref, out_ref,
                     *, INV_M, EPS):
    sc2, sh2 = _affine_from_stats(st2_ref, gb2_ref, INV_M, EPS)
    sc3, sh3 = _affine_from_stats(st3_ref, gb3_ref, INV_M, EPS)
    main = jnp.maximum(r2_ref[0, 0].astype(jnp.float32) * sc2 + sh2, 0.0)
    res = jnp.maximum(s_ref[0, 0].astype(jnp.float32) * sc3 + sh3, 0.0)
    out_ref[0, 0] = main + res


def _stage3(r2, s_raw, st2, st3, gb2, gb3, *, n, d, hw, cp, eps):
    inv_m = 1.0 / float(d * hw)
    kernel = functools.partial(_finalize_kernel, INV_M=inv_m, EPS=eps)
    grid_spec = pltpu.PrefetchScalarGridSpec(
        num_scalar_prefetch=0,
        grid=(n, d),
        in_specs=[
            pl.BlockSpec((1, 1, hw, cp), lambda i, j: (i, j, 0, 0)),
            pl.BlockSpec((1, 1, hw, cp), lambda i, j: (i, j, 0, 0)),
            pl.BlockSpec((1, 2, cp), lambda i, j: (i, 0, 0)),
            pl.BlockSpec((1, 2, cp), lambda i, j: (i, 0, 0)),
            pl.BlockSpec((2, cp), lambda i, j: (0, 0)),
            pl.BlockSpec((2, cp), lambda i, j: (0, 0)),
        ],
        out_specs=pl.BlockSpec((1, 1, hw, cp), lambda i, j: (i, j, 0, 0)),
    )
    return pl.pallas_call(
        kernel,
        out_shape=jax.ShapeDtypeStruct((n, d, hw, cp), jnp.float32),
        grid_spec=grid_spec,
        compiler_params=pltpu.CompilerParams(
            dimension_semantics=("parallel", "parallel"),
            vmem_limit_bytes=_VMEM_LIMIT),
    )(r2, s_raw, st2, st3, gb2, gb3)


# ---------------------------------------------------------------------------
# Plain-JAX glue: weight / affine folding and layout plumbing (no im2col!)
# ---------------------------------------------------------------------------
def _fold_w3(w_dhwio, cin_p, cout_p):
    """(3,3,3,Cin,Cout) -> (3, 3, 3*cin_p, cout_p) bf16, (kw, cin) folded into K, zero-padded."""
    kd, kh, kw, ci, co = w_dhwio.shape
    wp = jnp.pad(w_dhwio, ((0, 0), (0, 0), (0, 0), (0, cin_p - ci), (0, cout_p - co)))
    return wp.reshape(kd, kh, kw * cin_p, cout_p).astype(jnp.bfloat16)


def _fold_w1(w_dhwio, cin_p, cout_p):
    ci, co = w_dhwio.shape[-2:]
    wp = jnp.pad(w_dhwio.reshape(ci, co), ((0, cin_p - ci), (0, cout_p - co)))
    return wp.astype(jnp.bfloat16)


def _pack_gb(gamma, beta, cout_p):
    co = gamma.shape[0]
    g = jnp.pad(gamma.astype(jnp.float32), (0, cout_p - co), constant_values=1.0)
    b = jnp.pad(beta.astype(jnp.float32), (0, cout_p - co), constant_values=0.0)
    return jnp.stack([g, b], axis=0)   # (2, cout_p)


def resblock_pallas(x_ncdhw, params, eps=1e-5):
    """Forward of ResBlock.  x_ncdhw: (N, Cin, D, H, W) -> (N, planes, D, H, W)."""
    x = jnp.transpose(x_ncdhw, (0, 2, 3, 4, 1)).astype(jnp.bfloat16)   # NDHWC bf16
    n, d, h, w, cin = x.shape
    planes = params["w1"].shape[-1]
    cin_p = _round_up(max(cin, 8), 8)
    cp = _round_up(planes, 128)        # lane-dense padded channel width kept between stages
    hw = h * w

    # Spatially + channel zero-padded input; (H+2, W+2) merged so blocks stay <= 4-D.
    x_pad = jnp.pad(x, ((0, 0), (1, 1), (1, 1), (1, 1), (0, cin_p - cin)))
    x_pad = x_pad.reshape(n, d + 2, (h + 2) * (w + 2), cin_p)

    w1f = _fold_w3(params["w1"], cin_p, cp)
    w2f = _fold_w3(params["w2"], cp, cp)            # padded Cin rows are zero (stays exact)
    wtf = _fold_w1(params["wt"], cin_p, cp)
    gb1 = _pack_gb(params["g1"], params["b1"], cp)
    gb2 = _pack_gb(params["g2"], params["b2"], cp)
    gb3 = _pack_gb(params["g3"], params["b3"], cp)

    r1, s_raw, st1, st3 = _stage1(x_pad, w1f, wtf, n=n, d=d, h=h, w=w, cin_p=cin_p, cp=cp)
    r2, st2 = _stage2(r1, st1, gb1, w2f, n=n, d=d, h=h, w=w, cp=cp, eps=eps)
    outp = _stage3(r2, s_raw, st2, st3, gb2, gb3, n=n, d=d, hw=hw, cp=cp, eps=eps)

    out = outp[..., :planes].reshape(n, d, h, w, planes)
    return jnp.transpose(out, (0, 4, 1, 2, 3))      # back to NCDHW


# ---------------------------------------------------------------------------
# Pure-JAX reference (bf16 matmul operands, f32 accumulation / InstanceNorm math)
# ---------------------------------------------------------------------------
def _conv3d_ref(x, w, padding):
    return jax.lax.conv_general_dilated(
        x.astype(jnp.bfloat16), w.astype(jnp.bfloat16),
        window_strides=(1, 1, 1), padding=padding,
        dimension_numbers=("NDHWC", "DHWIO", "NDHWC"),
        preferred_element_type=jnp.float32)


def _in_relu_ref(y, gamma, beta, eps=1e-5):
    mu = jnp.mean(y, axis=(1, 2, 3), keepdims=True)
    var = jnp.mean((y - mu) ** 2, axis=(1, 2, 3), keepdims=True)
    out = (y - mu) * jax.lax.rsqrt(var + eps) * gamma + beta
    return jnp.maximum(out, 0.0)


def resblock_ref(x_ncdhw, params):
    x = jnp.transpose(x_ncdhw, (0, 2, 3, 4, 1))
    o1 = _in_relu_ref(_conv3d_ref(x, params["w1"], ((1, 1),) * 3), params["g1"], params["b1"])
    o2 = _in_relu_ref(_conv3d_ref(o1, params["w2"], ((1, 1),) * 3), params["g2"], params["b2"])
    r = _in_relu_ref(_conv3d_ref(x, params["wt"], ((0, 0),) * 3), params["g3"], params["b3"])
    out = o2 + r
    return jnp.transpose(out, (0, 4, 1, 2, 3))


# ---------------------------------------------------------------------------
if __name__ == "__main__":
    N, CIN, PLANES, D, H, W = 2, 4, 8, 8, 8, 8

    key = jax.random.PRNGKey(0)
    k = jax.random.split(key, 10)

    x = jax.random.normal(k[0], (N, CIN, D, H, W), jnp.float32)  # PyTorch NCDHW input

    params = {
        # conv weights stored DHWIO (kd, kh, kw, Cin, Cout)
        "w1": 0.1 * jax.random.normal(k[1], (3, 3, 3, CIN, PLANES), jnp.float32),
        "w2": 0.1 * jax.random.normal(k[2], (3, 3, 3, PLANES, PLANES), jnp.float32),
        "wt": 0.1 * jax.random.normal(k[3], (1, 1, 1, CIN, PLANES), jnp.float32),
        # InstanceNorm affine params
        "g1": 1.0 + 0.1 * jax.random.normal(k[4], (PLANES,), jnp.float32),
        "b1": 0.1 * jax.random.normal(k[5], (PLANES,), jnp.float32),
        "g2": 1.0 + 0.1 * jax.random.normal(k[6], (PLANES,), jnp.float32),
        "b2": 0.1 * jax.random.normal(k[7], (PLANES,), jnp.float32),
        "g3": 1.0 + 0.1 * jax.random.normal(k[8], (PLANES,), jnp.float32),
        "b3": 0.1 * jax.random.normal(k[9], (PLANES,), jnp.float32),
    }

    out = jax.jit(resblock_pallas)(x, params)
    out = jax.block_until_ready(out)

    ref = jax.block_until_ready(resblock_ref(x, params))

    assert out.shape == (N, PLANES, D, H, W), out.shape
    # bf16 matmul operands + bf16 pre-norm intermediates -> use a bf16-appropriate tolerance.
    max_diff = float(jnp.max(jnp.abs(out - ref)))
    assert max_diff < 5e-2, f"mismatch vs reference: max abs diff {max_diff}"

    print("KERNEL_OK")
</pallas_src>

<mosaic_0001>
module attributes {stable_mosaic.version = 11 : i64} {
  func.func @_conv1_shortcut_kernel(%arg0: i32, %arg1: i32, %arg2: memref<1x1x100x8xbf16, #tpu.memory_space<vmem>>, %arg3: memref<1x1x100x8xbf16, #tpu.memory_space<vmem>>, %arg4: memref<1x1x100x8xbf16, #tpu.memory_space<vmem>>, %arg5: memref<3x3x24x128xbf16, #tpu.memory_space<vmem>>, %arg6: memref<8x128xbf16, #tpu.memory_space<vmem>>, %arg7: memref<1x1x64x128xbf16, #tpu.memory_space<vmem>>, %arg8: memref<1x1x64x128xbf16, #tpu.memory_space<vmem>>, %arg9: memref<1x2x128xf32, #tpu.memory_space<vmem>>, %arg10: memref<1x2x128xf32, #tpu.memory_space<vmem>>, %arg11: memref<64x128xf32, #tpu.memory_space<vmem>>) attributes {dimension_semantics = [#tpu.dimension_semantics<parallel>, #tpu.dimension_semantics<arbitrary>], iteration_bounds = array<i64: 2, 8>, scalar_prefetch = 0 : i64, scratch_operands = 1 : i64, tpu.core_type = #tpu.core_type<tc>, window_params = [{transform_indices = @transform_0, window_bounds = array<i64: 1, 1, 100, 8>}, {transform_indices = @transform_1, window_bounds = array<i64: 1, 1, 100, 8>}, {transform_indices = @transform_2, window_bounds = array<i64: 1, 1, 100, 8>}, {pipeline_mode = #tpu.pipeline_mode<synchronous>, transform_indices = @transform_3, window_bounds = array<i64: 3, 3, 24, 128>}, {pipeline_mode = #tpu.pipeline_mode<synchronous>, transform_indices = @transform_4, window_bounds = array<i64: 8, 128>}, {transform_indices = @transform_5, window_bounds = array<i64: 1, 1, 64, 128>}, {transform_indices = @transform_6, window_bounds = array<i64: 1, 1, 64, 128>}, {transform_indices = @transform_7, window_bounds = array<i64: 1, 2, 128>}, {transform_indices = @transform_8, window_bounds = array<i64: 1, 2, 128>}]} {
    %c0_i32 = arith.constant 0 : i32
    %0 = arith.cmpi eq, %arg1, %c0_i32 : i32
    %1 = arith.extui %0 : i1 to i32
    %c0_i32_0 = arith.constant 0 : i32
    %2 = arith.cmpi ne, %1, %c0_i32_0 : i32
    scf.if %2 {
      %cst_122 = arith.constant 0.000000e+00 : f32
      %159 = vector.broadcast %cst_122 : f32 to vector<1x2x128xf32>
      %c0_123 = arith.constant 0 : index
      %c0_124 = arith.constant 0 : index
      %c0_125 = arith.constant 0 : index
      %160 = vector.load %arg9[%c0_123, %c0_124, %c0_125] : memref<1x2x128xf32, #tpu.memory_space<vmem>>, vector<1x2x128xf32>
      tpu.vector_store %arg9[%c0_123, %c0_124, %c0_125], %159 {strides = array<i32>} : memref<1x2x128xf32, #tpu.memory_space<vmem>>, vector<1x2x128xf32>,
      %cst_126 = arith.constant 0.000000e+00 : f32
      %161 = vector.broadcast %cst_126 : f32 to vector<1x2x128xf32>
      %c0_127 = arith.constant 0 : index
      %c0_128 = arith.constant 0 : index
      %c0_129 = arith.constant 0 : index
      %162 = vector.load %arg10[%c0_127, %c0_128, %c0_129] : memref<1x2x128xf32, #tpu.memory_space<vmem>>, vector<1x2x128xf32>
      tpu.vector_store %arg10[%c0_127, %c0_128, %c0_129], %161 {strides = array<i32>} : memref<1x2x128xf32, #tpu.memory_space<vmem>>, vector<1x2x128xf32>,
    } else {
    }
    %c0 = arith.constant 0 : index
    %c0_1 = arith.constant 0 : index
    %c0_2 = arith.constant 0 : index
    %c0_3 = arith.constant 0 : index
    %3 = vector.load %arg2[%c0, %c0_1, %c0_2, %c0_3] : memref<1x1x100x8xbf16, #tpu.memory_space<vmem>>, vector<1x1x100x8xbf16>
    %4 = vector.shape_cast %3 : vector<1x1x100x8xbf16> to vector<100x8xbf16>
    %5 = vector.shape_cast %4 : vector<100x8xbf16> to vector<10x10x8xbf16>
    %c0_4 = arith.constant 0 : index
    %c0_5 = arith.constant 0 : index
    %c0_6 = arith.constant 0 : index
    %c0_7 = arith.constant 0 : index
    %6 = vector.load %arg3[%c0_4, %c0_5, %c0_6, %c0_7] : memref<1x1x100x8xbf16, #tpu.memory_space<vmem>>, vector<1x1x100x8xbf16>
    %7 = vector.shape_cast %6 : vector<1x1x100x8xbf16> to vector<100x8xbf16>
    %8 = vector.shape_cast %7 : vector<100x8xbf16> to vector<10x10x8xbf16>
    %c0_8 = arith.constant 0 : index
    %c0_9 = arith.constant 0 : index
    %c0_10 = arith.constant 0 : index
    %c0_11 = arith.constant 0 : index
    %9 = vector.load %arg4[%c0_8, %c0_9, %c0_10, %c0_11] : memref<1x1x100x8xbf16, #tpu.memory_space<vmem>>, vector<1x1x100x8xbf16>
    %10 = vector.shape_cast %9 : vector<1x1x100x8xbf16> to vector<100x8xbf16>
    %11 = vector.shape_cast %10 : vector<100x8xbf16> to vector<10x10x8xbf16>
    %cst = arith.constant 0.000000e+00 : f32
    %12 = vector.broadcast %cst : f32 to vector<64x128xf32>
    %c0_12 = arith.constant 0 : index
    %c0_13 = arith.constant 0 : index
    %13 = vector.load %arg11[%c0_12, %c0_13] : memref<64x128xf32, #tpu.memory_space<vmem>>, vector<64x128xf32>
    tpu.vector_store %arg11[%c0_12, %c0_13], %12 {strides = array<i32>} : memref<64x128xf32, #tpu.memory_space<vmem>>, vector<64x128xf32>,
    %14 = vector.extract_strided_slice %5 {offsets = [0, 0, 0], sizes = [8, 10, 8], strides = [1, 1, 1]} : vector<10x10x8xbf16> to vector<8x10x8xbf16>
    %15 = vector.extract_strided_slice %14 {offsets = [0, 0, 0], sizes = [8, 8, 8], strides = [1, 1, 1]} : vector<8x10x8xbf16> to vector<8x8x8xbf16>
    %16 = vector.extract_strided_slice %14 {offsets = [0, 1, 0], sizes = [8, 8, 8], strides = [1, 1, 1]} : vector<8x10x8xbf16> to vector<8x8x8xbf16>
    %17 = vector.extract_strided_slice %14 {offsets = [0, 2, 0], sizes = [8, 8, 8], strides = [1, 1, 1]} : vector<8x10x8xbf16> to vector<8x8x8xbf16>
    %18 = tpu.concatenate %15, %16, %17 in 2 : vector<8x8x8xbf16>, vector<8x8x8xbf16>, vector<8x8x8xbf16> -> vector<8x8x24xbf16>
    %19 = vector.shape_cast %18 : vector<8x8x24xbf16> to vector<64x24xbf16>
    %c0_14 = arith.constant 0 : index
    %c0_15 = arith.constant 0 : index
    %20 = vector.load %arg11[%c0_14, %c0_15] : memref<64x128xf32, #tpu.memory_space<vmem>>, vector<64x128xf32>
    %c0_16 = arith.constant 0 : index
    %c0_17 = arith.constant 0 : index
    %c0_18 = arith.constant 0 : index
    %c0_19 = arith.constant 0 : index
    %21 = vector.load %arg5[%c0_16, %c0_17, %c0_18, %c0_19] : memref<3x3x24x128xbf16, #tpu.memory_space<vmem>>, vector<1x1x24x128xbf16>
    %22 = vector.shape_cast %21 : vector<1x1x24x128xbf16> to vector<24x128xbf16>
    %cst_20 = arith.constant dense<0.000000e+00> : vector<64x128xf32>
    %23 = tpu.matmul %19, %22, %cst_20 {dimension_numbers = #tpu.dot_dimension_numbers<[1], [0], [0], [1], [0, 0, 1, 1], [], []>} : vector<64x24xbf16>, vector<24x128xbf16>, vector<64x128xf32> -> vector<64x128xf32>
    %24 = arith.addf %20, %23 : vector<64x128xf32>
    %c0_21 = arith.constant 0 : index
    %c0_22 = arith.constant 0 : index
    %25 = vector.load %arg11[%c0_21, %c0_22] : memref<64x128xf32, #tpu.memory_space<vmem>>, vector<64x128xf32>
    tpu.vector_store %arg11[%c0_21, %c0_22], %24 {strides = array<i32>} : memref<64x128xf32, #tpu.memory_space<vmem>>, vector<64x128xf32>,
    %26 = vector.extract_strided_slice %5 {offsets = [1, 0, 0], sizes = [8, 10, 8], strides = [1, 1, 1]} : vector<10x10x8xbf16> to vector<8x10x8xbf16>
    %27 = vector.extract_strided_slice %26 {offsets = [0, 0, 0], sizes = [8, 8, 8], strides = [1, 1, 1]} : vector<8x10x8xbf16> to vector<8x8x8xbf16>
    %28 = vector.extract_strided_slice %26 {offsets = [0, 1, 0], sizes = [8, 8, 8], strides = [1, 1, 1]} : vector<8x10x8xbf16> to vector<8x8x8xbf16>
    %29 = vector.extract_strided_slice %26 {offsets = [0, 2, 0], sizes = [8, 8, 8], strides = [1, 1, 1]} : vector<8x10x8xbf16> to vector<8x8x8xbf16>
    %30 = tpu.concatenate %27, %28, %29 in 2 : vector<8x8x8xbf16>, vector<8x8x8xbf16>, vector<8x8x8xbf16> -> vector<8x8x24xbf16>
    %31 = vector.shape_cast %30 : vector<8x8x24xbf16> to vector<64x24xbf16>
    %c0_23 = arith.constant 0 : index
    %c0_24 = arith.constant 0 : index
    %32 = vector.load %arg11[%c0_23, %c0_24] : memref<64x128xf32, #tpu.memory_space<vmem>>, vector<64x128xf32>
    %c0_25 = arith.constant 0 : index
    %c1 = arith.constant 1 : index
    %c0_26 = arith.constant 0 : index
    %c0_27 = arith.constant 0 : index
    %33 = vector.load %arg5[%c0_25, %c1, %c0_26, %c0_27] : memref<3x3x24x128xbf16, #tpu.memory_space<vmem>>, vector<1x1x24x128xbf16>
    %34 = vector.shape_cast %33 : vector<1x1x24x128xbf16> to vector<24x128xbf16>
    %cst_28 = arith.constant dense<0.000000e+00> : vector<64x128xf32>
    %35 = tpu.matmul %31, %34, %cst_28 {dimension_numbers = #tpu.dot_dimension_numbers<[1], [0], [0], [1], [0, 0, 1, 1], [], []>} : vector<64x24xbf16>, vector<24x128xbf16>, vector<64x128xf32> -> vector<64x128xf32>
    %36 = arith.addf %32, %35 : vector<64x128xf32>
    %c0_29 = arith.constant 0 : index
    %c0_30 = arith.constant 0 : index
    %37 = vector.load %arg11[%c0_29, %c0_30] : memref<64x128xf32, #tpu.memory_space<vmem>>, vector<64x128xf32>
    tpu.vector_store %arg11[%c0_29, %c0_30], %36 {strides = array<i32>} : memref<64x128xf32, #tpu.memory_space<vmem>>, vector<64x128xf32>,
    %38 = vector.extract_strided_slice %5 {offsets = [2, 0, 0], sizes = [8, 10, 8], strides = [1, 1, 1]} : vector<10x10x8xbf16> to vector<8x10x8xbf16>
    %39 = vector.extract_strided_slice %38 {offsets = [0, 0, 0], sizes = [8, 8, 8], strides = [1, 1, 1]} : vector<8x10x8xbf16> to vector<8x8x8xbf16>
    %40 = vector.extract_strided_slice %38 {offsets = [0, 1, 0], sizes = [8, 8, 8], strides = [1, 1, 1]} : vector<8x10x8xbf16> to vector<8x8x8xbf16>
    %41 = vector.extract_strided_slice %38 {offsets = [0, 2, 0], sizes = [8, 8, 8], strides = [1, 1, 1]} : vector<8x10x8xbf16> to vector<8x8x8xbf16>
    %42 = tpu.concatenate %39, %40, %41 in 2 : vector<8x8x8xbf16>, vector<8x8x8xbf16>, vector<8x8x8xbf16> -> vector<8x8x24xbf16>
    %43 = vector.shape_cast %42 : vector<8x8x24xbf16> to vector<64x24xbf16>
    %c0_31 = arith.constant 0 : index
    %c0_32 = arith.constant 0 : index
    %44 = vector.load %arg11[%c0_31, %c0_32] : memref<64x128xf32, #tpu.memory_space<vmem>>, vector<64x128xf32>
    %c0_33 = arith.constant 0 : index
    %c2 = arith.constant 2 : index
    %c0_34 = arith.constant 0 : index
    %c0_35 = arith.constant 0 : index
    %45 = vector.load %arg5[%c0_33, %c2, %c0_34, %c0_35] : memref<3x3x24x128xbf16, #tpu.memory_space<vmem>>, vector<1x1x24x128xbf16>
    %46 = vector.shape_cast %45 : vector<1x1x24x128xbf16> to vector<24x128xbf16>
    %cst_36 = arith.constant dense<0.000000e+00> : vector<64x128xf32>
    %47 = tpu.matmul %43, %46, %cst_36 {dimension_numbers = #tpu.dot_dimension_numbers<[1], [0], [0], [1], [0, 0, 1, 1], [], []>} : vector<64x24xbf16>, vector<24x128xbf16>, vector<64x128xf32> -> vector<64x128xf32>
    %48 = arith.addf %44, %47 : vector<64x128xf32>
    %c0_37 = arith.constant 0 : index
    %c0_38 = arith.constant 0 : index
    %49 = vector.load %arg11[%c0_37, %c0_38] : memref<64x128xf32, #tpu.memory_space<vmem>>, vector<64x128xf32>
    tpu.vector_store %arg11[%c0_37, %c0_38], %48 {strides = array<i32>} : memref<64x128xf32, #tpu.memory_space<vmem>>, vector<64x128xf32>,
    %50 = vector.extract_strided_slice %8 {offsets = [0, 0, 0], sizes = [8, 10, 8], strides = [1, 1, 1]} : vector<10x10x8xbf16> to vector<8x10x8xbf16>
    %51 = vector.extract_strided_slice %50 {offsets = [0, 0, 0], sizes = [8, 8, 8], strides = [1, 1, 1]} : vector<8x10x8xbf16> to vector<8x8x8xbf16>
    %52 = vector.extract_strided_slice %50 {offsets = [0, 1, 0], sizes = [8, 8, 8], strides = [1, 1, 1]} : vector<8x10x8xbf16> to vector<8x8x8xbf16>
    %53 = vector.extract_strided_slice %50 {offsets = [0, 2, 0], sizes = [8, 8, 8], strides = [1, 1, 1]} : vector<8x10x8xbf16> to vector<8x8x8xbf16>
    %54 = tpu.concatenate %51, %52, %53 in 2 : vector<8x8x8xbf16>, vector<8x8x8xbf16>, vector<8x8x8xbf16> -> vector<8x8x24xbf16>
    %55 = vector.shape_cast %54 : vector<8x8x24xbf16> to vector<64x24xbf16>
    %c0_39 = arith.constant 0 : index
    %c0_40 = arith.constant 0 : index
    %56 = vector.load %arg11[%c0_39, %c0_40] : memref<64x128xf32, #tpu.memory_space<vmem>>, vector<64x128xf32>
    %c1_41 = arith.constant 1 : index
    %c0_42 = arith.constant 0 : index
    %c0_43 = arith.constant 0 : index
    %c0_44 = arith.constant 0 : index
    %57 = vector.load %arg5[%c1_41, %c0_42, %c0_43, %c0_44] : memref<3x3x24x128xbf16, #tpu.memory_space<vmem>>, vector<1x1x24x128xbf16>
    %58 = vector.shape_cast %57 : vector<1x1x24x128xbf16> to vector<24x128xbf16>
    %cst_45 = arith.constant dense<0.000000e+00> : vector<64x128xf32>
    %59 = tpu.matmul %55, %58, %cst_45 {dimension_numbers = #tpu.dot_dimension_numbers<[1], [0], [0], [1], [0, 0, 1, 1], [], []>} : vector<64x24xbf16>, vector<24x128xbf16>, vector<64x128xf32> -> vector<64x128xf32>
    %60 = arith.addf %56, %59 : vector<64x128xf32>
    %c0_46 = arith.constant 0 : index
    %c0_47 = arith.constant 0 : index
    %61 = vector.load %arg11[%c0_46, %c0_47] : memref<64x128xf32, #tpu.memory_space<vmem>>, vector<64x128xf32>
    tpu.vector_store %arg11[%c0_46, %c0_47], %60 {strides = array<i32>} : memref<64x128xf32, #tpu.memory_space<vmem>>, vector<64x128xf32>,
    %62 = vector.extract_strided_slice %8 {offsets = [1, 0, 0], sizes = [8, 10, 8], strides = [1, 1, 1]} : vector<10x10x8xbf16> to vector<8x10x8xbf16>
    %63 = vector.extract_strided_slice %62 {offsets = [0, 0, 0], sizes = [8, 8, 8], strides = [1, 1, 1]} : vector<8x10x8xbf16> to vector<8x8x8xbf16>
    %64 = vector.extract_strided_slice %62 {offsets = [0, 1, 0], sizes = [8, 8, 8], strides = [1, 1, 1]} : vector<8x10x8xbf16> to vector<8x8x8xbf16>
    %65 = vector.extract_strided_slice %62 {offsets = [0, 2, 0], sizes = [8, 8, 8], strides = [1, 1, 1]} : vector<8x10x8xbf16> to vector<8x8x8xbf16>
    %66 = tpu.concatenate %63, %64, %65 in 2 : vector<8x8x8xbf16>, vector<8x8x8xbf16>, vector<8x8x8xbf16> -> vector<8x8x24xbf16>
    %67 = vector.shape_cast %66 : vector<8x8x24xbf16> to vector<64x24xbf16>
    %c0_48 = arith.constant 0 : index
    %c0_49 = arith.constant 0 : index
    %68 = vector.load %arg11[%c0_48, %c0_49] : memref<64x128xf32, #tpu.memory_space<vmem>>, vector<64x128xf32>
    %c1_50 = arith.constant 1 : index
    %c1_51 = arith.constant 1 : index
    %c0_52 = arith.constant 0 : index
    %c0_53 = arith.constant 0 : index
    %69 = vector.load %arg5[%c1_50, %c1_51, %c0_52, %c0_53] : memref<3x3x24x128xbf16, #tpu.memory_space<vmem>>, vector<1x1x24x128xbf16>
    %70 = vector.shape_cast %69 : vector<1x1x24x128xbf16> to vector<24x128xbf16>
    %cst_54 = arith.constant dense<0.000000e+00> : vector<64x128xf32>
    %71 = tpu.matmul %67, %70, %cst_54 {dimension_numbers = #tpu.dot_dimension_numbers<[1], [0], [0], [1], [0, 0, 1, 1], [], []>} : vector<64x24xbf16>, vector<24x128xbf16>, vector<64x128xf32> -> vector<64x128xf32>
    %72 = arith.addf %68, %71 : vector<64x128xf32>
    %c0_55 = arith.constant 0 : index
    %c0_56 = arith.constant 0 : index
    %73 = vector.load %arg11[%c0_55, %c0_56] : memref<64x128xf32, #tpu.memory_space<vmem>>, vector<64x128xf32>
    tpu.vector_store %arg11[%c0_55, %c0_56], %72 {strides = array<i32>} : memref<64x128xf32, #tpu.memory_space<vmem>>, vector<64x128xf32>,
    %74 = vector.extract_strided_slice %8 {offsets = [2, 0, 0], sizes = [8, 10, 8], strides = [1, 1, 1]} : vector<10x10x8xbf16> to vector<8x10x8xbf16>
    %75 = vector.extract_strided_slice %74 {offsets = [0, 0, 0], sizes = [8, 8, 8], strides = [1, 1, 1]} : vector<8x10x8xbf16> to vector<8x8x8xbf16>
    %76 = vector.extract_strided_slice %74 {offsets = [0, 1, 0], sizes = [8, 8, 8], strides = [1, 1, 1]} : vector<8x10x8xbf16> to vector<8x8x8xbf16>
    %77 = vector.extract_strided_slice %74 {offsets = [0, 2, 0], sizes = [8, 8, 8], strides = [1, 1, 1]} : vector<8x10x8xbf16> to vector<8x8x8xbf16>
    %78 = tpu.concatenate %75, %76, %77 in 2 : vector<8x8x8xbf16>, vector<8x8x8xbf16>, vector<8x8x8xbf16> -> vector<8x8x24xbf16>
    %79 = vector.shape_cast %78 : vector<8x8x24xbf16> to vector<64x24xbf16>
    %c0_57 = arith.constant 0 : index
    %c0_58 = arith.constant 0 : index
    %80 = vector.load %arg11[%c0_57, %c0_58] : memref<64x128xf32, #tpu.memory_space<vmem>>, vector<64x128xf32>
    %c1_59 = arith.constant 1 : index
    %c2_60 = arith.constant 2 : index
    %c0_61 = arith.constant 0 : index
    %c0_62 = arith.constant 0 : index
    %81 = vector.load %arg5[%c1_59, %c2_60, %c0_61, %c0_62] : memref<3x3x24x128xbf16, #tpu.memory_space<vmem>>, vector<1x1x24x128xbf16>
    %82 = vector.shape_cast %81 : vector<1x1x24x128xbf16> to vector<24x128xbf16>
    %cst_63 = arith.constant dense<0.000000e+00> : vector<64x128xf32>
    %83 = tpu.matmul %79, %82, %cst_63 {dimension_numbers = #tpu.dot_dimension_numbers<[1], [0], [0], [1], [0, 0, 1, 1], [], []>} : vector<64x24xbf16>, vector<24x128xbf16>, vector<64x128xf32> -> vector<64x128xf32>
    %84 = arith.addf %80, %83 : vector<64x128xf32>
    %c0_64 = arith.constant 0 : index
    %c0_65 = arith.constant 0 : index
    %85 = vector.load %arg11[%c0_64, %c0_65] : memref<64x128xf32, #tpu.memory_space<vmem>>, vector<64x128xf32>
    tpu.vector_store %arg11[%c0_64, %c0_65], %84 {strides = array<i32>} : memref<64x128xf32, #tpu.memory_space<vmem>>, vector<64x128xf32>,
    %86 = vector.extract_strided_slice %11 {offsets = [0, 0, 0], sizes = [8, 10, 8], strides = [1, 1, 1]} : vector<10x10x8xbf16> to vector<8x10x8xbf16>
    %87 = vector.extract_strided_slice %86 {offsets = [0, 0, 0], sizes = [8, 8, 8], strides = [1, 1, 1]} : vector<8x10x8xbf16> to vector<8x8x8xbf16>
    %88 = vector.extract_strided_slice %86 {offsets = [0, 1, 0], sizes = [8, 8, 8], strides = [1, 1, 1]} : vector<8x10x8xbf16> to vector<8x8x8xbf16>
    %89 = vector.extract_strided_slice %86 {offsets = [0, 2, 0], sizes = [8, 8, 8], strides = [1, 1, 1]} : vector<8x10x8xbf16> to vector<8x8x8xbf16>
    %90 = tpu.concatenate %87, %88, %89 in 2 : vector<8x8x8xbf16>, vector<8x8x8xbf16>, vector<8x8x8xbf16> -> vector<8x8x24xbf16>
    %91 = vector.shape_cast %90 : vector<8x8x24xbf16> to vector<64x24xbf16>
    %c0_66 = arith.constant 0 : index
    %c0_67 = arith.constant 0 : index
    %92 = vector.load %arg11[%c0_66, %c0_67] : memref<64x128xf32, #tpu.memory_space<vmem>>, vector<64x128xf32>
    %c2_68 = arith.constant 2 : index
    %c0_69 = arith.constant 0 : index
    %c0_70 = arith.constant 0 : index
    %c0_71 = arith.constant 0 : index
    %93 = vector.load %arg5[%c2_68, %c0_69, %c0_70, %c0_71] : memref<3x3x24x128xbf16, #tpu.memory_space<vmem>>, vector<1x1x24x128xbf16>
    %94 = vector.shape_cast %93 : vector<1x1x24x128xbf16> to vector<24x128xbf16>
    %cst_72 = arith.constant dense<0.000000e+00> : vector<64x128xf32>
    %95 = tpu.matmul %91, %94, %cst_72 {dimension_numbers = #tpu.dot_dimension_numbers<[1], [0], [0], [1], [0, 0, 1, 1], [], []>} : vector<64x24xbf16>, vector<24x128xbf16>, vector<64x128xf32> -> vector<64x128xf32>
    %96 = arith.addf %92, %95 : vector<64x128xf32>
    %c0_73 = arith.constant 0 : index
    %c0_74 = arith.constant 0 : index
    %97 = vector.load %arg11[%c0_73, %c0_74] : memref<64x128xf32, #tpu.memory_space<vmem>>, vector<64x128xf32>
    tpu.vector_store %arg11[%c0_73, %c0_74], %96 {strides = array<i32>} : memref<64x128xf32, #tpu.memory_space<vmem>>, vector<64x128xf32>,
    %98 = vector.extract_strided_slice %11 {offsets = [1, 0, 0], sizes = [8, 10, 8], strides = [1, 1, 1]} : vector<10x10x8xbf16> to vector<8x10x8xbf16>
    %99 = vector.extract_strided_slice %98 {offsets = [0, 0, 0], sizes = [8, 8, 8], strides = [1, 1, 1]} : vector<8x10x8xbf16> to vector<8x8x8xbf16>
    %100 = vector.extract_strided_slice %98 {offsets = [0, 1, 0], sizes = [8, 8, 8], strides = [1, 1, 1]} : vector<8x10x8xbf16> to vector<8x8x8xbf16>
    %101 = vector.extract_strided_slice %98 {offsets = [0, 2, 0], sizes = [8, 8, 8], strides = [1, 1, 1]} : vector<8x10x8xbf16> to vector<8x8x8xbf16>
    %102 = tpu.concatenate %99, %100, %101 in 2 : vector<8x8x8xbf16>, vector<8x8x8xbf16>, vector<8x8x8xbf16> -> vector<8x8x24xbf16>
    %103 = vector.shape_cast %102 : vector<8x8x24xbf16> to vector<64x24xbf16>
    %c0_75 = arith.constant 0 : index
    %c0_76 = arith.constant 0 : index
    %104 = vector.load %arg11[%c0_75, %c0_76] : memref<64x128xf32, #tpu.memory_space<vmem>>, vector<64x128xf32>
    %c2_77 = arith.constant 2 : index
    %c1_78 = arith.constant 1 : index
    %c0_79 = arith.constant 0 : index
    %c0_80 = arith.constant 0 : index
    %105 = vector.load %arg5[%c2_77, %c1_78, %c0_79, %c0_80] : memref<3x3x24x128xbf16, #tpu.memory_space<vmem>>, vector<1x1x24x128xbf16>
    %106 = vector.shape_cast %105 : vector<1x1x24x128xbf16> to vector<24x128xbf16>
    %cst_81 = arith.constant dense<0.000000e+00> : vector<64x128xf32>
    %107 = tpu.matmul %103, %106, %cst_81 {dimension_numbers = #tpu.dot_dimension_numbers<[1], [0], [0], [1], [0, 0, 1, 1], [], []>} : vector<64x24xbf16>, vector<24x128xbf16>, vector<64x128xf32> -> vector<64x128xf32>
    %108 = arith.addf %104, %107 : vector<64x128xf32>
    %c0_82 = arith.constant 0 : index
    %c0_83 = arith.constant 0 : index
    %109 = vector.load %arg11[%c0_82, %c0_83] : memref<64x128xf32, #tpu.memory_space<vmem>>, vector<64x128xf32>
    tpu.vector_store %arg11[%c0_82, %c0_83], %108 {strides = array<i32>} : memref<64x128xf32, #tpu.memory_space<vmem>>, vector<64x128xf32>,
    %110 = vector.extract_strided_slice %11 {offsets = [2, 0, 0], sizes = [8, 10, 8], strides = [1, 1, 1]} : vector<10x10x8xbf16> to vector<8x10x8xbf16>
    %111 = vector.extract_strided_slice %110 {offsets = [0, 0, 0], sizes = [8, 8, 8], strides = [1, 1, 1]} : vector<8x10x8xbf16> to vector<8x8x8xbf16>
    %112 = vector.extract_strided_slice %110 {offsets = [0, 1, 0], sizes = [8, 8, 8], strides = [1, 1, 1]} : vector<8x10x8xbf16> to vector<8x8x8xbf16>
    %113 = vector.extract_strided_slice %110 {offsets = [0, 2, 0], sizes = [8, 8, 8], strides = [1, 1, 1]} : vector<8x10x8xbf16> to vector<8x8x8xbf16>
    %114 = tpu.concatenate %111, %112, %113 in 2 : vector<8x8x8xbf16>, vector<8x8x8xbf16>, vector<8x8x8xbf16> -> vector<8x8x24xbf16>
    %115 = vector.shape_cast %114 : vector<8x8x24xbf16> to vector<64x24xbf16>
    %c0_84 = arith.constant 0 : index
    %c0_85 = arith.constant 0 : index
    %116 = vector.load %arg11[%c0_84, %c0_85] : memref<64x128xf32, #tpu.memory_space<vmem>>, vector<64x128xf32>
    %c2_86 = arith.constant 2 : index
    %c2_87 = arith.constant 2 : index
    %c0_88 = arith.constant 0 : index
    %c0_89 = arith.constant 0 : index
    %117 = vector.load %arg5[%c2_86, %c2_87, %c0_88, %c0_89] : memref<3x3x24x128xbf16, #tpu.memory_space<vmem>>, vector<1x1x24x128xbf16>
    %118 = vector.shape_cast %117 : vector<1x1x24x128xbf16> to vector<24x128xbf16>
    %cst_90 = arith.constant dense<0.000000e+00> : vector<64x128xf32>
    %119 = tpu.matmul %115, %118, %cst_90 {dimension_numbers = #tpu.dot_dimension_numbers<[1], [0], [0], [1], [0, 0, 1, 1], [], []>} : vector<64x24xbf16>, vector<24x128xbf16>, vector<64x128xf32> -> vector<64x128xf32>
    %120 = arith.addf %116, %119 : vector<64x128xf32>
    %c0_91 = arith.constant 0 : index
    %c0_92 = arith.constant 0 : index
    %121 = vector.load %arg11[%c0_91, %c0_92] : memref<64x128xf32, #tpu.memory_space<vmem>>, vector<64x128xf32>
    tpu.vector_store %arg11[%c0_91, %c0_92], %120 {strides = array<i32>} : memref<64x128xf32, #tpu.memory_space<vmem>>, vector<64x128xf32>,
    %c0_93 = arith.constant 0 : index
    %c0_94 = arith.constant 0 : index
    %122 = vector.load %arg11[%c0_93, %c0_94] : memref<64x128xf32, #tpu.memory_space<vmem>>, vector<64x128xf32>
    %123 = vector.extract_strided_slice %8 {offsets = [1, 1, 0], sizes = [8, 8, 8], strides = [1, 1, 1]} : vector<10x10x8xbf16> to vector<8x8x8xbf16>
    %124 = vector.shape_cast %123 : vector<8x8x8xbf16> to vector<64x8xbf16>
    %c0_95 = arith.constant 0 : index
    %c0_96 = arith.constant 0 : index
    %125 = vector.load %arg6[%c0_95, %c0_96] : memref<8x128xbf16, #tpu.memory_space<vmem>>, vector<8x128xbf16>
    %cst_97 = arith.constant dense<0.000000e+00> : vector<64x128xf32>
    %126 = tpu.matmul %124, %125, %cst_97 {dimension_numbers = #tpu.dot_dimension_numbers<[1], [0], [0], [1], [0, 0, 1, 1], [], []>} : vector<64x8xbf16>, vector<8x128xbf16>, vector<64x128xf32> -> vector<64x128xf32>
    %c0_98 = arith.constant 0 : index
    %c0_99 = arith.constant 0 : index
    %c0_100 = arith.constant 0 : index
    %127 = vector.load %arg9[%c0_98, %c0_99, %c0_100] : memref<1x2x128xf32, #tpu.memory_space<vmem>>, vector<1x2x128xf32>
    %128 = vector.shape_cast %127 : vector<1x2x128xf32> to vector<2x128xf32>
    %cst_101 = arith.constant dense<0.000000e+00> : vector<128xf32>
    %129 = vector.multi_reduction <add>, %122, %cst_101 [0] : vector<64x128xf32> to vector<128xf32>
    %130 = vector.shape_cast %129 : vector<128xf32> to vector<1x128xf32>
    %131 = arith.mulf %122, %122 : vector<64x128xf32>
    %cst_102 = arith.constant dense<0.000000e+00> : vector<128xf32>
    %132 = vector.multi_reduction <add>, %131, %cst_102 [0] : vector<64x128xf32> to vector<128xf32>
    %133 = vector.shape_cast %132 : vector<128xf32> to vector<1x128xf32>
    %134 = tpu.concatenate %130, %133 in 0 : vector<1x128xf32>, vector<1x128xf32> -> vector<2x128xf32>
    %135 = arith.addf %128, %134 : vector<2x128xf32>
    %c0_103 = arith.constant 0 : index
    %c0_104 = arith.constant 0 : index
    %c0_105 = arith.constant 0 : index
    %136 = vector.load %arg9[%c0_103, %c0_104, %c0_105] : memref<1x2x128xf32, #tpu.memory_space<vmem>>, vector<1x2x128xf32>
    %137 = vector.shape_cast %136 : vector<1x2x128xf32> to vector<2x128xf32>
    %138 = vector.shape_cast %135 : vector<2x128xf32> to vector<1x2x128xf32>
    tpu.vector_store %arg9[%c0_103, %c0_104, %c0_105], %138 {strides = array<i32>} : memref<1x2x128xf32, #tpu.memory_space<vmem>>, vector<1x2x128xf32>,
    %c0_106 = arith.constant 0 : index
    %c0_107 = arith.constant 0 : index
    %c0_108 = arith.constant 0 : index
    %139 = vector.load %arg10[%c0_106, %c0_107, %c0_108] : memref<1x2x128xf32, #tpu.memory_space<vmem>>, vector<1x2x128xf32>
    %140 = vector.shape_cast %139 : vector<1x2x128xf32> to vector<2x128xf32>
    %cst_109 = arith.constant dense<0.000000e+00> : vector<128xf32>
    %141 = vector.multi_reduction <add>, %126, %cst_109 [0] : vector<64x128xf32> to vector<128xf32>
    %142 = vector.shape_cast %141 : vector<128xf32> to vector<1x128xf32>
    %143 = arith.mulf %126, %126 : vector<64x128xf32>
    %cst_110 = arith.constant dense<0.000000e+00> : vector<128xf32>
    %144 = vector.multi_reduction <add>, %143, %cst_110 [0] : vector<64x128xf32> to vector<128xf32>
    %145 = vector.shape_cast %144 : vector<128xf32> to vector<1x128xf32>
    %146 = tpu.concatenate %142, %145 in 0 : vector<1x128xf32>, vector<1x128xf32> -> vector<2x128xf32>
    %147 = arith.addf %140, %146 : vector<2x128xf32>
    %c0_111 = arith.constant 0 : index
    %c0_112 = arith.constant 0 : index
    %c0_113 = arith.constant 0 : index
    %148 = vector.load %arg10[%c0_111, %c0_112, %c0_113] : memref<1x2x128xf32, #tpu.memory_space<vmem>>, vector<1x2x128xf32>
    %149 = vector.shape_cast %148 : vector<1x2x128xf32> to vector<2x128xf32>
    %150 = vector.shape_cast %147 : vector<2x128xf32> to vector<1x2x128xf32>
    tpu.vector_store %arg10[%c0_111, %c0_112, %c0_113], %150 {strides = array<i32>} : memref<1x2x128xf32, #tpu.memory_space<vmem>>, vector<1x2x128xf32>,
    %151 = arith.truncf %122 : vector<64x128xf32> to vector<64x128xbf16>
    %c0_114 = arith.constant 0 : index
    %c0_115 = arith.constant 0 : index
    %c0_116 = arith.constant 0 : index
    %c0_117 = arith.constant 0 : index
    %152 = vector.load %arg7[%c0_114, %c0_115, %c0_116, %c0_117] : memref<1x1x64x128xbf16, #tpu.memory_space<vmem>>, vector<1x1x64x128xbf16>
    %153 = vector.shape_cast %152 : vector<1x1x64x128xbf16> to vector<64x128xbf16>
    %154 = vector.shape_cast %151 : vector<64x128xbf16> to vector<1x1x64x128xbf16>
    tpu.vector_store %arg7[%c0_114, %c0_115, %c0_116, %c0_117], %154 {strides = array<i32>} : memref<1x1x64x128xbf16, #tpu.memory_space<vmem>>, vector<1x1x64x128xbf16>,
    %155 = arith.truncf %126 : vector<64x128xf32> to vector<64x128xbf16>
    %c0_118 = arith.constant 0 : index
    %c0_119 = arith.constant 0 : index
    %c0_120 = arith.constant 0 : index
    %c0_121 = arith.constant 0 : index
    %156 = vector.load %arg8[%c0_118, %c0_119, %c0_120, %c0_121] : memref<1x1x64x128xbf16, #tpu.memory_space<vmem>>, vector<1x1x64x128xbf16>
    %157 = vector.shape_cast %156 : vector<1x1x64x128xbf16> to vector<64x128xbf16>
    %158 = vector.shape_cast %155 : vector<64x128xbf16> to vector<1x1x64x128xbf16>
    tpu.vector_store %arg8[%c0_118, %c0_119, %c0_120, %c0_121], %158 {strides = array<i32>} : memref<1x1x64x128xbf16, #tpu.memory_space<vmem>>, vector<1x1x64x128xbf16>,
    return
  }
  func.func @transform_0(%arg0: i32, %arg1: i32) -> (i32, i32, i32, i32) {
    %c0_i32 = arith.constant 0 : i32
    %0 = arith.addi %arg1, %c0_i32 : i32
    %c0_i32_0 = arith.constant 0 : i32
    %c0_i32_1 = arith.constant 0 : i32
    %c0_i32_2 = arith.constant 0 : i32
    return %arg0, %0, %c0_i32_0, %c0_i32_1 : i32, i32, i32, i32
  }
  func.func @transform_1(%arg0: i32, %arg1: i32) -> (i32, i32, i32, i32) {
    %c1_i32 = arith.constant 1 : i32
    %0 = arith.addi %arg1, %c1_i32 : i32
    %c0_i32 = arith.constant 0 : i32
    %c0_i32_0 = arith.constant 0 : i32
    %c0_i32_1 = arith.constant 0 : i32
    return %arg0, %0, %c0_i32, %c0_i32_0 : i32, i32, i32, i32
  }
  func.func @transform_2(%arg0: i32, %arg1: i32) -> (i32, i32, i32, i32) {
    %c2_i32 = arith.constant 2 : i32
    %0 = arith.addi %arg1, %c2_i32 : i32
    %c0_i32 = arith.constant 0 : i32
    %c0_i32_0 = arith.constant 0 : i32
    %c0_i32_1 = arith.constant 0 : i32
    return %arg0, %0, %c0_i32, %c0_i32_0 : i32, i32, i32, i32
  }
  func.func @transform_3(%arg0: i32, %arg1: i32) -> (i32, i32, i32, i32) {
    %c0_i32 = arith.constant 0 : i32
    %c0_i32_0 = arith.constant 0 : i32
    %c0_i32_1 = arith.constant 0 : i32
    %c0_i32_2 = arith.constant 0 : i32
    %c0_i32_3 = arith.constant 0 : i32
    return %c0_i32, %c0_i32_0, %c0_i32_1, %c0_i32_2 : i32, i32, i32, i32
  }
  func.func @transform_4(%arg0: i32, %arg1: i32) -> (i32, i32) {
    %c0_i32 = arith.constant 0 : i32
    %c0_i32_0 = arith.constant 0 : i32
    %c0_i32_1 = arith.constant 0 : i32
    return %c0_i32, %c0_i32_0 : i32, i32
  }
  func.func @transform_5(%arg0: i32, %arg1: i32) -> (i32, i32, i32, i32) {
    %c0_i32 = arith.constant 0 : i32
    %c0_i32_0 = arith.constant 0 : i32
    %c0_i32_1 = arith.constant 0 : i32
    return %arg0, %arg1, %c0_i32, %c0_i32_0 : i32, i32, i32, i32
  }
  func.func @transform_6(%arg0: i32, %arg1: i32) -> (i32, i32, i32, i32) {
    %c0_i32 = arith.constant 0 : i32
    %c0_i32_0 = arith.constant 0 : i32
    %c0_i32_1 = arith.constant 0 : i32
    return %arg0, %arg1, %c0_i32, %c0_i32_0 : i32, i32, i32, i32
  }
  func.func @transform_7(%arg0: i32, %arg1: i32) -> (i32, i32, i32) {
    %c0_i32 = arith.constant 0 : i32
    %c0_i32_0 = arith.constant 0 : i32
    %c0_i32_1 = arith.constant 0 : i32
    return %arg0, %c0_i32, %c0_i32_0 : i32, i32, i32
  }
  func.func @transform_8(%arg0: i32, %arg1: i32) -> (i32, i32, i32) {
    %c0_i32 = arith.constant 0 : i32
    %c0_i32_0 = arith.constant 0 : i32
    %c0_i32_1 = arith.constant 0 : i32
    return %arg0, %c0_i32, %c0_i32_0 : i32, i32, i32
  }
}

module attributes {stable_mosaic.version = 11 : i64} {
  func.func @_finalize_kernel(%arg0: i32, %arg1: i32, %arg2: memref<1x1x64x128xbf16, #tpu.memory_space<vmem>>, %arg3: memref<1x1x64x128xbf16, #tpu.memory_space<vmem>>, %arg4: memref<1x2x128xf32, #tpu.memory_space<vmem>>, %arg5: memref<1x2x128xf32, #tpu.memory_space<vmem>>, %arg6: memref<2x128xf32, #tpu.memory_space<vmem>>, %arg7: memref<2x128xf32, #tpu.memory_space<vmem>>, %arg8: memref<1x1x64x128xf32, #tpu.memory_space<vmem>>) attributes {dimension_semantics = [#tpu.dimension_semantics<parallel>, #tpu.dimension_semantics<parallel>], iteration_bounds = array<i64: 2, 8>, scalar_prefetch = 0 : i64, scratch_operands = 0 : i64, tpu.core_type = #tpu.core_type<tc>, window_params = [{transform_indices = @transform_0, window_bounds = array<i64: 1, 1, 64, 128>}, {transform_indices = @transform_1, window_bounds = array<i64: 1, 1, 64, 128>}, {transform_indices = @transform_2, window_bounds = array<i64: 1, 2, 128>}, {transform_indices = @transform_3, window_bounds = array<i64: 1, 2, 128>}, {pipeline_mode = #tpu.pipeline_mode<synchronous>, transform_indices = @transform_4, window_bounds = array<i64: 2, 128>}, {pipeline_mode = #tpu.pipeline_mode<synchronous>, transform_indices = @transform_5, window_bounds = array<i64: 2, 128>}, {transform_indices = @transform_6, window_bounds = array<i64: 1, 1, 64, 128>}]} {
    %c0 = arith.constant 0 : index
    %c0_0 = arith.constant 0 : index
    %c0_1 = arith.constant 0 : index
    %0 = vector.load %arg4[%c0, %c0_0, %c0_1] : memref<1x2x128xf32, #tpu.memory_space<vmem>>, vector<1x1x128xf32>
    %1 = vector.shape_cast %0 : vector<1x1x128xf32> to vector<1x128xf32>
    %cst = arith.constant 0.001953125 : f32
    %2 = vector.broadcast %cst : f32 to vector<1x128xf32>
    %3 = arith.mulf %1, %2 : vector<1x128xf32>
    %c0_2 = arith.constant 0 : index
    %c1 = arith.constant 1 : index
    %c0_3 = arith.constant 0 : index
    %4 = vector.load %arg4[%c0_2, %c1, %c0_3] : memref<1x2x128xf32, #tpu.memory_space<vmem>>, vector<1x1x128xf32>
    %5 = vector.shape_cast %4 : vector<1x1x128xf32> to vector<1x128xf32>
    %cst_4 = arith.constant 0.001953125 : f32
    %6 = vector.broadcast %cst_4 : f32 to vector<1x128xf32>
    %7 = arith.mulf %5, %6 : vector<1x128xf32>
    %8 = arith.mulf %3, %3 : vector<1x128xf32>
    %9 = arith.subf %7, %8 : vector<1x128xf32>
    %cst_5 = arith.constant 0.000000e+00 : f32
    %10 = vector.broadcast %cst_5 : f32 to vector<1x128xf32>
    %11 = arith.maximumf %9, %10 : vector<1x128xf32>
    %c0_6 = arith.constant 0 : index
    %c0_7 = arith.constant 0 : index
    %12 = vector.load %arg6[%c0_6, %c0_7] : memref<2x128xf32, #tpu.memory_space<vmem>>, vector<1x128xf32>
    %cst_8 = arith.constant 9.99999974E-6 : f32
    %13 = vector.broadcast %cst_8 : f32 to vector<1x128xf32>
    %14 = arith.addf %11, %13 : vector<1x128xf32>
    %15 = math.rsqrt %14 : vector<1x128xf32>
    %16 = arith.mulf %12, %15 : vector<1x128xf32>
    %c1_9 = arith.constant 1 : index
    %c0_10 = arith.constant 0 : index
    %17 = vector.load %arg6[%c1_9, %c0_10] : memref<2x128xf32, #tpu.memory_space<vmem>>, vector<1x128xf32>
    %18 = arith.mulf %3, %16 : vector<1x128xf32>
    %19 = arith.subf %17, %18 : vector<1x128xf32>
    %c0_11 = arith.constant 0 : index
    %c0_12 = arith.constant 0 : index
    %c0_13 = arith.constant 0 : index
    %20 = vector.load %arg5[%c0_11, %c0_12, %c0_13] : memref<1x2x128xf32, #tpu.memory_space<vmem>>, vector<1x1x128xf32>
    %21 = vector.shape_cast %20 : vector<1x1x128xf32> to vector<1x128xf32>
    %cst_14 = arith.constant 0.001953125 : f32
    %22 = vector.broadcast %cst_14 : f32 to vector<1x128xf32>
    %23 = arith.mulf %21, %22 : vector<1x128xf32>
    %c0_15 = arith.constant 0 : index
    %c1_16 = arith.constant 1 : index
    %c0_17 = arith.constant 0 : index
    %24 = vector.load %arg5[%c0_15, %c1_16, %c0_17] : memref<1x2x128xf32, #tpu.memory_space<vmem>>, vector<1x1x128xf32>
    %25 = vector.shape_cast %24 : vector<1x1x128xf32> to vector<1x128xf32>
    %cst_18 = arith.constant 0.001953125 : f32
    %26 = vector.broadcast %cst_18 : f32 to vector<1x128xf32>
    %27 = arith.mulf %25, %26 : vector<1x128xf32>
    %28 = arith.mulf %23, %23 : vector<1x128xf32>
    %29 = arith.subf %27, %28 : vector<1x128xf32>
    %cst_19 = arith.constant 0.000000e+00 : f32
    %30 = vector.broadcast %cst_19 : f32 to vector<1x128xf32>
    %31 = arith.maximumf %29, %30 : vector<1x128xf32>
    %c0_20 = arith.constant 0 : index
    %c0_21 = arith.constant 0 : index
    %32 = vector.load %arg7[%c0_20, %c0_21] : memref<2x128xf32, #tpu.memory_space<vmem>>, vector<1x128xf32>
    %cst_22 = arith.constant 9.99999974E-6 : f32
    %33 = vector.broadcast %cst_22 : f32 to vector<1x128xf32>
    %34 = arith.addf %31, %33 : vector<1x128xf32>
    %35 = math.rsqrt %34 : vector<1x128xf32>
    %36 = arith.mulf %32, %35 : vector<1x128xf32>
    %c1_23 = arith.constant 1 : index
    %c0_24 = arith.constant 0 : index
    %37 = vector.load %arg7[%c1_23, %c0_24] : memref<2x128xf32, #tpu.memory_space<vmem>>, vector<1x128xf32>
    %38 = arith.mulf %23, %36 : vector<1x128xf32>
    %39 = arith.subf %37, %38 : vector<1x128xf32>
    %c0_25 = arith.constant 0 : index
    %c0_26 = arith.constant 0 : index
    %c0_27 = arith.constant 0 : index
    %c0_28 = arith.constant 0 : index
    %40 = vector.load %arg2[%c0_25, %c0_26, %c0_27, %c0_28] : memref<1x1x64x128xbf16, #tpu.memory_space<vmem>>, vector<1x1x64x128xbf16>
    %41 = vector.shape_cast %40 : vector<1x1x64x128xbf16> to vector<64x128xbf16>
    %42 = arith.extf %41 : vector<64x128xbf16> to vector<64x128xf32>
    %43 = vector.broadcast %16 : vector<1x128xf32> to vector<64x128xf32>
    %44 = arith.mulf %42, %43 : vector<64x128xf32>
    %45 = vector.broadcast %19 : vector<1x128xf32> to vector<64x128xf32>
    %46 = arith.addf %44, %45 : vector<64x128xf32>
    %cst_29 = arith.constant 0.000000e+00 : f32
    %47 = vector.broadcast %cst_29 : f32 to vector<64x128xf32>
    %48 = arith.maximumf %46, %47 : vector<64x128xf32>
    %c0_30 = arith.constant 0 : index
    %c0_31 = arith.constant 0 : index
    %c0_32 = arith.constant 0 : index
    %c0_33 = arith.constant 0 : index
    %49 = vector.load %arg3[%c0_30, %c0_31, %c0_32, %c0_33] : memref<1x1x64x128xbf16, #tpu.memory_space<vmem>>, vector<1x1x64x128xbf16>
    %50 = vector.shape_cast %49 : vector<1x1x64x128xbf16> to vector<64x128xbf16>
    %51 = arith.extf %50 : vector<64x128xbf16> to vector<64x128xf32>
    %52 = vector.broadcast %36 : vector<1x128xf32> to vector<64x128xf32>
    %53 = arith.mulf %51, %52 : vector<64x128xf32>
    %54 = vector.broadcast %39 : vector<1x128xf32> to vector<64x128xf32>
    %55 = arith.addf %53, %54 : vector<64x128xf32>
    %cst_34 = arith.constant 0.000000e+00 : f32
    %56 = vector.broadcast %cst_34 : f32 to vector<64x128xf32>
    %57 = arith.maximumf %55, %56 : vector<64x128xf32>
    %58 = arith.addf %48, %57 : vector<64x128xf32>
    %c0_35 = arith.constant 0 : index
    %c0_36 = arith.constant 0 : index
    %c0_37 = arith.constant 0 : index
    %c0_38 = arith.constant 0 : index
    %59 = vector.load %arg8[%c0_35, %c0_36, %c0_37, %c0_38] : memref<1x1x64x128xf32, #tpu.memory_space<vmem>>, vector<1x1x64x128xf32>
    %60 = vector.shape_cast %59 : vector<1x1x64x128xf32> to vector<64x128xf32>
    %61 = vector.shape_cast %58 : vector<64x128xf32> to vector<1x1x64x128xf32>
    tpu.vector_store %arg8[%c0_35, %c0_36, %c0_37, %c0_38], %61 {strides = array<i32>} : memref<1x1x64x128xf32, #tpu.memory_space<vmem>>, vector<1x1x64x128xf32>,
    return
  }
  func.func @transform_0(%arg0: i32, %arg1: i32) -> (i32, i32, i32, i32) {
    %c0_i32 = arith.constant 0 : i32
    %c0_i32_0 = arith.constant 0 : i32
    %c0_i32_1 = arith.constant 0 : i32
    return %arg0, %arg1, %c0_i32, %c0_i32_0 : i32, i32, i32, i32
  }
  func.func @transform_1(%arg0: i32, %arg1: i32) -> (i32, i32, i32, i32) {
    %c0_i32 = arith.constant 0 : i32
    %c0_i32_0 = arith.constant 0 : i32
    %c0_i32_1 = arith.constant 0 : i32
    return %arg0, %arg1, %c0_i32, %c0_i32_0 : i32, i32, i32, i32
  }
  func.func @transform_2(%arg0: i32, %arg1: i32) -> (i32, i32, i32) {
    %c0_i32 = arith.constant 0 : i32
    %c0_i32_0 = arith.constant 0 : i32
    %c0_i32_1 = arith.constant 0 : i32
    return %arg0, %c0_i32, %c0_i32_0 : i32, i32, i32
  }
  func.func @transform_3(%arg0: i32, %arg1: i32) -> (i32, i32, i32) {
    %c0_i32 = arith.constant 0 : i32
    %c0_i32_0 = arith.constant 0 : i32
    %c0_i32_1 = arith.constant 0 : i32
    return %arg0, %c0_i32, %c0_i32_0 : i32, i32, i32
  }
  func.func @transform_4(%arg0: i32, %arg1: i32) -> (i32, i32) {
    %c0_i32 = arith.constant 0 : i32
    %c0_i32_0 = arith.constant 0 : i32
    %c0_i32_1 = arith.constant 0 : i32
    return %c0_i32, %c0_i32_0 : i32, i32
  }
  func.func @transform_5(%arg0: i32, %arg1: i32) -> (i32, i32) {
    %c0_i32 = arith.constant 0 : i32
    %c0_i32_0 = arith.constant 0 : i32
    %c0_i32_1 = arith.constant 0 : i32
    return %c0_i32, %c0_i32_0 : i32, i32
  }
  func.func @transform_6(%arg0: i32, %arg1: i32) -> (i32, i32, i32, i32) {
    %c0_i32 = arith.constant 0 : i32
    %c0_i32_0 = arith.constant 0 : i32
    %c0_i32_1 = arith.constant 0 : i32
    return %arg0, %arg1, %c0_i32, %c0_i32_0 : i32, i32, i32, i32
  }
}

module attributes {stable_mosaic.version = 11 : i64} {
  func.func @_conv2_kernel(%arg0: i32, %arg1: i32, %arg2: memref<1x1x64x128xbf16, #tpu.memory_space<vmem>>, %arg3: memref<1x1x64x128xbf16, #tpu.memory_space<vmem>>, %arg4: memref<1x1x64x128xbf16, #tpu.memory_space<vmem>>, %arg5: memref<1x2x128xf32, #tpu.memory_space<vmem>>, %arg6: memref<2x128xf32, #tpu.memory_space<vmem>>, %arg7: memref<3x3x384x128xbf16, #tpu.memory_space<vmem>>, %arg8: memref<1x1x64x128xbf16, #tpu.memory_space<vmem>>, %arg9: memref<1x2x128xf32, #tpu.memory_space<vmem>>, %arg10: memref<10x10x128xbf16, #tpu.memory_space<vmem>>, %arg11: memref<64x128xf32, #tpu.memory_space<vmem>>) attributes {dimension_semantics = [#tpu.dimension_semantics<parallel>, #tpu.dimension_semantics<arbitrary>], iteration_bounds = array<i64: 2, 8>, scalar_prefetch = 0 : i64, scratch_operands = 2 : i64, tpu.core_type = #tpu.core_type<tc>, window_params = [{transform_indices = @transform_0, window_bounds = array<i64: 1, 1, 64, 128>}, {transform_indices = @transform_1, window_bounds = array<i64: 1, 1, 64, 128>}, {transform_indices = @transform_2, window_bounds = array<i64: 1, 1, 64, 128>}, {transform_indices = @transform_3, window_bounds = array<i64: 1, 2, 128>}, {pipeline_mode = #tpu.pipeline_mode<synchronous>, transform_indices = @transform_4, window_bounds = array<i64: 2, 128>}, {pipeline_mode = #tpu.pipeline_mode<synchronous>, transform_indices = @transform_5, window_bounds = array<i64: 3, 3, 384, 128>}, {transform_indices = @transform_6, window_bounds = array<i64: 1, 1, 64, 128>}, {transform_indices = @transform_7, window_bounds = array<i64: 1, 2, 128>}]} {
    %c0_i32 = arith.constant 0 : i32
    %0 = arith.cmpi eq, %arg1, %c0_i32 : i32
    %1 = arith.extui %0 : i1 to i32
    %c0_i32_0 = arith.constant 0 : i32
    %2 = arith.cmpi ne, %1, %c0_i32_0 : i32
    scf.if %2 {
      %cst_155 = arith.constant 0.000000e+00 : f32
      %218 = vector.broadcast %cst_155 : f32 to vector<1x2x128xf32>
      %c0_156 = arith.constant 0 : index
      %c0_157 = arith.constant 0 : index
      %c0_158 = arith.constant 0 : index
      %219 = vector.load %arg9[%c0_156, %c0_157, %c0_158] : memref<1x2x128xf32, #tpu.memory_space<vmem>>, vector<1x2x128xf32>
      tpu.vector_store %arg9[%c0_156, %c0_157, %c0_158], %218 {strides = array<i32>} : memref<1x2x128xf32, #tpu.memory_space<vmem>>, vector<1x2x128xf32>,
    } else {
    }
    %c0 = arith.constant 0 : index
    %c0_1 = arith.constant 0 : index
    %c0_2 = arith.constant 0 : index
    %3 = vector.load %arg5[%c0, %c0_1, %c0_2] : memref<1x2x128xf32, #tpu.memory_space<vmem>>, vector<1x1x128xf32>
    %4 = vector.shape_cast %3 : vector<1x1x128xf32> to vector<1x128xf32>
    %cst = arith.constant 0.001953125 : f32
    %5 = vector.broadcast %cst : f32 to vector<1x128xf32>
    %6 = arith.mulf %4, %5 : vector<1x128xf32>
    %c0_3 = arith.constant 0 : index
    %c1 = arith.constant 1 : index
    %c0_4 = arith.constant 0 : index
    %7 = vector.load %arg5[%c0_3, %c1, %c0_4] : memref<1x2x128xf32, #tpu.memory_space<vmem>>, vector<1x1x128xf32>
    %8 = vector.shape_cast %7 : vector<1x1x128xf32> to vector<1x128xf32>
    %cst_5 = arith.constant 0.001953125 : f32
    %9 = vector.broadcast %cst_5 : f32 to vector<1x128xf32>
    %10 = arith.mulf %8, %9 : vector<1x128xf32>
    %11 = arith.mulf %6, %6 : vector<1x128xf32>
    %12 = arith.subf %10, %11 : vector<1x128xf32>
    %cst_6 = arith.constant 0.000000e+00 : f32
    %13 = vector.broadcast %cst_6 : f32 to vector<1x128xf32>
    %14 = arith.maximumf %12, %13 : vector<1x128xf32>
    %c0_7 = arith.constant 0 : index
    %c0_8 = arith.constant 0 : index
    %15 = vector.load %arg6[%c0_7, %c0_8] : memref<2x128xf32, #tpu.memory_space<vmem>>, vector<1x128xf32>
    %cst_9 = arith.constant 9.99999974E-6 : f32
    %16 = vector.broadcast %cst_9 : f32 to vector<1x128xf32>
    %17 = arith.addf %14, %16 : vector<1x128xf32>
    %18 = math.rsqrt %17 : vector<1x128xf32>
    %19 = arith.mulf %15, %18 : vector<1x128xf32>
    %c1_10 = arith.constant 1 : index
    %c0_11 = arith.constant 0 : index
    %20 = vector.load %arg6[%c1_10, %c0_11] : memref<2x128xf32, #tpu.memory_space<vmem>>, vector<1x128xf32>
    %21 = arith.mulf %6, %19 : vector<1x128xf32>
    %22 = arith.subf %20, %21 : vector<1x128xf32>
    %cst_12 = arith.constant 0.000000e+00 : f32
    %23 = vector.broadcast %cst_12 : f32 to vector<64x128xf32>
    %c0_13 = arith.constant 0 : index
    %c0_14 = arith.constant 0 : index
    %24 = vector.load %arg11[%c0_13, %c0_14] : memref<64x128xf32, #tpu.memory_space<vmem>>, vector<64x128xf32>
    tpu.vector_store %arg11[%c0_13, %c0_14], %23 {strides = array<i32>} : memref<64x128xf32, #tpu.memory_space<vmem>>, vector<64x128xf32>,
    %cst_15 = arith.constant 0.000000e+00 : bf16
    %25 = vector.broadcast %cst_15 : bf16 to vector<10x10x128xbf16>
    %c0_16 = arith.constant 0 : index
    %c0_17 = arith.constant 0 : index
    %c0_18 = arith.constant 0 : index
    %26 = vector.load %arg10[%c0_16, %c0_17, %c0_18] : memref<10x10x128xbf16, #tpu.memory_space<vmem>>, vector<10x10x128xbf16>
    tpu.vector_store %arg10[%c0_16, %c0_17, %c0_18], %25 {strides = array<i32>} : memref<10x10x128xbf16, #tpu.memory_space<vmem>>, vector<10x10x128xbf16>,
    %c1_i32 = arith.constant 1 : i32
    %27 = arith.subi %arg1, %c1_i32 : i32
    %c0_i32_19 = arith.constant 0 : i32
    %28 = arith.addi %27, %c0_i32_19 : i32
    %c0_i32_20 = arith.constant 0 : i32
    %29 = arith.cmpi sge, %28, %c0_i32_20 : i32
    %c7_i32 = arith.constant 7 : i32
    %30 = arith.cmpi sle, %28, %c7_i32 : i32
    %31 = arith.andi %29, %30 : i1
    %32 = arith.extui %31 : i1 to i32
    %33 = arith.sitofp %32 : i32 to f32
    %c0_21 = arith.constant 0 : index
    %c0_22 = arith.constant 0 : index
    %c0_23 = arith.constant 0 : index
    %c0_24 = arith.constant 0 : index
    %34 = vector.load %arg2[%c0_21, %c0_22, %c0_23, %c0_24] : memref<1x1x64x128xbf16, #tpu.memory_space<vmem>>, vector<1x1x64x128xbf16>
    %35 = vector.shape_cast %34 : vector<1x1x64x128xbf16> to vector<64x128xbf16>
    %36 = arith.extf %35 : vector<64x128xbf16> to vector<64x128xf32>
    %37 = vector.broadcast %19 : vector<1x128xf32> to vector<64x128xf32>
    %38 = arith.mulf %36, %37 : vector<64x128xf32>
    %39 = vector.broadcast %22 : vector<1x128xf32> to vector<64x128xf32>
    %40 = arith.addf %38, %39 : vector<64x128xf32>
    %cst_25 = arith.constant 0.000000e+00 : f32
    %41 = vector.broadcast %cst_25 : f32 to vector<64x128xf32>
    %42 = arith.maximumf %40, %41 : vector<64x128xf32>
    %43 = vector.broadcast %33 : f32 to vector<64x128xf32>
    %44 = arith.mulf %42, %43 : vector<64x128xf32>
    %45 = vector.shape_cast %44 : vector<64x128xf32> to vector<8x8x128xf32>
    %46 = arith.truncf %45 : vector<8x8x128xf32> to vector<8x8x128xbf16>
    %c1_26 = arith.constant 1 : index
    %c1_27 = arith.constant 1 : index
    %c0_28 = arith.constant 0 : index
    %47 = vector.load %arg10[%c1_26, %c1_27, %c0_28] : memref<10x10x128xbf16, #tpu.memory_space<vmem>>, vector<8x8x128xbf16>
    tpu.vector_store %arg10[%c1_26, %c1_27, %c0_28], %46 {strides = array<i32>} : memref<10x10x128xbf16, #tpu.memory_space<vmem>>, vector<8x8x128xbf16>,
    %c0_29 = arith.constant 0 : index
    %c0_30 = arith.constant 0 : index
    %c0_31 = arith.constant 0 : index
    %48 = vector.load %arg10[%c0_29, %c0_30, %c0_31] : memref<10x10x128xbf16, #tpu.memory_space<vmem>>, vector<10x10x128xbf16>
    %49 = vector.extract_strided_slice %48 {offsets = [0, 0, 0], sizes = [8, 10, 128], strides = [1, 1, 1]} : vector<10x10x128xbf16> to vector<8x10x128xbf16>
    %50 = vector.extract_strided_slice %49 {offsets = [0, 0, 0], sizes = [8, 8, 128], strides = [1, 1, 1]} : vector<8x10x128xbf16> to vector<8x8x128xbf16>
    %51 = vector.extract_strided_slice %49 {offsets = [0, 1, 0], sizes = [8, 8, 128], strides = [1, 1, 1]} : vector<8x10x128xbf16> to vector<8x8x128xbf16>
    %52 = vector.extract_strided_slice %49 {offsets = [0, 2, 0], sizes = [8, 8, 128], strides = [1, 1, 1]} : vector<8x10x128xbf16> to vector<8x8x128xbf16>
    %53 = tpu.concatenate %50, %51, %52 in 2 : vector<8x8x128xbf16>, vector<8x8x128xbf16>, vector<8x8x128xbf16> -> vector<8x8x384xbf16>
    %54 = vector.shape_cast %53 : vector<8x8x384xbf16> to vector<64x384xbf16>
    %c0_32 = arith.constant 0 : index
    %c0_33 = arith.constant 0 : index
    %55 = vector.load %arg11[%c0_32, %c0_33] : memref<64x128xf32, #tpu.memory_space<vmem>>, vector<64x128xf32>
    %c0_34 = arith.constant 0 : index
    %c0_35 = arith.constant 0 : index
    %c0_36 = arith.constant 0 : index
    %c0_37 = arith.constant 0 : index
    %56 = vector.load %arg7[%c0_34, %c0_35, %c0_36, %c0_37] : memref<3x3x384x128xbf16, #tpu.memory_space<vmem>>, vector<1x1x384x128xbf16>
    %57 = vector.shape_cast %56 : vector<1x1x384x128xbf16> to vector<384x128xbf16>
    %cst_38 = arith.constant dense<0.000000e+00> : vector<64x128xf32>
    %58 = tpu.matmul %54, %57, %cst_38 {dimension_numbers = #tpu.dot_dimension_numbers<[1], [0], [0], [1], [0, 0, 1, 1], [], []>} : vector<64x384xbf16>, vector<384x128xbf16>, vector<64x128xf32> -> vector<64x128xf32>
    %59 = arith.addf %55, %58 : vector<64x128xf32>
    %c0_39 = arith.constant 0 : index
    %c0_40 = arith.constant 0 : index
    %60 = vector.load %arg11[%c0_39, %c0_40] : memref<64x128xf32, #tpu.memory_space<vmem>>, vector<64x128xf32>
    tpu.vector_store %arg11[%c0_39, %c0_40], %59 {strides = array<i32>} : memref<64x128xf32, #tpu.memory_space<vmem>>, vector<64x128xf32>,
    %61 = vector.extract_strided_slice %48 {offsets = [1, 0, 0], sizes = [8, 10, 128], strides = [1, 1, 1]} : vector<10x10x128xbf16> to vector<8x10x128xbf16>
    %62 = vector.extract_strided_slice %61 {offsets = [0, 0, 0], sizes = [8, 8, 128], strides = [1, 1, 1]} : vector<8x10x128xbf16> to vector<8x8x128xbf16>
    %63 = vector.extract_strided_slice %61 {offsets = [0, 1, 0], sizes = [8, 8, 128], strides = [1, 1, 1]} : vector<8x10x128xbf16> to vector<8x8x128xbf16>
    %64 = vector.extract_strided_slice %61 {offsets = [0, 2, 0], sizes = [8, 8, 128], strides = [1, 1, 1]} : vector<8x10x128xbf16> to vector<8x8x128xbf16>
    %65 = tpu.concatenate %62, %63, %64 in 2 : vector<8x8x128xbf16>, vector<8x8x128xbf16>, vector<8x8x128xbf16> -> vector<8x8x384xbf16>
    %66 = vector.shape_cast %65 : vector<8x8x384xbf16> to vector<64x384xbf16>
    %c0_41 = arith.constant 0 : index
    %c0_42 = arith.constant 0 : index
    %67 = vector.load %arg11[%c0_41, %c0_42] : memref<64x128xf32, #tpu.memory_space<vmem>>, vector<64x128xf32>
    %c0_43 = arith.constant 0 : index
    %c1_44 = arith.constant 1 : index
    %c0_45 = arith.constant 0 : index
    %c0_46 = arith.constant 0 : index
    %68 = vector.load %arg7[%c0_43, %c1_44, %c0_45, %c0_46] : memref<3x3x384x128xbf16, #tpu.memory_space<vmem>>, vector<1x1x384x128xbf16>
    %69 = vector.shape_cast %68 : vector<1x1x384x128xbf16> to vector<384x128xbf16>
    %cst_47 = arith.constant dense<0.000000e+00> : vector<64x128xf32>
    %70 = tpu.matmul %66, %69, %cst_47 {dimension_numbers = #tpu.dot_dimension_numbers<[1], [0], [0], [1], [0, 0, 1, 1], [], []>} : vector<64x384xbf16>, vector<384x128xbf16>, vector<64x128xf32> -> vector<64x128xf32>
    %71 = arith.addf %67, %70 : vector<64x128xf32>
    %c0_48 = arith.constant 0 : index
    %c0_49 = arith.constant 0 : index
    %72 = vector.load %arg11[%c0_48, %c0_49] : memref<64x128xf32, #tpu.memory_space<vmem>>, vector<64x128xf32>
    tpu.vector_store %arg11[%c0_48, %c0_49], %71 {strides = array<i32>} : memref<64x128xf32, #tpu.memory_space<vmem>>, vector<64x128xf32>,
    %73 = vector.extract_strided_slice %48 {offsets = [2, 0, 0], sizes = [8, 10, 128], strides = [1, 1, 1]} : vector<10x10x128xbf16> to vector<8x10x128xbf16>
    %74 = vector.extract_strided_slice %73 {offsets = [0, 0, 0], sizes = [8, 8, 128], strides = [1, 1, 1]} : vector<8x10x128xbf16> to vector<8x8x128xbf16>
    %75 = vector.extract_strided_slice %73 {offsets = [0, 1, 0], sizes = [8, 8, 128], strides = [1, 1, 1]} : vector<8x10x128xbf16> to vector<8x8x128xbf16>
    %76 = vector.extract_strided_slice %73 {offsets = [0, 2, 0], sizes = [8, 8, 128], strides = [1, 1, 1]} : vector<8x10x128xbf16> to vector<8x8x128xbf16>
    %77 = tpu.concatenate %74, %75, %76 in 2 : vector<8x8x128xbf16>, vector<8x8x128xbf16>, vector<8x8x128xbf16> -> vector<8x8x384xbf16>
    %78 = vector.shape_cast %77 : vector<8x8x384xbf16> to vector<64x384xbf16>
    %c0_50 = arith.constant 0 : index
    %c0_51 = arith.constant 0 : index
    %79 = vector.load %arg11[%c0_50, %c0_51] : memref<64x128xf32, #tpu.memory_space<vmem>>, vector<64x128xf32>
    %c0_52 = arith.constant 0 : index
    %c2 = arith.constant 2 : index
    %c0_53 = arith.constant 0 : index
    %c0_54 = arith.constant 0 : index
    %80 = vector.load %arg7[%c0_52, %c2, %c0_53, %c0_54] : memref<3x3x384x128xbf16, #tpu.memory_space<vmem>>, vector<1x1x384x128xbf16>
    %81 = vector.shape_cast %80 : vector<1x1x384x128xbf16> to vector<384x128xbf16>
    %cst_55 = arith.constant dense<0.000000e+00> : vector<64x128xf32>
    %82 = tpu.matmul %78, %81, %cst_55 {dimension_numbers = #tpu.dot_dimension_numbers<[1], [0], [0], [1], [0, 0, 1, 1], [], []>} : vector<64x384xbf16>, vector<384x128xbf16>, vector<64x128xf32> -> vector<64x128xf32>
    %83 = arith.addf %79, %82 : vector<64x128xf32>
    %c0_56 = arith.constant 0 : index
    %c0_57 = arith.constant 0 : index
    %84 = vector.load %arg11[%c0_56, %c0_57] : memref<64x128xf32, #tpu.memory_space<vmem>>, vector<64x128xf32>
    tpu.vector_store %arg11[%c0_56, %c0_57], %83 {strides = array<i32>} : memref<64x128xf32, #tpu.memory_space<vmem>>, vector<64x128xf32>,
    %c1_i32_58 = arith.constant 1 : i32
    %85 = arith.subi %arg1, %c1_i32_58 : i32
    %c1_i32_59 = arith.constant 1 : i32
    %86 = arith.addi %85, %c1_i32_59 : i32
    %c0_i32_60 = arith.constant 0 : i32
    %87 = arith.cmpi sge, %86, %c0_i32_60 : i32
    %c7_i32_61 = arith.constant 7 : i32
    %88 = arith.cmpi sle, %86, %c7_i32_61 : i32
    %89 = arith.andi %87, %88 : i1
    %90 = arith.extui %89 : i1 to i32
    %91 = arith.sitofp %90 : i32 to f32
    %c0_62 = arith.constant 0 : index
    %c0_63 = arith.constant 0 : index
    %c0_64 = arith.constant 0 : index
    %c0_65 = arith.constant 0 : index
    %92 = vector.load %arg3[%c0_62, %c0_63, %c0_64, %c0_65] : memref<1x1x64x128xbf16, #tpu.memory_space<vmem>>, vector<1x1x64x128xbf16>
    %93 = vector.shape_cast %92 : vector<1x1x64x128xbf16> to vector<64x128xbf16>
    %94 = arith.extf %93 : vector<64x128xbf16> to vector<64x128xf32>
    %95 = vector.broadcast %19 : vector<1x128xf32> to vector<64x128xf32>
    %96 = arith.mulf %94, %95 : vector<64x128xf32>
    %97 = vector.broadcast %22 : vector<1x128xf32> to vector<64x128xf32>
    %98 = arith.addf %96, %97 : vector<64x128xf32>
    %cst_66 = arith.constant 0.000000e+00 : f32
    %99 = vector.broadcast %cst_66 : f32 to vector<64x128xf32>
    %100 = arith.maximumf %98, %99 : vector<64x128xf32>
    %101 = vector.broadcast %91 : f32 to vector<64x128xf32>
    %102 = arith.mulf %100, %101 : vector<64x128xf32>
    %103 = vector.shape_cast %102 : vector<64x128xf32> to vector<8x8x128xf32>
    %104 = arith.truncf %103 : vector<8x8x128xf32> to vector<8x8x128xbf16>
    %c1_67 = arith.constant 1 : index
    %c1_68 = arith.constant 1 : index
    %c0_69 = arith.constant 0 : index
    %105 = vector.load %arg10[%c1_67, %c1_68, %c0_69] : memref<10x10x128xbf16, #tpu.memory_space<vmem>>, vector<8x8x128xbf16>
    tpu.vector_store %arg10[%c1_67, %c1_68, %c0_69], %104 {strides = array<i32>} : memref<10x10x128xbf16, #tpu.memory_space<vmem>>, vector<8x8x128xbf16>,
    %c0_70 = arith.constant 0 : index
    %c0_71 = arith.constant 0 : index
    %c0_72 = arith.constant 0 : index
    %106 = vector.load %arg10[%c0_70, %c0_71, %c0_72] : memref<10x10x128xbf16, #tpu.memory_space<vmem>>, vector<10x10x128xbf16>
    %107 = vector.extract_strided_slice %106 {offsets = [0, 0, 0], sizes = [8, 10, 128], strides = [1, 1, 1]} : vector<10x10x128xbf16> to vector<8x10x128xbf16>
    %108 = vector.extract_strided_slice %107 {offsets = [0, 0, 0], sizes = [8, 8, 128], strides = [1, 1, 1]} : vector<8x10x128xbf16> to vector<8x8x128xbf16>
    %109 = vector.extract_strided_slice %107 {offsets = [0, 1, 0], sizes = [8, 8, 128], strides = [1, 1, 1]} : vector<8x10x128xbf16> to vector<8x8x128xbf16>
    %110 = vector.extract_strided_slice %107 {offsets = [0, 2, 0], sizes = [8, 8, 128], strides = [1, 1, 1]} : vector<8x10x128xbf16> to vector<8x8x128xbf16>
    %111 = tpu.concatenate %108, %109, %110 in 2 : vector<8x8x128xbf16>, vector<8x8x128xbf16>, vector<8x8x128xbf16> -> vector<8x8x384xbf16>
    %112 = vector.shape_cast %111 : vector<8x8x384xbf16> to vector<64x384xbf16>
    %c0_73 = arith.constant 0 : index
    %c0_74 = arith.constant 0 : index
    %113 = vector.load %arg11[%c0_73, %c0_74] : memref<64x128xf32, #tpu.memory_space<vmem>>, vector<64x128xf32>
    %c1_75 = arith.constant 1 : index
    %c0_76 = arith.constant 0 : index
    %c0_77 = arith.constant 0 : index
    %c0_78 = arith.constant 0 : index
    %114 = vector.load %arg7[%c1_75, %c0_76, %c0_77, %c0_78] : memref<3x3x384x128xbf16, #tpu.memory_space<vmem>>, vector<1x1x384x128xbf16>
    %115 = vector.shape_cast %114 : vector<1x1x384x128xbf16> to vector<384x128xbf16>
    %cst_79 = arith.constant dense<0.000000e+00> : vector<64x128xf32>
    %116 = tpu.matmul %112, %115, %cst_79 {dimension_numbers = #tpu.dot_dimension_numbers<[1], [0], [0], [1], [0, 0, 1, 1], [], []>} : vector<64x384xbf16>, vector<384x128xbf16>, vector<64x128xf32> -> vector<64x128xf32>
    %117 = arith.addf %113, %116 : vector<64x128xf32>
    %c0_80 = arith.constant 0 : index
    %c0_81 = arith.constant 0 : index
    %118 = vector.load %arg11[%c0_80, %c0_81] : memref<64x128xf32, #tpu.memory_space<vmem>>, vector<64x128xf32>
    tpu.vector_store %arg11[%c0_80, %c0_81], %117 {strides = array<i32>} : memref<64x128xf32, #tpu.memory_space<vmem>>, vector<64x128xf32>,
    %119 = vector.extract_strided_slice %106 {offsets = [1, 0, 0], sizes = [8, 10, 128], strides = [1, 1, 1]} : vector<10x10x128xbf16> to vector<8x10x128xbf16>
    %120 = vector.extract_strided_slice %119 {offsets = [0, 0, 0], sizes = [8, 8, 128], strides = [1, 1, 1]} : vector<8x10x128xbf16> to vector<8x8x128xbf16>
    %121 = vector.extract_strided_slice %119 {offsets = [0, 1, 0], sizes = [8, 8, 128], strides = [1, 1, 1]} : vector<8x10x128xbf16> to vector<8x8x128xbf16>
    %122 = vector.extract_strided_slice %119 {offsets = [0, 2, 0], sizes = [8, 8, 128], strides = [1, 1, 1]} : vector<8x10x128xbf16> to vector<8x8x128xbf16>
    %123 = tpu.concatenate %120, %121, %122 in 2 : vector<8x8x128xbf16>, vector<8x8x128xbf16>, vector<8x8x128xbf16> -> vector<8x8x384xbf16>
    %124 = vector.shape_cast %123 : vector<8x8x384xbf16> to vector<64x384xbf16>
    %c0_82 = arith.constant 0 : index
    %c0_83 = arith.constant 0 : index
    %125 = vector.load %arg11[%c0_82, %c0_83] : memref<64x128xf32, #tpu.memory_space<vmem>>, vector<64x128xf32>
    %c1_84 = arith.constant 1 : index
    %c1_85 = arith.constant 1 : index
    %c0_86 = arith.constant 0 : index
    %c0_87 = arith.constant 0 : index
    %126 = vector.load %arg7[%c1_84, %c1_85, %c0_86, %c0_87] : memref<3x3x384x128xbf16, #tpu.memory_space<vmem>>, vector<1x1x384x128xbf16>
    %127 = vector.shape_cast %126 : vector<1x1x384x128xbf16> to vector<384x128xbf16>
    %cst_88 = arith.constant dense<0.000000e+00> : vector<64x128xf32>
    %128 = tpu.matmul %124, %127, %cst_88 {dimension_numbers = #tpu.dot_dimension_numbers<[1], [0], [0], [1], [0, 0, 1, 1], [], []>} : vector<64x384xbf16>, vector<384x128xbf16>, vector<64x128xf32> -> vector<64x128xf32>
    %129 = arith.addf %125, %128 : vector<64x128xf32>
    %c0_89 = arith.constant 0 : index
    %c0_90 = arith.constant 0 : index
    %130 = vector.load %arg11[%c0_89, %c0_90] : memref<64x128xf32, #tpu.memory_space<vmem>>, vector<64x128xf32>
    tpu.vector_store %arg11[%c0_89, %c0_90], %129 {strides = array<i32>} : memref<64x128xf32, #tpu.memory_space<vmem>>, vector<64x128xf32>,
    %131 = vector.extract_strided_slice %106 {offsets = [2, 0, 0], sizes = [8, 10, 128], strides = [1, 1, 1]} : vector<10x10x128xbf16> to vector<8x10x128xbf16>
    %132 = vector.extract_strided_slice %131 {offsets = [0, 0, 0], sizes = [8, 8, 128], strides = [1, 1, 1]} : vector<8x10x128xbf16> to vector<8x8x128xbf16>
    %133 = vector.extract_strided_slice %131 {offsets = [0, 1, 0], sizes = [8, 8, 128], strides = [1, 1, 1]} : vector<8x10x128xbf16> to vector<8x8x128xbf16>
    %134 = vector.extract_strided_slice %131 {offsets = [0, 2, 0], sizes = [8, 8, 128], strides = [1, 1, 1]} : vector<8x10x128xbf16> to vector<8x8x128xbf16>
    %135 = tpu.concatenate %132, %133, %134 in 2 : vector<8x8x128xbf16>, vector<8x8x128xbf16>, vector<8x8x128xbf16> -> vector<8x8x384xbf16>
    %136 = vector.shape_cast %135 : vector<8x8x384xbf16> to vector<64x384xbf16>
    %c0_91 = arith.constant 0 : index
    %c0_92 = arith.constant 0 : index
    %137 = vector.load %arg11[%c0_91, %c0_92] : memref<64x128xf32, #tpu.memory_space<vmem>>, vector<64x128xf32>
    %c1_93 = arith.constant 1 : index
    %c2_94 = arith.constant 2 : index
    %c0_95 = arith.constant 0 : index
    %c0_96 = arith.constant 0 : index
    %138 = vector.load %arg7[%c1_93, %c2_94, %c0_95, %c0_96] : memref<3x3x384x128xbf16, #tpu.memory_space<vmem>>, vector<1x1x384x128xbf16>
    %139 = vector.shape_cast %138 : vector<1x1x384x128xbf16> to vector<384x128xbf16>
    %cst_97 = arith.constant dense<0.000000e+00> : vector<64x128xf32>
    %140 = tpu.matmul %136, %139, %cst_97 {dimension_numbers = #tpu.dot_dimension_numbers<[1], [0], [0], [1], [0, 0, 1, 1], [], []>} : vector<64x384xbf16>, vector<384x128xbf16>, vector<64x128xf32> -> vector<64x128xf32>
    %141 = arith.addf %137, %140 : vector<64x128xf32>
    %c0_98 = arith.constant 0 : index
    %c0_99 = arith.constant 0 : index
    %142 = vector.load %arg11[%c0_98, %c0_99] : memref<64x128xf32, #tpu.memory_space<vmem>>, vector<64x128xf32>
    tpu.vector_store %arg11[%c0_98, %c0_99], %141 {strides = array<i32>} : memref<64x128xf32, #tpu.memory_space<vmem>>, vector<64x128xf32>,
    %c1_i32_100 = arith.constant 1 : i32
    %143 = arith.subi %arg1, %c1_i32_100 : i32
    %c2_i32 = arith.constant 2 : i32
    %144 = arith.addi %143, %c2_i32 : i32
    %c0_i32_101 = arith.constant 0 : i32
    %145 = arith.cmpi sge, %144, %c0_i32_101 : i32
    %c7_i32_102 = arith.constant 7 : i32
    %146 = arith.cmpi sle, %144, %c7_i32_102 : i32
    %147 = arith.andi %145, %146 : i1
    %148 = arith.extui %147 : i1 to i32
    %149 = arith.sitofp %148 : i32 to f32
    %c0_103 = arith.constant 0 : index
    %c0_104 = arith.constant 0 : index
    %c0_105 = arith.constant 0 : index
    %c0_106 = arith.constant 0 : index
    %150 = vector.load %arg4[%c0_103, %c0_104, %c0_105, %c0_106] : memref<1x1x64x128xbf16, #tpu.memory_space<vmem>>, vector<1x1x64x128xbf16>
    %151 = vector.shape_cast %150 : vector<1x1x64x128xbf16> to vector<64x128xbf16>
    %152 = arith.extf %151 : vector<64x128xbf16> to vector<64x128xf32>
    %153 = vector.broadcast %19 : vector<1x128xf32> to vector<64x128xf32>
    %154 = arith.mulf %152, %153 : vector<64x128xf32>
    %155 = vector.broadcast %22 : vector<1x128xf32> to vector<64x128xf32>
    %156 = arith.addf %154, %155 : vector<64x128xf32>
    %cst_107 = arith.constant 0.000000e+00 : f32
    %157 = vector.broadcast %cst_107 : f32 to vector<64x128xf32>
    %158 = arith.maximumf %156, %157 : vector<64x128xf32>
    %159 = vector.broadcast %149 : f32 to vector<64x128xf32>
    %160 = arith.mulf %158, %159 : vector<64x128xf32>
    %161 = vector.shape_cast %160 : vector<64x128xf32> to vector<8x8x128xf32>
    %162 = arith.truncf %161 : vector<8x8x128xf32> to vector<8x8x128xbf16>
    %c1_108 = arith.constant 1 : index
    %c1_109 = arith.constant 1 : index
    %c0_110 = arith.constant 0 : index
    %163 = vector.load %arg10[%c1_108, %c1_109, %c0_110] : memref<10x10x128xbf16, #tpu.memory_space<vmem>>, vector<8x8x128xbf16>
    tpu.vector_store %arg10[%c1_108, %c1_109, %c0_110], %162 {strides = array<i32>} : memref<10x10x128xbf16, #tpu.memory_space<vmem>>, vector<8x8x128xbf16>,
    %c0_111 = arith.constant 0 : index
    %c0_112 = arith.constant 0 : index
    %c0_113 = arith.constant 0 : index
    %164 = vector.load %arg10[%c0_111, %c0_112, %c0_113] : memref<10x10x128xbf16, #tpu.memory_space<vmem>>, vector<10x10x128xbf16>
    %165 = vector.extract_strided_slice %164 {offsets = [0, 0, 0], sizes = [8, 10, 128], strides = [1, 1, 1]} : vector<10x10x128xbf16> to vector<8x10x128xbf16>
    %166 = vector.extract_strided_slice %165 {offsets = [0, 0, 0], sizes = [8, 8, 128], strides = [1, 1, 1]} : vector<8x10x128xbf16> to vector<8x8x128xbf16>
    %167 = vector.extract_strided_slice %165 {offsets = [0, 1, 0], sizes = [8, 8, 128], strides = [1, 1, 1]} : vector<8x10x128xbf16> to vector<8x8x128xbf16>
    %168 = vector.extract_strided_slice %165 {offsets = [0, 2, 0], sizes = [8, 8, 128], strides = [1, 1, 1]} : vector<8x10x128xbf16> to vector<8x8x128xbf16>
    %169 = tpu.concatenate %166, %167, %168 in 2 : vector<8x8x128xbf16>, vector<8x8x128xbf16>, vector<8x8x128xbf16> -> vector<8x8x384xbf16>
    %170 = vector.shape_cast %169 : vector<8x8x384xbf16> to vector<64x384xbf16>
    %c0_114 = arith.constant 0 : index
    %c0_115 = arith.constant 0 : index
    %171 = vector.load %arg11[%c0_114, %c0_115] : memref<64x128xf32, #tpu.memory_space<vmem>>, vector<64x128xf32>
    %c2_116 = arith.constant 2 : index
    %c0_117 = arith.constant 0 : index
    %c0_118 = arith.constant 0 : index
    %c0_119 = arith.constant 0 : index
    %172 = vector.load %arg7[%c2_116, %c0_117, %c0_118, %c0_119] : memref<3x3x384x128xbf16, #tpu.memory_space<vmem>>, vector<1x1x384x128xbf16>
    %173 = vector.shape_cast %172 : vector<1x1x384x128xbf16> to vector<384x128xbf16>
    %cst_120 = arith.constant dense<0.000000e+00> : vector<64x128xf32>
    %174 = tpu.matmul %170, %173, %cst_120 {dimension_numbers = #tpu.dot_dimension_numbers<[1], [0], [0], [1], [0, 0, 1, 1], [], []>} : vector<64x384xbf16>, vector<384x128xbf16>, vector<64x128xf32> -> vector<64x128xf32>
    %175 = arith.addf %171, %174 : vector<64x128xf32>
    %c0_121 = arith.constant 0 : index
    %c0_122 = arith.constant 0 : index
    %176 = vector.load %arg11[%c0_121, %c0_122] : memref<64x128xf32, #tpu.memory_space<vmem>>, vector<64x128xf32>
    tpu.vector_store %arg11[%c0_121, %c0_122], %175 {strides = array<i32>} : memref<64x128xf32, #tpu.memory_space<vmem>>, vector<64x128xf32>,
    %177 = vector.extract_strided_slice %164 {offsets = [1, 0, 0], sizes = [8, 10, 128], strides = [1, 1, 1]} : vector<10x10x128xbf16> to vector<8x10x128xbf16>
    %178 = vector.extract_strided_slice %177 {offsets = [0, 0, 0], sizes = [8, 8, 128], strides = [1, 1, 1]} : vector<8x10x128xbf16> to vector<8x8x128xbf16>
    %179 = vector.extract_strided_slice %177 {offsets = [0, 1, 0], sizes = [8, 8, 128], strides = [1, 1, 1]} : vector<8x10x128xbf16> to vector<8x8x128xbf16>
    %180 = vector.extract_strided_slice %177 {offsets = [0, 2, 0], sizes = [8, 8, 128], strides = [1, 1, 1]} : vector<8x10x128xbf16> to vector<8x8x128xbf16>
    %181 = tpu.concatenate %178, %179, %180 in 2 : vector<8x8x128xbf16>, vector<8x8x128xbf16>, vector<8x8x128xbf16> -> vector<8x8x384xbf16>
    %182 = vector.shape_cast %181 : vector<8x8x384xbf16> to vector<64x384xbf16>
    %c0_123 = arith.constant 0 : index
    %c0_124 = arith.constant 0 : index
    %183 = vector.load %arg11[%c0_123, %c0_124] : memref<64x128xf32, #tpu.memory_space<vmem>>, vector<64x128xf32>
    %c2_125 = arith.constant 2 : index
    %c1_126 = arith.constant 1 : index
    %c0_127 = arith.constant 0 : index
    %c0_128 = arith.constant 0 : index
    %184 = vector.load %arg7[%c2_125, %c1_126, %c0_127, %c0_128] : memref<3x3x384x128xbf16, #tpu.memory_space<vmem>>, vector<1x1x384x128xbf16>
    %185 = vector.shape_cast %184 : vector<1x1x384x128xbf16> to vector<384x128xbf16>
    %cst_129 = arith.constant dense<0.000000e+00> : vector<64x128xf32>
    %186 = tpu.matmul %182, %185, %cst_129 {dimension_numbers = #tpu.dot_dimension_numbers<[1], [0], [0], [1], [0, 0, 1, 1], [], []>} : vector<64x384xbf16>, vector<384x128xbf16>, vector<64x128xf32> -> vector<64x128xf32>
    %187 = arith.addf %183, %186 : vector<64x128xf32>
    %c0_130 = arith.constant 0 : index
    %c0_131 = arith.constant 0 : index
    %188 = vector.load %arg11[%c0_130, %c0_131] : memref<64x128xf32, #tpu.memory_space<vmem>>, vector<64x128xf32>
    tpu.vector_store %arg11[%c0_130, %c0_131], %187 {strides = array<i32>} : memref<64x128xf32, #tpu.memory_space<vmem>>, vector<64x128xf32>,
    %189 = vector.extract_strided_slice %164 {offsets = [2, 0, 0], sizes = [8, 10, 128], strides = [1, 1, 1]} : vector<10x10x128xbf16> to vector<8x10x128xbf16>
    %190 = vector.extract_strided_slice %189 {offsets = [0, 0, 0], sizes = [8, 8, 128], strides = [1, 1, 1]} : vector<8x10x128xbf16> to vector<8x8x128xbf16>
    %191 = vector.extract_strided_slice %189 {offsets = [0, 1, 0], sizes = [8, 8, 128], strides = [1, 1, 1]} : vector<8x10x128xbf16> to vector<8x8x128xbf16>
    %192 = vector.extract_strided_slice %189 {offsets = [0, 2, 0], sizes = [8, 8, 128], strides = [1, 1, 1]} : vector<8x10x128xbf16> to vector<8x8x128xbf16>
    %193 = tpu.concatenate %190, %191, %192 in 2 : vector<8x8x128xbf16>, vector<8x8x128xbf16>, vector<8x8x128xbf16> -> vector<8x8x384xbf16>
    %194 = vector.shape_cast %193 : vector<8x8x384xbf16> to vector<64x384xbf16>
    %c0_132 = arith.constant 0 : index
    %c0_133 = arith.constant 0 : index
    %195 = vector.load %arg11[%c0_132, %c0_133] : memref<64x128xf32, #tpu.memory_space<vmem>>, vector<64x128xf32>
    %c2_134 = arith.constant 2 : index
    %c2_135 = arith.constant 2 : index
    %c0_136 = arith.constant 0 : index
    %c0_137 = arith.constant 0 : index
    %196 = vector.load %arg7[%c2_134, %c2_135, %c0_136, %c0_137] : memref<3x3x384x128xbf16, #tpu.memory_space<vmem>>, vector<1x1x384x128xbf16>
    %197 = vector.shape_cast %196 : vector<1x1x384x128xbf16> to vector<384x128xbf16>
    %cst_138 = arith.constant dense<0.000000e+00> : vector<64x128xf32>
    %198 = tpu.matmul %194, %197, %cst_138 {dimension_numbers = #tpu.dot_dimension_numbers<[1], [0], [0], [1], [0, 0, 1, 1], [], []>} : vector<64x384xbf16>, vector<384x128xbf16>, vector<64x128xf32> -> vector<64x128xf32>
    %199 = arith.addf %195, %198 : vector<64x128xf32>
    %c0_139 = arith.constant 0 : index
    %c0_140 = arith.constant 0 : index
    %200 = vector.load %arg11[%c0_139, %c0_140] : memref<64x128xf32, #tpu.memory_space<vmem>>, vector<64x128xf32>
    tpu.vector_store %arg11[%c0_139, %c0_140], %199 {strides = array<i32>} : memref<64x128xf32, #tpu.memory_space<vmem>>, vector<64x128xf32>,
    %c0_141 = arith.constant 0 : index
    %c0_142 = arith.constant 0 : index
    %201 = vector.load %arg11[%c0_141, %c0_142] : memref<64x128xf32, #tpu.memory_space<vmem>>, vector<64x128xf32>
    %c0_143 = arith.constant 0 : index
    %c0_144 = arith.constant 0 : index
    %c0_145 = arith.constant 0 : index
    %202 = vector.load %arg9[%c0_143, %c0_144, %c0_145] : memref<1x2x128xf32, #tpu.memory_space<vmem>>, vector<1x2x128xf32>
    %203 = vector.shape_cast %202 : vector<1x2x128xf32> to vector<2x128xf32>
    %cst_146 = arith.constant dense<0.000000e+00> : vector<128xf32>
    %204 = vector.multi_reduction <add>, %201, %cst_146 [0] : vector<64x128xf32> to vector<128xf32>
    %205 = vector.shape_cast %204 : vector<128xf32> to vector<1x128xf32>
    %206 = arith.mulf %201, %201 : vector<64x128xf32>
    %cst_147 = arith.constant dense<0.000000e+00> : vector<128xf32>
    %207 = vector.multi_reduction <add>, %206, %cst_147 [0] : vector<64x128xf32> to vector<128xf32>
    %208 = vector.shape_cast %207 : vector<128xf32> to vector<1x128xf32>
    %209 = tpu.concatenate %205, %208 in 0 : vector<1x128xf32>, vector<1x128xf32> -> vector<2x128xf32>
    %210 = arith.addf %203, %209 : vector<2x128xf32>
    %c0_148 = arith.constant 0 : index
    %c0_149 = arith.constant 0 : index
    %c0_150 = arith.constant 0 : index
    %211 = vector.load %arg9[%c0_148, %c0_149, %c0_150] : memref<1x2x128xf32, #tpu.memory_space<vmem>>, vector<1x2x128xf32>
    %212 = vector.shape_cast %211 : vector<1x2x128xf32> to vector<2x128xf32>
    %213 = vector.shape_cast %210 : vector<2x128xf32> to vector<1x2x128xf32>
    tpu.vector_store %arg9[%c0_148, %c0_149, %c0_150], %213 {strides = array<i32>} : memref<1x2x128xf32, #tpu.memory_space<vmem>>, vector<1x2x128xf32>,
    %214 = arith.truncf %201 : vector<64x128xf32> to vector<64x128xbf16>
    %c0_151 = arith.constant 0 : index
    %c0_152 = arith.constant 0 : index
    %c0_153 = arith.constant 0 : index
    %c0_154 = arith.constant 0 : index
    %215 = vector.load %arg8[%c0_151, %c0_152, %c0_153, %c0_154] : memref<1x1x64x128xbf16, #tpu.memory_space<vmem>>, vector<1x1x64x128xbf16>
    %216 = vector.shape_cast %215 : vector<1x1x64x128xbf16> to vector<64x128xbf16>
    %217 = vector.shape_cast %214 : vector<64x128xbf16> to vector<1x1x64x128xbf16>
    tpu.vector_store %arg8[%c0_151, %c0_152, %c0_153, %c0_154], %217 {strides = array<i32>} : memref<1x1x64x128xbf16, #tpu.memory_space<vmem>>, vector<1x1x64x128xbf16>,
    return
  }
  func.func @transform_0(%arg0: i32, %arg1: i32) -> (i32, i32, i32, i32) {
    %c1_i32 = arith.constant 1 : i32
    %0 = arith.subi %arg1, %c1_i32 : i32
    %c0_i32 = arith.constant 0 : i32
    %1 = arith.addi %0, %c0_i32 : i32
    %c7_i32 = arith.constant 7 : i32
    %2 = arith.minsi %1, %c7_i32 : i32
    %c0_i32_0 = arith.constant 0 : i32
    %3 = arith.maxsi %2, %c0_i32_0 : i32
    %c0_i32_1 = arith.constant 0 : i32
    %c0_i32_2 = arith.constant 0 : i32
    %c0_i32_3 = arith.constant 0 : i32
    return %arg0, %3, %c0_i32_1, %c0_i32_2 : i32, i32, i32, i32
  }
  func.func @transform_1(%arg0: i32, %arg1: i32) -> (i32, i32, i32, i32) {
    %c1_i32 = arith.constant 1 : i32
    %0 = arith.subi %arg1, %c1_i32 : i32
    %c1_i32_0 = arith.constant 1 : i32
    %1 = arith.addi %0, %c1_i32_0 : i32
    %c7_i32 = arith.constant 7 : i32
    %2 = arith.minsi %1, %c7_i32 : i32
    %c0_i32 = arith.constant 0 : i32
    %3 = arith.maxsi %2, %c0_i32 : i32
    %c0_i32_1 = arith.constant 0 : i32
    %c0_i32_2 = arith.constant 0 : i32
    %c0_i32_3 = arith.constant 0 : i32
    return %arg0, %3, %c0_i32_1, %c0_i32_2 : i32, i32, i32, i32
  }
  func.func @transform_2(%arg0: i32, %arg1: i32) -> (i32, i32, i32, i32) {
    %c1_i32 = arith.constant 1 : i32
    %0 = arith.subi %arg1, %c1_i32 : i32
    %c2_i32 = arith.constant 2 : i32
    %1 = arith.addi %0, %c2_i32 : i32
    %c7_i32 = arith.constant 7 : i32
    %2 = arith.minsi %1, %c7_i32 : i32
    %c0_i32 = arith.constant 0 : i32
    %3 = arith.maxsi %2, %c0_i32 : i32
    %c0_i32_0 = arith.constant 0 : i32
    %c0_i32_1 = arith.constant 0 : i32
    %c0_i32_2 = arith.constant 0 : i32
    return %arg0, %3, %c0_i32_0, %c0_i32_1 : i32, i32, i32, i32
  }
  func.func @transform_3(%arg0: i32, %arg1: i32) -> (i32, i32, i32) {
    %c0_i32 = arith.constant 0 : i32
    %c0_i32_0 = arith.constant 0 : i32
    %c0_i32_1 = arith.constant 0 : i32
    return %arg0, %c0_i32, %c0_i32_0 : i32, i32, i32
  }
  func.func @transform_4(%arg0: i32, %arg1: i32) -> (i32, i32) {
    %c0_i32 = arith.constant 0 : i32
    %c0_i32_0 = arith.constant 0 : i32
    %c0_i32_1 = arith.constant 0 : i32
    return %c0_i32, %c0_i32_0 : i32, i32
  }
  func.func @transform_5(%arg0: i32, %arg1: i32) -> (i32, i32, i32, i32) {
    %c0_i32 = arith.constant 0 : i32
    %c0_i32_0 = arith.constant 0 : i32
    %c0_i32_1 = arith.constant 0 : i32
    %c0_i32_2 = arith.constant 0 : i32
    %c0_i32_3 = arith.constant 0 : i32
    return %c0_i32, %c0_i32_0, %c0_i32_1, %c0_i32_2 : i32, i32, i32, i32
  }
  func.func @transform_6(%arg0: i32, %arg1: i32) -> (i32, i32, i32, i32) {
    %c0_i32 = arith.constant 0 : i32
    %c0_i32_0 = arith.constant 0 : i32
    %c0_i32_1 = arith.constant 0 : i32
    return %arg0, %arg1, %c0_i32, %c0_i32_0 : i32, i32, i32, i32
  }
  func.func @transform_7(%arg0: i32, %arg1: i32) -> (i32, i32, i32) {
    %c0_i32 = arith.constant 0 : i32
    %c0_i32_0 = arith.constant 0 : i32
    %c0_i32_1 = arith.constant 0 : i32
    return %arg0, %c0_i32, %c0_i32_0 : i32, i32, i32
  }
}

</mosaic_0001>

<bundles_post_ra>
// kernel: resblock_pallas.5
= control target key start
LH: loop header
LB: loop body
LE: loop exit
PB: predicated region body
PF: predicated region fallthrough
CT: control target
= control target key end

     0   :  { %s811_s21 = smov 0   ;;  %s813_s22 = smov 0   ;;  %s905_s0 = inlined_call_operand.vmem [shape: bf16[2,8,64,128], index: 0, kind: input, shape index: {}]   ;;  %s906_s1 = inlined_call_operand.vmem [shape: bf16[2,8,64,128], index: 1, kind: input, shape index: {}]   ;;  %s907_s2 = inlined_call_operand.vmem [shape: f32[2,2,128], index: 2, kind: input, shape index: {}]   ;;  %s908_s3 = inlined_call_operand.vmem [shape: f32[2,2,128], index: 3, kind: input, shape index: {}]   ;;  %s909_s4 = inlined_call_operand.vmem [shape: f32[2,128], index: 4, kind: input, shape index: {}]   ;;  %s910_s5 = inlined_call_operand.vmem [shape: f32[2,128], index: 5, kind: input, shape index: {}]   ;;  %s911_s6 = inlined_call_operand.vmem [shape: f32[2,8,64,128], index: 6, kind: output, shape index: {}]  }
   0x1   :  { %s815_s23 = smov 0   ;;  %s817_s24 = smov 0  }
   0x2   :  { %s819_s25 = smov 0  }
   0x3 LB: > { %s25_s26 = sadd.s32 1, %s766_s23  ;;  %s28_s27 = sadd.s32 1, %s770_s24  ;;  %s774_s25 = sphi %s819_s25, %s16_s25   ;;  %s770_s24 = sphi %s817_s24, %s915_s24   ;;  %s766_s23 = sphi %s815_s23, %s914_s23   ;;  %s762_s22 = sphi %s813_s22, %s913_s22   ;;  %s758_s21 = sphi %s811_s21, %s912_s21  }
   0x4   : > { %p26_p0 = scmp.ge.s32.totalorder %s25_s26, 8  ;;  %p640_p1 = scmp.ge.s32.totalorder %s774_s25, 1 }
   0x5   : > { %p266_p2 = scmp.lt.s32.totalorder %s774_s25, 17 }
   0x6   : > { %s917_s26 = smov (%p26_p0, %s25_s26), 0  ;;  %s919_s27 = smov (!%p26_p0, %s28_s27), %s770_s24 }
   0x7   : > { %p267_p3 = pnand %p640_p1, %p266_p2  ;;  %p30_p4 = scmp.ge.s32.totalorder %s919_s27, 2 }
   0x8   : > { %p321_p5 = scmp.lt.s32.totalorder (!%p267_p3), %s762_s22, 1  ;;  %p323_p6 = scmp.lt.s32.totalorder (!%p267_p3), %s758_s21, 7  ;;  %v400_v16 = vlaneseq (!%p267_p3)  ;;  %v363_v22 = vld [vmem:[%s909_s4] sm:$0x1] (!%p267_p3)  ;;  %v367_v41 = vld [vmem:[%s909_s4 + $0x1] sm:$0x1] (!%p267_p3) }
   0x9   : > { %s921_s27 = smov (%p30_p4, %s919_s27), 0  ;;  %270 = sbr.rel (%p267_p3) target bundleno = 66 (0x42), region = 44 }
   0xa   : > { %v401_v17 = vshrl.u32 (!%p267_p3), %v400_v16, 7  ;;  %v377_v24 = vld [vmem:[%s910_s5] sm:$0x1] (!%p267_p3)  ;;  %v381_v47 = vld [vmem:[%s910_s5 + $0x1] sm:$0x1] (!%p267_p3) }
   0xc   : > { %v402_v26 = vsub.s32 (!%p267_p3), 0, %v401_v17 }
  0x10   : > { %s923_s22 = smov (!%p321_p5, %s762_s22), 1  ;;  %s925_s21 = smov (!%p323_p6, %s758_s21), 7 }
  0x11   : > { %s647_s28 = sshll.u32 %s923_s22, 1  ;;  %s641_s11 = sshll.u32 %s925_s21, 3 }
  0x12   : > { %s342_s7 = scalar_lea.vmem %s907_s2, %s647_s28  ;;  %s346_s10 = scalar_lea.vmem %s908_s3, %s647_s28 }
  0x13   : > { %v356_v0 = vld [vmem:[%s342_s7] sm:$0x1]  ;;  %v358_v1 = vld [vmem:[%s342_s7 + $0x1] sm:$0x1]  ;;  %s642_s12 = sshll.u32 %s923_s22, 6 }
  0x14   : > { %v357_v2 = vmul.f32 0.001953125, %v356_v0  ;;  %v359_v3 = vmul.f32 0.001953125, %v358_v1  ;;  %v370_v4 = vld [vmem:[%s346_s10] sm:$0x1]  ;;  %v372_v6 = vld [vmem:[%s346_s10 + $0x1] sm:$0x1]  ;;  %s847_s13 = sadd.s32 %s642_s12, %s641_s11 }
  0x15   : > { %v371_v5 = vmul.f32 0.001953125, %v370_v4  ;;  %v373_v8 = vmul.f32 0.001953125, %v372_v6  ;;  %s643_s14 = sshll.u32 %s847_s13, 2  ;;  %s651_s10 = sshll.u32 %s847_s13, 3 }
  0x16   : > { %v360_v7 = vmul.f32 %v357_v2, %v357_v2  ;;  %s329_s17 = scalar_lea.vmem %s905_s0, %s643_s14  ;;  %s338_s20 = scalar_lea.vmem %s906_s1, %s643_s14 }
  0x17   : > { %v374_v9 = vmul.f32 %v371_v5, %v371_v5  ;;  %v655_v18 = vld [vmem:[%s329_s17] sm:$0xff]   ;;  %v686_v20 = vld [vmem:[%s329_s17 + $0x8] sm:$0xff]   ;;  %v687_v23 = vld [vmem:[%s329_s17 + $0x10] sm:$0xff]   ;;  %s880_s14 = scalar_lea.vmem %s911_s6, %s651_s10 }
  0x18   : > { %v361_v10 = vsub.f32 %v359_v3, %v360_v7  ;;  %v671_v19 = vld [vmem:[%s338_s20] sm:$0xff]   ;;  %v689_v21 = vld [vmem:[%s338_s20 + $0x8] sm:$0xff]   ;;  %v656_v25 = vunpack.c.l.bf16 %v655_v18  ;;  %v690_v28 = vld [vmem:[%s338_s20 + $0x10] sm:$0xff]   ;;  %v657_v30 = vunpack.c.h.bf16 %v655_v18  ;;  %v660_v32 = vunpack.c.l.bf16 %v686_v20 }
  0x19   : > { %v375_v11 = vsub.f32 %v373_v8, %v374_v9  ;;  %v672_v27 = vunpack.c.l.bf16 %v671_v19  ;;  %v673_v31 = vunpack.c.h.bf16 %v671_v19  ;;  %v676_v33 = vunpack.c.l.bf16 %v689_v21  ;;  %v862_v34 = vld [vmem:[%s329_s17 + $0x18] sm:$0xff]  }
  0x1a   : > { %v362_v12 = vmax.f32 %v361_v10, 0.0  ;;  %v864_v35 = vld [vmem:[%s338_s20 + $0x18] sm:$0xff]   ;;  %v661_v38 = vunpack.c.h.bf16 %v686_v20  ;;  %v677_v39 = vunpack.c.h.bf16 %v689_v21  ;;  %v664_v40 = vunpack.c.l.bf16 %v687_v23 }
  0x1b   : > { %v376_v13 = vmax.f32 %v375_v11, 0.0  ;;  %v680_v43 = vunpack.c.l.bf16 %v690_v28  ;;  %v665_v44 = vunpack.c.h.bf16 %v687_v23  ;;  %v681_v45 = vunpack.c.h.bf16 %v690_v28 }
  0x1c   : > { %v364_v14 = vadd.f32 1e-05, %v362_v12  ;;  %v668_v49 = vunpack.c.l.bf16 %v862_v34  ;;  %v684_v50 = vunpack.c.l.bf16 %v864_v35  ;;  %v669_v53 = vunpack.c.h.bf16 %v862_v34 }
  0x1d   : > { %v378_v15 = vadd.f32 1e-05, %v376_v13  ;;  %v685_v54 = vunpack.c.h.bf16 %v864_v35 }
  0x1e   : > { %732 = vrsqrt.f32 %v364_v14 }
  0x1f   : > { %734 = vrsqrt.f32 %v378_v15 }
  0x28   : > { %v733_v29 = vpop.eup %732 }
  0x29   : > { %v735_v36 = vpop.eup %734  ;;  %v366_v37 = vmul.f32 %v733_v29, %v363_v22 }
  0x2a   : > { %v380_v42 = vmul.f32 %v735_v36, %v377_v24 }
  0x2b   : > { %v368_v46 = vmul.f32 %v366_v37, %v357_v2  ;;  %v403_v48 = vrot.slane %v366_v37, %v402_v26 }
  0x2c   : > { %v382_v51 = vmul.f32 %v380_v42, %v371_v5  ;;  %v451_v52 = vrot.slane %v380_v42, %v402_v26 }
  0x2d   : > { %v369_v55 = vsub.f32 %v367_v41, %v368_v46  ;;  %v404_v56 = vmul.f32 %v656_v25, %v403_v48  ;;  %v405_v57 = vmul.f32 %v657_v30, %v403_v48  ;;  %v406_v58 = vmul.f32 %v660_v32, %v403_v48 }
  0x2e   : > { %v383_v59 = vsub.f32 %v381_v47, %v382_v51  ;;  %v452_v60 = vmul.f32 %v672_v27, %v451_v52  ;;  %v453_v61 = vmul.f32 %v673_v31, %v451_v52  ;;  %v454_v62 = vmul.f32 %v676_v33, %v451_v52 }
  0x2f   : > { %v415_v63 = vrot.slane %v369_v55, %v402_v26  ;;  %v407_v0 = vmul.f32 %v661_v38, %v403_v48  ;;  %v455_v1 = vmul.f32 %v677_v39, %v451_v52  ;;  %v408_v2 = vmul.f32 %v664_v40, %v403_v48 }
  0x30   : > { %v463_v3 = vrot.slane %v383_v59, %v402_v26  ;;  %v456_v4 = vmul.f32 %v680_v43, %v451_v52  ;;  %v409_v5 = vmul.f32 %v665_v44, %v403_v48  ;;  %v457_v6 = vmul.f32 %v681_v45, %v451_v52 }
  0x31   : > { %v416_v7 = vadd.f32 %v415_v63, %v404_v56  ;;  %v417_v8 = vadd.f32 %v415_v63, %v405_v57  ;;  %v418_v9 = vadd.f32 %v415_v63, %v406_v58  ;;  %v419_v10 = vadd.f32 %v415_v63, %v407_v0 }
  0x32   : > { %v464_v11 = vadd.f32 %v463_v3, %v452_v60  ;;  %v465_v12 = vadd.f32 %v463_v3, %v453_v61  ;;  %v466_v13 = vadd.f32 %v463_v3, %v454_v62  ;;  %v467_v14 = vadd.f32 %v463_v3, %v455_v1 }
  0x33   : > { %v424_v15 = vmax.f32 %v416_v7, 0.0  ;;  %v425_v16 = vmax.f32 %v417_v8, 0.0  ;;  %v426_v17 = vmax.f32 %v418_v9, 0.0  ;;  %v427_v18 = vmax.f32 %v419_v10, 0.0 }
  0x34   : > { %v472_v19 = vmax.f32 %v464_v11, 0.0  ;;  %v473_v20 = vmax.f32 %v465_v12, 0.0  ;;  %v474_v21 = vmax.f32 %v466_v13, 0.0  ;;  %v475_v22 = vmax.f32 %v467_v14, 0.0 }
  0x35   : > { %v420_v23 = vadd.f32 %v415_v63, %v408_v2  ;;  %v468_v24 = vadd.f32 %v463_v3, %v456_v4  ;;  %v421_v25 = vadd.f32 %v415_v63, %v409_v5  ;;  %v469_v26 = vadd.f32 %v463_v3, %v457_v6 }
  0x36   : > { %v480_v27 = vadd.f32 %v472_v19, %v424_v15  ;;  %v481_v28 = vadd.f32 %v473_v20, %v425_v16  ;;  %v482_v29 = vadd.f32 %v474_v21, %v426_v17  ;;  %v483_v30 = vadd.f32 %v475_v22, %v427_v18 }
  0x37   : > { %v428_v31 = vmax.f32 %v420_v23, 0.0  ;;  %v476_v32 = vmax.f32 %v468_v24, 0.0  ;;  %v429_v33 = vmax.f32 %v421_v25, 0.0  ;;  %v477_v34 = vmax.f32 %v469_v26, 0.0 }
  0x38   : > { %488 = vst [vmem:[%s880_s14] sm:$0xff] %v480_v27  ;;  %489 = vst [vmem:[%s880_s14 + $0x8] sm:$0xff] %v481_v28  ;;  %v410_v35 = vmul.f32 %v668_v49, %v403_v48  ;;  %v458_v36 = vmul.f32 %v684_v50, %v451_v52  ;;  %v411_v37 = vmul.f32 %v669_v53, %v403_v48 }
  0x39   : > { %490 = vst [vmem:[%s880_s14 + $0x10] sm:$0xff] %v482_v29  ;;  %491 = vst [vmem:[%s880_s14 + $0x18] sm:$0xff] %v483_v30  ;;  %v459_v38 = vmul.f32 %v685_v54, %v451_v52  ;;  %v484_v39 = vadd.f32 %v476_v32, %v428_v31  ;;  %v485_v40 = vadd.f32 %v477_v34, %v429_v33 }
  0x3a   : > { %v422_v41 = vadd.f32 %v415_v63, %v410_v35  ;;  %v470_v42 = vadd.f32 %v463_v3, %v458_v36  ;;  %v423_v43 = vadd.f32 %v415_v63, %v411_v37 }
  0x3b   : > { %v471_v44 = vadd.f32 %v463_v3, %v459_v38  ;;  %492 = vst [vmem:[%s880_s14 + $0x20] sm:$0xff] %v484_v39  ;;  %493 = vst [vmem:[%s880_s14 + $0x28] sm:$0xff] %v485_v40 }
  0x3c   : > { %v430_v45 = vmax.f32 %v422_v41, 0.0  ;;  %v478_v46 = vmax.f32 %v470_v42, 0.0  ;;  %v431_v47 = vmax.f32 %v423_v43, 0.0 }
  0x3d   : > { %v479_v51 = vmax.f32 %v471_v44, 0.0 }
  0x3e   : > { %v486_v55 = vadd.f32 %v478_v46, %v430_v45 }
  0x3f   : > { %v487_v56 = vadd.f32 %v479_v51, %v431_v47 }
  0x40   : > { %494 = vst [vmem:[%s880_s14 + $0x30] sm:$0xff] %v486_v55 }
  0x41   : > { %495 = vst [vmem:[%s880_s14 + $0x38] sm:$0xff] %v487_v56 }
  0x42 PF: > { %s16_s25 = sadd.s32 1, %s774_s25   ;;  %s912_s21 = smov %s766_s23 }
  0x43   : > { %p13_p7 = scmp.ge.s32.totalorder %s16_s25, 18   ;;  %s913_s22 = smov %s770_s24 }
  0x44   : > { %s914_s23 = smov %s917_s26  ;;  %s915_s24 = smov %s921_s27 }
  0x45   :  { %15 = sbr.rel (!%p13_p7) target bundleno = 3 (0x3), region = 83 }

// kernel: resblock_pallas.4
= control target key start
LH: loop header
LB: loop body
LE: loop exit
PB: predicated region body
PF: predicated region fallthrough
CT: control target
= control target key end

     0   :  { %s7428_s24 = smov 0   ;;  %s7430_s25 = smov 0   ;;  %s9131_s0 = inlined_call_operand.vmem [shape: bf16[2,8,64,128], index: 0, kind: input, shape index: {}, may-alias: {0,1,2}]   ;;  %s9132_s1 = inlined_call_operand.vmem [shape: bf16[2,8,64,128], index: 1, kind: input, shape index: {}, may-alias: {0,1,2}]   ;;  %s9133_s2 = inlined_call_operand.vmem [shape: bf16[2,8,64,128], index: 2, kind: input, shape index: {}, may-alias: {0,1,2}]   ;;  %s9134_s3 = inlined_call_operand.vmem [shape: f32[2,2,128], index: 3, kind: input, shape index: {}]   ;;  %s9135_s4 = inlined_call_operand.vmem [shape: f32[2,128], index: 4, kind: input, shape index: {}]   ;;  %s9136_s5 = inlined_call_operand.vmem [shape: bf16[3,3,384,128], index: 5, kind: input, shape index: {}]   ;;  %s9137_s6 = inlined_call_operand.vmem [shape: bf16[2,8,64,128], index: 6, kind: output, shape index: {0}]   ;;  %s9138_s7 = inlined_call_operand.vmem [shape: f32[2,2,128], index: 7, kind: output, shape index: {1}]  }
   0x1   :  { %9142 = sst [smem:[#allocation9_spill]] %s9131_s0  ;;  %s7432_s26 = smov 0  }
   0x2   :  { %s7434_s27 = smov 0   ;;  %s7436_s28 = smov 0  }
   0x3 LB: > { %9143 = sst [smem:[#allocation4_spill]] %s7376_s26  ;;  %s27_s29 = sadd.s32 1, %s7376_s26  ;;  %s7384_s28 = sphi %s7436_s28, %s18_s28   ;;  %s7380_s27 = sphi %s7434_s27, %s9160_s27   ;;  %s7376_s26 = sphi %s7432_s26, %s9159_s26   ;;  %s7372_s25 = sphi %s7430_s25, %s9158_s25   ;;  %s7368_s24 = sphi %s7428_s24, %s9157_s24  }
   0x4   : > { %9144 = sst [smem:[#allocation5_spill]] %s7380_s27  ;;  %s30_s30 = sadd.s32 1, %s7380_s27 }
   0x5   : > { %9145 = sst [smem:[#allocation6_spill]] %s7384_s28  ;;  %p28_p0 = scmp.ge.s32.totalorder %s27_s29, 8 }
   0x6   : > { %p5316_p1 = scmp.ge.s32.totalorder %s7384_s28, 1  ;;  %p357_p2 = scmp.lt.s32.totalorder %s7384_s28, 17 }
   0x7   : > { %s9162_s29 = smov (%p28_p0, %s27_s29), 0  ;;  %s9164_s30 = smov (!%p28_p0, %s30_s30), %s7380_s27 }
   0x8   : > { %9146 = sst [smem:[#allocation7_spill]] %s9162_s29  ;;  %p358_p3 = pnand %p5316_p1, %p357_p2 }
   0x9   : > { %p32_p4 = scmp.ge.s32.totalorder %s9164_s30, 2  ;;  %s7461_s8 = sadd.s32 (!%p358_p3), 4294967295, %s7368_s24 }
   0xa   : > { %361 = sbr.rel (%p358_p3) target bundleno = 647 (0x287), region = 44  ;;  %p442_p5 = scmp.lt.s32.totalorder (!%p358_p3), %s7372_s25, 1 }
   0xb   : > { %s9166_s30 = smov (%p32_p4, %s9164_s30), 0  ;;  %p438_p6 = scmp.lt.s32.totalorder (!%p358_p3), %s7461_s8, 7 }
   0xc   : > { %9147 = sst [smem:[#allocation8_spill]] %s9166_s30  ;;  %p5318_p7 = scmp.gt.s32.totalorder (!%p358_p3), %s7461_s8, 0 }
   0xd   : > { %p456_p8 = scmp.lt.s32.totalorder (!%p358_p3), %s7368_s24, 7  ;;  %p5326_p10 = scmp.gt.s32.totalorder (!%p358_p3), %s7368_s24, 0 }
   0xe   : > { %s7475_s12 = sadd.s32 (!%p358_p3), 1, %s7368_s24  ;;  %s9148_s0 = sld [smem:[#allocation9_spill]] (!%p358_p3) }
   0xf   : > { %p474_p11 = scmp.lt.s32.totalorder (!%p358_p3), %s7475_s12, 7  ;;  %p5334_p13 = scmp.gt.s32.totalorder (!%p358_p3), %s7475_s12, 0 }
  0x10   : > { %p5347_p1 = scmp.ne.s32.totalorder (!%p358_p3), %s7368_s24, 0 }
  0x11   : > { %s9168_s25 = smov (!%p442_p5, %s7372_s25), 1  ;;  %v7386_v0 = vmov (!%p5347_p1), 0.0  }
  0x12   : > { %s439_s9 = scalar_select %p438_p6, %s7461_s8, 7 }
  0x13   : > { %s7469_s10 = sshll.u32 %s9168_s25, 6  ;;  %s5342_s13 = sshll.u32 %s9168_s25, 1 }
  0x14   : > { %s9170_s9 = smov (!%p5318_p7, %s439_s9), 0  ;;  %s7489_s23 = scalar_lea.vmem %s9134_s3, %s5342_s13 }
  0x15   : > { %s457_s11 = scalar_select %p456_p8, %s7368_s24, 7 }
  0x16   : > { %p444_p9 = scmp.lt.s32.totalorder %s9170_s9, 7 }
  0x17   : > { %s6112_s14 = scalar_select %p5326_p10, %s457_s11, 0 }
  0x18   : > { %s9172_s9 = smov (!%p444_p9, %s9170_s9), 7 }
  0x19   : > { %s5323_s15 = sshll.u32 %s9172_s9, 3  ;;  %p462_p12 = scmp.lt.s32.totalorder %s6112_s14, 7 }
  0x1a   : > { %s448_s16 = sadd.s32 %s7469_s10, %s5323_s15  ;;  %s5343_s9 = sshll.u32 %s457_s11, 3 }
  0x1b   : > { %s5325_s17 = sshll.u32 %s448_s16, 2  ;;  %s9174_s14 = smov (!%p462_p12, %s6112_s14), 7 }
  0x1c   : > { %s7484_s20 = scalar_lea.vmem %s9148_s0, %s5325_s17  ;;  %s5331_s30 = sshll.u32 %s9174_s14, 3 }
  0x1d   : > { %s475_s25 = scalar_select %p474_p11, %s7475_s12, 7 }
  0x1e   : > { %s466_s29 = sadd.s32 %s5331_s30, %s7469_s10  ;;  %s502_s15 = sadd.s32 %s5343_s9, %s7469_s10 }
  0x1f   : > { %s5333_s27 = sshll.u32 %s466_s29, 2  ;;  %s5345_s16 = sshll.u32 %s502_s15, 2 }
  0x20   : > { %s7497_s18 = scalar_lea.vmem %s9132_s1, %s5333_s27  ;;  %s7502_s21 = scalar_lea.vmem %s9137_s6, %s5345_s16 }
  0x21   : > { %s9176_s25 = smov (!%p5334_p13, %s475_s25), 0  ;;  %s7507_s14 = scalar_lea.vmem %s9138_s7, %s5342_s13 }
  0x22   : > { %p480_p0 = scmp.lt.s32.totalorder %s9176_s25, 7  ;;  %513 = sbr.rel (%p5347_p1) target bundleno = 41 (0x29), region = 48  ;;  %514 = vst [vmem:[%s7507_s14] sm:$0x3] (!%p5347_p1), %v7386_v0 }
  0x24   : > { %s9178_s25 = smov (!%p480_p0, %s9176_s25), 7 }
  0x25   : > { %s5339_s29 = sshll.u32 %s9178_s25, 3 }
  0x26   : > { %s484_s30 = sadd.s32 %s5339_s29, %s7469_s10 }
  0x27   : > { %s5341_s11 = sshll.u32 %s484_s30, 2 }
  0x28   : > { %s7513_s27 = scalar_lea.vmem %s9133_s2, %s5341_s11 }
  0x29 PF: > { %v7089_v1 = vld [vmem:[%s9136_s5 + $0x80] sm:$0xff]   ;;  %v7387_v3 = vmov 0   ;;  %v7091_v4 = vld [vmem:[%s9136_s5 + $0x88] sm:$0xff]   ;;  %v7094_v7 = vld [vmem:[%s9136_s5 + $0x90] sm:$0xff]   ;;  %p558_p2 = scmp.ge.s32.totalorder %s7461_s8, 0  ;;  %p559_p3 = scmp.le.s32.totalorder %s7461_s8, 7  ;;  %v580_v36 = vlaneseq }
  0x2a   : > { %v7090_v2 = vld [vmem:[%s9136_s5 + $0x40] sm:$0xff]   ;;  %537 = vst [vmem:[#allocation2] sm:$0xf] %v7387_v3  ;;  %538 = vst [vmem:[#allocation2 + $0x4] sm:$0x1] %v7387_v3  ;;  %6695 = vmatprep.subr.bf16.mxu1 %v7089_v1  ;;  %v7093_v6 = vld [vmem:[%s9136_s5 + $0x48] sm:$0xff]  }
  0x2b   : > { %539 = vst [vmem:[#allocation2 + $0x8] sm:$0xf] %v7387_v3  ;;  %540 = vst [vmem:[#allocation2 + $0xc] sm:$0x1] %v7387_v3  ;;  %6696 = vmatpush3.bf16.msra.mxu1 %v7089_v1  ;;  %6227 = vmatprep.subr.bf16.mxu0 %v7090_v2  ;;  %v7092_v5 = vld [vmem:[%s9136_s5] sm:$0xff]   ;;  %v7095_v8 = vld [vmem:[%s9136_s5 + $0x8] sm:$0xff]   ;;  %p7604_p6 = pnand %p559_p3, %p558_p2 }
  0x2c   : > { %541 = vst [vmem:[#allocation2 + $0x10] sm:$0xf] %v7387_v3  ;;  %542 = vst [vmem:[#allocation2 + $0x14] sm:$0x1] %v7387_v3  ;;  %6697 = vmatprep.subr.bf16.mxu1 %v7091_v4  ;;  %6228 = vmatpush3.bf16.msra.mxu0 %v7092_v5  ;;  %v7096_v9 = vld [vmem:[%s9136_s5 + $0x50] sm:$0xff]   ;;  %v7097_v10 = vld [vmem:[%s9136_s5 + $0x98] sm:$0xff]  }
  0x2d   : > { %543 = vst [vmem:[#allocation2 + $0x18] sm:$0xf] %v7387_v3  ;;  %544 = vst [vmem:[#allocation2 + $0x1c] sm:$0x1] %v7387_v3  ;;  %6229 = vmatprep.subr.bf16.mxu0 %v7093_v6  ;;  %v7098_v11 = vld [vmem:[%s9136_s5 + $0x10] sm:$0xff]   ;;  %v7099_v12 = vld [vmem:[%s9136_s5 + $0x58] sm:$0xff]  }
  0x2e   : > { %545 = vst [vmem:[#allocation2 + $0x20] sm:$0xf] %v7387_v3  ;;  %546 = vst [vmem:[#allocation2 + $0x24] sm:$0x1] %v7387_v3  ;;  %v7100_v13 = vld [vmem:[%s9136_s5 + $0xa0] sm:$0xff]   ;;  %v7101_v14 = vld [vmem:[%s9136_s5 + $0x18] sm:$0xff]  }
  0x2f   : > { %547 = vst [vmem:[#allocation2 + $0x28] sm:$0xf] %v7387_v3  ;;  %548 = vst [vmem:[#allocation2 + $0x2c] sm:$0x1] %v7387_v3  ;;  %6698 = vmatpush3.bf16.msra.mxu1 %v7091_v4  ;;  %v7102_v15 = vld [vmem:[%s9136_s5 + $0x60] sm:$0xff]   ;;  %v7103_v16 = vld [vmem:[%s9136_s5 + $0xa8] sm:$0xff]  }
  0x30   : > { %549 = vst [vmem:[#allocation2 + $0x30] sm:$0xf] %v7387_v3  ;;  %550 = vst [vmem:[#allocation2 + $0x34] sm:$0x1] %v7387_v3  ;;  %6699 = vmatprep.subr.bf16.mxu1 %v7094_v7  ;;  %6230 = vmatpush3.bf16.msra.mxu0 %v7095_v8  ;;  %v7104_v17 = vld [vmem:[%s9136_s5 + $0x20] sm:$0xff]   ;;  %v7105_v18 = vld [vmem:[%s9136_s5 + $0x68] sm:$0xff]  }
  0x31   : > { %551 = vst [vmem:[#allocation2 + $0x38] sm:$0xf] %v7387_v3  ;;  %552 = vst [vmem:[#allocation2 + $0x3c] sm:$0x1] %v7387_v3  ;;  %6231 = vmatprep.subr.bf16.mxu0 %v7096_v9  ;;  %v7106_v19 = vld [vmem:[%s9136_s5 + $0xb0] sm:$0xff]   ;;  %v7107_v20 = vld [vmem:[%s9136_s5 + $0x28] sm:$0xff]  }
  0x32   : > { %553 = vst [vmem:[#allocation2 + $0x40] sm:$0xf] %v7387_v3  ;;  %554 = vst [vmem:[#allocation2 + $0x44] sm:$0x1] %v7387_v3  ;;  %v7108_v21 = vld [vmem:[%s9136_s5 + $0x70] sm:$0xff]   ;;  %v7109_v24 = vld [vmem:[%s9136_s5 + $0xb8] sm:$0xff]  }
  0x33   : > { %555 = vst [vmem:[#allocation2 + $0x48] sm:$0xf] %v7387_v3  ;;  %556 = vst [vmem:[#allocation2 + $0x4c] sm:$0x1] %v7387_v3  ;;  %6700 = vmatpush3.bf16.msra.mxu1 %v7094_v7  ;;  %v515_v22 = vld [vmem:[%s7489_s23] sm:$0x1] }
  0x34   : > { %6701 = vmatprep.subr.bf16.mxu1 %v7097_v10  ;;  %6232 = vmatpush3.bf16.msra.mxu0 %v7098_v11  ;;  %v517_v23 = vld [vmem:[%s7489_s23 + $0x1] sm:$0x1]  ;;  %v516_v25 = vmul.f32 0.001953125, %v515_v22  ;;  %v7110_v27 = vld [vmem:[%s9136_s5 + $0x30] sm:$0xff]   ;;  %v7111_v28 = vld [vmem:[%s9136_s5 + $0x78] sm:$0xff]   ;;  %p2052_p4 = scmp.ge.s32.totalorder %s7368_s24, 0 }
  0x35   : > { %6233 = vmatprep.subr.bf16.mxu0 %v7099_v12  ;;  %v518_v26 = vmul.f32 0.001953125, %v517_v23  ;;  %v7591_v31 = vld [vmem:[%s9136_s5 + $0x140] sm:$0xff]   ;;  %v7115_v32 = vld [vmem:[%s9136_s5 + $0x38] sm:$0xff]   ;;  %p2053_p5 = scmp.le.s32.totalorder %s7368_s24, 7  ;;  %v581_v39 = vshrl.u32 %v580_v36, 7  ;;  %v6215_v45 = vld [vmem:[%s7484_s20 + $0x8] sm:$0xff]  }
  0x36   : > { %v519_v29 = vmul.f32 %v516_v25, %v516_v25  ;;  %v7118_v35 = vld [vmem:[%s9136_s5 + $0x100] sm:$0xff]   ;;  %s5349_s16 = scalar_select %p7604_p6, 0, 1  ;;  %v6218_v46 = vld [vmem:[%s7497_s18 + $0x8] sm:$0xff]   ;;  %v7630_v51 = vld [vmem:[%s7484_s20 + $0x10] sm:$0xff]   ;;  %v6153_v57 = vunpack.c.l.bf16 %v6215_v45  ;;  %v6154_v60 = vunpack.c.h.bf16 %v6215_v45  ;;  %vm734_vm0 = vcmask 1043456  }
  0x37   : > { %6702 = vmatpush3.bf16.msra.mxu1 %v7097_v10  ;;  %v7608_v37 = vld [vmem:[#allocation2] sm:$0xf]  ;;  %v789_v38 = vld [vmem:[#allocation2 + $0x4] sm:$0x1]  ;;  %p7610_p7 = pnand %p2053_p5, %p2052_p4  ;;  %v582_v44 = vsub.s32 0, %v581_v39  ;;  %v6169_v58 = vunpack.c.l.bf16 %v6218_v46  ;;  %v6219_v61 = vld [vmem:[%s7497_s18 + $0x10] sm:$0xff]   ;;  %v6157_v1 = vunpack.c.l.bf16 %v7630_v51  ;;  %v6170_v4 = vunpack.c.h.bf16 %v6218_v46 }
  0x38   : > { %6703 = vmatprep.subr.bf16.mxu1 %v7100_v13  ;;  %6234 = vmatpush3.bf16.msra.mxu0 %v7101_v14  ;;  %v520_v30 = vsub.f32 %v518_v26, %v519_v29  ;;  %v6148_v40 = vld [vmem:[%s7484_s20] sm:$0xff]   ;;  %v7618_v41 = vcombine.low %v7608_v37, %v789_v38  ;;  %s563_s29 = scvt.s32.f32 %s5349_s16  ;;  %v6173_v5 = vunpack.c.l.bf16 %v6219_v61  ;;  %vm735_vm1 = vsmask.f32 7938  ;;  %p3533_p8 = scmp.ge.s32.totalorder %s7475_s12, 0 }
  0x39   : > { %6235 = vmatprep.subr.bf16.mxu0 %v7102_v15  ;;  %v522_v42 = vld [vmem:[%s9135_s4] sm:$0x1]  ;;  %s5563_s22 = scalar_select %p7610_p7, 0, 1  ;;  %v6149_v49 = vunpack.c.l.bf16 %v6148_v40  ;;  %v6150_v50 = vunpack.c.h.bf16 %v6148_v40  ;;  %v526_v53 = vld [vmem:[%s9135_s4 + $0x1] sm:$0x1]  ;;  %v6174_v22 = vunpack.c.h.bf16 %v6219_v61  ;;  %vm7696_vm4 = vmand %vm734_vm0, %vm735_vm1 }
  0x3a   : > { %v521_v33 = vmax.f32 %v520_v30, 0.0  ;;  %v6164_v43 = vld [vmem:[%s7497_s18] sm:$0xff]   ;;  %v851_v47 = vshll.u32 %v7618_v41, 16  ;;  %v7635_v54 = vstv %s563_s29  ;;  %v849_v59 = vshrl.u32 %v7618_v41, 16  ;;  %p3534_p9 = scmp.le.s32.totalorder %s7475_s12, 7 }
  0x3b   : > { %6704 = vmatpush3.bf16.msra.mxu1 %v7100_v13  ;;  %s2057_s30 = scvt.s32.f32 %s5563_s22  ;;  %v6165_v55 = vunpack.c.l.bf16 %v6164_v43  ;;  %v6166_v56 = vunpack.c.h.bf16 %v6164_v43  ;;  %v904_v2 = vrot.slane %v7618_v41, 1  ;;  %vm740_vm2 = vcmask 1040384  }
  0x3c   : > { %6705 = vmatprep.subr.bf16.mxu1 %v7103_v16  ;;  %6236 = vmatpush3.bf16.msra.mxu0 %v7104_v17  ;;  %v523_v34 = vadd.f32 1e-05, %v521_v33  ;;  %v853_v0 = vrot.slane %v851_v47, 1  ;;  %v6158_v17 = vunpack.c.h.bf16 %v7630_v51  ;;  %vm741_vm3 = vsmask.f32 256  ;;  %p8081_p10 = pnand %p3534_p9, %p3533_p8 }
  0x3d   : > { %6237 = vmatprep.subr.bf16.mxu0 %v7105_v18  ;;  %v7643_v3 = vstv %s2057_s30  ;;  %v7659_v18 = vld [vmem:[%s7484_s20 + $0x18] sm:$0xff]   ;;  %vm7703_vm5 = vmand %vm740_vm2, %vm741_vm3 }
  0x3e   : > { %7344 = vrsqrt.f32 %v523_v34  ;;  %v7654_v15 = vor.u32 %v853_v0, %v849_v59  ;;  %v737_v0 = vld [vmem:[#allocation2 + $0x8] sm:$0xf]  ;;  %s5825_s23 = scalar_select %p8081_p10, 0, 1 }
  0x3f   : > { %6706 = vmatpush3.bf16.msra.mxu1 %v7103_v16 }
  0x40   : > { %6707 = vmatprep.subr.bf16.mxu1 %v7106_v19  ;;  %6238 = vmatpush3.bf16.msra.mxu0 %v7107_v20  ;;  %s3538_s15 = scvt.s32.f32 %s5825_s23 }
  0x41   : > { %6239 = vmatprep.subr.bf16.mxu0 %v7108_v21  ;;  %v6161_v21 = vunpack.c.l.bf16 %v7659_v18 }
  0x43   : > { %6708 = vmatpush3.bf16.msra.mxu1 %v7106_v19 }
  0x44   : > { %6709 = vmatprep.subr.bf16.mxu1 %v7109_v24  ;;  %6240 = vmatpush3.bf16.msra.mxu0 %v7110_v27 }
  0x45   : > { %6241 = vmatprep.subr.bf16.mxu0 %v7111_v28 }
  0x47   : > { %6710 = vmatpush3.bf16.msra.mxu1 %v7109_v24 }
  0x48   : > { %6719 = vmatprep.subr.bf16.mxu1 %v7591_v31  ;;  %6242 = vmatpush3.bf16.msra.mxu0 %v7115_v32  ;;  %v7345_v48 = vpop.eup %7344 }
  0x49   : > { %6279 = vmatprep.subr.bf16.mxu0 %v7118_v35  ;;  %v525_v52 = vmul.f32 %v7345_v48, %v522_v42 }
  0x4b   : > { %v527_v62 = vmul.f32 %v525_v52, %v516_v25  ;;  %v7639_v63 = vrot.slane %v525_v52, %v582_v44 }
  0x4d   : > { %v528_v6 = vsub.f32 %v526_v53, %v527_v62  ;;  %v584_v7 = vmul.f32 %v6149_v49, %v7639_v63  ;;  %v2074_v8 = vmul.f32 %v6165_v55, %v7639_v63  ;;  %v585_v9 = vmul.f32 %v6150_v50, %v7639_v63 }
  0x4e   : > { %v586_v10 = vmul.f32 %v6153_v57, %v7639_v63  ;;  %v2075_v11 = vmul.f32 %v6166_v56, %v7639_v63  ;;  %v2076_v12 = vmul.f32 %v6169_v58, %v7639_v63  ;;  %v587_v13 = vmul.f32 %v6154_v60, %v7639_v63 }
  0x4f   : > { %v7652_v14 = vrot.slane %v528_v6, %v582_v44  ;;  %v588_v16 = vmul.f32 %v6157_v1, %v7639_v63  ;;  %v7662_v19 = vmul.f32 %v6170_v4, %v7639_v63  ;;  %v7665_v20 = vmul.f32 %v6173_v5, %v7639_v63  ;;  %v743_v1 = vld [vmem:[#allocation2 + $0xc] sm:$0x1] }
  0x50   : > { %v589_v57 = vmul.f32 %v6158_v17, %v7639_v63  ;;  %v7690_v58 = vmul.f32 %v6174_v22, %v7639_v63 }
  0x51   : > { %v596_v23 = vadd.f32 %v7652_v14, %v584_v7  ;;  %v2082_v24 = vadd.f32 %v2074_v8, %v7652_v14  ;;  %v597_v25 = vadd.f32 %v7652_v14, %v585_v9  ;;  %v598_v26 = vadd.f32 %v7652_v14, %v586_v10 }
  0x52   : > { %v2083_v27 = vadd.f32 %v2075_v11, %v7652_v14  ;;  %v2084_v28 = vadd.f32 %v2076_v12, %v7652_v14  ;;  %v599_v29 = vadd.f32 %v7652_v14, %v587_v13  ;;  %v600_v30 = vadd.f32 %v7652_v14, %v588_v16  ;;  %v746_v11 = vld [vmem:[#allocation2 + $0x10] sm:$0xf]  ;;  %v749_v12 = vld [vmem:[#allocation2 + $0x14] sm:$0x1]  ;;  %v752_v13 = vld [vmem:[#allocation2 + $0x18] sm:$0xf] }
  0x53   : > { %v604_v32 = vmax.f32 %v596_v23, 0.0  ;;  %v2090_v33 = vmax.f32 %v2082_v24, 0.0  ;;  %v605_v34 = vmax.f32 %v597_v25, 0.0  ;;  %v606_v35 = vmax.f32 %v598_v26, 0.0  ;;  %v755_v16 = vld [vmem:[#allocation2 + $0x1c] sm:$0x1] }
  0x54   : > { %v2091_v36 = vmax.f32 %v2083_v27, 0.0  ;;  %v2092_v38 = vmax.f32 %v2084_v28, 0.0  ;;  %v607_v39 = vmax.f32 %v599_v29, 0.0  ;;  %v608_v40 = vmax.f32 %v600_v30, 0.0  ;;  %v7210_v23 = vld [vmem:[%s9136_s5 + $0x3a0] sm:$0xff]  }
  0x55   : > { %v613_v42 = vmul.f32 %v7635_v54, %v604_v32  ;;  %v2099_v43 = vmul.f32 %v7643_v3, %v2090_v33  ;;  %v614_v44 = vmul.f32 %v7635_v54, %v605_v34  ;;  %v615_v45 = vmul.f32 %v7635_v54, %v606_v35 }
  0x56   : > { %v2100_v46 = vmul.f32 %v7643_v3, %v2091_v36  ;;  %v2101_v47 = vmul.f32 %v7643_v3, %v2092_v38  ;;  %v616_v48 = vmul.f32 %v7635_v54, %v607_v39  ;;  %v617_v49 = vmul.f32 %v7635_v54, %v608_v40 }
  0x57   : > { %v6115_v50 = vpack.c.bf16 %v613_v42, %v613_v42  ;;  %v6123_v51 = vpack.c.bf16 %v2099_v43, %v2099_v43  ;;  %v6116_v52 = vpack.c.bf16 %v614_v44, %v614_v44  ;;  %v6117_v53 = vpack.c.bf16 %v615_v45, %v615_v45 }
  0x58   : > { %v7684_v55 = vpack.c.bf16 %v2100_v46, %v2100_v46  ;;  %v7686_v56 = vpack.c.bf16 %v2101_v47, %v2101_v47  ;;  %v7692_v62 = vpack.c.bf16 %v616_v48, %v616_v48  ;;  %v6119_v22 = vpack.c.bf16 %v617_v49, %v617_v49 }
  0x59   : > { %v654_v59 = vshrl.u32 %v6115_v50, 16  ;;  %v657_v60 = vshll.u32 %v6115_v50, 16  ;;  %v2140_v61 = vshrl.u32 %v6123_v51, 16  ;;  %v662_v4 = vshrl.u32 %v6116_v52, 16 }
  0x5a   : > { %v665_v5 = vshll.u32 %v6116_v52, 16  ;;  %v670_v6 = vshrl.u32 %v6117_v53, 16  ;;  %v673_v7 = vshll.u32 %v6117_v53, 16  ;;  %v2143_v10 = vshll.u32 %v6123_v51, 16  ;;  %v7733_v51 = vld [vmem:[%s7497_s18 + $0x18] sm:$0xff]  }
  0x5b   : > { %v656_v8 = vrot.slane %v654_v59, 7  ;;  %v2148_v17 = vshrl.u32 %v7684_v55, 16  ;;  %v7707_v24 = vrot.slane %v2140_v61, 7  ;;  %v664_v25 = vrot.slane %v662_v4, 7  ;;  %v758_v59 = vld [vmem:[#allocation2 + $0x20] sm:$0xf] }
  0x5c   : > { %v672_v26 = vrot.slane %v670_v6, 7  ;;  %v2156_v27 = vshrl.u32 %v7686_v56, 16  ;;  %v2151_v30 = vshll.u32 %v7684_v55, 16  ;;  %v2159_v32 = vshll.u32 %v7686_v56, 16 }
  0x5d   : > { %v659_v28 = vor.u32 %v657_v60, %v656_v8  ;;  %v660_v29 = vrot.slane %v656_v8, 4  ;;  %v667_v33 = vor.u32 %v665_v5, %v664_v25  ;;  %v668_v34 = vrot.slane %v664_v25, 4 }
  0x5e   : > { %v675_v35 = vor.u32 %v673_v7, %v672_v26  ;;  %v676_v36 = vrot.slane %v672_v26, 4  ;;  %v7716_v40 = vrot.slane %v2148_v17, 7  ;;  %v7718_v42 = vrot.slane %v2156_v27, 7  ;;  %v761_v7 = vld [vmem:[#allocation2 + $0x24] sm:$0x1] }
  0x5f   : > { %v738_v38 = vsel %vm7696_vm4, %v659_v28, %v737_v0  ;;  %v744_v39 = vsel %vm7703_vm5, %v660_v29, %v743_v1  ;;  %v747_v43 = vsel %vm7696_vm4, %v667_v33, %v746_v11  ;;  %v750_v44 = vsel %vm7703_vm5, %v668_v34, %v749_v12 }
  0x60   : > { %739 = vst [vmem:[#allocation2 + $0x8] sm:$0xf] %v738_v38  ;;  %745 = vst [vmem:[#allocation2 + $0xc] sm:$0x1] %v744_v39  ;;  %v753_v45 = vsel %vm7696_vm4, %v675_v35, %v752_v13  ;;  %v756_v46 = vsel %vm7703_vm5, %v676_v36, %v755_v16  ;;  %v2145_v47 = vor.u32 %v2143_v10, %v7707_v24  ;;  %v2146_v48 = vrot.slane %v7707_v24, 4 }
  0x61   : > { %748 = vst [vmem:[#allocation2 + $0x10] sm:$0xf] %v747_v43  ;;  %751 = vst [vmem:[#allocation2 + $0x14] sm:$0x1] %v750_v44  ;;  %v2154_v49 = vrot.slane %v7716_v40, 4  ;;  %v2162_v50 = vrot.slane %v7718_v42, 4  ;;  %v2085_v60 = vadd.f32 %v7662_v19, %v7652_v14  ;;  %v2086_v61 = vadd.f32 %v7665_v20, %v7652_v14 }
  0x62   : > { %754 = vst [vmem:[#allocation2 + $0x18] sm:$0xf] %v753_v45  ;;  %757 = vst [vmem:[#allocation2 + $0x1c] sm:$0x1] %v756_v46  ;;  %v678_v52 = vshrl.u32 %v7692_v62, 16  ;;  %v681_v53 = vshll.u32 %v7692_v62, 16  ;;  %v590_v0 = vmul.f32 %v6161_v21, %v7639_v63  ;;  %v601_v1 = vadd.f32 %v7652_v14, %v589_v57 }
  0x63   : > { %v686_v55 = vshrl.u32 %v6119_v22, 16  ;;  %v689_v56 = vshll.u32 %v6119_v22, 16  ;;  %v2153_v4 = vor.u32 %v2151_v30, %v7716_v40  ;;  %v2161_v5 = vor.u32 %v2159_v32, %v7718_v42  ;;  %v764_v57 = vld [vmem:[#allocation2 + $0x28] sm:$0xf]  ;;  %v767_v45 = vld [vmem:[#allocation2 + $0x2c] sm:$0x1] }
  0x64   : > { %v680_v62 = vrot.slane %v678_v52, 7  ;;  %v2093_v8 = vmax.f32 %v2085_v60, 0.0  ;;  %v2094_v10 = vmax.f32 %v2086_v61, 0.0  ;;  %v609_v19 = vmax.f32 %v601_v1, 0.0  ;;  %v7119_v42 = vld [vmem:[%s9136_s5 + $0x148] sm:$0xff]  }
  0x65   : > { %v7747_v6 = vrot.slane %v686_v55, 7  ;;  %v6177_v11 = vunpack.c.l.bf16 %v7733_v51  ;;  %v7757_v26 = vadd.f32 %v7652_v14, %v590_v0  ;;  %v7761_v27 = vadd.f32 %v7690_v58, %v7652_v14 }
  0x66   : > { %v683_v20 = vor.u32 %v681_v53, %v680_v62  ;;  %v684_v12 = vrot.slane %v680_v62, 4  ;;  %v2102_v24 = vmul.f32 %v7643_v3, %v2093_v8  ;;  %v2103_v25 = vmul.f32 %v7643_v3, %v2094_v10 }
  0x67   : > { %v691_v13 = vor.u32 %v689_v56, %v7747_v6  ;;  %v692_v21 = vrot.slane %v7747_v6, 4  ;;  %v7752_v16 = vld [vmem:[#allocation2 + $0x8] sm:$0xf]  ;;  %v791_v17 = vld [vmem:[#allocation2 + $0xc] sm:$0x1]  ;;  %v618_v35 = vmul.f32 %v7635_v54, %v609_v19  ;;  %v7822_v10 = vmul.f32 %v6177_v11, %v7639_v63 }
  0x68   : > { %v2219_v22 = vld [vmem:[#allocation2 + $0x8] sm:$0xf]  ;;  %v7764_v28 = vcombine.low %v7752_v16, %v791_v17  ;;  %v2222_v30 = vld [vmem:[#allocation2 + $0xc] sm:$0x1]  ;;  %v7768_v32 = vld [vmem:[#allocation2 + $0x10] sm:$0xf]  ;;  %v759_v34 = vsel %vm7696_vm4, %v683_v20, %v758_v59  ;;  %v762_v43 = vsel %vm7703_vm5, %v684_v12, %v761_v7  ;;  %v6126_v8 = vpack.c.bf16 %v2102_v24, %v2102_v24 }
  0x69   : > { %v2220_v29 = vsel %vm7696_vm4, %v2145_v47, %v2219_v22  ;;  %v793_v33 = vld [vmem:[#allocation2 + $0x14] sm:$0x1]  ;;  %v2223_v58 = vsel %vm7703_vm5, %v2146_v48, %v2222_v30  ;;  %v7775_v36 = vld [vmem:[#allocation2 + $0x18] sm:$0xf]  ;;  %v795_v38 = vld [vmem:[#allocation2 + $0x1c] sm:$0x1]  ;;  %v765_v44 = vsel %vm7696_vm4, %v691_v13, %v764_v57  ;;  %v6127_v13 = vpack.c.bf16 %v2103_v25, %v2103_v25 }
  0x6a   : > { %2221 = vst [vmem:[#allocation2 + $0x8] sm:$0xf] %v2220_v29  ;;  %v7778_v39 = vcombine.low %v7768_v32, %v793_v33  ;;  %v2225_v40 = vld [vmem:[#allocation2 + $0x10] sm:$0xf]  ;;  %760 = vst [vmem:[#allocation2 + $0x20] sm:$0xf] %v759_v34  ;;  %v7786_v47 = vcombine.low %v7775_v36, %v795_v38  ;;  %v5366_v57 = vcombine.low %v7608_v37, %v7752_v16 }
  0x6b   : > { %v905_v46 = vrot.slane %v7764_v28, 1  ;;  %2224 = vst [vmem:[#allocation2 + $0xc] sm:$0x1] %v2223_v58  ;;  %v2226_v48 = vsel %vm7696_vm4, %v2153_v4, %v2225_v40  ;;  %v2228_v52 = vld [vmem:[#allocation2 + $0x14] sm:$0x1]  ;;  %v856_v55 = vshrl.u32 %v7764_v28, 16  ;;  %v7837_v29 = vpack.c.bf16 %v618_v35, %v618_v35 }
  0x6c   : > { %v2231_v53 = vld [vmem:[#allocation2 + $0x18] sm:$0xf]  ;;  %763 = vst [vmem:[#allocation2 + $0x24] sm:$0x1] %v762_v43  ;;  %766 = vst [vmem:[#allocation2 + $0x28] sm:$0xf] %v765_v44  ;;  %v2229_v59 = vsel %vm7703_vm5, %v2154_v49, %v2228_v52  ;;  %v7851_v35 = vcombine.low %v7768_v32, %v7775_v36 }
  0x6d   : > { %v906_v56 = vrot.slane %v7778_v39, 1  ;;  %2227 = vst [vmem:[#allocation2 + $0x10] sm:$0xf] %v2226_v48  ;;  %v2232_v60 = vsel %vm7696_vm4, %v2161_v5, %v2231_v53  ;;  %v2234_v61 = vld [vmem:[#allocation2 + $0x1c] sm:$0x1]  ;;  %v858_v0 = vshll.u32 %v7764_v28, 16  ;;  %v5368_v1 = vcombine.low %v904_v2, %v905_v46 }
  0x6e   : > { %v907_v4 = vrot.slane %v7786_v47, 1  ;;  %2230 = vst [vmem:[#allocation2 + $0x14] sm:$0x1] %v2229_v59  ;;  %2233 = vst [vmem:[#allocation2 + $0x18] sm:$0xf] %v2232_v60  ;;  %v2235_v49 = vsel %vm7703_vm5, %v2162_v50, %v2234_v61  ;;  %v863_v62 = vshrl.u32 %v7778_v39, 16  ;;  %v768_v50 = vsel %vm7703_vm5, %v692_v21, %v767_v45 }
  0x6f   : > { %2236 = vst [vmem:[#allocation2 + $0x1c] sm:$0x1] %v2235_v49  ;;  %v860_v5 = vrot.slane %v858_v0, 1  ;;  %v865_v6 = vshll.u32 %v7778_v39, 16  ;;  %v870_v7 = vshrl.u32 %v7786_v47, 16  ;;  %v872_v41 = vshll.u32 %v7786_v47, 16  ;;  %6711 = vmatprep.mubr.bf16.mxu1 %v5368_v1 }
  0x70   : > { %v7814_v2 = vcombine.low %v906_v56, %v907_v4  ;;  %769 = vst [vmem:[#allocation2 + $0x2c] sm:$0x1] %v768_v50  ;;  %v7120_v17 = vld [vmem:[%s9136_s5 + $0xc0] sm:$0xff]   ;;  %v7121_v11 = vld [vmem:[%s9136_s5 + $0x108] sm:$0xff]   ;;  %v2164_v22 = vshrl.u32 %v6126_v8, 16  ;;  %v2167_v24 = vshll.u32 %v6126_v8, 16 }
  0x71   : > { %v7824_v19 = vor.u32 %v860_v5, %v856_v55  ;;  %v867_v20 = vrot.slane %v865_v6, 1  ;;  %v874_v12 = vrot.slane %v872_v41, 1  ;;  %v7835_v21 = vld [vmem:[#allocation2 + $0x20] sm:$0xf]  ;;  %v7122_v37 = vld [vmem:[%s9136_s5 + $0x150] sm:$0xff]   ;;  %v2172_v58 = vshrl.u32 %v6127_v13, 16 }
  0x72   : > { %6712 = vmatmul.mubr.bf16.vlgmr.msra.gmra.mrb[0].mxu1 %v7814_v2  ;;  %v2237_v38 = vld [vmem:[#allocation2 + $0x20] sm:$0xf]  ;;  %v2166_v40 = vrot.slane %v2164_v22, 7  ;;  %v2175_v43 = vshll.u32 %v6127_v13, 16  ;;  %v7123_v48 = vld [vmem:[%s9136_s5 + $0xc8] sm:$0xff]   ;;  %v610_v55 = vmax.f32 %v7757_v26, 0.0 }
  0x73   : > { %6720 = vmatpush3.bf16.msra.mxu1 %v7591_v31  ;;  %v5367_v25 = vcombine.low %v7654_v15, %v7824_v19  ;;  %v7845_v30 = vor.u32 %v867_v20, %v863_v62  ;;  %v7847_v33 = vor.u32 %v874_v12, %v870_v7  ;;  %v797_v34 = vld [vmem:[#allocation2 + $0x24] sm:$0x1]  ;;  %v7853_v31 = vld [vmem:[#allocation2 + $0x28] sm:$0xf]  ;;  %v2174_v53 = vrot.slane %v2172_v58, 7  ;;  %v7124_v60 = vld [vmem:[%s9136_s5 + $0x110] sm:$0xff]  }
  0x74   : > { %6721 = vmatprep.subr.bf16.mxu1 %v7119_v42  ;;  %v7856_v15 = vcombine.low %v7835_v21, %v797_v34  ;;  %v2240_v44 = vld [vmem:[#allocation2 + $0x24] sm:$0x1]  ;;  %v2243_v45 = vld [vmem:[#allocation2 + $0x28] sm:$0xf]  ;;  %v694_v59 = vshrl.u32 %v7837_v29, 16  ;;  %v7125_v61 = vld [vmem:[%s9136_s5 + $0x158] sm:$0xff]   ;;  %v2169_v49 = vor.u32 %v2167_v24, %v2166_v40  ;;  %v619_v7 = vmul.f32 %v7635_v54, %v610_v55 }
  0x75   : > { %1184 = vmatprep.mubr.bf16.mxu0 %v5367_v25  ;;  %v7863_v52 = vcombine.low %v7845_v30, %v7847_v33  ;;  %v2170_v62 = vrot.slane %v2166_v40, 4  ;;  %v2177_v26 = vor.u32 %v2175_v43, %v2174_v53  ;;  %v2178_v5 = vrot.slane %v2174_v53, 4  ;;  %v773_v41 = vld [vmem:[#allocation2 + $0x34] sm:$0x1]  ;;  %v7146_v28 = vld [vmem:[%s9136_s5 + $0x1c0] sm:$0xff]  }
  0x76   : > { %1185 = vmatmul.mubr.bf16.vlgmr.msra.gmra.mrb[0].mxu0 %v5366_v57  ;;  %v877_v0 = vshrl.u32 %v7856_v15, 16  ;;  %v879_v1 = vshll.u32 %v7856_v15, 16  ;;  %v908_v6 = vrot.slane %v7856_v15, 1  ;;  %v2238_v20 = vsel %vm7696_vm4, %v2169_v49, %v2237_v38  ;;  %v7148_v47 = vld [vmem:[%s9136_s5 + $0x180] sm:$0xff]  }
  0x77   : > { %6280 = vmatpush3.bf16.msra.mxu0 %v7120_v17  ;;  %6722 = vmatpush3.bf16.msra.mxu1 %v7119_v42  ;;  %v799_v50 = vld [vmem:[#allocation2 + $0x2c] sm:$0x1]  ;;  %v2241_v12 = vsel %vm7703_vm5, %v2170_v62, %v2240_v44  ;;  %v696_v57 = vrot.slane %v694_v59, 7  ;;  %v7126_v42 = vld [vmem:[%s9136_s5 + $0xd0] sm:$0xff]   ;;  %2239 = vst [vmem:[#allocation2 + $0x20] sm:$0xf] %v2238_v20  ;;  %v2088_v24 = vadd.f32 %v7822_v10, %v7652_v14 }
  0x78   : > { %6281 = vmatprep.subr.bf16.mxu0 %v7121_v11  ;;  %6723 = vmatprep.subr.bf16.mxu1 %v7122_v37  ;;  %v881_v8 = vrot.slane %v879_v1, 1  ;;  %v2246_v13 = vld [vmem:[#allocation2 + $0x2c] sm:$0x1]  ;;  %v7886_v17 = vcombine.low %v7853_v31, %v799_v50  ;;  %2242 = vst [vmem:[#allocation2 + $0x24] sm:$0x1] %v2241_v12  ;;  %v2244_v11 = vsel %vm7696_vm4, %v2177_v26, %v2243_v45  ;;  %v697_v58 = vshll.u32 %v7837_v29, 16 }
  0x79   : > { %1192 = vmatprep.mubr.bf16.mxu0 %v7863_v52  ;;  %v2247_v22 = vsel %vm7703_vm5, %v2178_v5, %v2246_v13  ;;  %2245 = vst [vmem:[#allocation2 + $0x28] sm:$0xf] %v2244_v11  ;;  %v6121_v34 = vpack.c.bf16 %v619_v7, %v619_v7  ;;  %v700_v38 = vrot.slane %v696_v57, 4  ;;  %v770_v45 = vld [vmem:[#allocation2 + $0x30] sm:$0xf]  ;;  %v2095_v53 = vmax.f32 %v7761_v27, 0.0 }
  0x7a   : > { %v7894_v25 = vor.u32 %v881_v8, %v877_v0  ;;  %2248 = vst [vmem:[#allocation2 + $0x2c] sm:$0x1] %v2247_v22  ;;  %v884_v40 = vshrl.u32 %v7886_v17, 16  ;;  %v886_v43 = vshll.u32 %v7886_v17, 16  ;;  %v909_v44 = vrot.slane %v7886_v17, 1  ;;  %v7127_v10 = vld [vmem:[%s9136_s5 + $0x118] sm:$0xff]  }
  0x7b   : > { %6282 = vmatpush3.bf16.msra.mxu0 %v7123_v48  ;;  %6724 = vmatpush3.bf16.msra.mxu1 %v7122_v37  ;;  %v7128_v29 = vld [vmem:[%s9136_s5 + $0x160] sm:$0xff]   ;;  %v699_v37 = vor.u32 %v697_v58, %v696_v57  ;;  %v702_v48 = vshrl.u32 %v6121_v34, 16  ;;  %v705_v55 = vshll.u32 %v6121_v34, 16  ;;  %v774_v59 = vsel %vm7703_vm5, %v700_v38, %v773_v41  ;;  %v7129_v27 = vld [vmem:[%s9136_s5 + $0xd8] sm:$0xff]   ;;  %v7133_v57 = vld [vmem:[%s9136_s5 + $0x168] sm:$0xff]  }
  0x7c   : > { %6283 = vmatprep.subr.bf16.mxu0 %v7124_v60  ;;  %6725 = vmatprep.subr.bf16.mxu1 %v7125_v61  ;;  %v888_v60 = vrot.slane %v886_v43, 1  ;;  %v7916_v0 = vcombine.low %v908_v6, %v909_v44  ;;  %775 = vst [vmem:[#allocation2 + $0x34] sm:$0x1] %v774_v59  ;;  %v776_v1 = vld [vmem:[#allocation2 + $0x38] sm:$0xf]  ;;  %v2096_v49 = vmax.f32 %v2088_v24, 0.0  ;;  %v2104_v62 = vmul.f32 %v7643_v3, %v2095_v53 }
  0x7d   : > { %v7132_v26 = vld [vmem:[%s9136_s5 + $0x120] sm:$0xff]   ;;  %v704_v5 = vrot.slane %v702_v48, 7  ;;  %v771_v7 = vsel %vm7696_vm4, %v699_v37, %v770_v45  ;;  %v6162_v41 = vunpack.c.h.bf16 %v7659_v18  ;;  %v779_v8 = vld [vmem:[#allocation2 + $0x3c] sm:$0x1]  ;;  %v6178_v13 = vunpack.c.h.bf16 %v7733_v51  ;;  %v7135_v43 = vld [vmem:[%s9136_s5 + $0x128] sm:$0xff]  }
  0x7e   : > { %1193 = vmatmul.mubr.bf16.gmra.mrb[4].mxu0 %v7851_v35  ;;  %v7926_v50 = vor.u32 %v888_v60, %v884_v40  ;;  %772 = vst [vmem:[#allocation2 + $0x30] sm:$0xf] %v771_v7  ;;  %v2105_v20 = vmul.f32 %v7643_v3, %v2096_v49  ;;  %v6128_v12 = vpack.c.bf16 %v2104_v62, %v2104_v62  ;;  %v7134_v34 = vld [vmem:[%s9136_s5 + $0xe0] sm:$0xff]   ;;  %v7136_v48 = vld [vmem:[%s9136_s5 + $0x170] sm:$0xff]   ;;  %v7139_v49 = vld [vmem:[%s9136_s5 + $0xe8] sm:$0xff]  }
  0x7f   : > { %6284 = vmatpush3.bf16.msra.mxu0 %v7126_v42  ;;  %6726 = vmatpush3.bf16.msra.mxu1 %v7125_v61  ;;  %v707_v11 = vor.u32 %v705_v55, %v704_v5  ;;  %v708_v22 = vrot.slane %v704_v5, 4  ;;  %v7940_v51 = vcombine.low %v7835_v21, %v7853_v31  ;;  %v591_v40 = vmul.f32 %v6162_v41, %v7639_v63  ;;  %v7140_v7 = vld [vmem:[%s9136_s5 + $0x130] sm:$0xff]  }
  0x80   : > { %6285 = vmatprep.subr.bf16.mxu0 %v7127_v10  ;;  %6727 = vmatprep.subr.bf16.mxu1 %v7128_v29  ;;  %v7935_v18 = vcombine.low %v7894_v25, %v7926_v50  ;;  %v6129_v61 = vpack.c.bf16 %v2105_v20, %v2105_v20  ;;  %v2180_v42 = vshrl.u32 %v6128_v12, 16  ;;  %v2183_v24 = vshll.u32 %v6128_v12, 16 }
  0x81   : > { %6715 = vmatprep.mubr.bf16.mxu1 %v7916_v0  ;;  %v777_v58 = vsel %vm7696_vm4, %v707_v11, %v776_v1  ;;  %v780_v38 = vsel %vm7703_vm5, %v708_v22, %v779_v8  ;;  %v2081_v37 = vmul.f32 %v6178_v13, %v7639_v63  ;;  %v7141_v13 = vld [vmem:[%s9136_s5 + $0x178] sm:$0xff]  }
  0x82   : > { %778 = vst [vmem:[#allocation2 + $0x38] sm:$0xf] %v777_v58  ;;  %781 = vst [vmem:[#allocation2 + $0x3c] sm:$0x1] %v780_v38  ;;  %v2182_v45 = vrot.slane %v2180_v42, 7  ;;  %v2188_v53 = vshrl.u32 %v6129_v61, 16  ;;  %1200 = vmatprep.mubr.bf16.mxu0 %v7935_v18 }
  0x83   : > { %6286 = vmatpush3.bf16.msra.mxu0 %v7129_v27  ;;  %6728 = vmatpush3.bf16.msra.mxu1 %v7128_v29  ;;  %v2191_v10 = vshll.u32 %v6129_v61, 16  ;;  %v801_v55 = vld [vmem:[#allocation2 + $0x34] sm:$0x1]  ;;  %v603_v29 = vadd.f32 %v7652_v14, %v591_v40  ;;  %v2089_v62 = vadd.f32 %v2081_v37, %v7652_v14 }
  0x84   : > { %6287 = vmatprep.subr.bf16.mxu0 %v7132_v26  ;;  %6729 = vmatprep.subr.bf16.mxu1 %v7133_v57  ;;  %v2185_v59 = vor.u32 %v2183_v24, %v2182_v45  ;;  %v2186_v27 = vrot.slane %v2182_v45, 4  ;;  %v2190_v60 = vrot.slane %v2188_v53, 7  ;;  %v2252_v1 = vld [vmem:[#allocation2 + $0x34] sm:$0x1] }
  0x85   : > { %v7964_v26 = vld [vmem:[#allocation2 + $0x30] sm:$0xf]  ;;  %v611_v41 = vmax.f32 %v603_v29, 0.0  ;;  %v2097_v61 = vmax.f32 %v2089_v62, 0.0 }
  0x86   : > { %1201 = vmatmul.mubr.bf16.gmra.mrb[8].mxu0 %v7940_v51  ;;  %v2249_v5 = vld [vmem:[#allocation2 + $0x30] sm:$0xf]  ;;  %v7970_v8 = vcombine.low %v7964_v26, %v801_v55  ;;  %v2193_v20 = vor.u32 %v2191_v10, %v2190_v60  ;;  %v2194_v11 = vrot.slane %v2190_v60, 4  ;;  %v2253_v22 = vsel %vm7703_vm5, %v2186_v27, %v2252_v1 }
  0x87   : > { %6288 = vmatpush3.bf16.msra.mxu0 %v7134_v34  ;;  %6730 = vmatpush3.bf16.msra.mxu1 %v7133_v57  ;;  %v2250_v12 = vsel %vm7696_vm4, %v2185_v59, %v2249_v5  ;;  %v620_v57 = vmul.f32 %v7635_v54, %v611_v41  ;;  %2254 = vst [vmem:[#allocation2 + $0x34] sm:$0x1] %v2253_v22  ;;  %v7142_v34 = vld [vmem:[%s9136_s5 + $0xf0] sm:$0xff]   ;;  %v7144_v54 = vld [vmem:[%s9136_s5 + $0x200] sm:$0xff]   ;;  %v7145_v22 = vld [vmem:[%s9136_s5 + $0xf8] sm:$0xff]  }
  0x88   : > { %6289 = vmatprep.subr.bf16.mxu0 %v7135_v43  ;;  %6731 = vmatprep.subr.bf16.mxu1 %v7136_v48  ;;  %2251 = vst [vmem:[#allocation2 + $0x30] sm:$0xf] %v2250_v12  ;;  %v910_v42 = vrot.slane %v7970_v8, 1  ;;  %v893_v24 = vshll.u32 %v7970_v8, 16  ;;  %v7143_v43 = vld [vmem:[%s9136_s5 + $0x138] sm:$0xff]   ;;  %v2106_v53 = vmul.f32 %v7643_v3, %v2097_v61  ;;  %v891_v29 = vshrl.u32 %v7970_v8, 16 }
  0x89   : > { %v7985_v58 = vld [vmem:[#allocation2 + $0x38] sm:$0xf]  ;;  %v803_v38 = vld [vmem:[#allocation2 + $0x3c] sm:$0x1]  ;;  %v6122_v45 = vpack.c.bf16 %v620_v57, %v620_v57  ;;  %v5453_v41 = vcombine.low %v905_v46, %v906_v56 }
  0x8a   : > { %v2255_v40 = vld [vmem:[#allocation2 + $0x38] sm:$0xf]  ;;  %v7995_v10 = vcombine.low %v7985_v58, %v803_v38  ;;  %v2258_v55 = vld [vmem:[#allocation2 + $0x3c] sm:$0x1]  ;;  %v895_v59 = vrot.slane %v893_v24, 1 }
  0x8b   : > { %v2256_v37 = vsel %vm7696_vm4, %v2193_v20, %v2255_v40  ;;  %6290 = vmatpush3.bf16.msra.mxu0 %v7139_v49  ;;  %6732 = vmatpush3.bf16.msra.mxu1 %v7136_v48  ;;  %v2259_v27 = vsel %vm7703_vm5, %v2194_v11, %v2258_v55  ;;  %v710_v60 = vshrl.u32 %v6122_v45, 16  ;;  %v713_v3 = vshll.u32 %v6122_v45, 16  ;;  %v782_v49 = vld [vmem:[#allocation2 + $0x40] sm:$0xf]  ;;  %v785_v48 = vld [vmem:[#allocation2 + $0x44] sm:$0x1] }
  0x8c   : > { %2257 = vst [vmem:[#allocation2 + $0x38] sm:$0xf] %v2256_v37  ;;  %6291 = vmatprep.subr.bf16.mxu0 %v7140_v7  ;;  %6733 = vmatprep.subr.bf16.mxu1 %v7141_v13  ;;  %v911_v1 = vrot.slane %v7995_v10, 1  ;;  %2260 = vst [vmem:[#allocation2 + $0x3c] sm:$0x1] %v2259_v27  ;;  %v898_v62 = vshrl.u32 %v7995_v10, 16  ;;  %v6130_v20 = vpack.c.bf16 %v2106_v53, %v2106_v53 }
  0x8d   : > { %v900_v5 = vshll.u32 %v7995_v10, 16  ;;  %v712_v8 = vrot.slane %v710_v60, 7  ;;  %v8013_v12 = vor.u32 %v895_v59, %v891_v29  ;;  %v5456_v45 = vcombine.low %v907_v4, %v908_v6  ;;  %v7151_v27 = vld [vmem:[%s9136_s5 + $0x188] sm:$0xff]   ;;  %v7152_v60 = vld [vmem:[%s9136_s5 + $0x1d0] sm:$0xff]   ;;  %v7155_v10 = vld [vmem:[%s9136_s5 + $0x1d8] sm:$0xff]  }
  0x8e   : > { %v8011_v7 = vcombine.low %v910_v42, %v911_v1  ;;  %v2196_v56 = vshrl.u32 %v6130_v20, 16  ;;  %v2199_v38 = vshll.u32 %v6130_v20, 16  ;;  %v5459_v53 = vcombine.low %v909_v44, %v910_v42  ;;  %v7150_v44 = vld [vmem:[%s9136_s5 + $0x210] sm:$0xff]  }
  0x8f   : > { %v902_v11 = vrot.slane %v900_v5, 1  ;;  %6292 = vmatpush3.bf16.msra.mxu0 %v7142_v34  ;;  %6734 = vmatpush3.bf16.msra.mxu1 %v7141_v13  ;;  %v715_v39 = vor.u32 %v713_v3, %v712_v8  ;;  %v716_v46 = vrot.slane %v712_v8, 4  ;;  %v8026_v13 = vcombine.low %v7964_v26, %v7985_v58  ;;  %v7154_v5 = vld [vmem:[%s9136_s5 + $0x190] sm:$0xff]  }
  0x90   : > { %6293 = vmatprep.subr.bf16.mxu0 %v7143_v43  ;;  %6743 = vmatprep.subr.bf16.mxu1 %v7144_v54  ;;  %v2198_v34 = vrot.slane %v2196_v56, 7  ;;  %v5452_v43 = vcombine.low %v7824_v19, %v7845_v30  ;;  %v7147_v19 = vld [vmem:[%s9136_s5 + $0x208] sm:$0xff]   ;;  %v5451_v4 = vcombine.low %v7752_v16, %v7768_v32  ;;  %v5455_v32 = vcombine.low %v7847_v33, %v7894_v25  ;;  %v7153_v33 = vld [vmem:[%s9136_s5 + $0x218] sm:$0xff]  }
  0x91   : > { %6716 = vmatmul.mubr.bf16.gmra.mrb[4].mxu1 %v8011_v7  ;;  %v8022_v57 = vor.u32 %v902_v11, %v898_v62  ;;  %v783_v61 = vsel %vm7696_vm4, %v715_v39, %v782_v49  ;;  %v786_v24 = vsel %vm7703_vm5, %v716_v46, %v785_v48  ;;  %v7149_v16 = vld [vmem:[%s9136_s5 + $0x1c8] sm:$0xff]   ;;  %v5454_v62 = vcombine.low %v7775_v36, %v7835_v21  ;;  %v6180_v21 = vld [vmem:[%s7513_s27] sm:$0xff]  }
  0x92   : > { %6735 = vmatprep.mubr.bf16.mxu1 %v5453_v41  ;;  %784 = vst [vmem:[#allocation2 + $0x40] sm:$0xf] %v783_v61  ;;  %787 = vst [vmem:[#allocation2 + $0x44] sm:$0x1] %v786_v24  ;;  %v2201_v30 = vor.u32 %v2199_v38, %v2198_v34  ;;  %v2202_v37 = vrot.slane %v2198_v34, 4  ;;  %v5458_v36 = vcombine.low %v7926_v50, %v8013_v12  ;;  %v6181_v48 = vunpack.c.l.bf16 %v6180_v21  ;;  %v7157_v50 = vld [vmem:[%s9136_s5 + $0x198] sm:$0xff]  }
  0x93   : > { %v8034_v40 = vcombine.low %v8013_v12, %v8022_v57  ;;  %6294 = vmatpush3.bf16.msra.mxu0 %v7145_v22  ;;  %v6182_v41 = vunpack.c.h.bf16 %v6180_v21  ;;  %v7159_v12 = vld [vmem:[%s9136_s5 + $0x228] sm:$0xff]   ;;  %v7158_v22 = vld [vmem:[%s9136_s5 + $0x1e0] sm:$0xff]   ;;  %v8130_v61 = vstv %s3538_s15  ;;  %v5457_v24 = vcombine.low %v7853_v31, %v7964_v26 }
  0x94   : > { %6331 = vmatprep.subr.bf16.mxu0 %v7146_v28  ;;  %v3555_v8 = vmul.f32 %v6181_v48, %v7639_v63  ;;  %v6221_v11 = vld [vmem:[%s7513_s27 + $0x8] sm:$0xff]   ;;  %v7160_v34 = vld [vmem:[%s9136_s5 + $0x1a0] sm:$0xff]  }
  0x95   : > { %1208 = vmatprep.mubr.bf16.mxu0 %v8034_v40  ;;  %v3556_v20 = vmul.f32 %v6182_v41, %v7639_v63  ;;  %v6185_v46 = vunpack.c.l.bf16 %v6221_v11  ;;  %v7161_v38 = vld [vmem:[%s9136_s5 + $0x1e8] sm:$0xff]  }
  0x96   : > { %1209 = vmatmul.mubr.bf16.gmra.mrb[12].mxu0 %v8026_v13  ;;  %v3563_v39 = vadd.f32 %v3555_v8, %v7652_v14  ;;  %v8146_v26 = vld [vmem:[#allocation2 + $0x8] sm:$0xf]  ;;  %v7168_v8 = vld [vmem:[%s9136_s5 + $0x1f8] sm:$0xff]  }
  0x97   : > { %1570 = vmatprep.mubr.bf16.mxu0 %v5452_v43  ;;  %v3564_v56 = vadd.f32 %v3556_v20, %v7652_v14  ;;  %v3700_v21 = vld [vmem:[#allocation2 + $0x8] sm:$0xf] }
  0x98   : > { %v3571_v43 = vmax.f32 %v3563_v39, 0.0 }
  0x99   : > { %6736 = vmatmul.mubr.bf16.vlgmr.msra.gmra.mrb[0].mxu1 %v5456_v45  ;;  %v8056_v15 = vld [vmem:[#allocation2 + $0x40] sm:$0xf]  ;;  %v805_v6 = vld [vmem:[#allocation2 + $0x44] sm:$0x1]  ;;  %v3557_v45 = vmul.f32 %v6185_v46, %v7639_v63  ;;  %v3709_v46 = vld [vmem:[#allocation2 + $0x14] sm:$0x1] }
  0x9a   : > { %6744 = vmatpush3.bf16.msra.mxu1 %v7144_v54  ;;  %6739 = vmatprep.mubr.bf16.mxu1 %v5459_v53  ;;  %v2261_v17 = vld [vmem:[#allocation2 + $0x40] sm:$0xf]  ;;  %v8062_v42 = vcombine.low %v8056_v15, %v805_v6  ;;  %v2264_v55 = vld [vmem:[#allocation2 + $0x44] sm:$0x1]  ;;  %v3572_v53 = vmax.f32 %v3564_v56, 0.0  ;;  %v5460_v41 = vcombine.low %v7985_v58, %v8056_v15 }
  0x9b   : > { %6745 = vmatprep.subr.bf16.mxu1 %v7147_v19  ;;  %v2262_v54 = vsel %vm7696_vm4, %v2201_v30, %v2261_v17  ;;  %v2265_v29 = vsel %vm7703_vm5, %v2202_v37, %v2264_v55  ;;  %v3580_v30 = vmul.f32 %v8130_v61, %v3571_v43  ;;  %v3565_v37 = vadd.f32 %v3557_v45, %v7652_v14  ;;  %v8154_v6 = vld [vmem:[#allocation2 + $0x10] sm:$0xf]  ;;  %v8161_v55 = vld [vmem:[#allocation2] sm:$0xf] }
  0x9c   : > { %2263 = vst [vmem:[#allocation2 + $0x40] sm:$0xf] %v2262_v54  ;;  %v1310_v59 = vrot.slane %v8062_v42, 1  ;;  %2266 = vst [vmem:[#allocation2 + $0x44] sm:$0x1] %v2265_v29  ;;  %v1306_v3 = vshll.u32 %v8062_v42, 16  ;;  %v6186_v17 = vunpack.c.h.bf16 %v6221_v11 }
  0x9d   : > { %v807_v54 = vld [vmem:[#allocation2 + $0x4c] sm:$0x1]  ;;  %v3706_v11 = vld [vmem:[#allocation2 + $0x10] sm:$0xf] }
  0x9e   : > { %1571 = vmatmul.mubr.bf16.vlgmr.msra.gmra.mrb[16].mxu0 %v5451_v4  ;;  %6746 = vmatpush3.bf16.msra.mxu1 %v7147_v19  ;;  %v5462_v25 = vcombine.low %v911_v1, %v1310_v59  ;;  %v7156_v1 = vld [vmem:[%s9136_s5 + $0x220] sm:$0xff]   ;;  %v1308_v49 = vrot.slane %v1306_v3, 1  ;;  %v7162_v19 = vld [vmem:[%s9136_s5 + $0x230] sm:$0xff]   ;;  %v7164_v4 = vld [vmem:[%s9136_s5 + $0x1a8] sm:$0xff]   ;;  %v3558_v48 = vmul.f32 %v6186_v17, %v7639_v63 }
  0x9f   : > { %6332 = vmatpush3.bf16.msra.mxu0 %v7148_v47  ;;  %6747 = vmatprep.subr.bf16.mxu1 %v7150_v44  ;;  %v3581_v47 = vmul.f32 %v8130_v61, %v3572_v53 }
  0xa0   : > { %6333 = vmatprep.subr.bf16.mxu0 %v7149_v16  ;;  %1578 = vmatprep.mubr.bf16.mxu0 %v5455_v32  ;;  %v6131_v16 = vpack.c.bf16 %v3580_v30, %v3580_v30  ;;  %v3573_v32 = vmax.f32 %v3565_v37, 0.0 }
  0xa1   : > { %6740 = vmatmul.mubr.bf16.gmra.mrb[4].mxu1 %v5462_v25  ;;  %v6132_v29 = vpack.c.bf16 %v3581_v47, %v3581_v47  ;;  %v7165_v25 = vld [vmem:[%s9136_s5 + $0x1f0] sm:$0xff]   ;;  %v7172_v47 = vld [vmem:[%s9136_s5 + $0x2c8] sm:$0xff]  }
  0xa2   : > { %6748 = vmatpush3.bf16.msra.mxu1 %v7150_v44  ;;  %6759 = vmatprep.mubr.bf16.mxu1 %v7814_v2  ;;  %v1304_v2 = vshrl.u32 %v8062_v42, 16  ;;  %v8159_v44 = vld [vmem:[#allocation2 + $0x48] sm:$0xf]  ;;  %v3621_v3 = vshrl.u32 %v6131_v16, 16  ;;  %v7177_v42 = vld [vmem:[%s9136_s5 + $0x290] sm:$0xff]  }
  0xa3   : > { %6334 = vmatpush3.bf16.msra.mxu0 %v7151_v27  ;;  %6749 = vmatprep.subr.bf16.mxu1 %v7153_v33  ;;  %v5713_v27 = vcombine.low %v8146_v26, %v8154_v6 }
  0xa4   : > { %6335 = vmatprep.subr.bf16.mxu0 %v7152_v60  ;;  %v8126_v28 = vor.u32 %v1308_v49, %v1304_v2  ;;  %v2270_v60 = vld [vmem:[#allocation2 + $0xc] sm:$0x1]  ;;  %v3632_v49 = vshll.u32 %v6132_v29, 16  ;;  %v3623_v20 = vrot.slane %v3621_v3, 7  ;;  %v6222_v3 = vld [vmem:[%s7513_s27 + $0x10] sm:$0xff]  }
  0xa5   : > { %v3703_v2 = vld [vmem:[#allocation2 + $0xc] sm:$0x1]  ;;  %v8191_v43 = vcombine.low %v8146_v26, %v2270_v60 }
  0xa6   : > { %1579 = vmatmul.mubr.bf16.gmra.mrb[20].mxu0 %v5454_v62  ;;  %6750 = vmatpush3.bf16.msra.mxu1 %v7153_v33  ;;  %v5461_v31 = vcombine.low %v8022_v57, %v8126_v28  ;;  %v7166_v57 = vld [vmem:[%s9136_s5 + $0x238] sm:$0xff]   ;;  %v2268_v33 = vld [vmem:[#allocation2 + $0x4] sm:$0x1]  ;;  %v3624_v62 = vshll.u32 %v6131_v16, 16  ;;  %v3627_v58 = vrot.slane %v3623_v20, 4 }
  0xa7   : > { %6336 = vmatpush3.bf16.msra.mxu0 %v7154_v5  ;;  %6751 = vmatprep.subr.bf16.mxu1 %v7156_v1  ;;  %v3582_v5 = vmul.f32 %v8130_v61, %v3573_v32  ;;  %v8185_v39 = vcombine.low %v8161_v55, %v2268_v33  ;;  %v3712_v16 = vld [vmem:[#allocation2 + $0x18] sm:$0xf]  ;;  %v3715_v32 = vld [vmem:[#allocation2 + $0x1c] sm:$0x1] }
  0xa8   : > { %6337 = vmatprep.subr.bf16.mxu0 %v7155_v10  ;;  %1586 = vmatprep.mubr.bf16.mxu0 %v5458_v36  ;;  %v3629_v10 = vshrl.u32 %v6132_v29, 16  ;;  %v7169_v36 = vld [vmem:[%s9136_s5 + $0x2c0] sm:$0xff]   ;;  %v3626_v56 = vor.u32 %v3624_v62, %v3623_v20  ;;  %v3704_v30 = vsel %vm7703_vm5, %v3627_v58, %v3703_v2  ;;  %v7175_v62 = vld [vmem:[%s9136_s5 + $0x2d0] sm:$0xff]  }
  0xa9   : > { %3705 = vst [vmem:[#allocation2 + $0xc] sm:$0x1] %v3704_v30  ;;  %v2383_v33 = vrot.slane %v8185_v39, 1 }
  0xaa   : > { %6752 = vmatpush3.bf16.msra.mxu1 %v7156_v1  ;;  %v7167_v1 = vld [vmem:[%s9136_s5 + $0x1b0] sm:$0xff]  }
  0xab   : > { %6338 = vmatpush3.bf16.msra.mxu0 %v7157_v50  ;;  %6753 = vmatprep.subr.bf16.mxu1 %v7159_v12  ;;  %v6133_v50 = vpack.c.bf16 %v3582_v5, %v3582_v5  ;;  %v8221_v5 = vld [vmem:[#allocation2 + $0x18] sm:$0xf] }
  0xac   : > { %6339 = vmatprep.subr.bf16.mxu0 %v7158_v22  ;;  %v8182_v22 = vcombine.low %v8159_v44, %v807_v54  ;;  %v7171_v54 = vld [vmem:[%s9136_s5 + $0x280] sm:$0xff]   ;;  %v8468_v9 = vcombine.low %v8154_v6, %v8221_v5 }
  0xad   : > { %v3637_v45 = vshrl.u32 %v6133_v50, 16  ;;  %v3640_v53 = vshll.u32 %v6133_v50, 16 }
  0xae   : > { %1587 = vmatmul.mubr.bf16.gmra.mrb[24].mxu0 %v5457_v24  ;;  %6754 = vmatpush3.bf16.msra.mxu1 %v7159_v12  ;;  %v3631_v12 = vrot.slane %v3629_v10, 7  ;;  %v1696_v29 = vrot.slane %v8182_v22, 1  ;;  %v6189_v10 = vunpack.c.l.bf16 %v6222_v3  ;;  %v1692_v20 = vshll.u32 %v8182_v22, 16 }
  0xaf   : > { %6340 = vmatpush3.bf16.msra.mxu0 %v7160_v34  ;;  %6755 = vmatprep.subr.bf16.mxu1 %v7162_v19  ;;  %v3639_v17 = vrot.slane %v3637_v45, 7  ;;  %v1690_v58 = vshrl.u32 %v8182_v22, 16 }
  0xb0   : > { %6341 = vmatprep.subr.bf16.mxu0 %v7161_v38  ;;  %1594 = vmatprep.mubr.bf16.mxu0 %v5461_v31  ;;  %v3634_v24 = vor.u32 %v3632_v49, %v3631_v12  ;;  %v3635_v34 = vrot.slane %v3631_v12, 4  ;;  %v7170_v38 = vld [vmem:[%s9136_s5 + $0x1b8] sm:$0xff]   ;;  %v3701_v31 = vsel %vm7696_vm4, %v3626_v56, %v3700_v21  ;;  %v6190_v21 = vunpack.c.h.bf16 %v6222_v3 }
  0xb1   : > { %3702 = vst [vmem:[#allocation2 + $0x8] sm:$0xf] %v3701_v31  ;;  %v3643_v60 = vrot.slane %v3639_v17, 4  ;;  %v1694_v31 = vrot.slane %v1692_v20, 1 }
  0xb2   : > { %6756 = vmatpush3.bf16.msra.mxu1 %v7162_v19  ;;  %v3566_v19 = vadd.f32 %v3558_v48, %v7652_v14  ;;  %v3707_v37 = vsel %vm7696_vm4, %v3634_v24, %v3706_v11  ;;  %v3559_v48 = vmul.f32 %v6189_v10, %v7639_v63  ;;  %v3560_v12 = vmul.f32 %v6190_v21, %v7639_v63  ;;  %v7176_v11 = vld [vmem:[%s9136_s5 + $0x248] sm:$0xff]   ;;  %v7182_v21 = vld [vmem:[%s9136_s5 + $0x258] sm:$0xff]  }
  0xb3   : > { %6342 = vmatpush3.bf16.msra.mxu0 %v7164_v4  ;;  %6757 = vmatprep.subr.bf16.mxu1 %v7166_v57  ;;  %v2272_v4 = vld [vmem:[#allocation2 + $0x14] sm:$0x1]  ;;  %3708 = vst [vmem:[#allocation2 + $0x10] sm:$0xf] %v3707_v37  ;;  %v3716_v49 = vsel %vm7703_vm5, %v3643_v60, %v3715_v32  ;;  %v2328_v37 = vshrl.u32 %v8185_v39, 16  ;;  %v2337_v32 = vshll.u32 %v8191_v43, 16 }
  0xb4   : > { %6343 = vmatprep.subr.bf16.mxu0 %v7165_v25  ;;  %v3642_v25 = vor.u32 %v3640_v53, %v3639_v17  ;;  %v8236_v50 = vcombine.low %v8154_v6, %v2272_v4  ;;  %v3568_v24 = vadd.f32 %v3560_v12, %v7652_v14  ;;  %v7181_v4 = vld [vmem:[%s9136_s5 + $0x2e0] sm:$0xff]   ;;  %v2330_v17 = vshll.u32 %v8185_v39, 16  ;;  %v7184_v12 = vld [vmem:[%s9136_s5 + $0x2e8] sm:$0xff]  }
  0xb6   : > { %1595 = vmatmul.mubr.bf16.gmra.mrb[28].mxu0 %v5460_v41  ;;  %6758 = vmatpush3.bf16.msra.mxu1 %v7166_v57  ;;  %v3710_v57 = vsel %vm7703_vm5, %v3635_v34, %v3709_v46  ;;  %v3713_v2 = vsel %vm7696_vm4, %v3642_v25, %v3712_v16  ;;  %v3567_v46 = vadd.f32 %v3559_v48, %v7652_v14  ;;  %v2385_v30 = vrot.slane %v8236_v50, 1 }
  0xb7   : > { %6344 = vmatpush3.bf16.msra.mxu0 %v7167_v1  ;;  %6767 = vmatprep.subr.bf16.mxu1 %v7169_v36  ;;  %3711 = vst [vmem:[#allocation2 + $0x14] sm:$0x1] %v3710_v57  ;;  %v3574_v1 = vmax.f32 %v3566_v19, 0.0  ;;  %3714 = vst [vmem:[#allocation2 + $0x18] sm:$0xf] %v3713_v2  ;;  %v8259_v19 = vld [vmem:[%s7513_s27 + $0x18] sm:$0xff]  }
  0xb8   : > { %6345 = vmatprep.subr.bf16.mxu0 %v7168_v8  ;;  %1938 = vmatprep.mubr.bf16.mxu0 %v7863_v52  ;;  %v7173_v52 = vld [vmem:[%s9136_s5 + $0x240] sm:$0xff]   ;;  %v5538_v8 = vcombine.low %v1310_v59, %v1696_v29  ;;  %v6193_v22 = vunpack.c.l.bf16 %v8259_v19  ;;  %v2335_v57 = vshrl.u32 %v8191_v43, 16  ;;  %v3576_v60 = vmax.f32 %v3568_v24, 0.0  ;;  %v3724_v24 = vld [vmem:[#allocation2 + $0x28] sm:$0xf] }
  0xb9   : > { %6760 = vmatmul.mubr.bf16.vlgmr.msra.gmra.mrb[0].mxu1 %v7916_v0  ;;  %v2384_v0 = vrot.slane %v8191_v43, 1  ;;  %v3583_v41 = vmul.f32 %v8130_v61, %v3574_v1  ;;  %v3718_v29 = vld [vmem:[#allocation2 + $0x20] sm:$0xf] }
  0xba   : > { %6768 = vmatpush3.bf16.msra.mxu1 %v7169_v36  ;;  %6763 = vmatprep.mubr.bf16.mxu1 %v8011_v7  ;;  %v2274_v36 = vld [vmem:[#allocation2 + $0x1c] sm:$0x1]  ;;  %v7174_v7 = vld [vmem:[%s9136_s5 + $0x288] sm:$0xff]   ;;  %v3561_v25 = vmul.f32 %v6193_v22, %v7639_v63 }
  0xbb   : > { %6346 = vmatpush3.bf16.msra.mxu0 %v7170_v38  ;;  %6769 = vmatprep.subr.bf16.mxu1 %v7172_v47  ;;  %3717 = vst [vmem:[#allocation2 + $0x1c] sm:$0x1] %v3716_v49  ;;  %v5630_v59 = vcombine.low %v2383_v33, %v2384_v0  ;;  %v6134_v56 = vpack.c.bf16 %v3583_v41, %v3583_v41  ;;  %v3575_v38 = vmax.f32 %v3567_v46, 0.0  ;;  %v3721_v33 = vld [vmem:[#allocation2 + $0x24] sm:$0x1] }
  0xbc   : > { %6383 = vmatprep.subr.bf16.mxu0 %v7171_v54  ;;  %v8256_v34 = vcombine.low %v8221_v5, %v2274_v36  ;;  %v8284_v36 = vld [vmem:[#allocation2 + $0x24] sm:$0x1]  ;;  %v3569_v2 = vadd.f32 %v3561_v25, %v7652_v14  ;;  %v3585_v49 = vmul.f32 %v8130_v61, %v3576_v60  ;;  %v1695_v46 = vor.u32 %v1694_v31, %v1690_v58  ;;  %v8312_v31 = vld [vmem:[#allocation2 + $0x28] sm:$0xf] }
  0xbd   : > { %v3645_v45 = vshrl.u32 %v6134_v56, 16  ;;  %v3648_v53 = vshll.u32 %v6134_v56, 16  ;;  %v3584_v54 = vmul.f32 %v8130_v61, %v3575_v38  ;;  %v2342_v56 = vshrl.u32 %v8236_v50, 16  ;;  %v7185_v38 = vld [vmem:[%s9136_s5 + $0x260] sm:$0xff]  }
  0xbe   : > { %1939 = vmatmul.mubr.bf16.vlgmr.msra.gmra.mrb[32].mxu0 %v7851_v35  ;;  %6770 = vmatpush3.bf16.msra.mxu1 %v7172_v47  ;;  %v7178_v35 = vld [vmem:[%s9136_s5 + $0x2d8] sm:$0xff]   ;;  %v2386_v3 = vrot.slane %v8256_v34, 1  ;;  %v2344_v58 = vshll.u32 %v8236_v50, 16  ;;  %v2284_v50 = vld [vmem:[#allocation2 + $0x44] sm:$0x1] }
  0xbf   : > { %6384 = vmatpush3.bf16.msra.mxu0 %v7173_v52  ;;  %6771 = vmatprep.subr.bf16.mxu1 %v7175_v62  ;;  %v7180_v47 = vld [vmem:[%s9136_s5 + $0x298] sm:$0xff]   ;;  %v3647_v16 = vrot.slane %v3645_v45, 7  ;;  %v8279_v52 = vld [vmem:[#allocation2 + $0x20] sm:$0xf]  ;;  %v7187_v45 = vld [vmem:[%s9136_s5 + $0x2f0] sm:$0xff]  }
  0xc0   : > { %6385 = vmatprep.subr.bf16.mxu0 %v7174_v7  ;;  %1946 = vmatprep.mubr.bf16.mxu0 %v7935_v18  ;;  %v7179_v18 = vld [vmem:[%s9136_s5 + $0x250] sm:$0xff]   ;;  %v7183_v7 = vld [vmem:[%s9136_s5 + $0x2a0] sm:$0xff]   ;;  %v5716_v6 = vcombine.low %v8221_v5, %v8279_v52 }
  0xc1   : > { %6764 = vmatmul.mubr.bf16.gmra.mrb[4].mxu1 %v5538_v8  ;;  %v3650_v10 = vor.u32 %v3648_v53, %v3647_v16  ;;  %v3651_v1 = vrot.slane %v3647_v16, 4  ;;  %v3727_v53 = vld [vmem:[#allocation2 + $0x2c] sm:$0x1] }
  0xc2   : > { %6772 = vmatpush3.bf16.msra.mxu1 %v7175_v62  ;;  %6783 = vmatprep.mubr.bf16.mxu1 %v5630_v59  ;;  %v6135_v62 = vpack.c.bf16 %v3584_v54, %v3584_v54  ;;  %v6136_v59 = vpack.c.bf16 %v3585_v49, %v3585_v49  ;;  %v2280_v49 = vld [vmem:[#allocation2 + $0x34] sm:$0x1] }
  0xc3   : > { %6386 = vmatpush3.bf16.msra.mxu0 %v7176_v11  ;;  %6773 = vmatprep.subr.bf16.mxu1 %v7178_v35  ;;  %v3719_v8 = vsel %vm7696_vm4, %v3650_v10, %v3718_v29  ;;  %v3722_v20 = vsel %vm7703_vm5, %v3651_v1, %v3721_v33  ;;  %v2339_v11 = vrot.slane %v2337_v32, 1  ;;  %v3730_v32 = vld [vmem:[#allocation2 + $0x30] sm:$0xf]  ;;  %v3733_v29 = vld [vmem:[#allocation2 + $0x34] sm:$0x1]  ;;  %v2351_v33 = vshll.u32 %v8256_v34, 16 }
  0xc4   : > { %6387 = vmatprep.subr.bf16.mxu0 %v7177_v42  ;;  %v3653_v48 = vshrl.u32 %v6135_v62, 16  ;;  %v3656_v41 = vshll.u32 %v6135_v62, 16  ;;  %3720 = vst [vmem:[#allocation2 + $0x20] sm:$0xf] %v3719_v8  ;;  %3723 = vst [vmem:[#allocation2 + $0x24] sm:$0x1] %v3722_v20  ;;  %v5537_v62 = vcombine.low %v8126_v28, %v1695_v46 }
  0xc5   : > { %v3577_v42 = vmax.f32 %v3569_v2, 0.0  ;;  %v8324_v2 = vld [vmem:[#allocation2 + $0x30] sm:$0xf]  ;;  %v8334_v20 = vor.u32 %v2339_v11, %v2335_v57  ;;  %v8351_v57 = vld [vmem:[#allocation2 + $0x38] sm:$0xf] }
  0xc6   : > { %1947 = vmatmul.mubr.bf16.gmra.mrb[36].mxu0 %v7940_v51  ;;  %6774 = vmatpush3.bf16.msra.mxu1 %v7178_v35  ;;  %v2332_v51 = vrot.slane %v2330_v17, 1  ;;  %v3655_v35 = vrot.slane %v3653_v48, 7  ;;  %v2278_v17 = vld [vmem:[#allocation2 + $0x2c] sm:$0x1]  ;;  %v7190_v28 = vld [vmem:[%s9136_s5 + $0x2b0] sm:$0xff]  }
  0xc7   : > { %6388 = vmatpush3.bf16.msra.mxu0 %v7179_v18  ;;  %6775 = vmatprep.subr.bf16.mxu1 %v7181_v4  ;;  %v3586_v22 = vmul.f32 %v8130_v61, %v3577_v42  ;;  %v3661_v18 = vshrl.u32 %v6136_v59, 16  ;;  %v3736_v42 = vld [vmem:[#allocation2 + $0x38] sm:$0xf]  ;;  %v3739_v11 = vld [vmem:[#allocation2 + $0x3c] sm:$0x1] }
  0xc8   : > { %6389 = vmatprep.subr.bf16.mxu0 %v7180_v47  ;;  %1954 = vmatprep.mubr.bf16.mxu0 %v8034_v40  ;;  %v3664_v47 = vshll.u32 %v6136_v59, 16  ;;  %v7186_v40 = vld [vmem:[%s9136_s5 + $0x2a8] sm:$0xff]   ;;  %v3658_v54 = vor.u32 %v3656_v41, %v3655_v35  ;;  %v3659_v16 = vrot.slane %v3655_v35, 4  ;;  %v2333_v8 = vor.u32 %v2332_v51, %v2328_v37  ;;  %v2282_v51 = vld [vmem:[#allocation2 + $0x3c] sm:$0x1]  ;;  %v7192_v35 = vld [vmem:[%s9136_s5 + $0x270] sm:$0xff]  }
  0xc9   : > { %v6137_v25 = vpack.c.bf16 %v3586_v22, %v3586_v22  ;;  %v3663_v60 = vrot.slane %v3661_v18, 7  ;;  %v5536_v22 = vcombine.low %v8056_v15, %v8159_v44  ;;  %v7193_v18 = vld [vmem:[%s9136_s5 + $0x2b8] sm:$0xff]   ;;  %v2349_v44 = vshrl.u32 %v8256_v34, 16  ;;  %v7229_v34 = vld [vmem:[%s9136_s5 + $0x448] sm:$0xff]  }
  0xca   : > { %6776 = vmatpush3.bf16.msra.mxu1 %v7181_v4  ;;  %v6194_v4 = vunpack.c.h.bf16 %v8259_v19  ;;  %v3725_v10 = vsel %vm7696_vm4, %v3658_v54, %v3724_v24  ;;  %v3728_v1 = vsel %vm7703_vm5, %v3659_v16, %v3727_v53  ;;  %v2346_v54 = vrot.slane %v2344_v58, 1  ;;  %v7197_v58 = vld [vmem:[%s9136_s5 + $0x278] sm:$0xff]  }
  0xcb   : > { %6390 = vmatpush3.bf16.msra.mxu0 %v7182_v21  ;;  %6777 = vmatprep.subr.bf16.mxu1 %v7184_v12  ;;  %v7189_v21 = vld [vmem:[%s9136_s5 + $0x268] sm:$0xff]   ;;  %3726 = vst [vmem:[#allocation2 + $0x28] sm:$0xf] %v3725_v10  ;;  %3729 = vst [vmem:[#allocation2 + $0x2c] sm:$0x1] %v3728_v1  ;;  %v3666_v48 = vor.u32 %v3664_v47, %v3663_v60  ;;  %v3667_v19 = vrot.slane %v3663_v60, 4  ;;  %v8387_v60 = vcombine.low %v8351_v57, %v2282_v51 }
  0xcc   : > { %6391 = vmatprep.subr.bf16.mxu0 %v7183_v7  ;;  %v3669_v7 = vshrl.u32 %v6137_v25, 16  ;;  %v3672_v41 = vshll.u32 %v6137_v25, 16  ;;  %v3562_v59 = vmul.f32 %v6194_v4, %v7639_v63  ;;  %v8349_v63 = vcombine.low %v8312_v31, %v2278_v17 }
  0xcd   : > { %v3731_v39 = vsel %vm7696_vm4, %v3666_v48, %v3730_v32  ;;  %v3734_v37 = vsel %vm7703_vm5, %v3667_v19, %v3733_v29  ;;  %v5629_v17 = vcombine.low %v2333_v8, %v8334_v20  ;;  %v2353_v16 = vrot.slane %v2351_v33, 1  ;;  %v7200_v33 = vld [vmem:[%s9136_s5 + $0x340] sm:$0xff]  }
  0xce   : > { %1955 = vmatmul.mubr.bf16.gmra.mrb[40].mxu0 %v8026_v13  ;;  %6778 = vmatpush3.bf16.msra.mxu1 %v7184_v12  ;;  %v7191_v13 = vld [vmem:[%s9136_s5 + $0x2f8] sm:$0xff]   ;;  %v8342_v12 = vcombine.low %v8279_v52, %v8284_v36  ;;  %v3671_v46 = vrot.slane %v3669_v7, 7  ;;  %3732 = vst [vmem:[#allocation2 + $0x30] sm:$0xf] %v3731_v39  ;;  %3735 = vst [vmem:[#allocation2 + $0x34] sm:$0x1] %v3734_v37  ;;  %v3570_v36 = vadd.f32 %v3562_v59, %v7652_v14 }
  0xcf   : > { %6392 = vmatpush3.bf16.msra.mxu0 %v7185_v38  ;;  %6779 = vmatprep.subr.bf16.mxu1 %v7187_v45  ;;  %v2388_v47 = vrot.slane %v8349_v63, 1  ;;  %v7196_v14 = vld [vmem:[%s9136_s5 + $0x380] sm:$0xff]   ;;  %v8374_v32 = vcombine.low %v8324_v2, %v2280_v49  ;;  %v8384_v25 = vcombine.low %v2385_v30, %v2386_v3  ;;  %v2365_v1 = vshll.u32 %v8349_v63, 16 }
  0xd0   : > { %6393 = vmatprep.subr.bf16.mxu0 %v7186_v40  ;;  %1962 = vmatprep.mubr.bf16.mxu0 %v5537_v62  ;;  %v2387_v24 = vrot.slane %v8342_v12, 1  ;;  %v3674_v38 = vor.u32 %v3672_v41, %v3671_v46  ;;  %v3675_v53 = vrot.slane %v3671_v46, 4  ;;  %v3578_v40 = vmax.f32 %v3570_v36, 0.0  ;;  %v7202_v7 = vld [vmem:[%s9136_s5 + $0x300] sm:$0xff]   ;;  %v7204_v41 = vld [vmem:[%s9136_s5 + $0x390] sm:$0xff]   ;;  %v7205_v36 = vld [vmem:[%s9136_s5 + $0x308] sm:$0xff]  }
  0xd1   : > { %v2358_v10 = vshll.u32 %v8342_v12, 16  ;;  %v8407_v49 = vor.u32 %v2353_v16, %v2349_v44  ;;  %v2389_v48 = vrot.slane %v8374_v32, 1  ;;  %v2356_v59 = vshrl.u32 %v8342_v12, 16 }
  0xd2   : > { %6780 = vmatpush3.bf16.msra.mxu1 %v7187_v45  ;;  %v3737_v45 = vsel %vm7696_vm4, %v3674_v38, %v3736_v42  ;;  %v3740_v15 = vsel %vm7703_vm5, %v3675_v53, %v3739_v11  ;;  %v3587_v29 = vmul.f32 %v8130_v61, %v3578_v40  ;;  %v7201_v61 = vld [vmem:[%s9136_s5 + $0x388] sm:$0xff]   ;;  %v8399_v4 = vcombine.low %v2387_v24, %v2388_v47  ;;  %v7206_v53 = vld [vmem:[%s9136_s5 + $0x350] sm:$0xff]  }
  0xd3   : > { %6394 = vmatpush3.bf16.msra.mxu0 %v7189_v21  ;;  %6781 = vmatprep.subr.bf16.mxu1 %v7191_v13  ;;  %3738 = vst [vmem:[#allocation2 + $0x38] sm:$0xf] %v3737_v45  ;;  %3741 = vst [vmem:[#allocation2 + $0x3c] sm:$0x1] %v3740_v15  ;;  %v8405_v21 = vor.u32 %v2346_v54, %v2342_v56  ;;  %v5628_v56 = vcombine.low %v8161_v55, %v8146_v26  ;;  %v7203_v42 = vld [vmem:[%s9136_s5 + $0x348] sm:$0xff]   ;;  %v2360_v46 = vrot.slane %v2358_v10, 1 }
  0xd4   : > { %6395 = vmatprep.subr.bf16.mxu0 %v7190_v28  ;;  %v6138_v62 = vpack.c.bf16 %v3587_v29, %v3587_v29  ;;  %v2390_v28 = vrot.slane %v8387_v60, 1  ;;  %v2363_v39 = vshrl.u32 %v8349_v63, 16  ;;  %v2367_v55 = vrot.slane %v2365_v1, 1  ;;  %v3745_v45 = vld [vmem:[#allocation2 + $0x44] sm:$0x1]  ;;  %v7215_v10 = vld [vmem:[%s9136_s5 + $0x3a8] sm:$0xff]  }
  0xd5   : > { %v8428_v37 = vcombine.low %v8405_v21, %v8407_v49  ;;  %v5715_v40 = vcombine.low %v2384_v0, %v2385_v30  ;;  %v8456_v15 = vor.u32 %v2360_v46, %v2356_v59  ;;  %v7208_v0 = vld [vmem:[%s9136_s5 + $0x310] sm:$0xff]   ;;  %v7209_v30 = vld [vmem:[%s9136_s5 + $0x358] sm:$0xff]   ;;  %v2370_v16 = vshrl.u32 %v8374_v32, 16  ;;  %v7214_v1 = vld [vmem:[%s9136_s5 + $0x360] sm:$0xff]  }
  0xd6   : > { %1963 = vmatmul.mubr.bf16.gmra.mrb[44].mxu0 %v5536_v22  ;;  %6782 = vmatpush3.bf16.msra.mxu1 %v7191_v13  ;;  %v3677_v19 = vshrl.u32 %v6138_v62, 16  ;;  %v3680_v8 = vshll.u32 %v6138_v62, 16  ;;  %v8440_v38 = vcombine.low %v2389_v48, %v2390_v28  ;;  %v2372_v22 = vshll.u32 %v8374_v32, 16  ;;  %v7211_v62 = vld [vmem:[%s9136_s5 + $0x318] sm:$0xff]   ;;  %v7230_v63 = vld [vmem:[%s9136_s5 + $0x3c0] sm:$0xff]  }
  0xd7   : > { %6396 = vmatpush3.bf16.msra.mxu0 %v7192_v35  ;;  %6791 = vmatprep.subr.bf16.mxu1 %v7196_v14  ;;  %v7207_v35 = vld [vmem:[%s9136_s5 + $0x398] sm:$0xff]   ;;  %v8458_v44 = vor.u32 %v2367_v55, %v2363_v39  ;;  %v2377_v29 = vshrl.u32 %v8387_v60, 16  ;;  %v7222_v39 = vld [vmem:[%s9136_s5 + $0x370] sm:$0xff]   ;;  %v8527_v55 = vcombine.low %v8324_v2, %v8351_v57  ;;  %v5717_v32 = vcombine.low %v8407_v49, %v8456_v15 }
  0xd8   : > { %6397 = vmatprep.subr.bf16.mxu0 %v7193_v18  ;;  %2664 = vmatprep.mubr.bf16.mxu0 %v5629_v17  ;;  %v3679_v13 = vrot.slane %v3677_v19, 7  ;;  %v2379_v18 = vshll.u32 %v8387_v60, 16  ;;  %v3742_v17 = vld [vmem:[#allocation2 + $0x40] sm:$0xf]  ;;  %v7223_v46 = vld [vmem:[%s9136_s5 + $0x3b8] sm:$0xff]   ;;  %v7234_v60 = vld [vmem:[%s9136_s5 + $0x410] sm:$0xff]  }
  0xd9   : > { %6784 = vmatmul.mubr.bf16.vlgmr.msra.gmra.mrb[0].mxu1 %v8384_v25  ;;  %v7235_v49 = vld [vmem:[%s9136_s5 + $0x458] sm:$0xff]  }
  0xda   : > { %6792 = vmatpush3.bf16.msra.mxu1 %v7196_v14  ;;  %6787 = vmatprep.mubr.bf16.mxu1 %v8399_v4  ;;  %v3682_v51 = vor.u32 %v3680_v8, %v3679_v13  ;;  %v3683_v11 = vrot.slane %v3679_v13, 4  ;;  %v8451_v14 = vld [vmem:[#allocation2 + $0x40] sm:$0xf]  ;;  %v7221_v13 = vld [vmem:[%s9136_s5 + $0x328] sm:$0xff]  }
  0xdb   : > { %6398 = vmatpush3.bf16.msra.mxu0 %v7197_v58  ;;  %6793 = vmatprep.subr.bf16.mxu1 %v7201_v61  ;;  %v8480_v58 = vcombine.low %v8456_v15, %v8458_v44  ;;  %v7216_v8 = vld [vmem:[%s9136_s5 + $0x320] sm:$0xff]  }
  0xdc   : > { %6435 = vmatprep.subr.bf16.mxu0 %v7200_v33  ;;  %v3743_v54 = vsel %vm7696_vm4, %v3682_v51, %v3742_v17  ;;  %v3746_v43 = vsel %vm7703_vm5, %v3683_v11, %v3745_v45  ;;  %v2374_v33 = vrot.slane %v2372_v22, 1  ;;  %v7224_v51 = vld [vmem:[%s9136_s5 + $0x330] sm:$0xff]   ;;  %v7226_v11 = vld [vmem:[%s9136_s5 + $0x440] sm:$0xff]   ;;  %v8545_v22 = vcombine.low %v8451_v14, %v2284_v50 }
  0xdd   : > { %3744 = vst [vmem:[#allocation2 + $0x40] sm:$0xf] %v3743_v54  ;;  %3747 = vst [vmem:[#allocation2 + $0x44] sm:$0x1] %v3746_v43  ;;  %v7241_v54 = vld [vmem:[%s9136_s5 + $0x468] sm:$0xff]   ;;  %v7240_v45 = vld [vmem:[%s9136_s5 + $0x420] sm:$0xff]   ;;  %v5719_v50 = vcombine.low %v8312_v31, %v8324_v2 }
  0xde   : > { %2665 = vmatmul.mubr.bf16.vlgmr.msra.gmra.mrb[48].mxu0 %v5628_v56  ;;  %6794 = vmatpush3.bf16.msra.mxu1 %v7201_v61  ;;  %v2381_v61 = vrot.slane %v2379_v18, 1  ;;  %v8493_v19 = vor.u32 %v2374_v33, %v2370_v16  ;;  %v7218_v56 = vld [vmem:[%s9136_s5 + $0x3b0] sm:$0xff]   ;;  %v5721_v18 = vcombine.low %v2388_v47, %v2389_v48  ;;  %v2790_v12 = vrot.slane %v8545_v22, 1  ;;  %v7231_v47 = vld [vmem:[%s9136_s5 + $0x408] sm:$0xff]   ;;  %v7248_v2 = vld [vmem:[%s9136_s5 + $0x478] sm:$0xff]  }
  0xdf   : > { %6436 = vmatpush3.bf16.msra.mxu0 %v7202_v7  ;;  %6795 = vmatprep.subr.bf16.mxu1 %v7204_v41  ;;  %v7233_v48 = vld [vmem:[%s9136_s5 + $0x3c8] sm:$0xff]   ;;  %v2786_v26 = vshll.u32 %v8545_v22, 16  ;;  %v7244_v43 = vld [vmem:[%s9136_s5 + $0x470] sm:$0xff]  }
  0xe0   : > { %6437 = vmatprep.subr.bf16.mxu0 %v7203_v42  ;;  %2672 = vmatprep.mubr.bf16.mxu0 %v8428_v37  ;;  %v8495_v7 = vor.u32 %v2381_v61, %v2377_v29  ;;  %v7217_v42 = vld [vmem:[%s9136_s5 + $0x368] sm:$0xff]   ;;  %v5720_v5 = vcombine.low %v8458_v44, %v8493_v19  ;;  %v7242_v44 = vld [vmem:[%s9136_s5 + $0x3e0] sm:$0xff]   ;;  %v7249_v33 = vld [vmem:[%s9136_s5 + $0x3f0] sm:$0xff]  }
  0xe1   : > { %6788 = vmatmul.mubr.bf16.gmra.mrb[4].mxu1 %v8440_v38  ;;  %v2788_v17 = vrot.slane %v2786_v26, 1  ;;  %v8638_v16 = vld [vmem:[#allocation2 + $0x48] sm:$0xf]  ;;  %v2286_v29 = vld [vmem:[#allocation2 + $0x4c] sm:$0x1]  ;;  %v7251_v61 = vld [vmem:[%s9136_s5 + $0x500] sm:$0xff]  }
  0xe2   : > { %6796 = vmatpush3.bf16.msra.mxu1 %v7204_v41  ;;  %6807 = vmatprep.mubr.bf16.mxu1 %v5715_v40  ;;  %v8499_v41 = vcombine.low %v8279_v52, %v8312_v31  ;;  %v8512_v59 = vcombine.low %v8493_v19, %v8495_v7  ;;  %v7237_v40 = vld [vmem:[%s9136_s5 + $0x418] sm:$0xff]   ;;  %v2784_v52 = vshrl.u32 %v8545_v22, 16  ;;  %v7246_v31 = vld [vmem:[%s9136_s5 + $0x3e8] sm:$0xff]  }
  0xe3   : > { %6438 = vmatpush3.bf16.msra.mxu0 %v7205_v36  ;;  %6797 = vmatprep.subr.bf16.mxu1 %v7207_v35  ;;  %v7225_v36 = vld [vmem:[%s9136_s5 + $0x378] sm:$0xff]   ;;  %v8650_v19 = vld [vmem:[#allocation2 + $0x8] sm:$0xf] }
  0xe4   : > { %6439 = vmatprep.subr.bf16.mxu0 %v7206_v53  ;;  %v5718_v53 = vcombine.low %v2386_v3, %v2387_v24  ;;  %v7228_v3 = vld [vmem:[%s9136_s5 + $0x400] sm:$0xff]   ;;  %v7232_v24 = vld [vmem:[%s9136_s5 + $0x450] sm:$0xff]   ;;  %v8614_v15 = vor.u32 %v2788_v17, %v2784_v52  ;;  %v8739_v52 = vld [vmem:[#allocation2 + $0x28] sm:$0xf] }
  0xe5   : > { %v7268_v17 = vld [vmem:[%s9136_s5 + $0x4e8] sm:$0xff]  }
  0xe6   : > { %2673 = vmatmul.mubr.bf16.gmra.mrb[52].mxu0 %v8468_v9  ;;  %6798 = vmatpush3.bf16.msra.mxu1 %v7207_v35  ;;  %v5714_v35 = vcombine.low %v8334_v20, %v8405_v21  ;;  %v7227_v20 = vld [vmem:[%s9136_s5 + $0x338] sm:$0xff]   ;;  %v5724_v21 = vcombine.low %v2390_v28, %v2790_v12  ;;  %v7238_v28 = vld [vmem:[%s9136_s5 + $0x460] sm:$0xff]  }
  0xe7   : > { %6440 = vmatpush3.bf16.msra.mxu0 %v7208_v0  ;;  %6799 = vmatprep.subr.bf16.mxu1 %v7210_v23  ;;  %v7243_v0 = vld [vmem:[%s9136_s5 + $0x428] sm:$0xff]  }
  0xe8   : > { %6441 = vmatprep.subr.bf16.mxu0 %v7209_v30  ;;  %2680 = vmatprep.mubr.bf16.mxu0 %v8480_v58  ;;  %v5723_v30 = vcombine.low %v8495_v7, %v8614_v15  ;;  %v3751_v7 = vld [vmem:[#allocation2 + $0xc] sm:$0x1] }
  0xea   : > { %6800 = vmatpush3.bf16.msra.mxu1 %v7210_v23  ;;  %v7247_v23 = vld [vmem:[%s9136_s5 + $0x430] sm:$0xff]  }
  0xeb   : > { %6442 = vmatpush3.bf16.msra.mxu0 %v7211_v62  ;;  %6801 = vmatprep.subr.bf16.mxu1 %v7215_v10  ;;  %v8646_v62 = vld [vmem:[#allocation2] sm:$0xf] }
  0xec   : > { %6443 = vmatprep.subr.bf16.mxu0 %v7214_v1  ;;  %v3749_v1 = vld [vmem:[#allocation2 + $0x4] sm:$0x1] }
  0xee   : > { %2681 = vmatmul.mubr.bf16.gmra.mrb[56].mxu0 %v8499_v41  ;;  %6802 = vmatpush3.bf16.msra.mxu1 %v7215_v10  ;;  %v5722_v10 = vcombine.low %v8351_v57, %v8451_v14  ;;  %v8662_v57 = vcombine.low %v8650_v19, %v3751_v7 }
  0xef   : > { %6444 = vmatpush3.bf16.msra.mxu0 %v7216_v8  ;;  %6803 = vmatprep.subr.bf16.mxu1 %v7218_v56  ;;  %v7250_v8 = vld [vmem:[%s9136_s5 + $0x438] sm:$0xff]  }
  0xf0   : > { %6445 = vmatprep.subr.bf16.mxu0 %v7217_v42  ;;  %2688 = vmatprep.mubr.bf16.mxu0 %v8512_v59  ;;  %v8659_v42 = vcombine.low %v8646_v62, %v3749_v1 }
  0xf2   : > { %6804 = vmatpush3.bf16.msra.mxu1 %v7218_v56  ;;  %v8656_v56 = vcombine.low %v8638_v16, %v2286_v29  ;;  %v3811_v26 = vshll.u32 %v8659_v42, 16 }
  0xf3   : > { %6446 = vmatpush3.bf16.msra.mxu0 %v7221_v13  ;;  %6805 = vmatprep.subr.bf16.mxu1 %v7223_v46  ;;  %v7252_v13 = vld [vmem:[%s9136_s5 + $0x3f8] sm:$0xff]  }
  0xf4   : > { %6447 = vmatprep.subr.bf16.mxu0 %v7222_v39  ;;  %v7253_v39 = vld [vmem:[%s9136_s5 + $0x4c0] sm:$0xff]   ;;  %v3172_v22 = vshll.u32 %v8656_v56, 16 }
  0xf6   : > { %2689 = vmatmul.mubr.bf16.gmra.mrb[60].mxu0 %v8527_v55  ;;  %6806 = vmatpush3.bf16.msra.mxu1 %v7223_v46  ;;  %v7254_v46 = vld [vmem:[%s9136_s5 + $0x508] sm:$0xff]  }
  0xf7   : > { %6448 = vmatpush3.bf16.msra.mxu0 %v7224_v51  ;;  %6815 = vmatprep.subr.bf16.mxu1 %v7226_v11  ;;  %v3176_v51 = vrot.slane %v8656_v56, 1 }
  0xf8   : > { %6449 = vmatprep.subr.bf16.mxu0 %v7225_v36  ;;  %3050 = vmatprep.mubr.bf16.mxu0 %v5714_v35  ;;  %v3865_v36 = vrot.slane %v8662_v57, 1  ;;  %v7257_v35 = vld [vmem:[%s9136_s5 + $0x510] sm:$0xff]  }
  0xf9   : > { %6808 = vmatmul.mubr.bf16.vlgmr.msra.gmra.mrb[0].mxu1 %v5718_v53  ;;  %v7258_v53 = vld [vmem:[%s9136_s5 + $0x488] sm:$0xff]  }
  0xfa   : > { %6816 = vmatpush3.bf16.msra.mxu1 %v7226_v11  ;;  %6811 = vmatprep.mubr.bf16.mxu1 %v5721_v18  ;;  %v3864_v11 = vrot.slane %v8659_v42, 1 }
  0xfb   : > { %6450 = vmatpush3.bf16.msra.mxu0 %v7227_v20  ;;  %6817 = vmatprep.subr.bf16.mxu1 %v7229_v34  ;;  %v7260_v20 = vld [vmem:[%s9136_s5 + $0x518] sm:$0xff]  }
  0xfc   : > { %6487 = vmatprep.subr.bf16.mxu0 %v7228_v3  ;;  %v5892_v18 = vcombine.low %v3864_v11, %v3865_v36  ;;  %v7262_v3 = vld [vmem:[%s9136_s5 + $0x4d8] sm:$0xff]  }
  0xfd   : > { %v8790_v11 = vld [vmem:[#allocation2 + $0x38] sm:$0xf] }
  0xfe   : > { %3051 = vmatmul.mubr.bf16.vlgmr.msra.gmra.mrb[64].mxu0 %v5713_v27  ;;  %6818 = vmatpush3.bf16.msra.mxu1 %v7229_v34  ;;  %v7236_v27 = vld [vmem:[%s9136_s5 + $0x3d0] sm:$0xff]  }
  0xff   : > { %6488 = vmatpush3.bf16.msra.mxu0 %v7230_v63  ;;  %6819 = vmatprep.subr.bf16.mxu1 %v7232_v24  ;;  %v7261_v34 = vld [vmem:[%s9136_s5 + $0x490] sm:$0xff]   ;;  %v3174_v63 = vrot.slane %v3172_v22, 1  ;;  %v7283_v22 = vld [vmem:[%s9136_s5 + $0x5c8] sm:$0xff]  }
 0x100   : > { %6489 = vmatprep.subr.bf16.mxu0 %v7231_v47  ;;  %3058 = vmatprep.mubr.bf16.mxu0 %v5717_v32  ;;  %v7266_v47 = vld [vmem:[%s9136_s5 + $0x528] sm:$0xff]   ;;  %v8720_v32 = vld [vmem:[#allocation2 + $0x10] sm:$0xf] }
 0x101   : > { %6812 = vmatmul.mubr.bf16.gmra.mrb[4].mxu1 %v5724_v21  ;;  %v3753_v21 = vld [vmem:[#allocation2 + $0x14] sm:$0x1] }
 0x102   : > { %6820 = vmatpush3.bf16.msra.mxu1 %v7232_v24  ;;  %6831 = vmatprep.mubr.bf16.mxu1 %v8384_v25  ;;  %v7239_v25 = vld [vmem:[%s9136_s5 + $0x3d8] sm:$0xff]  }
 0x103   : > { %6490 = vmatpush3.bf16.msra.mxu0 %v7233_v48  ;;  %6821 = vmatprep.subr.bf16.mxu1 %v7235_v49  ;;  %v7264_v24 = vld [vmem:[%s9136_s5 + $0x498] sm:$0xff]  }
 0x104   : > { %6491 = vmatprep.subr.bf16.mxu0 %v7234_v60  ;;  %v8722_v48 = vld [vmem:[#allocation2 + $0x18] sm:$0xf]  ;;  %v3755_v60 = vld [vmem:[#allocation2 + $0x1c] sm:$0x1] }
 0x106   : > { %3059 = vmatmul.mubr.bf16.gmra.mrb[68].mxu0 %v5716_v6  ;;  %6822 = vmatpush3.bf16.msra.mxu1 %v7235_v49  ;;  %v7265_v49 = vld [vmem:[%s9136_s5 + $0x4e0] sm:$0xff]   ;;  %v3818_v6 = vshll.u32 %v8662_v57, 16 }
 0x107   : > { %6492 = vmatpush3.bf16.msra.mxu0 %v7236_v27  ;;  %6823 = vmatprep.subr.bf16.mxu1 %v7238_v28 }
 0x108   : > { %6493 = vmatprep.subr.bf16.mxu0 %v7237_v40  ;;  %3066 = vmatprep.mubr.bf16.mxu0 %v5720_v5  ;;  %v3757_v40 = vld [vmem:[#allocation2 + $0x24] sm:$0x1]  ;;  %v7269_v5 = vld [vmem:[%s9136_s5 + $0x530] sm:$0xff]  }
 0x10a   : > { %6824 = vmatpush3.bf16.msra.mxu1 %v7238_v28  ;;  %v8731_v28 = vld [vmem:[#allocation2 + $0x20] sm:$0xf] }
 0x10b   : > { %6494 = vmatpush3.bf16.msra.mxu0 %v7239_v25  ;;  %6825 = vmatprep.subr.bf16.mxu1 %v7241_v54  ;;  %v8748_v25 = vcombine.low %v8722_v48, %v3755_v60  ;;  %v7285_v60 = vld [vmem:[%s9136_s5 + $0x540] sm:$0xff]  }
 0x10c   : > { %6495 = vmatprep.subr.bf16.mxu0 %v7240_v45  ;;  %v3809_v45 = vshrl.u32 %v8659_v42, 16  ;;  %v7274_v42 = vld [vmem:[%s9136_s5 + $0x4b0] sm:$0xff]  }
 0x10e   : > { %3067 = vmatmul.mubr.bf16.gmra.mrb[72].mxu0 %v5719_v50  ;;  %6826 = vmatpush3.bf16.msra.mxu1 %v7241_v54  ;;  %v3759_v54 = vld [vmem:[#allocation2 + $0x2c] sm:$0x1] }
 0x10f   : > { %6496 = vmatpush3.bf16.msra.mxu0 %v7242_v44  ;;  %6827 = vmatprep.subr.bf16.mxu1 %v7244_v43  ;;  %v3816_v44 = vshrl.u32 %v8662_v57, 16  ;;  %v7289_v57 = vld [vmem:[%s9136_s5 + $0x590] sm:$0xff]  }
 0x110   : > { %6497 = vmatprep.subr.bf16.mxu0 %v7243_v0  ;;  %3074 = vmatprep.mubr.bf16.mxu0 %v5723_v30  ;;  %v3820_v0 = vrot.slane %v3818_v6, 1  ;;  %v7271_v30 = vld [vmem:[%s9136_s5 + $0x4a8] sm:$0xff]  }
 0x112   : > { %6828 = vmatpush3.bf16.msra.mxu1 %v7244_v43  ;;  %v3813_v43 = vrot.slane %v3811_v26, 1  ;;  %v7287_v26 = vld [vmem:[%s9136_s5 + $0x5d0] sm:$0xff]  }
 0x113   : > { %6498 = vmatpush3.bf16.msra.mxu0 %v7246_v31  ;;  %6829 = vmatprep.subr.bf16.mxu1 %v7248_v2  ;;  %v7273_v31 = vld [vmem:[%s9136_s5 + $0x538] sm:$0xff]  }
 0x114   : > { %6499 = vmatprep.subr.bf16.mxu0 %v7247_v23  ;;  %v8763_v23 = vcombine.low %v8739_v52, %v3759_v54 }
 0x116   : > { %3075 = vmatmul.mubr.bf16.gmra.mrb[76].mxu0 %v5722_v10  ;;  %6830 = vmatpush3.bf16.msra.mxu1 %v7248_v2  ;;  %v8760_v2 = vcombine.low %v8731_v28, %v3757_v40  ;;  %v3832_v10 = vshll.u32 %v8748_v25, 16  ;;  %v3869_v7 = vrot.slane %v8763_v23, 1  ;;  %v3844_v40 = vshrl.u32 %v8763_v23, 16 }
 0x117   : > { %6500 = vmatpush3.bf16.msra.mxu0 %v7249_v33  ;;  %6839 = vmatprep.subr.bf16.mxu1 %v7251_v61  ;;  %v3867_v33 = vrot.slane %v8748_v25, 1 }
 0x118   : > { %6501 = vmatprep.subr.bf16.mxu0 %v7250_v8  ;;  %3418 = vmatprep.mubr.bf16.mxu0 %v8428_v37  ;;  %v7255_v37 = vld [vmem:[%s9136_s5 + $0x480] sm:$0xff]   ;;  %v3868_v1 = vrot.slane %v8760_v2, 1  ;;  %v8775_v8 = vor.u32 %v3820_v0, %v3816_v44  ;;  %v3837_v6 = vshrl.u32 %v8760_v2, 16  ;;  %v7290_v44 = vld [vmem:[%s9136_s5 + $0x5d8] sm:$0xff]   ;;  %v8878_v0 = vcombine.low %v8720_v32, %v8722_v48 }
 0x119   : > { %6832 = vmatmul.mubr.bf16.vlgmr.msra.gmra.mrb[0].mxu1 %v8399_v4  ;;  %v7256_v4 = vld [vmem:[%s9136_s5 + $0x4c8] sm:$0xff]  }
 0x11a   : > { %6840 = vmatpush3.bf16.msra.mxu1 %v7251_v61  ;;  %6835 = vmatprep.mubr.bf16.mxu1 %v8440_v38  ;;  %v5800_v38 = vcombine.low %v2790_v12, %v3176_v51  ;;  %v3170_v12 = vshrl.u32 %v8656_v56, 16  ;;  %v8777_v56 = vld [vmem:[#allocation2 + $0x30] sm:$0xf]  ;;  %v7275_v51 = vld [vmem:[%s9136_s5 + $0x4f8] sm:$0xff]  }
 0x11b   : > { %6502 = vmatpush3.bf16.msra.mxu0 %v7252_v13  ;;  %6841 = vmatprep.subr.bf16.mxu1 %v7254_v46  ;;  %v7278_v13 = vld [vmem:[%s9136_s5 + $0x5c0] sm:$0xff]  }
 0x11c   : > { %6539 = vmatprep.subr.bf16.mxu0 %v7253_v39  ;;  %v3175_v27 = vor.u32 %v3174_v63, %v3170_v12  ;;  %v5798_v39 = vcombine.low %v8451_v14, %v8638_v16  ;;  %v7279_v14 = vld [vmem:[%s9136_s5 + $0x4b8] sm:$0xff]   ;;  %v7282_v12 = vld [vmem:[%s9136_s5 + $0x580] sm:$0xff]  }
 0x11e   : > { %3419 = vmatmul.mubr.bf16.vlgmr.msra.gmra.mrb[80].mxu0 %v8468_v9  ;;  %6842 = vmatpush3.bf16.msra.mxu1 %v7254_v46  ;;  %v7259_v9 = vld [vmem:[%s9136_s5 + $0x4d0] sm:$0xff]   ;;  %v5799_v50 = vcombine.low %v8614_v15, %v3175_v27 }
 0x11f   : > { %6540 = vmatpush3.bf16.msra.mxu0 %v7255_v37  ;;  %6843 = vmatprep.subr.bf16.mxu1 %v7257_v35  ;;  %v7272_v15 = vld [vmem:[%s9136_s5 + $0x4f0] sm:$0xff]   ;;  %v3763_v37 = vld [vmem:[#allocation2 + $0x3c] sm:$0x1] }
 0x120   : > { %6541 = vmatprep.subr.bf16.mxu0 %v7256_v4  ;;  %3426 = vmatprep.mubr.bf16.mxu0 %v8480_v58  ;;  %v7263_v58 = vld [vmem:[%s9136_s5 + $0x520] sm:$0xff]   ;;  %v3761_v46 = vld [vmem:[#allocation2 + $0x34] sm:$0x1]  ;;  %v3830_v4 = vshrl.u32 %v8748_v25, 16  ;;  %v7313_v25 = vld [vmem:[%s9136_s5 + $0x578] sm:$0xff]  }
 0x121   : > { %6836 = vmatmul.mubr.bf16.gmra.mrb[4].mxu1 %v5800_v38 }
 0x122   : > { %6844 = vmatpush3.bf16.msra.mxu1 %v7257_v35  ;;  %6855 = vmatprep.mubr.bf16.mxu1 %v5892_v18  ;;  %v3834_v18 = vrot.slane %v3832_v10, 1 }
 0x123   : > { %6542 = vmatpush3.bf16.msra.mxu0 %v7258_v53  ;;  %6845 = vmatprep.subr.bf16.mxu1 %v7260_v20 }
 0x124   : > { %6543 = vmatprep.subr.bf16.mxu0 %v7259_v9  ;;  %v8808_v9 = vcombine.low %v8790_v11, %v3763_v37 }
 0x126   : > { %3427 = vmatmul.mubr.bf16.gmra.mrb[84].mxu0 %v8499_v41  ;;  %6846 = vmatpush3.bf16.msra.mxu1 %v7260_v20  ;;  %v7267_v41 = vld [vmem:[%s9136_s5 + $0x4a0] sm:$0xff]   ;;  %v8805_v20 = vcombine.low %v8777_v56, %v3761_v46  ;;  %v7299_v46 = vld [vmem:[%s9136_s5 + $0x5e8] sm:$0xff]  }
 0x127   : > { %6544 = vmatpush3.bf16.msra.mxu0 %v7261_v34  ;;  %6847 = vmatprep.subr.bf16.mxu1 %v7263_v58  ;;  %v8817_v34 = vcombine.low %v3868_v1, %v3869_v7 }
 0x128   : > { %6545 = vmatprep.subr.bf16.mxu0 %v7262_v3  ;;  %3434 = vmatprep.mubr.bf16.mxu0 %v8512_v59  ;;  %v8745_v59 = vcombine.low %v8720_v32, %v3753_v21  ;;  %v3839_v3 = vshll.u32 %v8760_v2, 16  ;;  %v3871_v21 = vrot.slane %v8808_v9, 1  ;;  %v7315_v2 = vld [vmem:[%s9136_s5 + $0x688] sm:$0xff]  }
 0x12a   : > { %6848 = vmatpush3.bf16.msra.mxu1 %v7263_v58  ;;  %v3866_v29 = vrot.slane %v8745_v59, 1  ;;  %v3825_v61 = vshll.u32 %v8745_v59, 16  ;;  %v3823_v35 = vshrl.u32 %v8745_v59, 16  ;;  %v3846_v58 = vshll.u32 %v8763_v23, 16 }
 0x12b   : > { %6546 = vmatpush3.bf16.msra.mxu0 %v7264_v24  ;;  %6849 = vmatprep.subr.bf16.mxu1 %v7266_v47  ;;  %v8826_v24 = vor.u32 %v3834_v18, %v3830_v4  ;;  %v3841_v27 = vrot.slane %v3839_v3, 1  ;;  %v3860_v59 = vshll.u32 %v8808_v9, 16  ;;  %v8912_v4 = vcombine.low %v8731_v28, %v8739_v52  ;;  %v7303_v18 = vld [vmem:[%s9136_s5 + $0x5f0] sm:$0xff]   ;;  %v7302_v3 = vld [vmem:[%s9136_s5 + $0x5a8] sm:$0xff]  }
 0x12c   : > { %6547 = vmatprep.subr.bf16.mxu0 %v7265_v49  ;;  %v3827_v53 = vrot.slane %v3825_v61, 1  ;;  %v8802_v16 = vcombine.low %v3866_v29, %v3867_v33  ;;  %v5890_v49 = vcombine.low %v8646_v62, %v8650_v19  ;;  %v7286_v62 = vld [vmem:[%s9136_s5 + $0x588] sm:$0xff]   ;;  %v5977_v54 = vcombine.low %v3865_v36, %v3866_v29  ;;  %v7293_v29 = vld [vmem:[%s9136_s5 + $0x598] sm:$0xff]  }
 0x12d   : > { %v3853_v36 = vshll.u32 %v8805_v20, 16  ;;  %v3851_v61 = vshrl.u32 %v8805_v20, 16 }
 0x12e   : > { %3435 = vmatmul.mubr.bf16.gmra.mrb[88].mxu0 %v8527_v55  ;;  %6850 = vmatpush3.bf16.msra.mxu1 %v7266_v47  ;;  %v3814_v55 = vor.u32 %v3813_v43, %v3809_v45  ;;  %v8824_v63 = vor.u32 %v3827_v53, %v3823_v35  ;;  %v3870_v47 = vrot.slane %v8805_v20, 1  ;;  %v7288_v45 = vld [vmem:[%s9136_s5 + $0x548] sm:$0xff]   ;;  %v7301_v53 = vld [vmem:[%s9136_s5 + $0x560] sm:$0xff]  }
 0x12f   : > { %6548 = vmatpush3.bf16.msra.mxu0 %v7267_v41  ;;  %6851 = vmatprep.subr.bf16.mxu1 %v7269_v5  ;;  %v3848_v41 = vrot.slane %v3846_v58, 1  ;;  %v3855_v10 = vrot.slane %v3853_v36, 1  ;;  %v7317_v20 = vld [vmem:[%s9136_s5 + $0x600] sm:$0xff]  }
 0x130   : > { %6549 = vmatprep.subr.bf16.mxu0 %v7268_v17  ;;  %3442 = vmatprep.mubr.bf16.mxu0 %v5799_v50  ;;  %v5891_v38 = vcombine.low %v3814_v55, %v8775_v8  ;;  %v8853_v17 = vcombine.low %v3870_v47, %v3871_v21  ;;  %v8865_v50 = vor.u32 %v3841_v27, %v3837_v6  ;;  %v3858_v55 = vshrl.u32 %v8808_v9, 16  ;;  %v7307_v6 = vld [vmem:[%s9136_s5 + $0x5b0] sm:$0xff]  }
 0x131   : > { %v8867_v43 = vor.u32 %v3848_v41, %v3844_v40  ;;  %v8944_v40 = vcombine.low %v8777_v56, %v8790_v11 }
 0x132   : > { %6852 = vmatpush3.bf16.msra.mxu1 %v7269_v5  ;;  %v8847_v5 = vcombine.low %v8824_v63, %v8826_v24 }
 0x133   : > { %6550 = vmatpush3.bf16.msra.mxu0 %v7271_v30  ;;  %6853 = vmatprep.subr.bf16.mxu1 %v7273_v31  ;;  %v7292_v30 = vld [vmem:[%s9136_s5 + $0x550] sm:$0xff]  }
 0x134   : > { %6551 = vmatprep.subr.bf16.mxu0 %v7272_v15  ;;  %v8888_v15 = vcombine.low %v8865_v50, %v8867_v43 }
 0x136   : > { %3443 = vmatmul.mubr.bf16.gmra.mrb[92].mxu0 %v5798_v39  ;;  %6854 = vmatpush3.bf16.msra.mxu1 %v7273_v31  ;;  %v7294_v31 = vld [vmem:[%s9136_s5 + $0x5e0] sm:$0xff]  }
 0x137   : > { %6552 = vmatpush3.bf16.msra.mxu0 %v7274_v42  ;;  %6863 = vmatprep.subr.bf16.mxu1 %v7278_v13  ;;  %v3862_v42 = vrot.slane %v3860_v59, 1  ;;  %v7298_v39 = vld [vmem:[%s9136_s5 + $0x5a0] sm:$0xff]   ;;  %v7311_v59 = vld [vmem:[%s9136_s5 + $0x5b8] sm:$0xff]  }
 0x138   : > { %6553 = vmatprep.subr.bf16.mxu0 %v7275_v51  ;;  %4145 = vmatprep.mubr.bf16.mxu0 %v5891_v38  ;;  %v8906_v51 = vor.u32 %v3855_v10, %v3851_v61 }
 0x139   : > { %6856 = vmatmul.mubr.bf16.vlgmr.msra.gmra.mrb[0].mxu1 %v8802_v16  ;;  %v8908_v37 = vor.u32 %v3862_v42, %v3858_v55  ;;  %v5983_v55 = vcombine.low %v3869_v7, %v3870_v47  ;;  %v5975_v7 = vcombine.low %v8650_v19, %v8720_v32  ;;  %v7318_v19 = vld [vmem:[%s9136_s5 + $0x648] sm:$0xff]  }
 0x13a   : > { %6864 = vmatpush3.bf16.msra.mxu1 %v7278_v13  ;;  %6859 = vmatprep.mubr.bf16.mxu1 %v8817_v34  ;;  %v7295_v13 = vld [vmem:[%s9136_s5 + $0x558] sm:$0xff]  }
 0x13b   : > { %6554 = vmatpush3.bf16.msra.mxu0 %v7279_v14  ;;  %6865 = vmatprep.subr.bf16.mxu1 %v7283_v22 }
 0x13c   : > { %6591 = vmatprep.subr.bf16.mxu0 %v7282_v12  ;;  %v8927_v12 = vcombine.low %v8906_v51, %v8908_v37 }
 0x13e   : > { %4146 = vmatmul.mubr.bf16.vlgmr.msra.gmra.mrb[96].mxu0 %v5890_v49  ;;  %6866 = vmatpush3.bf16.msra.mxu1 %v7283_v22 }
 0x13f   : > { %6592 = vmatpush3.bf16.msra.mxu0 %v7285_v60  ;;  %6867 = vmatprep.subr.bf16.mxu1 %v7287_v26  ;;  %v7306_v60 = vld [vmem:[%s9136_s5 + $0x568] sm:$0xff]  }
 0x140   : > { %6593 = vmatprep.subr.bf16.mxu0 %v7286_v62  ;;  %4153 = vmatprep.mubr.bf16.mxu0 %v8847_v5  ;;  %v8946_v62 = vld [vmem:[#allocation2 + $0x40] sm:$0xf] }
 0x141   : > { %6860 = vmatmul.mubr.bf16.gmra.mrb[4].mxu1 %v8853_v17 }
 0x142   : > { %6868 = vmatpush3.bf16.msra.mxu1 %v7287_v26  ;;  %6879 = vmatprep.mubr.bf16.mxu1 %v5977_v54  ;;  %v7308_v26 = vld [vmem:[%s9136_s5 + $0x5f8] sm:$0xff]   ;;  %v3765_v54 = vld [vmem:[#allocation2 + $0x44] sm:$0x1] }
 0x143   : > { %6594 = vmatpush3.bf16.msra.mxu0 %v7288_v45  ;;  %6869 = vmatprep.subr.bf16.mxu1 %v7290_v44  ;;  %v7310_v45 = vld [vmem:[%s9136_s5 + $0x570] sm:$0xff]   ;;  %v8968_v10 = vcombine.low %v8946_v62, %v3765_v54 }
 0x144   : > { %6595 = vmatprep.subr.bf16.mxu0 %v7289_v57  ;;  %v7334_v54 = vld [vmem:[%s9136_s5 + $0x6b0] sm:$0xff]  }
 0x145   : > { %v4271_v23 = vrot.slane %v8968_v10, 1  ;;  %v4267_v9 = vshll.u32 %v8968_v10, 16 }
 0x146   : > { %4154 = vmatmul.mubr.bf16.gmra.mrb[100].mxu0 %v8878_v0  ;;  %6870 = vmatpush3.bf16.msra.mxu1 %v7290_v44  ;;  %v7312_v44 = vld [vmem:[%s9136_s5 + $0x680] sm:$0xff]  }
 0x147   : > { %6596 = vmatpush3.bf16.msra.mxu0 %v7292_v30  ;;  %6871 = vmatprep.subr.bf16.mxu1 %v7294_v31 }
 0x148   : > { %6597 = vmatprep.subr.bf16.mxu0 %v7293_v29  ;;  %4161 = vmatprep.mubr.bf16.mxu0 %v8888_v15  ;;  %v5980_v29 = vcombine.low %v3867_v33, %v3868_v1  ;;  %v7314_v33 = vld [vmem:[%s9136_s5 + $0x640] sm:$0xff]  }
 0x149   : > { %v6243_v35 = vpop.f32.mrb[0].mxu0 }
 0x14a   : > { %6872 = vmatpush3.bf16.msra.mxu1 %v7294_v31  ;;  %v6244_v38 = vpop.f32.mrb[1].mxu0  ;;  %v5976_v31 = vcombine.low %v8775_v8, %v8824_v63  ;;  %v7319_v63 = vld [vmem:[%s9136_s5 + $0x690] sm:$0xff]  }
 0x14b   : > { %6598 = vmatpush3.bf16.msra.mxu0 %v7295_v13  ;;  %6873 = vmatprep.subr.bf16.mxu1 %v7299_v46  ;;  %v8920_v14 = vadd.f32 %v6244_v38, %v6243_v35  ;;  %v6246_v22 = vpop.f32.mrb[2].mxu0  ;;  %v5979_v13 = vcombine.low %v8826_v24, %v8865_v50  ;;  %v7320_v35 = vld [vmem:[%s9136_s5 + $0x608] sm:$0xff]   ;;  %v7322_v38 = vld [vmem:[%s9136_s5 + $0x698] sm:$0xff]   ;;  %v7321_v24 = vld [vmem:[%s9136_s5 + $0x650] sm:$0xff]  }
 0x14c   : > { %6599 = vmatprep.subr.bf16.mxu0 %v7298_v39  ;;  %v6247_v58 = vpop.f32.mrb[3].mxu0  ;;  %v5986_v39 = vcombine.low %v3871_v21, %v4271_v23  ;;  %v5978_v21 = vcombine.low %v8722_v48, %v8731_v28  ;;  %v7324_v50 = vld [vmem:[%s9136_s5 + $0x610] sm:$0xff]   ;;  %v5982_v48 = vcombine.low %v8867_v43, %v8906_v51  ;;  %v4265_v28 = vshrl.u32 %v8968_v10, 16  ;;  %v7328_v43 = vld [vmem:[%s9136_s5 + $0x660] sm:$0xff]  }
 0x14d   : > { %v8929_v49 = vadd.f32 %v6247_v58, %v6246_v22  ;;  %v7327_v22 = vld [vmem:[%s9136_s5 + $0x618] sm:$0xff]  }
 0x14e   : > { %4162 = vmatmul.mubr.bf16.gmra.mrb[104].mxu0 %v8912_v4  ;;  %6874 = vmatpush3.bf16.msra.mxu1 %v7299_v46 }
 0x14f   : > { %6600 = vmatpush3.bf16.msra.mxu0 %v7301_v53  ;;  %6875 = vmatprep.subr.bf16.mxu1 %v7303_v18  ;;  %v7326_v53 = vld [vmem:[%s9136_s5 + $0x6a0] sm:$0xff]  }
 0x150   : > { %6601 = vmatprep.subr.bf16.mxu0 %v7302_v3  ;;  %4169 = vmatprep.mubr.bf16.mxu0 %v8927_v12  ;;  %v7329_v3 = vld [vmem:[%s9136_s5 + $0x6a8] sm:$0xff]  }
 0x151   : > { %v6249_v27 = vpop.f32.mrb[4].mxu0 }
 0x152   : > { %6876 = vmatpush3.bf16.msra.mxu1 %v7303_v18  ;;  %v6250_v41 = vpop.f32.mrb[5].mxu0  ;;  %v7325_v18 = vld [vmem:[%s9136_s5 + $0x658] sm:$0xff]  }
 0x153   : > { %6602 = vmatpush3.bf16.msra.mxu0 %v7306_v60  ;;  %6877 = vmatprep.subr.bf16.mxu1 %v7308_v26  ;;  %v8954_v57 = vadd.f32 %v6250_v41, %v6249_v27  ;;  %v6252_v36 = vpop.f32.mrb[6].mxu0  ;;  %v7331_v41 = vld [vmem:[%s9136_s5 + $0x620] sm:$0xff]  }
 0x154   : > { %6603 = vmatprep.subr.bf16.mxu0 %v7307_v6  ;;  %v6253_v30 = vpop.f32.mrb[7].mxu0 }
 0x155   : > { %v8965_v61 = vadd.f32 %v6253_v30, %v6252_v36  ;;  %v7335_v36 = vld [vmem:[%s9136_s5 + $0x628] sm:$0xff]  }
 0x156   : > { %4170 = vmatmul.mubr.bf16.gmra.mrb[108].mxu0 %v8944_v40  ;;  %6878 = vmatpush3.bf16.msra.mxu1 %v7308_v26  ;;  %v5981_v26 = vcombine.low %v8739_v52, %v8777_v56 }
 0x157   : > { %6604 = vmatpush3.bf16.msra.mxu0 %v7310_v45  ;;  %6887 = vmatprep.subr.bf16.mxu1 %v7312_v44 }
 0x158   : > { %6605 = vmatprep.subr.bf16.mxu0 %v7311_v59  ;;  %4531 = vmatprep.mubr.bf16.mxu0 %v5976_v31  ;;  %v7337_v59 = vld [vmem:[%s9136_s5 + $0x6b8] sm:$0xff]  }
 0x159   : > { %6880 = vmatmul.mubr.bf16.vlgmr.msra.gmra.mrb[0].mxu1 %v5980_v29  ;;  %v6255_v1 = vpop.f32.mrb[8].mxu0  ;;  %v5984_v29 = vcombine.low %v8790_v11, %v8946_v62 }
 0x15a   : > { %6888 = vmatpush3.bf16.msra.mxu1 %v7312_v44  ;;  %v6256_v8 = vpop.f32.mrb[9].mxu0  ;;  %6883 = vmatprep.mubr.bf16.mxu1 %v5983_v55  ;;  %v7333_v44 = vld [vmem:[%s9136_s5 + $0x668] sm:$0xff]  }
 0x15b   : > { %6606 = vmatpush3.bf16.msra.mxu0 %v7313_v25  ;;  %6889 = vmatprep.subr.bf16.mxu1 %v7315_v2  ;;  %v8993_v47 = vadd.f32 %v6256_v8, %v6255_v1  ;;  %v6258_v42 = vpop.f32.mrb[10].mxu0  ;;  %v9070_v55 = vld [vmem:[#allocation2 + $0x48] sm:$0xf]  ;;  %v3767_v25 = vld [vmem:[#allocation2 + $0x4c] sm:$0x1]  ;;  %v7339_v1 = vld [vmem:[%s9136_s5 + $0x630] sm:$0xff]  }
 0x15c   : > { %6643 = vmatprep.subr.bf16.mxu0 %v7314_v33  ;;  %v6259_v32 = vpop.f32.mrb[11].mxu0  ;;  %v7340_v8 = vld [vmem:[%s9136_s5 + $0x678] sm:$0xff]  }
 0x15d   : > { %v9000_v46 = vadd.f32 %v6259_v32, %v6258_v42 }
 0x15e   : > { %4532 = vmatmul.mubr.bf16.vlgmr.msra.gmra.mrb[112].mxu0 %v5975_v7  ;;  %6890 = vmatpush3.bf16.msra.mxu1 %v7315_v2 }
 0x15f   : > { %6644 = vmatpush3.bf16.msra.mxu0 %v7317_v20  ;;  %6891 = vmatprep.subr.bf16.mxu1 %v7319_v63 }
 0x160   : > { %6645 = vmatprep.subr.bf16.mxu0 %v7318_v19  ;;  %4539 = vmatprep.mubr.bf16.mxu0 %v5979_v13  ;;  %v7341_v19 = vld [vmem:[%s9136_s5 + $0x638] sm:$0xff]  }
 0x161   : > { %6884 = vmatmul.mubr.bf16.gmra.mrb[4].mxu1 %v5986_v39 }
 0x162   : > { %6892 = vmatpush3.bf16.msra.mxu1 %v7319_v63  ;;  %6903 = vmatprep.mubr.bf16.mxu1 %v8802_v16  ;;  %v4269_v16 = vrot.slane %v4267_v9, 1  ;;  %v6011_v63 = vcombine.low %v9070_v55, %v3767_v25 }
 0x163   : > { %6646 = vmatpush3.bf16.msra.mxu0 %v7320_v35  ;;  %6893 = vmatprep.subr.bf16.mxu1 %v7322_v38 }
 0x164   : > { %6647 = vmatprep.subr.bf16.mxu0 %v7321_v24  ;;  %v9040_v51 = vor.u32 %v4269_v16, %v4265_v28  ;;  %v4657_v13 = vrot.slane %v6011_v63, 1 }
 0x166   : > { %4540 = vmatmul.mubr.bf16.gmra.mrb[116].mxu0 %v5978_v21  ;;  %6894 = vmatpush3.bf16.msra.mxu1 %v7322_v38  ;;  %v5985_v52 = vcombine.low %v8908_v37, %v9040_v51  ;;  %v7336_v37 = vld [vmem:[%s9136_s5 + $0x670] sm:$0xff]   ;;  %v6062_v9 = vcombine.low %v4271_v23, %v4657_v13 }
 0x167   : > { %6648 = vmatpush3.bf16.msra.mxu0 %v7324_v50  ;;  %6895 = vmatprep.subr.bf16.mxu1 %v7326_v53 }
 0x168   : > { %6649 = vmatprep.subr.bf16.mxu0 %v7325_v18  ;;  %4547 = vmatprep.mubr.bf16.mxu0 %v5982_v48  ;;  %v4651_v18 = vshrl.u32 %v6011_v63, 16 }
 0x169   : > { %v6261_v58 = vpop.f32.mrb[12].mxu0 }
 0x16a   : > { %v6262_v60 = vpop.f32.mrb[13].mxu0  ;;  %6896 = vmatpush3.bf16.msra.mxu1 %v7326_v53 }
 0x16b   : > { %v9044_v6 = vadd.f32 %v6262_v60, %v6261_v58  ;;  %6650 = vmatpush3.bf16.msra.mxu0 %v7327_v22  ;;  %v6264_v27 = vpop.f32.mrb[14].mxu0  ;;  %6897 = vmatprep.subr.bf16.mxu1 %v7329_v3 }
 0x16c   : > { %v6265_v45 = vpop.f32.mrb[15].mxu0  ;;  %6651 = vmatprep.subr.bf16.mxu0 %v7328_v43 }
 0x16d   : > { %v9057_v56 = vadd.f32 %v6265_v45, %v6264_v27 }
 0x16e   : > { %4548 = vmatmul.mubr.bf16.gmra.mrb[120].mxu0 %v5981_v26  ;;  %6898 = vmatpush3.bf16.msra.mxu1 %v7329_v3 }
 0x16f   : > { %6652 = vmatpush3.bf16.msra.mxu0 %v7331_v41  ;;  %6899 = vmatprep.subr.bf16.mxu1 %v7334_v54 }
 0x170   : > { %6653 = vmatprep.subr.bf16.mxu0 %v7333_v44  ;;  %4555 = vmatprep.mubr.bf16.mxu0 %v5985_v52 }
 0x171   : > { %v6295_v30 = vpop.f32.mrb[16].mxu0 }
 0x172   : > { %v6296_v31 = vpop.f32.mrb[17].mxu0  ;;  %6900 = vmatpush3.bf16.msra.mxu1 %v7334_v54 }
 0x173   : > { %v6297_v2 = vadd.f32 %v6296_v31, %v6295_v30  ;;  %6654 = vmatpush3.bf16.msra.mxu0 %v7335_v36  ;;  %v6298_v33 = vpop.f32.mrb[18].mxu0  ;;  %6901 = vmatprep.subr.bf16.mxu1 %v7337_v59 }
 0x174   : > { %v6299_v7 = vpop.f32.mrb[19].mxu0  ;;  %6655 = vmatprep.subr.bf16.mxu0 %v7336_v37 }
 0x175   : > { %v6920_v20 = vadd.f32 %v6297_v2, %v8920_v14  ;;  %v6300_v11 = vadd.f32 %v6299_v7, %v6298_v33 }
 0x176   : > { %4556 = vmatmul.mubr.bf16.gmra.mrb[124].mxu0 %v5984_v29  ;;  %6902 = vmatpush3.bf16.msra.mxu1 %v7337_v59 }
 0x177   : > { %v6938_v42 = vadd.f32 %v6300_v11, %v8929_v49  ;;  %6656 = vmatpush3.bf16.msra.mxu0 %v7339_v1  ;;  %4899 = vmatprep.mubr.bf16.mxu0 %v8847_v5 }
 0x178   : > { %6657 = vmatprep.subr.bf16.mxu0 %v7340_v8 }
 0x179   : > { %v6301_v32 = vpop.f32.mrb[20].mxu0  ;;  %6904 = vmatmul.mubr.bf16.vlgmr.msra.gmra.mrb[0].mxu1 %v8817_v34  ;;  %v4653_v34 = vshll.u32 %v6011_v63, 16 }
 0x17a   : > { %v6302_v14 = vpop.f32.mrb[21].mxu0  ;;  %6907 = vmatprep.mubr.bf16.mxu1 %v8853_v17 }
 0x17b   : > { %v6303_v39 = vadd.f32 %v6302_v14, %v6301_v32  ;;  %6658 = vmatpush3.bf16.msra.mxu0 %v7341_v19  ;;  %v6304_v35 = vpop.f32.mrb[22].mxu0  ;;  %v4655_v48 = vrot.slane %v4653_v34, 1 }
 0x17c   : > { %v6305_v38 = vpop.f32.mrb[23].mxu0 }
 0x17d   : > { %v6911_v49 = vadd.f32 %v6303_v39, %v8954_v57  ;;  %v6306_v24 = vadd.f32 %v6305_v38, %v6304_v35 }
 0x17e   : > { %4900 = vmatmul.mubr.bf16.vlgmr.msra.gmra.mrb[128].mxu0 %v8878_v0 }
 0x17f   : > { %v6929_v5 = vadd.f32 %v6306_v24, %v8965_v61  ;;  %4907 = vmatprep.mubr.bf16.mxu0 %v8888_v15  ;;  %v4656_v61 = vor.u32 %v4655_v48, %v4651_v18 }
 0x181   : > { %v6307_v21 = vpop.f32.mrb[24].mxu0  ;;  %6908 = vmatmul.mubr.bf16.gmra.mrb[4].mxu1 %v6062_v9  ;;  %v6061_v3 = vcombine.low %v9040_v51, %v4656_v61 }
 0x182   : > { %v6308_v17 = vpop.f32.mrb[25].mxu0 }
 0x183   : > { %v6309_v50 = vadd.f32 %v6308_v17, %v6307_v21  ;;  %v6310_v53 = vpop.f32.mrb[26].mxu0 }
 0x184   : > { %v6311_v28 = vpop.f32.mrb[27].mxu0 }
 0x185   : > { %v6956_v57 = vadd.f32 %v6309_v50, %v8993_v47  ;;  %v6312_v16 = vadd.f32 %v6311_v28, %v6310_v53 }
 0x186   : > { %4908 = vmatmul.mubr.bf16.gmra.mrb[132].mxu0 %v8912_v4 }
 0x187   : > { %v6974_v0 = vadd.f32 %v6312_v16, %v9000_v46  ;;  %4915 = vmatprep.mubr.bf16.mxu0 %v8927_v12  ;;  %v6060_v12 = vcombine.low %v8946_v62, %v9070_v55 }
 0x189   : > { %v6313_v15 = vpop.f32.mrb[28].mxu0 }
 0x18a   : > { %v6314_v10 = vpop.f32.mrb[29].mxu0 }
 0x18b   : > { %v6315_v23 = vadd.f32 %v6314_v10, %v6313_v15  ;;  %v6316_v22 = vpop.f32.mrb[30].mxu0 }
 0x18c   : > { %v6317_v43 = vpop.f32.mrb[31].mxu0 }
 0x18d   : > { %v6947_v58 = vadd.f32 %v6315_v23, %v9044_v6  ;;  %v6318_v60 = vadd.f32 %v6317_v43, %v6316_v22 }
 0x18e   : > { %4916 = vmatmul.mubr.bf16.gmra.mrb[136].mxu0 %v8944_v40 }
 0x18f   : > { %v6965_v47 = vadd.f32 %v6318_v60, %v9057_v56  ;;  %4923 = vmatprep.mubr.bf16.mxu0 %v6061_v3 }
 0x191   : > { %v6347_v4 = vpop.f32.mrb[32].mxu0 }
 0x192   : > { %v6348_v46 = vpop.f32.mrb[33].mxu0 }
 0x193   : > { %v6349_v26 = vadd.f32 %v6348_v46, %v6347_v4  ;;  %v6350_v27 = vpop.f32.mrb[34].mxu0 }
 0x194   : > { %v6351_v41 = vpop.f32.mrb[35].mxu0 }
 0x195   : > { %v6921_v54 = vadd.f32 %v6920_v20, %v6349_v26  ;;  %v6352_v45 = vadd.f32 %v6351_v41, %v6350_v27 }
 0x196   : > { %4924 = vmatmul.mubr.bf16.gmra.mrb[140].mxu0 %v6060_v12 }
 0x197   : > { %v6939_v51 = vadd.f32 %v6938_v42, %v6352_v45 }
 0x199   : > { %v6353_v44 = vpop.f32.mrb[36].mxu0 }
 0x19a   : > { %v6354_v6 = vpop.f32.mrb[37].mxu0 }
 0x19b   : > { %v6355_v52 = vadd.f32 %v6354_v6, %v6353_v44  ;;  %v6356_v36 = vpop.f32.mrb[38].mxu0 }
 0x19c   : > { %v6357_v40 = vpop.f32.mrb[39].mxu0 }
 0x19d   : > { %v6912_v59 = vadd.f32 %v6911_v49, %v6355_v52  ;;  %v6358_v56 = vadd.f32 %v6357_v40, %v6356_v36 }
 0x19f   : > { %v6930_v37 = vadd.f32 %v6929_v5, %v6358_v56 }
 0x1a1   : > { %v6359_v30 = vpop.f32.mrb[40].mxu0 }
 0x1a2   : > { %v6360_v31 = vpop.f32.mrb[41].mxu0 }
 0x1a3   : > { %v6361_v29 = vadd.f32 %v6360_v31, %v6359_v30  ;;  %v6362_v25 = vpop.f32.mrb[42].mxu0 }
 0x1a4   : > { %v6363_v62 = vpop.f32.mrb[43].mxu0 }
 0x1a5   : > { %v6957_v55 = vadd.f32 %v6956_v57, %v6361_v29  ;;  %v6364_v2 = vadd.f32 %v6363_v62, %v6362_v25 }
 0x1a7   : > { %v6975_v33 = vadd.f32 %v6974_v0, %v6364_v2 }
 0x1a9   : > { %v6365_v1 = vpop.f32.mrb[44].mxu0 }
 0x1aa   : > { %v6366_v7 = vpop.f32.mrb[45].mxu0 }
 0x1ab   : > { %v6367_v8 = vadd.f32 %v6366_v7, %v6365_v1  ;;  %v6368_v20 = vpop.f32.mrb[46].mxu0 }
 0x1ac   : > { %v6369_v11 = vpop.f32.mrb[47].mxu0 }
 0x1ad   : > { %v6948_v63 = vadd.f32 %v6947_v58, %v6367_v8  ;;  %v6370_v42 = vadd.f32 %v6369_v11, %v6368_v20 }
 0x1af   : > { %v6966_v19 = vadd.f32 %v6965_v47, %v6370_v42 }
 0x1b1   : > { %v6399_v32 = vpop.f32.mrb[48].mxu0 }
 0x1b2   : > { %v6400_v13 = vpop.f32.mrb[49].mxu0 }
 0x1b3   : > { %v6401_v14 = vadd.f32 %v6400_v13, %v6399_v32  ;;  %v6402_v39 = vpop.f32.mrb[50].mxu0 }
 0x1b4   : > { %v6403_v35 = vpop.f32.mrb[51].mxu0 }
 0x1b5   : > { %v6922_v38 = vadd.f32 %v6921_v54, %v6401_v14  ;;  %v6404_v49 = vadd.f32 %v6403_v35, %v6402_v39 }
 0x1b7   : > { %v6940_v24 = vadd.f32 %v6939_v51, %v6404_v49 }
 0x1b9   : > { %v6405_v9 = vpop.f32.mrb[52].mxu0 }
 0x1ba   : > { %v6406_v5 = vpop.f32.mrb[53].mxu0 }
 0x1bb   : > { %v6407_v34 = vadd.f32 %v6406_v5, %v6405_v9  ;;  %v6408_v21 = vpop.f32.mrb[54].mxu0 }
 0x1bc   : > { %v6409_v17 = vpop.f32.mrb[55].mxu0 }
 0x1bd   : > { %v6913_v50 = vadd.f32 %v6912_v59, %v6407_v34  ;;  %v6410_v53 = vadd.f32 %v6409_v17, %v6408_v21 }
 0x1bf   : > { %v6931_v18 = vadd.f32 %v6930_v37, %v6410_v53 }
 0x1c1   : > { %v6411_v48 = vpop.f32.mrb[56].mxu0 }
 0x1c2   : > { %v6412_v28 = vpop.f32.mrb[57].mxu0 }
 0x1c3   : > { %v6413_v57 = vadd.f32 %v6412_v28, %v6411_v48  ;;  %v6414_v16 = vpop.f32.mrb[58].mxu0 }
 0x1c4   : > { %v6415_v0 = vpop.f32.mrb[59].mxu0 }
 0x1c5   : > { %v6958_v61 = vadd.f32 %v6957_v55, %v6413_v57  ;;  %v6416_v15 = vadd.f32 %v6415_v0, %v6414_v16 }
 0x1c7   : > { %v6976_v10 = vadd.f32 %v6975_v33, %v6416_v15 }
 0x1c9   : > { %v6417_v23 = vpop.f32.mrb[60].mxu0 }
 0x1ca   : > { %v6418_v22 = vpop.f32.mrb[61].mxu0 }
 0x1cb   : > { %v6419_v3 = vadd.f32 %v6418_v22, %v6417_v23  ;;  %v6420_v43 = vpop.f32.mrb[62].mxu0 }
 0x1cc   : > { %v6421_v58 = vpop.f32.mrb[63].mxu0 }
 0x1cd   : > { %v6949_v60 = vadd.f32 %v6948_v63, %v6419_v3  ;;  %v6422_v47 = vadd.f32 %v6421_v58, %v6420_v43 }
 0x1cf   : > { %v6967_v4 = vadd.f32 %v6966_v19, %v6422_v47 }
 0x1d1   : > { %v6451_v46 = vpop.f32.mrb[64].mxu0 }
 0x1d2   : > { %v6452_v12 = vpop.f32.mrb[65].mxu0 }
 0x1d3   : > { %v6453_v26 = vadd.f32 %v6452_v12, %v6451_v46  ;;  %v6454_v27 = vpop.f32.mrb[66].mxu0 }
 0x1d4   : > { %v6455_v41 = vpop.f32.mrb[67].mxu0 }
 0x1d5   : > { %v6923_v54 = vadd.f32 %v6922_v38, %v6453_v26  ;;  %v6456_v45 = vadd.f32 %v6455_v41, %v6454_v27 }
 0x1d7   : > { %v6941_v51 = vadd.f32 %v6940_v24, %v6456_v45 }
 0x1d9   : > { %v6457_v44 = vpop.f32.mrb[68].mxu0 }
 0x1da   : > { %v6458_v6 = vpop.f32.mrb[69].mxu0 }
 0x1db   : > { %v6459_v52 = vadd.f32 %v6458_v6, %v6457_v44  ;;  %v6460_v36 = vpop.f32.mrb[70].mxu0 }
 0x1dc   : > { %v6461_v40 = vpop.f32.mrb[71].mxu0 }
 0x1dd   : > { %v6914_v59 = vadd.f32 %v6913_v50, %v6459_v52  ;;  %v6462_v56 = vadd.f32 %v6461_v40, %v6460_v36 }
 0x1df   : > { %v6932_v37 = vadd.f32 %v6931_v18, %v6462_v56 }
 0x1e1   : > { %v6463_v30 = vpop.f32.mrb[72].mxu0 }
 0x1e2   : > { %v6464_v31 = vpop.f32.mrb[73].mxu0 }
 0x1e3   : > { %v6465_v29 = vadd.f32 %v6464_v31, %v6463_v30  ;;  %v6466_v25 = vpop.f32.mrb[74].mxu0 }
 0x1e4   : > { %v6467_v62 = vpop.f32.mrb[75].mxu0 }
 0x1e5   : > { %v6959_v55 = vadd.f32 %v6958_v61, %v6465_v29  ;;  %v6468_v2 = vadd.f32 %v6467_v62, %v6466_v25 }
 0x1e7   : > { %v6977_v33 = vadd.f32 %v6976_v10, %v6468_v2 }
 0x1e9   : > { %v6469_v1 = vpop.f32.mrb[76].mxu0 }
 0x1ea   : > { %v6470_v7 = vpop.f32.mrb[77].mxu0 }
 0x1eb   : > { %v6471_v8 = vadd.f32 %v6470_v7, %v6469_v1  ;;  %v6472_v20 = vpop.f32.mrb[78].mxu0 }
 0x1ec   : > { %v6473_v11 = vpop.f32.mrb[79].mxu0 }
 0x1ed   : > { %v6950_v63 = vadd.f32 %v6949_v60, %v6471_v8  ;;  %v6474_v42 = vadd.f32 %v6473_v11, %v6472_v20 }
 0x1ef   : > { %v6968_v19 = vadd.f32 %v6967_v4, %v6474_v42 }
 0x1f1   : > { %v6503_v32 = vpop.f32.mrb[80].mxu0 }
 0x1f2   : > { %v6504_v13 = vpop.f32.mrb[81].mxu0 }
 0x1f3   : > { %v6505_v14 = vadd.f32 %v6504_v13, %v6503_v32  ;;  %v6506_v39 = vpop.f32.mrb[82].mxu0 }
 0x1f4   : > { %v6507_v35 = vpop.f32.mrb[83].mxu0 }
 0x1f5   : > { %v6924_v38 = vadd.f32 %v6923_v54, %v6505_v14  ;;  %v6508_v49 = vadd.f32 %v6507_v35, %v6506_v39 }
 0x1f7   : > { %v6942_v24 = vadd.f32 %v6941_v51, %v6508_v49 }
 0x1f9   : > { %v6509_v9 = vpop.f32.mrb[84].mxu0 }
 0x1fa   : > { %v6510_v5 = vpop.f32.mrb[85].mxu0 }
 0x1fb   : > { %v6511_v34 = vadd.f32 %v6510_v5, %v6509_v9  ;;  %v6512_v21 = vpop.f32.mrb[86].mxu0 }
 0x1fc   : > { %v6513_v17 = vpop.f32.mrb[87].mxu0 }
 0x1fd   : > { %v6915_v50 = vadd.f32 %v6914_v59, %v6511_v34  ;;  %v6514_v53 = vadd.f32 %v6513_v17, %v6512_v21 }
 0x1ff   : > { %v6933_v18 = vadd.f32 %v6932_v37, %v6514_v53 }
 0x201   : > { %v6515_v48 = vpop.f32.mrb[88].mxu0 }
 0x202   : > { %v6516_v28 = vpop.f32.mrb[89].mxu0 }
 0x203   : > { %v6517_v57 = vadd.f32 %v6516_v28, %v6515_v48  ;;  %v6518_v16 = vpop.f32.mrb[90].mxu0 }
 0x204   : > { %v6519_v0 = vpop.f32.mrb[91].mxu0 }
 0x205   : > { %v6960_v61 = vadd.f32 %v6959_v55, %v6517_v57  ;;  %v6520_v15 = vadd.f32 %v6519_v0, %v6518_v16 }
 0x207   : > { %v6978_v10 = vadd.f32 %v6977_v33, %v6520_v15 }
 0x209   : > { %v6521_v23 = vpop.f32.mrb[92].mxu0 }
 0x20a   : > { %v6522_v22 = vpop.f32.mrb[93].mxu0 }
 0x20b   : > { %v6523_v3 = vadd.f32 %v6522_v22, %v6521_v23  ;;  %v6524_v43 = vpop.f32.mrb[94].mxu0 }
 0x20c   : > { %v6525_v58 = vpop.f32.mrb[95].mxu0 }
 0x20d   : > { %v6951_v60 = vadd.f32 %v6950_v63, %v6523_v3  ;;  %v6526_v47 = vadd.f32 %v6525_v58, %v6524_v43 }
 0x20f   : > { %v6969_v4 = vadd.f32 %v6968_v19, %v6526_v47 }
 0x211   : > { %v6555_v46 = vpop.f32.mrb[96].mxu0 }
 0x212   : > { %v6556_v12 = vpop.f32.mrb[97].mxu0 }
 0x213   : > { %v6557_v26 = vadd.f32 %v6556_v12, %v6555_v46  ;;  %v6558_v27 = vpop.f32.mrb[98].mxu0 }
 0x214   : > { %v6559_v41 = vpop.f32.mrb[99].mxu0 }
 0x215   : > { %v6925_v54 = vadd.f32 %v6924_v38, %v6557_v26  ;;  %v6560_v45 = vadd.f32 %v6559_v41, %v6558_v27 }
 0x217   : > { %v6943_v51 = vadd.f32 %v6942_v24, %v6560_v45 }
 0x219   : > { %v6561_v44 = vpop.f32.mrb[100].mxu0 }
 0x21a   : > { %v6562_v6 = vpop.f32.mrb[101].mxu0 }
 0x21b   : > { %v6563_v52 = vadd.f32 %v6562_v6, %v6561_v44  ;;  %v6564_v36 = vpop.f32.mrb[102].mxu0 }
 0x21c   : > { %v6565_v40 = vpop.f32.mrb[103].mxu0 }
 0x21d   : > { %v6916_v59 = vadd.f32 %v6915_v50, %v6563_v52  ;;  %v6566_v56 = vadd.f32 %v6565_v40, %v6564_v36 }
 0x21f   : > { %v6934_v37 = vadd.f32 %v6933_v18, %v6566_v56 }
 0x221   : > { %v6567_v30 = vpop.f32.mrb[104].mxu0 }
 0x222   : > { %v6568_v31 = vpop.f32.mrb[105].mxu0 }
 0x223   : > { %v6569_v29 = vadd.f32 %v6568_v31, %v6567_v30  ;;  %v6570_v25 = vpop.f32.mrb[106].mxu0 }
 0x224   : > { %v6571_v62 = vpop.f32.mrb[107].mxu0 }
 0x225   : > { %v6961_v55 = vadd.f32 %v6960_v61, %v6569_v29  ;;  %v6572_v2 = vadd.f32 %v6571_v62, %v6570_v25 }
 0x227   : > { %v6979_v33 = vadd.f32 %v6978_v10, %v6572_v2 }
 0x229   : > { %v6573_v1 = vpop.f32.mrb[108].mxu0 }
 0x22a   : > { %v6574_v7 = vpop.f32.mrb[109].mxu0 }
 0x22b   : > { %v6575_v8 = vadd.f32 %v6574_v7, %v6573_v1  ;;  %v6576_v20 = vpop.f32.mrb[110].mxu0 }
 0x22c   : > { %v6577_v11 = vpop.f32.mrb[111].mxu0 }
 0x22d   : > { %v6952_v63 = vadd.f32 %v6951_v60, %v6575_v8  ;;  %v6578_v42 = vadd.f32 %v6577_v11, %v6576_v20 }
 0x22f   : > { %v6970_v19 = vadd.f32 %v6969_v4, %v6578_v42 }
 0x231   : > { %v6607_v32 = vpop.f32.mrb[112].mxu0 }
 0x232   : > { %v6608_v13 = vpop.f32.mrb[113].mxu0 }
 0x233   : > { %v6609_v14 = vadd.f32 %v6608_v13, %v6607_v32  ;;  %v6610_v39 = vpop.f32.mrb[114].mxu0 }
 0x234   : > { %v6611_v35 = vpop.f32.mrb[115].mxu0 }
 0x235   : > { %v6926_v38 = vadd.f32 %v6925_v54, %v6609_v14  ;;  %v6612_v49 = vadd.f32 %v6611_v35, %v6610_v39 }
 0x237   : > { %v6944_v24 = vadd.f32 %v6943_v51, %v6612_v49 }
 0x239   : > { %v6613_v9 = vpop.f32.mrb[116].mxu0 }
 0x23a   : > { %v6614_v5 = vpop.f32.mrb[117].mxu0 }
 0x23b   : > { %v6615_v34 = vadd.f32 %v6614_v5, %v6613_v9  ;;  %v6616_v21 = vpop.f32.mrb[118].mxu0 }
 0x23c   : > { %v6617_v17 = vpop.f32.mrb[119].mxu0 }
 0x23d   : > { %v6917_v50 = vadd.f32 %v6916_v59, %v6615_v34  ;;  %v6618_v53 = vadd.f32 %v6617_v17, %v6616_v21 }
 0x23f   : > { %v6935_v18 = vadd.f32 %v6934_v37, %v6618_v53 }
 0x241   : > { %v6619_v48 = vpop.f32.mrb[120].mxu0 }
 0x242   : > { %v6620_v28 = vpop.f32.mrb[121].mxu0 }
 0x243   : > { %v6621_v57 = vadd.f32 %v6620_v28, %v6619_v48  ;;  %v6622_v16 = vpop.f32.mrb[122].mxu0 }
 0x244   : > { %v6623_v0 = vpop.f32.mrb[123].mxu0 }
 0x245   : > { %v6962_v61 = vadd.f32 %v6961_v55, %v6621_v57  ;;  %v6624_v15 = vadd.f32 %v6623_v0, %v6622_v16 }
 0x247   : > { %v6980_v10 = vadd.f32 %v6979_v33, %v6624_v15 }
 0x249   : > { %v6625_v23 = vpop.f32.mrb[124].mxu0 }
 0x24a   : > { %v6626_v22 = vpop.f32.mrb[125].mxu0 }
 0x24b   : > { %v6627_v3 = vadd.f32 %v6626_v22, %v6625_v23  ;;  %v6628_v43 = vpop.f32.mrb[126].mxu0 }
 0x24c   : > { %v6629_v58 = vpop.f32.mrb[127].mxu0  ;;  %v6905_v60 = vpop.f32.mrb[0].mxu1 }
 0x24d   : > { %v9103_v47 = vadd.f32 %v6952_v63, %v6627_v3  ;;  %v6630_v4 = vadd.f32 %v6629_v58, %v6628_v43  ;;  %v4966_v46 = vpop.f32.mrb[1].mxu1 }
 0x24e   : > { %v6906_v12 = vpop.f32.mrb[2].mxu1 }
 0x24f   : > { %v9105_v26 = vadd.f32 %v6970_v19, %v6630_v4  ;;  %v4969_v27 = vpop.f32.mrb[3].mxu1 }
 0x251   : > { %v6659_v41 = vpop.f32.mrb[128].mxu0 }
 0x252   : > { %v6660_v54 = vpop.f32.mrb[129].mxu0 }
 0x253   : > { %v6661_v45 = vadd.f32 %v6660_v54, %v6659_v41  ;;  %v6662_v51 = vpop.f32.mrb[130].mxu0 }
 0x254   : > { %v6663_v44 = vpop.f32.mrb[131].mxu0  ;;  %v6909_v6 = vpop.f32.mrb[4].mxu1 }
 0x255   : > { %v6927_v52 = vadd.f32 %v6926_v38, %v6661_v45  ;;  %v6664_v36 = vadd.f32 %v6663_v44, %v6662_v51  ;;  %v4982_v40 = vpop.f32.mrb[5].mxu1 }
 0x256   : > { %v6910_v59 = vpop.f32.mrb[6].mxu1 }
 0x257   : > { %v6928_v56 = vadd.f32 %v6927_v52, %v4966_v46  ;;  %v6945_v37 = vadd.f32 %v6944_v24, %v6664_v36  ;;  %v4985_v30 = vpop.f32.mrb[7].mxu1 }
 0x259   : > { %v6946_v31 = vadd.f32 %v6945_v37, %v4969_v27  ;;  %v6665_v29 = vpop.f32.mrb[132].mxu0  ;;  %v5035_v25 = vmul.f32 %v6928_v56, %v6928_v56 }
 0x25a   : > { %v6666_v62 = vpop.f32.mrb[133].mxu0 }
 0x25b   : > { %v5022_v55 = vadd.f32 %v6946_v31, %v6928_v56  ;;  %v5036_v2 = vmul.f32 %v6946_v31, %v6946_v31  ;;  %v6198_v33 = vpack.c.bf16 %v6946_v31, %v6928_v56  ;;  %v6667_v1 = vadd.f32 %v6666_v62, %v6665_v29  ;;  %v6668_v7 = vpop.f32.mrb[134].mxu0 }
 0x25c   : > { %v6669_v8 = vpop.f32.mrb[135].mxu0 }
 0x25d   : > { %v5043_v20 = vadd.f32 %v5036_v2, %v5035_v25  ;;  %6199 = vst [vmem:[%s7502_s21] sm:$0xff] %v6198_v33   ;;  %v6918_v11 = vadd.f32 %v6917_v50, %v6667_v1  ;;  %v6670_v63 = vadd.f32 %v6669_v8, %v6668_v7 }
 0x25f   : > { %v6919_v42 = vadd.f32 %v6918_v11, %v6905_v60  ;;  %v6936_v19 = vadd.f32 %v6935_v18, %v6670_v63 }
 0x261   : > { %v5023_v32 = vadd.f32 %v6919_v42, %v5022_v55  ;;  %v5037_v13 = vmul.f32 %v6919_v42, %v6919_v42  ;;  %v6937_v14 = vadd.f32 %v6936_v19, %v6906_v12  ;;  %v6671_v39 = vpop.f32.mrb[136].mxu0  ;;  %v5021_v55 = vld [vmem:[%s7507_s14] sm:$0x3] }
 0x262   : > { %v6672_v35 = vpop.f32.mrb[137].mxu0 }
 0x263   : > { %v5044_v38 = vadd.f32 %v5043_v20, %v5037_v13  ;;  %v5024_v49 = vadd.f32 %v6937_v14, %v5023_v32  ;;  %v5038_v24 = vmul.f32 %v6937_v14, %v6937_v14  ;;  %v6203_v9 = vpack.c.bf16 %v6937_v14, %v6919_v42  ;;  %v6674_v5 = vpop.f32.mrb[138].mxu0 }
 0x264   : > { %v6673_v34 = vadd.f32 %v6672_v35, %v6671_v39  ;;  %v6675_v21 = vpop.f32.mrb[139].mxu0 }
 0x265   : > { %v5045_v17 = vadd.f32 %v5044_v38, %v5038_v24  ;;  %6224 = vst [vmem:[%s7502_s21 + $0x8] sm:$0xff] %v6203_v9   ;;  %v6676_v53 = vadd.f32 %v6675_v21, %v6674_v5 }
 0x266   : > { %v6963_v50 = vadd.f32 %v6962_v61, %v6673_v34 }
 0x267   : > { %v6981_v48 = vadd.f32 %v6980_v10, %v6676_v53 }
 0x268   : > { %v6964_v28 = vadd.f32 %v6963_v50, %v4982_v40 }
 0x269   : > { %v6982_v18 = vadd.f32 %v6981_v48, %v4985_v30  ;;  %v6677_v57 = vpop.f32.mrb[140].mxu0 }
 0x26a   : > { %v5025_v16 = vadd.f32 %v6964_v28, %v5024_v49  ;;  %v5039_v0 = vmul.f32 %v6964_v28, %v6964_v28  ;;  %v6678_v15 = vpop.f32.mrb[141].mxu0 }
 0x26b   : > { %v5040_v23 = vmul.f32 %v6982_v18, %v6982_v18  ;;  %v6208_v22 = vpack.c.bf16 %v6982_v18, %v6964_v28  ;;  %v6679_v3 = vadd.f32 %v6678_v15, %v6677_v57  ;;  %v6680_v43 = vpop.f32.mrb[142].mxu0 }
 0x26c   : > { %v5046_v58 = vadd.f32 %v5045_v17, %v5039_v0  ;;  %v5026_v60 = vadd.f32 %v6982_v18, %v5025_v16  ;;  %v6681_v4 = vpop.f32.mrb[143].mxu0 }
 0x26d   : > { %6225 = vst [vmem:[%s7502_s21 + $0x10] sm:$0xff] %v6208_v22   ;;  %v6954_v46 = vadd.f32 %v9103_v47, %v6679_v3  ;;  %v6682_v12 = vadd.f32 %v6681_v4, %v6680_v43 }
 0x26e   : > { %v5047_v61 = vadd.f32 %v5046_v58, %v5040_v23 }
 0x26f   : > { %v6955_v10 = vadd.f32 %v6954_v46, %v6909_v6  ;;  %v6972_v27 = vadd.f32 %v9105_v26, %v6682_v12 }
 0x271   : > { %v5027_v41 = vadd.f32 %v6955_v10, %v5026_v60  ;;  %v5041_v54 = vmul.f32 %v6955_v10, %v6955_v10  ;;  %v6973_v45 = vadd.f32 %v6972_v27, %v6910_v59 }
 0x273   : > { %v5048_v51 = vadd.f32 %v5047_v61, %v5041_v54  ;;  %v5028_v44 = vadd.f32 %v6973_v45, %v5027_v41  ;;  %v5042_v52 = vmul.f32 %v6973_v45, %v6973_v45  ;;  %v6213_v36 = vpack.c.bf16 %v6973_v45, %v6955_v10 }
 0x275   : > { %v5029_v40 = vrot.slane %v5028_v44, 4  ;;  %v5049_v56 = vadd.f32 %v5048_v51, %v5042_v52  ;;  %6226 = vst [vmem:[%s7502_s21 + $0x18] sm:$0xff] %v6213_v36  }
 0x277   : > { %v5030_v37 = vadd.f32 %v5029_v40, %v5028_v44  ;;  %v5050_v30 = vrot.slane %v5049_v56, 4 }
 0x279   : > { %v5031_v47 = vrot.slane %v5030_v37, 2  ;;  %v5051_v31 = vadd.f32 %v5050_v30, %v5049_v56 }
 0x27b   : > { %v5032_v29 = vadd.f32 %v5031_v47, %v5030_v37  ;;  %v5052_v6 = vrot.slane %v5051_v31, 2 }
 0x27d   : > { %v5033_v25 = vrot.slane %v5032_v29, 1  ;;  %v5053_v26 = vadd.f32 %v5052_v6, %v5051_v31 }
 0x27f   : > { %v5054_v62 = vrot.slane %v5053_v26, 1  ;;  %v5034_v59 = vadd.f32 %v5033_v25, %v5032_v29 }
 0x281   : > { %v5055_v2 = vadd.f32 %v5054_v62, %v5053_v26 }
 0x283   : > { %v5057_v33 = vsel %vm740_vm2, %v5034_v59, %v5055_v2 }
 0x284   : > { %v5058_v1 = vadd.f32 %v5057_v33, %v5021_v55 }
 0x286   : > { %5059 = vst [vmem:[%s7507_s14] sm:$0x3] %v5058_v1 }
 0x287 PF: > { %s9156_s22 = sld [smem:[#allocation6_spill]]  ;;  %s9157_s24 = sld [smem:[#allocation4_spill]] }
 0x288   : > { %s9158_s25 = sld [smem:[#allocation5_spill]]  ;;  %s9159_s26 = sld [smem:[#allocation7_spill]] }
 0x289   : > { %s9160_s27 = sld [smem:[#allocation8_spill]] }
 0x28d   : > { %s18_s28 = sadd.s32 1, %s9156_s22  }
 0x28e   : > { %p15_p11 = scmp.ge.s32.totalorder %s18_s28, 18  }
 0x290   :  { %17 = sbr.rel (!%p15_p11) target bundleno = 3 (0x3), region = 108 }

// kernel: resblock_pallas.3
= control target key start
LH: loop header
LB: loop body
LE: loop exit
PB: predicated region body
PF: predicated region fallthrough
CT: control target
= control target key end

     0   :  { %s6662_s27 = smov 0   ;;  %s6664_s28 = smov 0   ;;  %s8254_s0 = inlined_call_operand.vmem [shape: bf16[2,10,100,8], index: 0, kind: input, shape index: {}, may-alias: {0,1,2}]   ;;  %s8255_s1 = inlined_call_operand.vmem [shape: bf16[2,10,100,8], index: 1, kind: input, shape index: {}, may-alias: {0,1,2}]   ;;  %s8256_s2 = inlined_call_operand.vmem [shape: bf16[2,10,100,8], index: 2, kind: input, shape index: {}, may-alias: {0,1,2}]   ;;  %s8257_s3 = inlined_call_operand.vmem [shape: bf16[3,3,24,128], index: 3, kind: input, shape index: {}]   ;;  %s8258_s4 = inlined_call_operand.vmem [shape: bf16[8,128], index: 4, kind: input, shape index: {}]   ;;  %s8259_s5 = inlined_call_operand.vmem [shape: bf16[2,8,64,128], index: 5, kind: output, shape index: {0}]   ;;  %s8260_s6 = inlined_call_operand.vmem [shape: bf16[2,8,64,128], index: 6, kind: output, shape index: {1}]   ;;  %s8261_s7 = inlined_call_operand.vmem [shape: f32[2,2,128], index: 7, kind: output, shape index: {2}]   ;;  %s8262_s8 = inlined_call_operand.vmem [shape: f32[2,2,128], index: 8, kind: output, shape index: {3}]  }
   0x1   :  { %8324 = sst [smem:[#allocation52_spill]] %s8254_s0  ;;  %s6666_s29 = smov 0  }
   0x2   :  { %8325 = sst [smem:[#allocation53_spill]] %s8261_s7  ;;  %s6668_s30 = smov 0  }
   0x3   :  { %s6670_s9 = smov 0  }
   0x4 LB: > { %8326 = sst [smem:[#allocation3_spill]] %s6603_s29  ;;  %s28_s10 = sadd.s32 1, %s6603_s29  ;;  %s6611_s9 = sphi %s6670_s9, %s19_s9   ;;  %s6607_s30 = sphi %s6668_s30, %s8432_s30   ;;  %s6603_s29 = sphi %s6666_s29, %s8431_s29   ;;  %s6599_s28 = sphi %s6664_s28, %s8430_s28   ;;  %s6595_s27 = sphi %s6662_s27, %s8429_s27  }
   0x5   : > { %8327 = sst [smem:[#allocation4_spill]] %s6607_s30  ;;  %s31_s11 = sadd.s32 1, %s6607_s30 }
   0x6   : > { %8328 = sst [smem:[#allocation5_spill]] %s6611_s9  ;;  %p29_p0 = scmp.ge.s32.totalorder %s28_s10, 8 }
   0x7   : > { %p5953_p1 = scmp.ge.s32.totalorder %s6611_s9, 1  ;;  %p331_p2 = scmp.lt.s32.totalorder %s6611_s9, 17 }
   0x8   : > { %s8434_s10 = smov (%p29_p0, %s28_s10), 0  ;;  %s8436_s11 = smov (!%p29_p0, %s31_s11), %s6607_s30 }
   0x9   : > { %8329 = sst [smem:[#allocation6_spill]] %s8434_s10  ;;  %p332_p3 = pnand %p5953_p1, %p331_p2 }
   0xa   : > { %p33_p4 = scmp.ge.s32.totalorder %s8436_s11, 2 }
   0xb   : > { %335 = sbr.rel (%p332_p3) target bundleno = 624 (0x270), region = 40 }
   0xc   : > { %s8438_s11 = smov (%p33_p4, %s8436_s11), 0 }
   0xd   : > { %8330 = sst [smem:[#allocation7_spill]] %s8438_s11 }
  0x12   : > { %p410_p5 = scmp.lt.s32.totalorder %s6599_s28, 1  ;;  %p412_p6 = scmp.lt.s32.totalorder %s6595_s27, 9 }
  0x13   : > { %s419_s12 = sadd.s32 1, %s6595_s27  ;;  %s430_s13 = sadd.s32 2, %s6595_s27 }
  0x14   : > { %s8440_s28 = smov (!%p410_p5, %s6599_s28), 1  ;;  %p422_p7 = scmp.lt.s32.totalorder %s419_s12, 9 }
  0x15   : > { %s413_s14 = scalar_select %p412_p6, %s6595_s27, 9 }
  0x16   : > { %s6508_s15 = smul.u32 130, %s8440_s28  ;;  %p6698_p8 = scmp.lt.s32.totalorder %s430_s13, 9 }
  0x17   : > { %s6507_s16 = smul.u32 13, %s413_s14  ;;  %s8442_s12 = smov (!%p422_p7, %s419_s12), 9 }
  0x18   : > { %p443_p9 = scmp.lt.s32.totalorder %s6595_s27, 7  ;;  %s6509_s20 = smul.u32 13, %s8442_s12 }
  0x19   : > { %s416_s18 = sadd.s32 %s6508_s15, %s6507_s16  ;;  %s8332_s0 = sld [smem:[#allocation52_spill]] }
  0x1a   : > { %s5954_s19 = sshll.u32 %s416_s18, 2  ;;  %s5958_s24 = sshll.u32 %s8440_s28, 6 }
  0x1b   : > { %s426_s25 = sadd.s32 %s6509_s20, %s6508_s15  ;;  %s5963_s26 = sshll.u32 %s8440_s28, 1 }
  0x1c   : > { %s5955_s14 = sshll.u32 %s426_s25, 2  ;;  %s8333_s7 = sld [smem:[#allocation53_spill]] }
  0x1d   : > { %s6716_s16 = scalar_lea.vmem %s8255_s1, %s5955_s14  ;;  %s6721_s21 = scalar_lea.vmem %s8262_s8, %s5963_s26 }
  0x1e   : > { %s8444_s13 = smov (!%p6698_p8, %s430_s13), 9  ;;  %p5965_p10 = scmp.ne.s32.totalorder %s6595_s27, 0 }
  0x1f   : > { %s6706_s23 = scalar_lea.vmem %s8332_s0, %s5954_s19  ;;  %s6510_s28 = smul.u32 13, %s8444_s13  ;;  %v6613_v0 = vmov (!%p5965_p10), 0.0  }
  0x20   : > { %s444_s19 = scalar_select %p443_p9, %s6595_s27, 7 }
  0x21   : > { %s437_s22 = sadd.s32 %s6510_s28, %s6508_s15  ;;  %471 = sbr.rel (%p5965_p10) target bundleno = 40 (0x28), region = 44  ;;  %473 = vst [vmem:[%s6721_s21] sm:$0x3] (!%p5965_p10), %v6613_v0 }
  0x22   : > { %s6711_s30 = scalar_lea.vmem %s8333_s7, %s5963_s26  ;;  %s5957_s20 = sshll.u32 %s444_s19, 3 }
  0x23   : > { %s447_s25 = sadd.s32 %s5958_s24, %s5957_s20  ;;  %s5956_s10 = sshll.u32 %s437_s22, 2  ;;  %472 = vst [vmem:[%s6711_s30] sm:$0x3] (!%p5965_p10), %v6613_v0 }
  0x24   : > { %s5959_s11 = sshll.u32 %s447_s25, 2  ;;  %s6729_s29 = scalar_lea.vmem %s8256_s2, %s5956_s10 }
  0x25   : > { %s6734_s12 = scalar_lea.vmem %s8259_s5, %s5959_s11  ;;  %s6739_s18 = scalar_lea.vmem %s8260_s6, %s5959_s11 }
  0x28 PF: > { %v511_v1 = vlaneseq  ;;  %v5980_v2 = vld.sshfl [vmem:[%s6716_s16 + $0x4] sm:$0x33 pattern:$0x75316420]  ;;  %v6614_v3 = vmov 1966171168  }
  0x29   : > { %v509_v4 = vunpack.c.l.s4 %v6614_v3  ;;  %v5981_v5 = vld.sshfl [vmem:[%s6716_s16 + $0x8] sm:$0x33 pattern:$0x75316420]  ;;  %v867_v9 = vcombine.high %v5980_v2, %v5980_v2  ;;  %vm4984_vm0 = vsmask.f32 256 }
  0x2a   : > { %v512_v6 = vshrl.u32 %v511_v1, 7  ;;  %v5967_v7 = vld.sshfl [vmem:[%s6706_s23 + $0x4] sm:$0x33 pattern:$0x75316420]  ;;  %v891_v10 = vcombine.high %v5981_v5, %v5981_v5  ;;  %s6615_s0 = smov 16  }
  0x2b   : > { %v510_v8 = vunpack.c.0.s8 %v509_v4  ;;  %v5968_v11 = vld.sshfl [vmem:[%s6706_s23 + $0x8] sm:$0x33 pattern:$0x75316420]  ;;  %v531_v12 = vcombine.high %v5967_v7, %v5967_v7  ;;  %vm4985_vm1 = vsmask.f32 1284 }
  0x2c   : > { %v555_v13 = vcombine.high %v5968_v11, %v5968_v11  ;;  %v5983_v14 = vld.sshfl [vmem:[%s6716_s16 + $0x10] sm:$0x33 pattern:$0x75316420]  ;;  %vm4986_vm2 = vmor %vm4984_vm0, %vm4985_vm1  ;;  %vm4987_vm3 = vsmask.f32 2312 }
  0x2d   : > { %v6749_v15 = vsub.s32 %v510_v8, %v512_v6  ;;  %v939_v16 = vcombine.high %v5983_v14, %v5983_v14  ;;  %v5982_v17 = vld.sshfl [vmem:[%s6716_s16 + $0xc] sm:$0x33 pattern:$0x75316420]  ;;  %vm4988_vm4 = vmor %vm4986_vm2, %vm4987_vm3  ;;  %vm4989_vm5 = vsmask.f32 3340 }
  0x2e   : > { %v915_v18 = vcombine.high %v5982_v17, %v5982_v17  ;;  %v5984_v42 = vld.sshfl [vmem:[%s6716_s16 + $0x14] sm:$0x33 pattern:$0x75316420]  ;;  %vm4990_vm6 = vmor %vm4988_vm4, %vm4989_vm5  ;;  %vm4991_vm7 = vsmask.f32 4368 }
  0x2f   : > { %v6753_v19 = vrot.slane %v5980_v2, %v6749_v15  ;;  %v6756_v20 = vrot.slane %v867_v9, %v6749_v15  ;;  %v6759_v21 = vrot.slane %v5981_v5, %v6749_v15  ;;  %v6762_v22 = vrot.slane %v891_v10, %v6749_v15  ;;  %v6821_v51 = vld.sshfl [vmem:[%s6716_s16 + $0x18] sm:$0x33 pattern:$0x75316420]  ;;  %vm4992_vm9 = vmor %vm4990_vm6, %vm4991_vm7  ;;  %s6616_s7 = smov 8  }
  0x30   : > { %v6765_v23 = vrot.slane %v5967_v7, %v6749_v15  ;;  %v6768_v24 = vrot.slane %v531_v12, %v6749_v15  ;;  %v6771_v25 = vrot.slane %v5968_v11, %v6749_v15  ;;  %v6774_v26 = vrot.slane %v555_v13, %v6749_v15  ;;  %v5966_v62 = vld.sshfl [vmem:[%s6706_s23] sm:$0x33 pattern:$0x75316420] }
  0x31   : > { %8334 = vst [vmem:[#allocation8_spill] sm:$0xff] %v6756_v20  ;;  %8335 = vst [vmem:[#allocation9_spill] sm:$0xff] %v6762_v22  ;;  %v6052_v27 = vcombine.high %v6753_v19, %v6756_v20  ;;  %v3063_v28 = vcombine.low %v6759_v21, %v6762_v22  ;;  %v6781_v29 = vrot.slane %v5983_v14, %v6749_v15  ;;  %vm4993_vm8 = vsmask.f32 5396 }
  0x32   : > { %v6784_v30 = vrot.slane %v939_v16, %v6749_v15  ;;  %v6009_v31 = vcombine.high %v6765_v23, %v6768_v24  ;;  %v1899_v32 = vcombine.low %v6771_v25, %v6774_v26  ;;  %v6792_v33 = vcombine.high %v6762_v22, %v6762_v22  ;;  %vm4994_vm12 = vmor %vm4992_vm9, %vm4993_vm8 }
  0x33   : > { %v3070_v34 = vrot.slane %v6052_v27, %v6749_v15  ;;  %v3077_v35 = vrot.slane %v3063_v28, %v6749_v15  ;;  %v6805_v40 = vrot.slane %v5982_v17, %v6749_v15  ;;  %v6808_v41 = vrot.slane %v915_v18, %v6749_v15 }
  0x34   : > { %v3110_v36 = vcombine.low %v6781_v29, %v6784_v30  ;;  %v6053_v37 = vcombine.high %v6781_v29, %v6784_v30  ;;  %v1906_v38 = vrot.slane %v6009_v31, %v6749_v15  ;;  %v1913_v39 = vrot.slane %v1899_v32, %v6749_v15 }
  0x35   : > { %v3078_v43 = vcombine.low %v3070_v34, %v3077_v35  ;;  %v6815_v47 = vcombine.high %v6805_v40, %v6805_v40  ;;  %v3086_v48 = vcombine.low %v6792_v33, %v6805_v40  ;;  %v963_v52 = vcombine.high %v5984_v42, %v5984_v42 }
  0x36   : > { %v3118_v44 = vrot.slane %v3110_v36, %v6749_v15  ;;  %v3125_v45 = vrot.slane %v6053_v37, %v6749_v15  ;;  %v1914_v46 = vcombine.low %v1906_v38, %v1913_v39  ;;  %v970_v53 = vrot.slane %v5984_v42, %v6749_v15 }
  0x37   : > { %v3085_v49 = vrot.slane %v3078_v43, %v6749_v15  ;;  %v3087_v55 = vcombine.low %v6808_v41, %v6815_v47  ;;  %v3094_v56 = vrot.slane %v3086_v48, %v6749_v15  ;;  %v977_v58 = vrot.slane %v963_v52, %v6749_v15 }
  0x38   : > { %v3126_v50 = vcombine.low %v3118_v44, %v3125_v45  ;;  %v1921_v54 = vrot.slane %v1914_v46, %v6749_v15  ;;  %v978_v59 = vcombine.high %v970_v53, %v970_v53  ;;  %v6835_v61 = vrot.slane %v6821_v51, %v6749_v15 }
  0x39   : > { %3232 = vrot.lane.b32.xlu0 %v3085_v49, %s6615_s0  ;;  %v3101_v60 = vrot.slane %v3087_v55, %v6749_v15  ;;  %v979_v63 = vcombine.high %v977_v58, %v977_v58  ;;  %vm4995_vm10 = vsmask.f32 6424  ;;  %vm4997_vm11 = vsmask.f32 7452 }
  0x3a   : > { %v3133_v57 = vrot.slane %v3126_v50, %v6749_v15  ;;  %2068 = vrot.lane.b32.xlu1 %v1921_v54, %s6615_s0  ;;  %v3134_v0 = vcombine.low %v977_v58, %v978_v59  ;;  %v5099_v2 = vshrl.u32 %v970_v53, 16  ;;  %v5104_v3 = vshll.u32 %v977_v58, 16  ;;  %vm4996_vm13 = vmor %vm4994_vm12, %vm4995_vm10 }
  0x3b   : > { %v3102_v1 = vcombine.low %v3094_v56, %v3101_v60  ;;  %v5107_v4 = vshrl.u32 %v977_v58, 16  ;;  %v3135_v5 = vcombine.low %v979_v63, %v6835_v61  ;;  %v5112_v7 = vshll.u32 %v978_v59, 16  ;;  %vm6842_vm14 = vmor %vm4996_vm13, %vm4997_vm11 }
  0x3c   : > { %v3142_v6 = vrot.slane %v3134_v0, %v6749_v15  ;;  %v5115_v8 = vshrl.u32 %v978_v59, 16  ;;  %v5120_v11 = vshll.u32 %v979_v63, 16  ;;  %v5123_v12 = vshrl.u32 %v979_v63, 16 }
  0x3d   : > { %3236 = vrot.lane.b32.xlu0 %v3133_v57, %s6615_s0  ;;  %v3109_v9 = vrot.slane %v3102_v1, %v6749_v15  ;;  %v5128_v13 = vshll.u32 %v6835_v61, 16  ;;  %v3149_v14 = vrot.slane %v3135_v5, %v6749_v15  ;;  %v6850_v16 = vsel %vm6842_vm14, %v5099_v2, %v5104_v3 }
  0x3e   : > { %v6854_v17 = vsel %vm6842_vm14, %v5107_v4, %v5112_v7  ;;  %v507_v18 = vcombine.high %v5966_v62, %v5966_v62  ;;  %v6859_v27 = vsel %vm6842_vm14, %v5115_v8, %v5120_v11  ;;  %v6868_v32 = vrot.slane %v5966_v62, %v6749_v15 }
  0x3f   : > { %8338 = vst [vmem:[#allocation10_spill] sm:$0xff] %v6854_v17  ;;  %3234 = vrot.lane.b32.xlu1 %v3109_v9, %s6615_s0  ;;  %8339 = vst [vmem:[#allocation11_spill] sm:$0xff] %v6859_v27  ;;  %v6863_v28 = vsel %vm6842_vm14, %v5123_v12, %v5128_v13  ;;  %v3150_v34 = vcombine.low %v3142_v6, %v3149_v14  ;;  %v2750_v37 = vcombine.low %v970_v53, %v977_v58  ;;  %vm2082_vm15 = vcmask 64512  }
  0x40   : > { %8340 = vst [vmem:[#allocation12_spill] sm:$0xff] %v6863_v28  ;;  %v6873_v36 = vrot.slane %v507_v18, %v6749_v15  ;;  %v522_v38 = vcombine.high %v6868_v32, %v6868_v32  ;;  %v6050_v39 = vcombine.high %v970_v53, %v977_v58  ;;  %v2912_v42 = vrot.slane %v6835_v61, %v6749_v15 }
  0x41   : > { %v6049_v43 = vcombine.high %v6759_v21, %v6762_v22  ;;  %v3157_v44 = vrot.slane %v3150_v34, %v6749_v15  ;;  %v2758_v46 = vrot.slane %v2750_v37, %v6749_v15  ;;  %v2703_v48 = vcombine.low %v6805_v40, %v6808_v41 }
  0x42   : > { %v523_v45 = vcombine.high %v6873_v36, %v6873_v36  ;;  %v1874_v49 = vcombine.low %v6873_v36, %v522_v38  ;;  %v2765_v50 = vrot.slane %v6050_v39, %v6749_v15  ;;  %v2919_v52 = vrot.slane %v2912_v42, %v6749_v15 }
  0x43   : > { %v2710_v53 = vrot.slane %v6049_v43, %v6749_v15  ;;  %3238 = vrot.lane.b32.xlu1 %v3157_v44, %s6615_s0  ;;  %v2717_v55 = vrot.slane %v2703_v48, %v6749_v15  ;;  %v2882_v56 = vrot.slane %v6815_v47, %v6749_v15  ;;  %v6898_v57 = vcombine.high %v6808_v41, %v6808_v41 }
  0x44   : > { %v1875_v54 = vcombine.low %v523_v45, %v6765_v23  ;;  %v1882_v58 = vrot.slane %v1874_v49, %v6749_v15  ;;  %v2766_v59 = vcombine.low %v2758_v46, %v2765_v50  ;;  %v954_v60 = vcombine.high %v6781_v29, %v6781_v29 }
  0x45   : > { %v955_v62 = vcombine.high %v6784_v30, %v6784_v30  ;;  %v2718_v0 = vcombine.low %v2710_v53, %v2717_v55  ;;  %v2889_v1 = vrot.slane %v2882_v56, %v6749_v15  ;;  %v2726_v2 = vcombine.low %v6898_v57, %v6781_v29 }
  0x46   : > { %v1889_v63 = vrot.slane %v1875_v54, %v6749_v15  ;;  %v6910_v3 = vrot.slane %v2766_v59, %v6749_v15  ;;  %v2727_v4 = vcombine.low %v6784_v30, %v954_v60  ;;  %v547_v9 = vcombine.high %v6768_v24, %v6768_v24  ;;  %v5969_v59 = vld.sshfl [vmem:[%s6706_s23 + $0xc] sm:$0x33 pattern:$0x75316420] }
  0x47   : > { %v2897_v5 = vrot.slane %v955_v62, %v6749_v15  ;;  %v6915_v7 = vrot.slane %v2718_v0, %v6749_v15  ;;  %v2734_v8 = vrot.slane %v2726_v2, %v6749_v15  ;;  %v5082_v13 = vshrl.u32 %v6784_v30, 16 }
  0x48   : > { %v1890_v6 = vcombine.low %v1882_v58, %v1889_v63  ;;  %v2920_v11 = vcombine.low %v6910_v3, %v2919_v52  ;;  %v2741_v12 = vrot.slane %v2727_v4, %v6749_v15  ;;  %v5087_v37 = vshll.u32 %v954_v60, 16 }
  0x49   : > { %v2890_v18 = vcombine.low %v6915_v7, %v2889_v1  ;;  %v2904_v34 = vrot.slane %v2897_v5, %v6749_v15  ;;  %v5090_v43 = vshrl.u32 %v954_v60, 16  ;;  %v5095_v48 = vshll.u32 %v955_v62, 16 }
  0x4a   : > { %v1897_v14 = vrot.slane %v1890_v6, %v6749_v15  ;;  %v2995_v38 = vshrl.u32 %v2920_v11, 16  ;;  %v2997_v39 = vshll.u32 %v2920_v11, 16  ;;  %v2742_v42 = vcombine.low %v2734_v8, %v2741_v12  ;;  %v5970_v8 = vld.sshfl [vmem:[%s6706_s23 + $0x10] sm:$0x33 pattern:$0x75316420] }
  0x4b   : > { %v2981_v44 = vshrl.u32 %v2890_v18, 16  ;;  %v2983_v45 = vshll.u32 %v2890_v18, 16  ;;  %v6929_v46 = vsel %vm6842_vm14, %v5082_v13, %v5087_v37  ;;  %v1490_v52 = vcombine.low %v6868_v32, %v6873_v36 }
  0x4c   : > { %2066 = vrot.lane.b32.xlu0 %v1897_v14, %s6615_s0  ;;  %8341 = vst [vmem:[#allocation13_spill] sm:$0xff] %v6929_v46  ;;  %v2999_v49 = vrot.slane %v2997_v39, 1  ;;  %v6932_v50 = vrot.slane %v2742_v42, %v6749_v15  ;;  %v6005_v53 = vcombine.high %v6868_v32, %v6873_v36  ;;  %v6940_v55 = vsel %vm6842_vm14, %v5090_v43, %v5095_v48 }
  0x4d   : > { %v2985_v54 = vrot.slane %v2983_v45, 1  ;;  %8342 = vst [vmem:[#allocation14_spill] sm:$0xff] %v6940_v55  ;;  %v1688_v56 = vrot.slane %v6765_v23, %v6749_v15  ;;  %v546_v58 = vcombine.high %v6765_v23, %v6765_v23  ;;  %v1498_v32 = vrot.slane %v1490_v52, %v6749_v15 }
  0x4e   : > { %v3000_v60 = vor.u32 %v2999_v49, %v2995_v38  ;;  %v2905_v62 = vcombine.low %v6932_v50, %v2904_v34  ;;  %v1505_v0 = vrot.slane %v6005_v53, %v6749_v15  ;;  %v1515_v5 = vcombine.low %v547_v9, %v6771_v25 }
  0x4f   : > { %v2986_v36 = vor.u32 %v2985_v54, %v2981_v44  ;;  %v1695_v1 = vrot.slane %v1688_v56, %v6749_v15  ;;  %v1514_v2 = vcombine.low %v6768_v24, %v546_v58  ;;  %v1703_v6 = vrot.slane %v6774_v26, %v6749_v15 }
  0x50   : > { %3030 = vrot.lane.b32.xlu1 %v3000_v60, %s6616_s7  ;;  %v2988_v23 = vshrl.u32 %v2905_v62, 16  ;;  %v2990_v4 = vshll.u32 %v2905_v62, 16  ;;  %v1506_v11 = vcombine.low %v1498_v32, %v1505_v0  ;;  %v579_v13 = vcombine.high %v5969_v59, %v5969_v59 }
  0x51   : > { %3026 = vrot.lane.b32.xlu0 %v2986_v36, %s6616_s7  ;;  %v1522_v12 = vrot.slane %v1514_v2, %v6749_v15  ;;  %v6962_v14 = vrot.slane %v5969_v59, %v6749_v15  ;;  %v1529_v18 = vrot.slane %v1515_v5, %v6749_v15  ;;  %v1710_v34 = vrot.slane %v1703_v6, %v6749_v15 }
  0x52   : > { %v2992_v24 = vrot.slane %v2990_v4, 1  ;;  %v6006_v9 = vcombine.high %v6771_v25, %v6774_v26  ;;  %v6969_v37 = vrot.slane %v1506_v11, %v6749_v15  ;;  %v6972_v38 = vrot.slane %v579_v13, %v6749_v15 }
  0x53   : > { %v6976_v39 = vcombine.high %v6962_v14, %v6962_v14  ;;  %v603_v42 = vcombine.high %v5970_v8, %v5970_v8  ;;  %v1530_v44 = vcombine.low %v1522_v12, %v1529_v18  ;;  %v610_v48 = vrot.slane %v5970_v8, %v6749_v15 }
  0x54   : > { %v2993_v43 = vor.u32 %v2992_v24, %v2988_v23  ;;  %v1546_v45 = vrot.slane %v6006_v9, %v6749_v15  ;;  %v1696_v49 = vcombine.low %v6969_v37, %v1695_v1  ;;  %v1539_v25 = vcombine.low %v6962_v14, %v6972_v38 }
  0x55   : > { %v1718_v52 = vrot.slane %v6976_v39, %v6749_v15  ;;  %v595_v53 = vcombine.high %v6972_v38, %v6972_v38  ;;  %v6989_v54 = vrot.slane %v1530_v44, %v6749_v15  ;;  %v617_v56 = vrot.slane %v603_v42, %v6749_v15 }
  0x56   : > { %3028 = vrot.lane.b32.xlu1 %v2993_v43, %s6616_s7  ;;  %v618_v58 = vcombine.high %v610_v48, %v610_v48  ;;  %v6994_v59 = vcombine.high %v6753_v19, %v6753_v19  ;;  %v1803_v60 = vshrl.u32 %v1696_v49, 16  ;;  %v1805_v62 = vshll.u32 %v1696_v49, 16 }
  0x57   : > { %v1553_v32 = vrot.slane %v1539_v25, %v6749_v15  ;;  %v1725_v36 = vrot.slane %v1718_v52, %v6749_v15  ;;  %v1711_v0 = vcombine.low %v6989_v54, %v1710_v34  ;;  %v619_v1 = vcombine.high %v617_v56, %v617_v56 }
  0x58   : > { %8343 = vst [vmem:[#allocation15_spill] sm:$0xff] %v6994_v59  ;;  %v1562_v2 = vcombine.low %v595_v53, %v610_v48  ;;  %v1563_v23 = vcombine.low %v617_v56, %v618_v58  ;;  %v1807_v4 = vrot.slane %v1805_v62, 1  ;;  %v7001_v6 = vcombine.high %v6756_v20, %v6756_v20 }
  0x59   : > { %v1554_v5 = vcombine.low %v1546_v45, %v1553_v32  ;;  %v2678_v8 = vcombine.low %v6756_v20, %v6994_v59  ;;  %v1810_v11 = vshrl.u32 %v1711_v0, 16  ;;  %v1812_v12 = vshll.u32 %v1711_v0, 16 }
  0x5a   : > { %8344 = vst [vmem:[#allocation16_spill] sm:$0xff] %v7001_v6  ;;  %v1570_v13 = vrot.slane %v1562_v2, %v6749_v15  ;;  %v1577_v24 = vrot.slane %v1563_v23, %v6749_v15  ;;  %v1808_v18 = vor.u32 %v1807_v4, %v1803_v60  ;;  %v1733_v9 = vrot.slane %v619_v1, %v6749_v15  ;;  %v5986_v1 = vld.sshfl [vmem:[%s6716_s16 + $0x1c] sm:$0x33 pattern:$0x75316420] }
  0x5b   : > { %v7008_v34 = vrot.slane %v1554_v5, %v6749_v15  ;;  %v2679_v42 = vcombine.low %v7001_v6, %v6759_v21  ;;  %v1814_v43 = vrot.slane %v1812_v12, 1  ;;  %v2686_v45 = vrot.slane %v2678_v8, %v6749_v15 }
  0x5c   : > { %v1578_v44 = vcombine.low %v1570_v13, %v1577_v24  ;;  %v2867_v49 = vrot.slane %v6762_v22, %v6749_v15  ;;  %1858 = vrot.lane.b32.xlu0 %v1808_v18, %s6616_s7  ;;  %v1740_v52 = vrot.slane %v1733_v9, %v6749_v15  ;;  %v1946_v58 = vcombine.low %v610_v48, %v617_v56 }
  0x5d   : > { %v1726_v25 = vcombine.low %v7008_v34, %v1725_v36  ;;  %v2693_v53 = vrot.slane %v2679_v42, %v6749_v15  ;;  %v1815_v60 = vor.u32 %v1814_v43, %v1810_v11  ;;  %v6010_v0 = vcombine.high %v610_v48, %v617_v56  ;;  %v5987_v56 = vld.sshfl [vmem:[%s6716_s16 + $0x20] sm:$0x33 pattern:$0x75316420] }
  0x5e   : > { %v7021_v62 = vrot.slane %v1578_v44, %v6749_v15  ;;  %v2874_v32 = vrot.slane %v2867_v49, %v6749_v15  ;;  %v1954_v5 = vrot.slane %v1946_v58, %v6749_v15  ;;  %v571_v11 = vcombine.high %v6774_v26, %v6774_v26 }
  0x5f   : > { %v1817_v2 = vshrl.u32 %v1726_v25, 16  ;;  %v1819_v23 = vshll.u32 %v1726_v25, 16  ;;  %v2694_v4 = vcombine.low %v2686_v45, %v2693_v53  ;;  %1860 = vrot.lane.b32.xlu1 %v1815_v60, %s6616_s7  ;;  %v1961_v8 = vrot.slane %v6010_v0, %v6749_v15 }
  0x60   : > { %v1741_v36 = vcombine.low %v7021_v62, %v1740_v52  ;;  %v1923_v12 = vcombine.low %v6972_v38, %v6976_v39  ;;  %v1011_v24 = vcombine.high %v5986_v1, %v5986_v1  ;;  %v7038_v18 = vrot.slane %v5986_v1, %v6749_v15 }
  0x61   : > { %v1821_v13 = vrot.slane %v1819_v23, 1  ;;  %v7034_v48 = vrot.slane %v2694_v4, %v6749_v15  ;;  %v987_v9 = vcombine.high %v6821_v51, %v6821_v51  ;;  %v1922_v44 = vcombine.low %v571_v11, %v6962_v14 }
  0x62   : > { %8345 = vst [vmem:[#allocation17_spill] sm:$0xff] %v7038_v18  ;;  %v1824_v42 = vshrl.u32 %v1741_v36, 16  ;;  %v1826_v43 = vshll.u32 %v1741_v36, 16  ;;  %v1937_v38 = vrot.slane %v1923_v12, %v6749_v15  ;;  %v7046_v39 = vrot.slane %v1011_v24, %v6749_v15 }
  0x63   : > { %v1822_v26 = vor.u32 %v1821_v13, %v1817_v2  ;;  %v2875_v45 = vcombine.low %v7034_v48, %v2874_v32  ;;  %v1962_v25 = vcombine.low %v1954_v5, %v1961_v8  ;;  %v1930_v52 = vrot.slane %v1922_v44, %v6749_v15 }
  0x64   : > { %8346 = vst [vmem:[#allocation18_spill] sm:$0xff] %v7046_v39  ;;  %v1828_v49 = vrot.slane %v1826_v43, 1  ;;  %v1035_v53 = vcombine.high %v5987_v56, %v5987_v56  ;;  %v7051_v60 = vrot.slane %v5987_v56, %v6749_v15  ;;  %v6051_v14 = vcombine.high %v7038_v18, %v7046_v39 }
  0x65   : > { %1862 = vrot.lane.b32.xlu0 %v1822_v26, %s6616_s7  ;;  %v2974_v51 = vshrl.u32 %v2875_v45, 16  ;;  %v2976_v58 = vshll.u32 %v2875_v45, 16  ;;  %v7059_v1 = vrot.slane %v987_v9, %v6749_v15  ;;  %v1938_v23 = vcombine.low %v1930_v52, %v1937_v38  ;;  %v5989_v45 = vld.sshfl [vmem:[%s6716_s16 + $0x28] sm:$0x33 pattern:$0x75316420] }
  0x66   : > { %8347 = vst [vmem:[#allocation19_spill] sm:$0xff] %v7051_v60  ;;  %v1829_v32 = vor.u32 %v1828_v49, %v1824_v42  ;;  %v7056_v0 = vrot.slane %v1035_v53, %v6749_v15  ;;  %v7063_v4 = vcombine.high %v7051_v60, %v7051_v60  ;;  %v7067_v5 = vcombine.high %v6835_v61, %v6835_v61  ;;  %v5988_v42 = vld.sshfl [vmem:[%s6716_s16 + $0x24] sm:$0x33 pattern:$0x75316420] }
  0x67   : > { %8349 = vst [vmem:[#allocation21_spill] sm:$0xff] %v7059_v1  ;;  %v2978_v2 = vrot.slane %v2976_v58, 1  ;;  %v1969_v36 = vrot.slane %v1962_v25, %v6749_v15  ;;  %v2806_v11 = vrot.slane %v6051_v14, %v6749_v15  ;;  %v7076_v12 = vcombine.high %v7059_v1, %v7059_v1 }
  0x68   : > { %8348 = vst [vmem:[#allocation20_spill] sm:$0xff] %v7056_v0  ;;  %8350 = vst [vmem:[#allocation22_spill] sm:$0xff] %v7063_v4  ;;  %1864 = vrot.lane.b32.xlu1 %v1829_v32, %s6616_s7  ;;  %v2799_v8 = vcombine.low %v7051_v60, %v7056_v0  ;;  %v2942_v56 = vrot.slane %v7063_v4, %v6749_v15  ;;  %v2774_v24 = vcombine.low %v7059_v1, %v7067_v5  ;;  %vm2107_vm0 = vcmask 130048  }
  0x69   : > { %8351 = vst [vmem:[#allocation23_spill] sm:$0xff] %v7067_v5  ;;  %8352 = vst [vmem:[#allocation24_spill] sm:$0xff] %v7076_v12  ;;  %v2979_v13 = vor.u32 %v2978_v2, %v2974_v51  ;;  %v2927_v9 = vrot.slane %v7046_v39, %v6749_v15  ;;  %v2775_v44 = vcombine.low %v7076_v12, %v7038_v18  ;;  %v7108_v2 = vld.sshfl [vmem:[%s6716_s16 + $0x2c] sm:$0x33 pattern:$0x75316420] }
  0x6a   : > { %v2813_v43 = vrot.slane %v2799_v8, %v6749_v15  ;;  %v6054_v26 = vcombine.high %v6835_v61, %v7059_v1  ;;  %v1945_v38 = vrot.slane %v1938_v23, %v6749_v15  ;;  %v2782_v49 = vrot.slane %v2774_v24, %v6749_v15  ;;  %v5972_v12 = vld.sshfl [vmem:[%s6706_s23 + $0x18] sm:$0x33 pattern:$0x75316420] }
  0x6b   : > { %3024 = vrot.lane.b32.xlu0 %v2979_v13, %s6616_s7  ;;  %v3159_v25 = vcombine.low %v7038_v18, %v7046_v39  ;;  %v7098_v52 = vcombine.high %v7056_v0, %v7056_v0  ;;  %v2949_v51 = vrot.slane %v2942_v56, %v6749_v15  ;;  %v2789_v61 = vrot.slane %v2775_v44, %v6749_v15 }
  0x6c   : > { %2072 = vrot.lane.b32.xlu1 %v1969_v36, %s6615_s0  ;;  %v2814_v53 = vcombine.low %v2806_v11, %v2813_v43  ;;  %v1059_v58 = vcombine.high %v5988_v42, %v5988_v42  ;;  %v2934_v14 = vrot.slane %v2927_v9, %v6749_v15  ;;  %v7105_v32 = vrot.slane %v5988_v42, %v6749_v15 }
  0x6d   : > { %8353 = vst [vmem:[#allocation25_spill] sm:$0xff] %v7098_v52  ;;  %v1083_v23 = vcombine.high %v5989_v45, %v5989_v45  ;;  %v7111_v8 = vrot.slane %v5989_v45, %v6749_v15  ;;  %v2790_v36 = vcombine.low %v2782_v49, %v2789_v61  ;;  %v3166_v11 = vrot.slane %v6054_v26, %v6749_v15 }
  0x6e   : > { %8354 = vst [vmem:[#allocation26_spill] sm:$0xff] %v7105_v32  ;;  %v7114_v13 = vrot.slane %v2814_v53, %v6749_v15  ;;  %v7118_v56 = vrot.slane %v1059_v58, %v6749_v15  ;;  %v3173_v24 = vrot.slane %v3159_v25, %v6749_v15  ;;  %v7124_v9 = vcombine.high %v7105_v32, %v7105_v32 }
  0x6f   : > { %8355 = vst [vmem:[#allocation27_spill] sm:$0xff] %v7111_v8  ;;  %2070 = vrot.lane.b32.xlu0 %v1945_v38, %s6615_s0  ;;  %v2822_v42 = vcombine.low %v7098_v52, %v7105_v32  ;;  %v7129_v43 = vrot.slane %v1083_v23, %v6749_v15  ;;  %v7133_v26 = vrot.slane %v2790_v36, %v6749_v15  ;;  %vm2164_vm1 = vcmask 195584  }
  0x70   : > { %8356 = vst [vmem:[#allocation28_spill] sm:$0xff] %v7118_v56  ;;  %8357 = vst [vmem:[#allocation29_spill] sm:$0xff] %v7124_v9  ;;  %v2950_v44 = vcombine.low %v7114_v13, %v2949_v51  ;;  %v7137_v45 = vcombine.high %v7118_v56, %v7118_v56  ;;  %v7141_v38 = vrot.slane %v7108_v2, %v6749_v15  ;;  %vm2177_vm2 = vcmask 1043456  }
  0x71   : > { %8358 = vst [vmem:[#allocation30_spill] sm:$0xff] %v7129_v43  ;;  %v2823_v49 = vcombine.low %v7118_v56, %v7124_v9  ;;  %v2830_v25 = vrot.slane %v2822_v42, %v6749_v15  ;;  %v3423_v53 = vcombine.low %v7111_v8, %v7129_v43  ;;  %v6069_v51 = vcombine.high %v7111_v8, %v7129_v43 }
  0x72   : > { %8359 = vst [vmem:[#allocation31_spill] sm:$0xff] %v7137_v45  ;;  %8360 = vst [vmem:[#allocation32_spill] sm:$0xff] %v7141_v38  ;;  %v3009_v61 = vshrl.u32 %v2950_v44, 16  ;;  %v3011_v58 = vshll.u32 %v2950_v44, 16  ;;  %v2935_v23 = vcombine.low %v7133_v26, %v2934_v14  ;;  %v2957_v36 = vrot.slane %v7137_v45, %v6749_v15 }
  0x73   : > { %v3174_v63 = vcombine.low %v3166_v11, %v3173_v24  ;;  %v2837_v35 = vrot.slane %v2823_v49, %v6749_v15  ;;  %v3431_v31 = vrot.slane %v3423_v53, %v6749_v15  ;;  %v3438_v42 = vrot.slane %v6069_v51, %v6749_v15  ;;  %v5973_v51 = vld.sshfl [vmem:[%s6706_s23 + $0x1c] sm:$0x33 pattern:$0x75316420] }
  0x74   : > { %v3013_v5 = vrot.slane %v3011_v58, 1  ;;  %v3002_v1 = vshrl.u32 %v2935_v23, 16  ;;  %v3004_v18 = vshll.u32 %v2935_v23, 16  ;;  %v2964_v44 = vrot.slane %v2957_v36, %v6749_v15 }
  0x75   : > { %v2838_v22 = vcombine.low %v2830_v25, %v2837_v35  ;;  %v3439_v14 = vcombine.low %v3431_v31, %v3438_v42  ;;  %v3453_v6 = vrot.slane %v7141_v38, %v6749_v15  ;;  %v7162_v11 = vcombine.high %v7046_v39, %v7046_v39  ;;  %v5971_v36 = vld.sshfl [vmem:[%s6706_s23 + $0x14] sm:$0x33 pattern:$0x75316420] }
  0x76   : > { %v3014_v24 = vor.u32 %v3013_v5, %v3009_v61  ;;  %v3006_v49 = vrot.slane %v3004_v18, 1  ;;  %v3183_v53 = vcombine.low %v7056_v0, %v7063_v4  ;;  %v651_v58 = vcombine.high %v5972_v12, %v5972_v12 }
  0x77   : > { %8361 = vst [vmem:[#allocation33_spill] sm:$0xff] %v7162_v11  ;;  %v7168_v23 = vrot.slane %v2838_v22, %v6749_v15  ;;  %v7171_v35 = vrot.slane %v3439_v14, %v6749_v15  ;;  %v3460_v31 = vrot.slane %v3453_v6, %v6749_v15  ;;  %v3182_v25 = vcombine.low %v7162_v11, %v7051_v60 }
  0x78   : > { %3034 = vrot.lane.b32.xlu1 %v3014_v24, %s6616_s7  ;;  %v3007_v18 = vor.u32 %v3006_v49, %v3002_v1  ;;  %v3181_v5 = vrot.slane %v3174_v63, %v6749_v15  ;;  %v3197_v61 = vrot.slane %v3183_v53, %v6749_v15  ;;  %v7184_v4 = vrot.slane %v5972_v12, %v6749_v15 }
  0x79   : > { %v2965_v42 = vcombine.low %v7168_v23, %v2964_v44  ;;  %v3461_v22 = vcombine.low %v7171_v35, %v3460_v31  ;;  %v3190_v14 = vrot.slane %v3182_v25, %v6749_v15  ;;  %v7188_v6 = vrot.slane %v651_v58, %v6749_v15 }
  0x7a   : > { %3032 = vrot.lane.b32.xlu0 %v3007_v18, %s6616_s7  ;;  %v675_v24 = vcombine.high %v5973_v51, %v5973_v51  ;;  %v7191_v1 = vrot.slane %v5973_v51, %v6749_v15  ;;  %v627_v63 = vcombine.high %v5971_v36, %v5971_v36  ;;  %v666_v12 = vcombine.high %v7184_v4, %v7184_v4  ;;  %v6555_v51 = vld [vmem:[%s8257_s3 + $0x30] sm:$0xff]   ;;  %v6556_v18 = vld [vmem:[%s8257_s3] sm:$0xff]  }
  0x7b   : > { %v3016_v49 = vshrl.u32 %v2965_v42, 16  ;;  %v3018_v53 = vshll.u32 %v2965_v42, 16  ;;  %v3463_v44 = vshrl.u32 %v3461_v22, 16  ;;  %v3465_v0 = vshll.u32 %v3461_v22, 16  ;;  %6363 = vmatprep.subr.bf16.mxu0 %v6555_v51  ;;  %6315 = vmatprep.subr.bf16.mxu1 %v6556_v18 }
  0x7c   : > { %3240 = vrot.lane.b32.xlu1 %v3181_v5, %s6615_s0  ;;  %v3198_v31 = vcombine.low %v3190_v14, %v3197_v61  ;;  %v667_v25 = vcombine.high %v7188_v6, %v7188_v6  ;;  %v7199_v58 = vrot.slane %v675_v24, %v6749_v15  ;;  %v7208_v61 = vrot.slane %v5971_v36, %v6749_v15 }
  0x7d   : > { %v3020_v42 = vrot.slane %v3018_v53, 1  ;;  %v3467_v5 = vrot.slane %v3465_v0, 1  ;;  %v7211_v22 = vrot.slane %v627_v63, %v6749_v15  ;;  %v1610_v14 = vcombine.low %v7188_v6, %v666_v12  ;;  %6364 = vmatpush3.bf16.msra.mxu0 %v6555_v51  ;;  %6316 = vmatpush3.bf16.msra.mxu1 %v6556_v18 }
  0x7e   : > { %v1611_v24 = vcombine.low %v667_v25, %v7191_v1  ;;  %v1763_v60 = vrot.slane %v7199_v58, %v6749_v15  ;;  %v3205_v36 = vrot.slane %v3198_v31, %v6749_v15  ;;  %v1748_v25 = vrot.slane %v7184_v4, %v6749_v15 }
  0x7f   : > { %v3021_v39 = vor.u32 %v3020_v42, %v3016_v49  ;;  %v3468_v11 = vor.u32 %v3467_v5, %v3463_v44  ;;  %v1586_v53 = vcombine.low %v7208_v61, %v7211_v22  ;;  %v6007_v0 = vcombine.high %v7208_v61, %v7211_v22 }
  0x80   : > { %v1618_v63 = vrot.slane %v1610_v14, %v6749_v15  ;;  %v1625_v12 = vrot.slane %v1611_v24, %v6749_v15  ;;  %v7232_v31 = vcombine.high %v7111_v8, %v7111_v8  ;;  %v1770_v42 = vrot.slane %v1763_v60, %v6749_v15  ;;  %v5974_v14 = vld.sshfl [vmem:[%s6706_s23 + $0x20] sm:$0x33 pattern:$0x75316420] }
  0x81   : > { %3036 = vrot.lane.b32.xlu0 %v3021_v39, %s6616_s7  ;;  %3469 = vrot.lane.b32.xlu1 %v3468_v11, %s6616_s7  ;;  %v1594_v49 = vrot.slane %v1586_v53, %v6749_v15  ;;  %v1601_v44 = vrot.slane %v6007_v0, %v6749_v15  ;;  %v7237_v5 = vcombine.high %v7129_v43, %v7129_v43  ;;  %v5975_v0 = vld.sshfl [vmem:[%s6706_s23 + $0x24] sm:$0x33 pattern:$0x75316420]  ;;  %vm5575_vm3 = vcmask 1040384  }
  0x82   : > { %8362 = vst [vmem:[#allocation34_spill] sm:$0xff] %v7232_v31  ;;  %v1626_v51 = vcombine.low %v1618_v63, %v1625_v12  ;;  %v3206_v39 = vcombine.low %v7105_v32, %v7118_v56  ;;  %v1755_v24 = vrot.slane %v1748_v25, %v6749_v15  ;;  %v3471_v53 = vcombine.low %v7129_v43, %v7232_v31 }
  0x83   : > { %8363 = vst [vmem:[#allocation35_spill] sm:$0xff] %v7237_v5  ;;  %v1602_v11 = vcombine.low %v1594_v49, %v1601_v44  ;;  %v3472_v60 = vcombine.low %v7237_v5, %v7141_v38  ;;  %v6055_v25 = vcombine.high %v7105_v32, %v7118_v56  ;;  %v699_v59 = vcombine.high %v5974_v14, %v5974_v14 }
  0x84   : > { %v7247_v63 = vrot.slane %v1626_v51, %v6749_v15  ;;  %v3479_v18 = vrot.slane %v3471_v53, %v6749_v15  ;;  %v3214_v49 = vrot.slane %v3206_v39, %v6749_v15  ;;  %v723_v20 = vcombine.high %v5975_v0, %v5975_v0 }
  0x85   : > { %3242 = vrot.lane.b32.xlu0 %v3205_v36, %s6615_s0  ;;  %v7253_v12 = vrot.slane %v1602_v11, %v6749_v15  ;;  %v3486_v51 = vrot.slane %v3472_v60, %v6749_v15  ;;  %v3221_v36 = vrot.slane %v6055_v25, %v6749_v15  ;;  %v730_v11 = vrot.slane %v5975_v0, %v6749_v15 }
  0x86   : > { %8364 = vst [vmem:[#allocation36_spill] sm:$0xff] %v7247_v63  ;;  %v1771_v44 = vcombine.low %v7247_v63, %v1770_v42  ;;  %v706_v8 = vrot.slane %v5974_v14, %v6749_v15  ;;  %v7266_v56 = vrot.slane %v699_v59, %v6749_v15  ;;  %v737_v60 = vrot.slane %v723_v20, %v6749_v15 }
  0x87   : > { %8365 = vst [vmem:[#allocation37_spill] sm:$0xff] %v7253_v12  ;;  %v1756_v43 = vcombine.low %v7253_v12, %v1755_v24  ;;  %v3487_v5 = vcombine.low %v3479_v18, %v3486_v51  ;;  %v3222_v63 = vcombine.low %v3214_v49, %v3221_v36  ;;  %v738_v0 = vcombine.high %v730_v11, %v730_v11 }
  0x88   : > { %v1838_v53 = vshrl.u32 %v1771_v44, 16  ;;  %v1840_v9 = vshll.u32 %v1771_v44, 16  ;;  %v715_v25 = vcombine.high %v7266_v56, %v7266_v56  ;;  %v739_v44 = vcombine.high %v737_v60, %v737_v60 }
  0x89   : > { %v1831_v39 = vshrl.u32 %v1756_v43, 16  ;;  %v1833_v42 = vshll.u32 %v1756_v43, 16  ;;  %v3494_v24 = vrot.slane %v3487_v5, %v6749_v15  ;;  %v3229_v14 = vrot.slane %v3222_v63, %v6749_v15 }
  0x8a   : > { %v1842_v32 = vrot.slane %v1840_v9, 1  ;;  %v714_v18 = vcombine.high %v706_v8, %v706_v8  ;;  %v1658_v59 = vcombine.low %v715_v25, %v730_v11  ;;  %v1659_v31 = vcombine.low %v737_v60, %v738_v0 }
  0x8b   : > { %v1835_v12 = vrot.slane %v1833_v42, 1  ;;  %v6008_v43 = vcombine.high %v7191_v1, %v7199_v58  ;;  %v1793_v20 = vrot.slane %v739_v44, %v6749_v15  ;;  %v1635_v9 = vcombine.low %v706_v8, %v7266_v56 }
  0x8c   : > { %v1843_v51 = vor.u32 %v1842_v32, %v1838_v53  ;;  %v1778_v5 = vrot.slane %v714_v18, %v6749_v15  ;;  %v1666_v36 = vrot.slane %v1658_v59, %v6749_v15  ;;  %v1673_v63 = vrot.slane %v1659_v31, %v6749_v15 }
  0x8d   : > { %v1836_v49 = vor.u32 %v1835_v12, %v1831_v39  ;;  %v1642_v32 = vrot.slane %v6008_v43, %v6749_v15  ;;  %v6011_v53 = vcombine.high %v7184_v4, %v7188_v6  ;;  %v1800_v12 = vrot.slane %v1793_v20, %v6749_v15 }
  0x8e   : > { %1868 = vrot.lane.b32.xlu1 %v1843_v51, %s6616_s7  ;;  %v1649_v39 = vrot.slane %v1635_v9, %v6749_v15  ;;  %v1785_v42 = vrot.slane %v1778_v5, %v6749_v15  ;;  %v1995_v25 = vcombine.low %v7191_v1, %v7199_v58  ;;  %v1674_v0 = vcombine.low %v1666_v36, %v1673_v63 }
  0x8f   : > { %1866 = vrot.lane.b32.xlu0 %v1836_v49, %s6616_s7  ;;  %v2002_v44 = vrot.slane %v6011_v53, %v6749_v15  ;;  %v642_v31 = vcombine.high %v7208_v61, %v7208_v61  ;;  %v643_v6 = vcombine.high %v7211_v22, %v7211_v22  ;;  %v2042_v43 = vcombine.low %v730_v11, %v737_v60 }
  0x90   : > { %v1650_v51 = vcombine.low %v1642_v32, %v1649_v39  ;;  %v2009_v59 = vrot.slane %v1995_v25, %v6749_v15  ;;  %v6012_v49 = vcombine.high %v730_v11, %v737_v60  ;;  %v7298_v20 = vrot.slane %v1674_v0, %v6749_v15 }
  0x91   : > { %v1970_v1 = vcombine.low %v7211_v22, %v642_v31  ;;  %v1971_v9 = vcombine.low %v643_v6, %v7184_v4  ;;  %v691_v61 = vcombine.high %v7199_v58, %v7199_v58  ;;  %v2050_v11 = vrot.slane %v2042_v43, %v6749_v15  ;;  %v5991_v31 = vld.sshfl [vmem:[%s6716_s16 + $0x30] sm:$0x11 pattern:$0x75316420] }
  0x92   : > { %3495 = vrot.lane.b32.xlu1 %v3494_v24, %s6615_s0  ;;  %8366 = vst [vmem:[#allocation38_spill] sm:$0xff] %v7298_v20  ;;  %v7306_v5 = vrot.slane %v1650_v51, %v6749_v15  ;;  %v2010_v36 = vcombine.low %v2002_v44, %v2009_v59  ;;  %v2057_v60 = vrot.slane %v6012_v49, %v6749_v15  ;;  %v5976_v59 = vld.sshfl [vmem:[%s6706_s23 + $0x28] sm:$0x33 pattern:$0x75316420] }
  0x93   : > { %3244 = vrot.lane.b32.xlu0 %v3229_v14, %s6615_s0  ;;  %v1801_v24 = vcombine.low %v7298_v20, %v1800_v12  ;;  %v1978_v22 = vrot.slane %v1970_v1, %v6749_v15  ;;  %v1985_v4 = vrot.slane %v1971_v9, %v6749_v15  ;;  %v2018_v63 = vcombine.low %v691_v61, %v706_v8 }
  0x94   : > { %8367 = vst [vmem:[#allocation39_spill] sm:$0xff] %v7306_v5  ;;  %v1786_v58 = vcombine.low %v7306_v5, %v1785_v42  ;;  %v2017_v14 = vrot.slane %v2010_v36, %v6749_v15  ;;  %v2058_v32 = vcombine.low %v2050_v11, %v2057_v60  ;;  %v2019_v53 = vcombine.low %v7266_v56, %v714_v18 }
  0x95   : > { %v1852_v39 = vshrl.u32 %v1801_v24, 16  ;;  %v1854_v25 = vshll.u32 %v1801_v24, 16  ;;  %v1986_v0 = vcombine.low %v1978_v22, %v1985_v4  ;;  %v2026_v44 = vrot.slane %v2018_v63, %v6749_v15  ;;  %v7330_v24 = vld.sshfl [vmem:[%s6706_s23 + $0x2c] sm:$0x33 pattern:$0x75316420] }
  0x96   : > { %v1845_v12 = vshrl.u32 %v1786_v58, 16  ;;  %v1847_v6 = vshll.u32 %v1786_v58, 16  ;;  %v2065_v51 = vrot.slane %v2058_v32, %v6749_v15  ;;  %v2033_v8 = vrot.slane %v2019_v53, %v6749_v15 }
  0x97   : > { %v1856_v42 = vrot.slane %v1854_v25, 1  ;;  %v1993_v43 = vrot.slane %v1986_v0, %v6749_v15  ;;  %v1107_v56 = vcombine.high %v7108_v2, %v7108_v2  ;;  %v1131_v18 = vcombine.high %v5991_v31, %v5991_v31 }
  0x98   : > { %v1849_v49 = vrot.slane %v1847_v6, 1  ;;  %v2034_v1 = vcombine.low %v2026_v44, %v2033_v8  ;;  %v1138_v9 = vrot.slane %v5991_v31, %v6749_v15  ;;  %v1122_v61 = vcombine.high %v7141_v38, %v7141_v38 }
  0x99   : > { %v1857_v36 = vor.u32 %v1856_v42, %v1852_v39  ;;  %v1121_v11 = vrot.slane %v1107_v56, %v6749_v15  ;;  %v1145_v60 = vrot.slane %v1131_v18, %v6749_v15  ;;  %v747_v22 = vcombine.high %v5976_v59, %v5976_v59  ;;  %v5993_v56 = vld.sshfl [vmem:[%s6729_s29 + $0x4] sm:$0x33 pattern:$0x75316420] }
  0x9a   : > { %v1850_v4 = vor.u32 %v1849_v49, %v1845_v12  ;;  %v2041_v63 = vrot.slane %v2034_v1, %v6749_v15  ;;  %v754_v2 = vrot.slane %v5976_v59, %v6749_v15  ;;  %v7343_v12 = vrot.slane %v7330_v24, %v6749_v15 }
  0x9b   : > { %1872 = vrot.lane.b32.xlu1 %v1857_v36, %s6616_s7  ;;  %v1123_v32 = vcombine.high %v1121_v11, %v1121_v11  ;;  %v6083_v53 = vcombine.high %v7141_v38, %v1121_v11  ;;  %v3674_v39 = vcombine.low %v1138_v9, %v1145_v60  ;;  %v3625_v25 = vcombine.low %v1121_v11, %v1122_v61 }
  0x9c   : > { %1870 = vrot.lane.b32.xlu0 %v1850_v4, %s6616_s7  ;;  %v3655_v0 = vrot.slane %v1145_v60, %v6749_v15  ;;  %v761_v44 = vrot.slane %v747_v22, %v6749_v15  ;;  %v762_v31 = vcombine.high %v754_v2, %v754_v2  ;;  %v5994_v22 = vld.sshfl [vmem:[%s6729_s29 + $0x8] sm:$0x33 pattern:$0x75316420] }
  0x9d   : > { %v3626_v6 = vcombine.low %v1123_v32, %v1138_v9  ;;  %v3681_v8 = vrot.slane %v6083_v53, %v6749_v15  ;;  %v3688_v59 = vrot.slane %v3674_v39, %v6749_v15  ;;  %v3633_v42 = vrot.slane %v3625_v25, %v6749_v15  ;;  %v5992_v25 = vld.sshfl [vmem:[%s6729_s29] sm:$0x33 pattern:$0x75316420] }
  0x9e   : > { %v3662_v18 = vrot.slane %v3655_v0, %v6749_v15  ;;  %v763_v49 = vcombine.high %v761_v44, %v761_v44  ;;  %v2310_v1 = vcombine.low %v761_v44, %v762_v31  ;;  %v2262_v61 = vcombine.low %v754_v2, %v761_v44 }
  0x9f   : > { %2076 = vrot.lane.b32.xlu1 %v2017_v14, %s6615_s0  ;;  %v3689_v36 = vcombine.low %v3681_v8, %v3688_v59  ;;  %v3640_v11 = vrot.slane %v3626_v6, %v6749_v15  ;;  %v6023_v60 = vcombine.high %v754_v2, %v761_v44  ;;  %v2292_v9 = vrot.slane %v7343_v12, %v6749_v15 }
  0xa0   : > { %2074 = vrot.lane.b32.xlu0 %v1993_v43, %s6615_s0  ;;  %v2311_v4 = vcombine.low %v763_v49, %v7343_v12  ;;  %v2318_v32 = vrot.slane %v2310_v1, %v6749_v15  ;;  %v2270_v53 = vrot.slane %v2262_v61, %v6749_v15  ;;  %v1203_v39 = vcombine.high %v5993_v56, %v5993_v56 }
  0xa1   : > { %v3696_v14 = vrot.slane %v3689_v36, %v6749_v15  ;;  %v3641_v0 = vcombine.low %v3633_v42, %v3640_v11  ;;  %v2277_v31 = vrot.slane %v6023_v60, %v6749_v15  ;;  %v2299_v2 = vrot.slane %v2292_v9, %v6749_v15 }
  0xa2   : > { %v2325_v44 = vrot.slane %v2311_v4, %v6749_v15  ;;  %v7365_v6 = vrot.slane %v5993_v56, %v6749_v15  ;;  %v7368_v43 = vrot.slane %v1203_v39, %v6749_v15  ;;  %v1227_v8 = vcombine.high %v5994_v22, %v5994_v22 }
  0xa3   : > { %2080 = vrot.lane.b32.xlu1 %v2065_v51, %s6615_s0  ;;  %v7372_v59 = vrot.slane %v3641_v0, %v6749_v15  ;;  %v2278_v49 = vcombine.low %v2270_v53, %v2277_v31  ;;  %v7375_v42 = vrot.slane %v5994_v22, %v6749_v15  ;;  %v1179_v1 = vcombine.high %v5992_v25, %v5992_v25  ;;  %v5995_v31 = vld.sshfl [vmem:[%s6729_s29 + $0xc] sm:$0x33 pattern:$0x75316420] }
  0xa4   : > { %2078 = vrot.lane.b32.xlu0 %v2041_v63, %s6615_s0  ;;  %v2326_v61 = vcombine.low %v2318_v32, %v2325_v44  ;;  %v1218_v56 = vcombine.high %v7365_v6, %v7365_v6  ;;  %v1219_v36 = vcombine.high %v7368_v43, %v7368_v43  ;;  %v7383_v51 = vrot.slane %v1227_v8, %v6749_v15 }
  0xa5   : > { %8368 = vst [vmem:[#allocation40_spill] sm:$0xff] %v7372_v59  ;;  %v3663_v11 = vcombine.low %v7372_v59, %v3662_v18  ;;  %v7387_v60 = vrot.slane %v2278_v49, %v6749_v15  ;;  %v7390_v9 = vrot.slane %v5992_v25, %v6749_v15  ;;  %v7393_v63 = vrot.slane %v1179_v1, %v6749_v15 }
  0xa6   : > { %v2333_v22 = vrot.slane %v2326_v61, %v6749_v15  ;;  %v3839_v4 = vcombine.low %v7368_v43, %v1218_v56  ;;  %v3840_v32 = vcombine.low %v1219_v36, %v7375_v42  ;;  %v4028_v53 = vrot.slane %v7383_v51, %v6749_v15  ;;  %v5996_v61 = vld.sshfl [vmem:[%s6729_s29 + $0x10] sm:$0x33 pattern:$0x75316420] }
  0xa7   : > { %8369 = vst [vmem:[#allocation41_spill] sm:$0xff] %v7387_v60  ;;  %3697 = vrot.lane.b32.xlu1 %v3696_v14, %s6615_s0  ;;  %v3665_v18 = vshrl.u32 %v3663_v11, 16  ;;  %v3667_v39 = vshll.u32 %v3663_v11, 16  ;;  %v2300_v25 = vcombine.low %v7387_v60, %v2299_v2  ;;  %v3815_v0 = vcombine.low %v7390_v9, %v7393_v63 }
  0xa8   : > { %v3847_v44 = vrot.slane %v3839_v4, %v6749_v15  ;;  %v3854_v8 = vrot.slane %v3840_v32, %v6749_v15  ;;  %v4035_v49 = vrot.slane %v4028_v53, %v6749_v15  ;;  %v6094_v1 = vcombine.high %v7390_v9, %v7393_v63 }
  0xa9   : > { %v3669_v56 = vrot.slane %v3667_v39, 1  ;;  %v2302_v14 = vshrl.u32 %v2300_v25, 16  ;;  %v2304_v36 = vshll.u32 %v2300_v25, 16  ;;  %v3823_v11 = vrot.slane %v3815_v0, %v6749_v15 }
  0xaa   : > { %v3855_v2 = vcombine.low %v3847_v44, %v3854_v8  ;;  %v3830_v58 = vrot.slane %v6094_v1, %v6749_v15  ;;  %v4013_v60 = vrot.slane %v7365_v6, %v6749_v15  ;;  %v1251_v4 = vcombine.high %v5995_v31, %v5995_v31 }
  0xab   : > { %v3670_v59 = vor.u32 %v3669_v56, %v3665_v18  ;;  %2334 = vrot.lane.b32.xlu1 %v2333_v22, %s6615_s0  ;;  %v2306_v32 = vrot.slane %v2304_v36, 1  ;;  %v1275_v53 = vcombine.high %v5996_v61, %v5996_v61  ;;  %v7417_v38 = vrot.slane %v5996_v61, %v6749_v15 }
  0xac   : > { %v7420_v39 = vrot.slane %v3855_v2, %v6749_v15  ;;  %v3831_v25 = vcombine.low %v3823_v11, %v3830_v58  ;;  %v4020_v0 = vrot.slane %v4013_v60, %v6749_v15  ;;  %v7424_v44 = vrot.slane %v1251_v4, %v6749_v15 }
  0xad   : > { %3671 = vrot.lane.b32.xlu0 %v3670_v59, %s6616_s7  ;;  %v2307_v8 = vor.u32 %v2306_v32, %v2302_v14  ;;  %v1289_v18 = vrot.slane %v1275_v53, %v6749_v15  ;;  %v1290_v22 = vcombine.high %v7417_v38, %v7417_v38  ;;  %v1258_v1 = vrot.slane %v5995_v31, %v6749_v15 }
  0xae   : > { %8370 = vst [vmem:[#allocation42_spill] sm:$0xff] %v7420_v39  ;;  %v4036_v61 = vcombine.low %v7420_v39, %v4035_v49  ;;  %v7433_v56 = vrot.slane %v3831_v25, %v6749_v15  ;;  %v1267_v58 = vcombine.high %v7424_v44, %v7424_v44  ;;  %v6095_v60 = vcombine.high %v7375_v42, %v7383_v51 }
  0xaf   : > { %v1291_v59 = vcombine.high %v1289_v18, %v1289_v18  ;;  %v3888_v14 = vcombine.low %v1289_v18, %v1290_v22  ;;  %v7439_v36 = vcombine.high %v1258_v1, %v1258_v1  ;;  %v3864_v11 = vcombine.low %v1258_v1, %v7424_v44 }
  0xb0   : > { %8371 = vst [vmem:[#allocation43_spill] sm:$0xff] %v7433_v56  ;;  %v4135_v2 = vshrl.u32 %v4036_v61, 16  ;;  %v4137_v4 = vshll.u32 %v4036_v61, 16  ;;  %v4021_v31 = vcombine.low %v7433_v56, %v4020_v0  ;;  %v3887_v49 = vcombine.low %v1267_v58, %v7417_v38 }
  0xb1   : > { %2308 = vrot.lane.b32.xlu0 %v2307_v8, %s6616_s7  ;;  %v3902_v32 = vrot.slane %v3888_v14, %v6749_v15  ;;  %v4058_v53 = vrot.slane %v1291_v59, %v6749_v15  ;;  %v3871_v25 = vrot.slane %v6095_v60, %v6749_v15  ;;  %v3878_v22 = vrot.slane %v3864_v11, %v6749_v15 }
  0xb2   : > { %v4139_v39 = vrot.slane %v4137_v4, 1  ;;  %v4128_v5 = vshrl.u32 %v4021_v31, 16  ;;  %v4130_v20 = vshll.u32 %v4021_v31, 16  ;;  %v3895_v45 = vrot.slane %v3887_v49, %v6749_v15 }
  0xb3   : > { %v4065_v61 = vrot.slane %v4058_v53, %v6749_v15  ;;  %v3879_v0 = vcombine.low %v3871_v25, %v3878_v22  ;;  %v4043_v58 = vrot.slane %v7439_v36, %v6749_v15  ;;  %v6098_v8 = vcombine.high %v7365_v6, %v7368_v43 }
  0xb4   : > { %v4140_v14 = vor.u32 %v4139_v39, %v4135_v2  ;;  %v4132_v59 = vrot.slane %v4130_v20, 1  ;;  %v3903_v56 = vcombine.low %v3895_v45, %v3902_v32  ;;  %v4224_v60 = vcombine.low %v7375_v42, %v7383_v51 }
  0xb5   : > { %v7458_v11 = vrot.slane %v3879_v0, %v6749_v15  ;;  %v4050_v4 = vrot.slane %v4043_v58, %v6749_v15  ;;  %v4231_v31 = vrot.slane %v6098_v8, %v6749_v15  ;;  %v1194_v49 = vcombine.high %v7390_v9, %v7390_v9  ;;  %v5998_v8 = vld.sshfl [vmem:[%s6729_s29 + $0x18] sm:$0x33 pattern:$0x75316420] }
  0xb6   : > { %4185 = vrot.lane.b32.xlu1 %v4140_v14, %s6616_s7  ;;  %v4133_v53 = vor.u32 %v4132_v59, %v4128_v5  ;;  %v7466_v43 = vrot.slane %v3903_v56, %v6749_v15  ;;  %v4238_v45 = vrot.slane %v4224_v60, %v6749_v15  ;;  %v1195_v20 = vcombine.high %v7393_v63, %v7393_v63 }
  0xb7   : > { %8372 = vst [vmem:[#allocation44_spill] sm:$0xff] %v7458_v11  ;;  %v4051_v42 = vcombine.low %v7458_v11, %v4050_v4  ;;  %v4199_v39 = vcombine.low %v7393_v63, %v1194_v49  ;;  %v4271_v2 = vcombine.low %v7417_v38, %v1289_v18  ;;  %v6099_v9 = vcombine.high %v7417_v38, %v1289_v18  ;;  %v5999_v49 = vld.sshfl [vmem:[%s6729_s29 + $0x1c] sm:$0x33 pattern:$0x75316420] }
  0xb8   : > { %8373 = vst [vmem:[#allocation45_spill] sm:$0xff] %v7466_v43  ;;  %4183 = vrot.lane.b32.xlu0 %v4133_v53, %s6616_s7  ;;  %v4066_v5 = vcombine.low %v7466_v43, %v4065_v61  ;;  %v4239_v56 = vcombine.low %v4231_v31, %v4238_v45  ;;  %v4200_v32 = vcombine.low %v1195_v20, %v7365_v6  ;;  %v7492_v20 = vpop.permute.xlu0 %3232 }
  0xb9   : > { %v1243_v25 = vcombine.high %v7383_v51, %v7383_v51  ;;  %v4142_v22 = vshrl.u32 %v4051_v42, 16  ;;  %v4144_v0 = vshll.u32 %v4051_v42, 16  ;;  %v4207_v58 = vrot.slane %v4199_v39, %v6749_v15 }
  0xba   : > { %v4279_v63 = vrot.slane %v4271_v2, %v6749_v15  ;;  %v4149_v14 = vshrl.u32 %v4066_v5, 16  ;;  %v4151_v38 = vshll.u32 %v4066_v5, 16  ;;  %v4246_v18 = vrot.slane %v4239_v56, %v6749_v15  ;;  %v7497_v5 = vpop.permute.xlu1 %2068 }
  0xbb   : > { %v4214_v61 = vrot.slane %v4200_v32, %v6749_v15  ;;  %v4146_v59 = vrot.slane %v4144_v0, 1  ;;  %v4286_v6 = vrot.slane %v6099_v9, %v6749_v15  ;;  %v4247_v60 = vcombine.low %v1243_v25, %v1258_v1  ;;  %v5997_v9 = vld.sshfl [vmem:[%s6729_s29 + $0x14] sm:$0x33 pattern:$0x75316420] }
  0xbc   : > { %v4248_v51 = vcombine.low %v7424_v44, %v7439_v36  ;;  %v4153_v4 = vrot.slane %v4151_v38, 1  ;;  %v1323_v53 = vcombine.high %v5998_v8, %v5998_v8  ;;  %v7490_v45 = vrot.slane %v5998_v8, %v6749_v15  ;;  %v6000_v25 = vld.sshfl [vmem:[%s6729_s29 + $0x20] sm:$0x33 pattern:$0x75316420] }
  0xbd   : > { %v4215_v31 = vcombine.low %v4207_v58, %v4214_v61  ;;  %v4147_v42 = vor.u32 %v4146_v59, %v4142_v22  ;;  %v4287_v39 = vcombine.low %v4279_v63, %v4286_v6  ;;  %v4255_v2 = vrot.slane %v4247_v60, %v6749_v15  ;;  %v6001_v8 = vld.sshfl [vmem:[%s6729_s29 + $0x24] sm:$0x33 pattern:$0x75316420] }
  0xbe   : > { %v4262_v1 = vrot.slane %v4248_v51, %v6749_v15  ;;  %v4154_v44 = vor.u32 %v4153_v4, %v4149_v14  ;;  %v7501_v56 = vrot.slane %v1323_v53, %v6749_v15  ;;  %v1338_v32 = vcombine.high %v7490_v45, %v7490_v45 }
  0xbf   : > { %v4222_v36 = vrot.slane %v4215_v31, %v6749_v15  ;;  %4187 = vrot.lane.b32.xlu0 %v4147_v42, %s6616_s7  ;;  %v4294_v22 = vrot.slane %v4287_v39, %v6749_v15  ;;  %v1347_v58 = vcombine.high %v5999_v49, %v5999_v49  ;;  %v7509_v63 = vrot.slane %v5999_v49, %v6749_v15  ;;  %v7530_v39 = vpop.permute.xlu0 %3236 }
  0xc0   : > { %v4263_v0 = vcombine.low %v4255_v2, %v4262_v1  ;;  %4189 = vrot.lane.b32.xlu1 %v4154_v44, %s6616_s7  ;;  %v1339_v14 = vcombine.high %v7501_v56, %v7501_v56  ;;  %v3935_v38 = vcombine.low %v7501_v56, %v1338_v32  ;;  %v1299_v61 = vcombine.high %v5997_v9, %v5997_v9  ;;  %v7542_v32 = vpop.permute.xlu1 %3234 }
  0xc1   : > { %v7517_v59 = vrot.slane %v5997_v9, %v6749_v15  ;;  %v7521_v60 = vrot.slane %v1347_v58, %v6749_v15  ;;  %v4073_v51 = vrot.slane %v7490_v45, %v6749_v15  ;;  %v1371_v4 = vcombine.high %v6000_v25, %v6000_v25 }
  0xc2   : > { %v4270_v6 = vrot.slane %v4263_v0, %v6749_v15  ;;  %v3936_v31 = vcombine.low %v1339_v14, %v7509_v63  ;;  %v3943_v49 = vrot.slane %v3935_v38, %v6749_v15  ;;  %v7528_v53 = vrot.slane %v1299_v61, %v6749_v15 }
  0xc3   : > { %v1395_v42 = vcombine.high %v6001_v8, %v6001_v8  ;;  %4391 = vrot.lane.b32.xlu0 %v4222_v36, %s6615_s0  ;;  %v4088_v2 = vrot.slane %v7521_v60, %v6749_v15  ;;  %v4080_v1 = vrot.slane %v4073_v51, %v6749_v15  ;;  %v7537_v9 = vrot.slane %v1371_v4, %v6749_v15 }
  0xc4   : > { %v7540_v44 = vrot.slane %v6001_v8, %v6749_v15  ;;  %4393 = vrot.lane.b32.xlu1 %v4246_v18, %s6615_s0  ;;  %v3950_v0 = vrot.slane %v3936_v31, %v6749_v15  ;;  %v3911_v36 = vcombine.low %v7517_v59, %v7528_v53  ;;  %v6096_v58 = vcombine.high %v7517_v59, %v7528_v53  ;;  %v7588_v55 = vpop.permute.xlu1 %3238 }
  0xc5   : > { %v7551_v14 = vrot.slane %v1395_v42, %v6749_v15  ;;  %v4095_v38 = vrot.slane %v4088_v2, %v6749_v15  ;;  %v1387_v8 = vcombine.high %v7537_v9, %v7537_v9  ;;  %v7559_v18 = vrot.slane %v6000_v25, %v6749_v15 }
  0xc6   : > { %v1410_v61 = vcombine.high %v7540_v44, %v7540_v44  ;;  %v3951_v51 = vcombine.low %v3943_v49, %v3950_v0  ;;  %v3919_v4 = vrot.slane %v3911_v36, %v6749_v15  ;;  %v3926_v31 = vrot.slane %v6096_v58, %v6749_v15  ;;  %v7581_v58 = vpop.permute.xlu0 %2066 }
  0xc7   : > { %v1411_v42 = vcombine.high %v7551_v14, %v7551_v14  ;;  %4395 = vrot.lane.b32.xlu0 %v4270_v6, %s6615_s0  ;;  %v3983_v2 = vcombine.low %v1387_v8, %v7540_v44  ;;  %v7570_v11 = vcombine.high %v7559_v18, %v7559_v18  ;;  %v6097_v25 = vcombine.high %v7509_v63, %v7521_v60 }
  0xc8   : > { %v3984_v43 = vcombine.low %v7551_v14, %v1410_v61  ;;  %4397 = vrot.lane.b32.xlu1 %v4294_v22, %s6615_s0  ;;  %v7576_v49 = vrot.slane %v3951_v51, %v6749_v15  ;;  %v3927_v0 = vcombine.low %v3919_v4, %v3926_v31  ;;  %v3960_v6 = vcombine.low %v7559_v18, %v7537_v9 }
  0xc9   : > { %v4118_v36 = vrot.slane %v1411_v42, %v6749_v15  ;;  %v3991_v8 = vrot.slane %v3983_v2, %v6749_v15  ;;  %v3967_v52 = vrot.slane %v6097_v25, %v6749_v15  ;;  %v4103_v22 = vrot.slane %v7570_v11, %v6749_v15 }
  0xca   : > { %8374 = vst [vmem:[#allocation46_spill] sm:$0xff] %v7576_v49  ;;  %v3998_v61 = vrot.slane %v3984_v43, %v6749_v15  ;;  %v4096_v51 = vcombine.low %v7576_v49, %v4095_v38  ;;  %v7592_v4 = vrot.slane %v3927_v0, %v6749_v15  ;;  %v3974_v42 = vrot.slane %v3960_v6, %v6749_v15 }
  0xcb   : > { %v4125_v31 = vrot.slane %v4118_v36, %v6749_v15  ;;  %v4110_v2 = vrot.slane %v4103_v22, %v6749_v15  ;;  %v6100_v43 = vcombine.high %v7490_v45, %v7501_v56  ;;  %v4320_v25 = vcombine.low %v7509_v63, %v7521_v60 }
  0xcc   : > { %8375 = vst [vmem:[#allocation47_spill] sm:$0xff] %v7592_v4  ;;  %v3999_v46 = vcombine.low %v3991_v8, %v3998_v61  ;;  %v4163_v28 = vshrl.u32 %v4096_v51, 16  ;;  %v4165_v27 = vshll.u32 %v4096_v51, 16  ;;  %v4081_v38 = vcombine.low %v7592_v4, %v4080_v1  ;;  %v7612_v51 = vpop.permute.xlu0 %3026 }
  0xcd   : > { %v3975_v49 = vcombine.low %v3967_v52, %v3974_v42  ;;  %v4327_v36 = vrot.slane %v6100_v43, %v6749_v15  ;;  %v4334_v6 = vrot.slane %v4320_v25, %v6749_v15  ;;  %v1314_v8 = vcombine.high %v7517_v59, %v7517_v59  ;;  %v7618_v43 = vpop.permute.xlu1 %3030 }
  0xce   : > { %v7603_v0 = vrot.slane %v3999_v46, %v6749_v15  ;;  %v4167_v61 = vrot.slane %v4165_v27, 1  ;;  %v4156_v56 = vshrl.u32 %v4081_v38, 16  ;;  %v4158_v22 = vshll.u32 %v4081_v38, 16 }
  0xcf   : > { %v7610_v63 = vrot.slane %v3975_v49, %v6749_v15  ;;  %v4335_v1 = vcombine.low %v4327_v36, %v4334_v6  ;;  %v1315_v46 = vcombine.high %v7528_v53, %v7528_v53  ;;  %v4295_v42 = vcombine.low %v7528_v53, %v1314_v8 }
  0xd0   : > { %8376 = vst [vmem:[#allocation48_spill] sm:$0xff] %v7603_v0  ;;  %v4126_v52 = vcombine.low %v7603_v0, %v4125_v31  ;;  %v4168_v25 = vor.u32 %v4167_v61, %v4163_v28  ;;  %v4160_v59 = vrot.slane %v4158_v22, 1  ;;  %v4367_v49 = vcombine.low %v7540_v44, %v7551_v14  ;;  %v6004_v0 = vld.sshfl [vmem:[%s6729_s29 + $0x30] sm:$0x11 pattern:$0x75316420] }
  0xd1   : > { %8377 = vst [vmem:[#allocation49_spill] sm:$0xff] %v7610_v63  ;;  %v4111_v27 = vcombine.low %v7610_v63, %v4110_v2  ;;  %v4342_v31 = vrot.slane %v4335_v1, %v6749_v15  ;;  %v4296_v36 = vcombine.low %v1315_v46, %v7490_v45  ;;  %v4303_v28 = vrot.slane %v4295_v42, %v6749_v15  ;;  %v5978_v46 = vld.sshfl [vmem:[%s6706_s23 + $0x30] sm:$0x11 pattern:$0x75316420] }
  0xd2   : > { %v4177_v38 = vshrl.u32 %v4126_v52, 16  ;;  %v4179_v4 = vshll.u32 %v4126_v52, 16  ;;  %4193 = vrot.lane.b32.xlu1 %v4168_v25, %s6616_s7  ;;  %v4161_v6 = vor.u32 %v4160_v59, %v4156_v56  ;;  %v6101_v22 = vcombine.high %v7540_v44, %v7551_v14  ;;  %v7641_v25 = vpop.permute.xlu0 %1858 }
  0xd3   : > { %v4170_v53 = vshrl.u32 %v4111_v27, 16  ;;  %v4172_v8 = vshll.u32 %v4111_v27, 16  ;;  %v4310_v2 = vrot.slane %v4296_v36, %v6749_v15  ;;  %v4375_v52 = vrot.slane %v4367_v49, %v6749_v15  ;;  %v5979_v49 = vld.sshfl [vmem:[%s6716_s16] sm:$0x33 pattern:$0x75316420] }
  0xd4   : > { %v4181_v61 = vrot.slane %v4179_v4, 1  ;;  %4191 = vrot.lane.b32.xlu0 %v4161_v6, %s6616_s7  ;;  %v1363_v45 = vcombine.high %v7521_v60, %v7521_v60  ;;  %v4344_v56 = vcombine.low %v7537_v9, %v7570_v11  ;;  %v8378_v4 = vcombine.high %v7330_v24, %v7330_v24  ;;  %v7647_v60 = vpop.permute.xlu1 %3028 }
  0xd5   : > { %v4174_v1 = vrot.slane %v4172_v8, 1  ;;  %v4311_v14 = vcombine.low %v4303_v28, %v4310_v2  ;;  %v4382_v59 = vrot.slane %v6101_v22, %v6749_v15  ;;  %v786_v27 = vcombine.high %v7343_v12, %v7343_v12 }
  0xd6   : > { %v785_v42 = vrot.slane %v8378_v4, %v6749_v15  ;;  %v4182_v44 = vor.u32 %v4181_v61, %v4177_v38  ;;  %v4343_v11 = vcombine.low %v1363_v45, %v7559_v18  ;;  %v4358_v9 = vrot.slane %v4344_v56, %v6749_v15 }
  0xd7   : > { %v4175_v36 = vor.u32 %v4174_v1, %v4170_v53  ;;  %v4318_v24 = vrot.slane %v4311_v14, %v6749_v15  ;;  %v4383_v38 = vcombine.low %v4375_v52, %v4382_v59  ;;  %v795_v8 = vcombine.high %v5978_v46, %v5978_v46  ;;  %v7663_v14 = vpop.permute.xlu0 %1862 }
  0xd8   : > { %v787_v6 = vcombine.high %v785_v42, %v785_v42  ;;  %4197 = vrot.lane.b32.xlu1 %v4182_v44, %s6616_s7  ;;  %v802_v28 = vrot.slane %v5978_v46, %v6749_v15  ;;  %v4351_v61 = vrot.slane %v4343_v11, %v6749_v15  ;;  %v2464_v2 = vcombine.low %v785_v42, %v786_v27 }
  0xd9   : > { %4195 = vrot.lane.b32.xlu0 %v4175_v36, %s6616_s7  ;;  %v6037_v53 = vcombine.high %v7343_v12, %v785_v42  ;;  %v843_v22 = vcombine.high %v5979_v49, %v5979_v49  ;;  %v4390_v18 = vrot.slane %v4383_v38, %v6749_v15  ;;  %v809_v1 = vrot.slane %v795_v8, %v6749_v15  ;;  %v6002_v38 = vld.sshfl [vmem:[%s6729_s29 + $0x28] sm:$0x33 pattern:$0x75316420] }
  0xda   : > { %v2465_v45 = vcombine.low %v787_v6, %v802_v28  ;;  %v850_v56 = vrot.slane %v5979_v49, %v6749_v15  ;;  %v4359_v4 = vcombine.low %v4351_v61, %v4358_v9  ;;  %v2472_v52 = vrot.slane %v2464_v2, %v6749_v15  ;;  %v7670_v49 = vpop.permute.xlu1 %1860  ;;  %v6003_v2 = vld.sshfl [vmem:[%s6729_s29 + $0x2c] sm:$0x33 pattern:$0x75316420] }
  0xdb   : > { %v2520_v46 = vrot.slane %v6037_v53, %v6749_v15  ;;  %v857_v44 = vrot.slane %v843_v22, %v6749_v15  ;;  %v2494_v42 = vrot.slane %v809_v1, %v6749_v15  ;;  %v2513_v59 = vcombine.low %v802_v28, %v809_v1 }
  0xdc   : > { %4401 = vrot.lane.b32.xlu1 %v4342_v31, %s6615_s0  ;;  %v2479_v12 = vrot.slane %v2465_v45, %v6749_v15  ;;  %v2852_v27 = vrot.slane %v6753_v19, %v6749_v15  ;;  %v4366_v36 = vrot.slane %v4359_v4, %v6749_v15  ;;  %v858_v6 = vcombine.high %v850_v56, %v850_v56 }
  0xdd   : > { %4399 = vrot.lane.b32.xlu0 %v4318_v24, %s6615_s0  ;;  %v2654_v11 = vcombine.low %v850_v56, %v857_v44  ;;  %v6048_v9 = vcombine.high %v850_v56, %v857_v44  ;;  %v2501_v8 = vrot.slane %v2494_v42, %v6749_v15  ;;  %v2527_v61 = vrot.slane %v2513_v59, %v6749_v15 }
  0xde   : > { %v2480_v31 = vcombine.low %v2472_v52, %v2479_v12  ;;  %v2859_v28 = vrot.slane %v2852_v27, %v6749_v15  ;;  %v859_v1 = vcombine.high %v857_v44, %v857_v44  ;;  %v3038_v24 = vcombine.low %v857_v44, %v858_v6  ;;  %v7695_v6 = vpop.permute.xlu1 %1864 }
  0xdf   : > { %v2662_v53 = vrot.slane %v2654_v11, %v6749_v15  ;;  %v2669_v22 = vrot.slane %v6048_v9, %v6749_v15  ;;  %v2528_v56 = vcombine.low %v2520_v46, %v2527_v61  ;;  %v1419_v4 = vcombine.high %v6002_v38, %v6002_v38  ;;  %v7689_v11 = vpop.permute.xlu0 %3024 }
  0xe0   : > { %4405 = vrot.lane.b32.xlu1 %v4390_v18, %s6615_s0  ;;  %v7683_v45 = vrot.slane %v2480_v31, %v6749_v15  ;;  %v1426_v52 = vrot.slane %v6002_v38, %v6749_v15  ;;  %v3039_v42 = vcombine.low %v859_v1, %v6753_v19  ;;  %v3046_v59 = vrot.slane %v3038_v24, %v6749_v15 }
  0xe1   : > { %4403 = vrot.lane.b32.xlu0 %v4366_v36, %s6615_s0  ;;  %v2670_v12 = vcombine.low %v2662_v53, %v2669_v22  ;;  %v1443_v27 = vcombine.high %v6003_v2, %v6003_v2  ;;  %v2535_v18 = vrot.slane %v2528_v56, %v6749_v15  ;;  %v1433_v9 = vrot.slane %v1419_v4, %v6749_v15 }
  0xe2   : > { %8379 = vst [vmem:[#allocation50_spill] sm:$0xff] %v7683_v45  ;;  %v2502_v44 = vcombine.low %v7683_v45, %v2501_v8  ;;  %v1450_v46 = vrot.slane %v6003_v2, %v6749_v15  ;;  %v3053_v19 = vrot.slane %v3039_v42, %v6749_v15  ;;  %v1434_v38 = vcombine.high %v1426_v52, %v1426_v52 }
  0xe3   : > { %v7698_v36 = vrot.slane %v2670_v12, %v6749_v15  ;;  %v1457_v31 = vrot.slane %v1443_v27, %v6749_v15  ;;  %v4584_v8 = vcombine.low %v1426_v52, %v1433_v9  ;;  %v6115_v22 = vcombine.high %v1426_v52, %v1433_v9  ;;  %v7710_v52 = vpop.permute.xlu0 %2070 }
  0xe4   : > { %v2504_v61 = vshrl.u32 %v2502_v44, 16  ;;  %v2506_v53 = vshll.u32 %v2502_v44, 16  ;;  %2536 = vrot.lane.b32.xlu1 %v2535_v18, %s6615_s0  ;;  %v3054_v2 = vcombine.low %v3046_v59, %v3053_v19  ;;  %v4614_v24 = vrot.slane %v1450_v46, %v6749_v15 }
  0xe5   : > { %8380 = vst [vmem:[#allocation51_spill] sm:$0xff] %v7698_v36  ;;  %v2860_v1 = vcombine.low %v7698_v36, %v2859_v28  ;;  %v1435_v56 = vcombine.high %v1433_v9, %v1433_v9  ;;  %v4592_v12 = vrot.slane %v4584_v8, %v6749_v15  ;;  %v4599_v42 = vrot.slane %v6115_v22, %v6749_v15 }
  0xe6   : > { %v2508_v4 = vrot.slane %v2506_v53, 1  ;;  %v4632_v45 = vcombine.low %v1433_v9, %v1434_v38  ;;  %v3061_v44 = vrot.slane %v3054_v2, %v6749_v15  ;;  %v4621_v18 = vrot.slane %v4614_v24, %v6749_v15  ;;  %v7713_v53 = vpop.permute.xlu1 %2072 }
  0xe7   : > { %v2967_v27 = vshrl.u32 %v2860_v1, 16  ;;  %v2969_v63 = vshll.u32 %v2860_v1, 16  ;;  %v4600_v59 = vcombine.low %v4592_v12, %v4599_v42  ;;  %v4633_v19 = vcombine.low %v1435_v56, %v1450_v46 }
  0xe8   : > { %v2509_v28 = vor.u32 %v2508_v4, %v2504_v61  ;;  %v4640_v36 = vrot.slane %v4632_v45, %v6749_v15  ;;  %3230 = vrot.lane.b32.xlu1 %v3061_v44, %s6615_s0  ;;  %v1458_v9 = vcombine.high %v1450_v46, %v1450_v46  ;;  %v1459_v38 = vcombine.high %v1457_v31, %v1457_v31 }
  0xe9   : > { %v2971_v8 = vrot.slane %v2969_v63, 1  ;;  %v1467_v22 = vcombine.high %v6004_v0, %v6004_v0  ;;  %v7718_v1 = vrot.slane %v4600_v59, %v6749_v15  ;;  %v4647_v2 = vrot.slane %v4633_v19, %v6749_v15 }
  0xea   : > { %2510 = vrot.lane.b32.xlu0 %v2509_v28, %s6616_s7  ;;  %v1474_v61 = vrot.slane %v6004_v0, %v6749_v15  ;;  %v6129_v24 = vcombine.high %v1450_v46, %v1457_v31  ;;  %v4786_v4 = vcombine.low %v1457_v31, %v1458_v9 }
  0xeb   : > { %v2972_v56 = vor.u32 %v2971_v8, %v2967_v27  ;;  %v1481_v45 = vrot.slane %v1467_v22, %v6749_v15  ;;  %v4622_v63 = vcombine.low %v7718_v1, %v4621_v18  ;;  %v4648_v12 = vcombine.low %v4640_v36, %v4647_v2  ;;  %v3035_v18 = vpop.permute.xlu1 %3034 }
  0xec   : > { %v4787_v42 = vcombine.low %v1459_v38, %v1474_v61  ;;  %v4794_v44 = vrot.slane %v4786_v4, %v6749_v15  ;;  %v4842_v17 = vrot.slane %v6129_v24, %v6749_v15  ;;  %v3033_v19 = vpop.permute.xlu0 %3032  ;;  %v3260_v8 = vsel %vm2082_vm15, %v6910_v3, %v7618_v43  ;;  %v6557_v43 = vld [vmem:[%s8257_s3 + $0x38] ss:$0 sps:$4 sm:$0xff]   ;;  %v6561_v4 = vld [vmem:[%s8257_s3 + $0xc] sm:$0xff]  }
  0xed   : > { %v4816_v28 = vrot.slane %v1481_v45, %v6749_v15  ;;  %v4835_v59 = vcombine.low %v1474_v61, %v1481_v45  ;;  %v4624_v0 = vshrl.u32 %v4622_v63, 16  ;;  %v4626_v46 = vshll.u32 %v4622_v63, 16  ;;  %6501 = vmatprep.subr.msk.bf16.mxu0 %vm2177_vm2, %v6557_v43 }
  0xee   : > { %3022 = vrot.lane.b32.xlu0 %v2972_v56, %s6616_s7  ;;  %v4655_v27 = vrot.slane %v4648_v12, %v6749_v15  ;;  %v4801_v31 = vrot.slane %v4787_v42, %v6749_v15  ;;  %v2085_v2 = vsel %vm2082_vm15, %v6969_v37, %v7641_v25  ;;  %v3254_v24 = vsel %vm2082_vm15, %v6915_v7, %v7612_v51 }
  0xef   : > { %v4849_v36 = vrot.slane %v4835_v59, %v6749_v15  ;;  %v4628_v9 = vrot.slane %v4626_v46, 1  ;;  %v4823_v22 = vrot.slane %v4816_v28, %v6749_v15  ;;  %v3257_v56 = vsel %vm2082_vm15, %v6932_v50, %v7647_v60 }
  0xf0   : > { %4656 = vrot.lane.b32.xlu1 %v4655_v27, %s6615_s0  ;;  %v4802_v38 = vcombine.low %v4794_v44, %v4801_v31  ;;  %v2088_v3 = vsel %vm2082_vm15, %v6989_v54, %v7670_v49  ;;  %v2091_v7 = vsel %vm2082_vm15, %v7008_v34, %v7663_v14  ;;  %v2094_v50 = vsel %vm2082_vm15, %v7021_v62, %v7695_v6  ;;  %v3241_v14 = vpop.permute.xlu1 %3240 }
  0xf1   : > { %v4850_v61 = vcombine.low %v4842_v17, %v4849_v36  ;;  %v6558_v17 = vld [vmem:[%s8257_s3 + $0x8] ss:$0 sps:$4 sm:$0xff]   ;;  %v4629_v37 = vor.u32 %v4628_v9, %v4624_v0  ;;  %v3251_v51 = vsel %vm2082_vm15, %v7034_v48, %v7689_v11  ;;  %v2109_v60 = vsel %vm2107_vm0, %v2085_v2, %v7581_v58  ;;  %v6559_v48 = vld [vmem:[%s8257_s3 + $0x3c] sm:$0xff]  }
  0xf2   : > { %v7755_v25 = vrot.slane %v4802_v38, %v6749_v15  ;;  %v7771_v49 = vsel %vm2107_vm0, %v2088_v3, %v7497_v5  ;;  %v3542_v5 = vsel %vm2177_vm2, %v6557_v43, 0  ;;  %v7786_v58 = vsel %vm2107_vm0, %v2094_v50, %v7713_v53  ;;  %6497 = vmatprep.subr.msk.bf16.mxu1 %vm2177_vm2, %v6558_v17 }
  0xf3   : > { %v4857_v54 = vrot.slane %v4850_v61, %v6749_v15  ;;  %v7773_v45 = vpop.permute.xlu0 %3036  ;;  %4630 = vrot.lane.b32.xlu0 %v4629_v37, %s6616_s7  ;;  %v6013_v62 = vcombine.low %v2109_v60, %v7771_v49  ;;  %v7790_v11 = vsel %vm2107_vm0, %v2091_v7, %v7710_v52  ;;  %v2179_v6 = vsel %vm2177_vm2, %v6558_v17, 0  ;;  %6366 = vmatpush3.bf16.msra.mxu0 %v3542_v5  ;;  %v7858_v61 = vld [vmem:[%s8257_s3 + $0x18] sm:$0xff]  }
  0xf4   : > { %v4824_v34 = vcombine.low %v7755_v25, %v4823_v22  ;;  %v7798_v42 = vsel %vm2107_vm0, %v3257_v56, %v7530_v39  ;;  %v7803_v53 = vsel %vm2107_vm0, %v3260_v8, %v7588_v55  ;;  %v7808_v52 = vcombine.low %v7790_v11, %v7786_v58  ;;  %6318 = vmatpush3.bf16.msra.mxu1 %v2179_v6  ;;  %v3470_v36 = vpop.permute.xlu1 %3469 }
  0xf5   : > { %4858 = vrot.lane.b32.xlu1 %v4857_v54, %s6615_s0  ;;  %6319 = vmatprep.mubr.msk.bf16.mxu1 %vm2164_vm1, %v6013_v62  ;;  %v7812_v44 = vsel %vm2107_vm0, %v3251_v51, %v7492_v20  ;;  %v7816_v39 = vsel %vm2107_vm0, %v3254_v24, %v7542_v32  ;;  %v3266_v0 = vsel %vm2082_vm15, %v7114_v13, %v3035_v18  ;;  %v5038_v18 = vshll.u32 %v6792_v33, 16 }
  0xf6   : > { %v4826_v63 = vshrl.u32 %v4824_v34, 16  ;;  %v4828_v12 = vshll.u32 %v4824_v34, 16  ;;  %v6073_v55 = vcombine.low %v7812_v44, %v7816_v39  ;;  %v3263_v46 = vsel %vm2082_vm15, %v7133_v26, %v3033_v19  ;;  %6375 = vmatprep.subr.bf16.mxu0 %v6559_v48  ;;  %6327 = vmatprep.subr.bf16.mxu1 %v6561_v4  ;;  %v6560_v26 = vld [vmem:[%s8257_s3 + $0x44] ss:$0 sps:$4 sm:$0xff]   ;;  %v6562_v19 = vld [vmem:[%s8257_s3 + $0x14] ss:$0 sps:$4 sm:$0xff]  }
  0xf7   : > { %v3243_v28 = vpop.permute.xlu0 %3242  ;;  %v6074_v20 = vcombine.low %v7798_v42, %v7803_v53  ;;  %v7827_v27 = vsel %vm2107_vm0, %v3263_v46, %v3241_v14  ;;  %6320 = vmatmul.mubr.msk.bf16.vlgmr.msra.gmra.mrb[0].mxu1 %vm2164_vm1, %v7808_v52  ;;  %v906_v8 = vcombine.high %v6759_v21, %v6759_v21  ;;  %v5041_v9 = vshrl.u32 %v6792_v33, 16  ;;  %v6564_v33 = vld [vmem:[%s8257_s3 + $0x48] sm:$0xff]  }
  0xf8   : > { %v4830_v59 = vrot.slane %v4828_v12, 1  ;;  %v7830_v32 = vsel %vm2107_vm0, %v3266_v0, %v3243_v28  ;;  %6367 = vmatprep.mubr.msk.bf16.mxu0 %vm2164_vm1, %v6073_v55  ;;  %6328 = vmatpush3.bf16.msra.mxu1 %v6561_v4  ;;  %v5062_v38 = vshll.u32 %v6815_v47, 16  ;;  %v3732_v22 = vsel %vm2177_vm2, %v6560_v26, 0 }
  0xf9   : > { %v6075_v13 = vcombine.low %v7827_v27, %v7830_v32  ;;  %6368 = vmatmul.mubr.msk.bf16.vlgmr.msra.gmra.mrb[0].mxu0 %vm2164_vm1, %v6074_v20  ;;  %6498 = vmatprep.subr.msk.bf16.mxu1 %vm2177_vm2, %v6562_v19  ;;  %v2381_v2 = vsel %vm2177_vm2, %v6562_v19, 0  ;;  %v5033_v24 = vshrl.u32 %v906_v8, 16  ;;  %v5066_v47 = vshrl.u32 %v6898_v57, 16  ;;  %v8386_v20 = vld [vmem:[#allocation13_spill] sm:$0xff] }
  0xfa   : > { %v4831_v31 = vor.u32 %v4830_v59, %v4826_v63  ;;  %6376 = vmatpush3.bf16.msra.mxu0 %v6559_v48  ;;  %v5071_v56 = vshll.u32 %v6781_v29, 16  ;;  %v5046_v3 = vshll.u32 %v6805_v40, 16  ;;  %v5049_v43 = vshrl.u32 %v6805_v40, 16 }
  0xfb   : > { %6371 = vmatprep.mubr.msk.bf16.mxu0 %vm2164_vm1, %v6075_v13  ;;  %6502 = vmatprep.subr.msk.bf16.mxu0 %vm2177_vm2, %v6560_v26  ;;  %v5040_v37 = vsel %vm6842_vm14, %v5033_v24, %v5038_v18  ;;  %v5054_v7 = vshll.u32 %v6808_v41, 16  ;;  %v5057_v57 = vshrl.u32 %v6808_v41, 16  ;;  %v5074_v51 = vshrl.u32 %v6781_v29, 16  ;;  %v8381_v29 = vld [vmem:[#allocation10_spill] sm:$0xff] }
  0xfc   : > { %4832 = vrot.lane.b32.xlu0 %v4831_v31, %s6616_s7  ;;  %6330 = vmatpush3.bf16.msra.mxu1 %v2381_v2  ;;  %v5048_v54 = vsel %vm6842_vm14, %v5041_v9, %v5046_v3  ;;  %v5073_v60 = vsel %vm6842_vm14, %v5066_v47, %v5071_v56  ;;  %v5079_v14 = vshll.u32 %v6784_v30, 16  ;;  %v3269_v41 = vsel %vm2082_vm15, %v7168_v23, %v7773_v45  ;;  %v8383_v45 = vld [vmem:[#allocation11_spill] sm:$0xff]  ;;  %v8387_v31 = vld [vmem:[#allocation14_spill] sm:$0xff]  ;;  %v8389_v3 = vld [vmem:[#allocation25_spill] sm:$0xff] }
  0xfd   : > { %6339 = vmatprep.subr.bf16.mxu1 %v7858_v61  ;;  %v5056_v40 = vsel %vm6842_vm14, %v5049_v43, %v5054_v7  ;;  %v5064_v34 = vsel %vm6842_vm14, %v5057_v57, %v5062_v38  ;;  %v5266_v62 = vcombine.low %v5040_v37, %v5048_v54  ;;  %v3499_v48 = vsel %vm2082_vm15, %v7171_v35, %v3470_v36  ;;  %v8384_v35 = vld [vmem:[#allocation12_spill] sm:$0xff]  ;;  %v6566_v56 = vld [vmem:[%s8257_s3 + $0x50] ss:$0 sps:$4 sm:$0xff]   ;;  %v8390_v7 = vld [vmem:[#allocation31_spill] sm:$0xff] }
  0xfe   : > { %6378 = vmatpush3.bf16.msra.mxu0 %v3732_v22  ;;  %v5267_v6 = vcombine.low %v5056_v40, %v5064_v34  ;;  %v8382_v4 = vcombine.low %v6850_v16, %v8381_v29  ;;  %v5081_v23 = vsel %vm6842_vm14, %v5074_v51, %v5079_v14  ;;  %v8385_v59 = vcombine.low %v8383_v45, %v8384_v35  ;;  %v8391_v57 = vld [vmem:[#allocation34_spill] sm:$0xff] }
  0xff   : > { %6387 = vmatprep.subr.bf16.mxu0 %v6564_v33  ;;  %v7895_v30 = vrot.slane %v5266_v62, %v6749_v15  ;;  %v5313_v46 = vcombine.low %v5073_v60, %v5081_v23  ;;  %v8388_v36 = vcombine.low %v8386_v20, %v8387_v31  ;;  %v7914_v18 = vcombine.low %v7816_v39, %v7798_v42  ;;  %v8392_v51 = vld [vmem:[#allocation26_spill] sm:$0xff]  ;;  %v8393_v60 = vld [vmem:[#allocation35_spill] sm:$0xff]  ;;  %v8394_v62 = vld [vmem:[#allocation36_spill] sm:$0xff] }
 0x100   : > { %v1869_v17 = vpop.permute.xlu1 %1868  ;;  %v5337_v63 = vrot.slane %v8382_v4, %v6749_v15  ;;  %v5344_v55 = vrot.slane %v8385_v59, %v6749_v15  ;;  %v7905_v16 = vrot.slane %v5267_v6, %v6749_v15  ;;  %v7932_v39 = vcombine.low %v7803_v53, %v7827_v27  ;;  %v8396_v6 = vld [vmem:[#allocation37_spill] sm:$0xff] }
 0x101   : > { %v1867_v50 = vpop.permute.xlu0 %1866  ;;  %v5330_v13 = vrot.slane %v8388_v36, %v6749_v15  ;;  %v5323_v9 = vrot.slane %v5313_v46, %v6749_v15  ;;  %v5198_v43 = vshrl.u32 %v8389_v3, 16  ;;  %v5227_v54 = vshll.u32 %v8390_v7, 16  ;;  %v8399_v36 = vld [vmem:[#allocation39_spill] sm:$0xff] }
 0x102   : > { %v5346_v19 = vcombine.low %v5337_v63, %v5344_v55  ;;  %v5297_v8 = vcombine.low %v7895_v30, %v7905_v16  ;;  %v5247_v40 = vshrl.u32 %v8391_v57, 16  ;;  %v5203_v53 = vshll.u32 %v8392_v51, 16  ;;  %v8398_v55 = vld [vmem:[#allocation38_spill] sm:$0xff] }
 0x103   : > { %v5345_v38 = vcombine.low %v5323_v9, %v5330_v13  ;;  %v5206_v27 = vshrl.u32 %v8392_v51, 16  ;;  %v5252_v34 = vshll.u32 %v8393_v60, 16  ;;  %v2100_v14 = vsel %vm2082_vm15, %v8394_v62, %v1869_v17  ;;  %v7962_v17 = vld [vmem:[%s8257_s3 + $0x54] sm:$0xff]  }
 0x104   : > { %v3496_v5 = vpop.permute.xlu1 %3495  ;;  %v7923_v22 = vrot.slane %v5346_v19, %v6749_v15  ;;  %v2097_v29 = vsel %vm2082_vm15, %v8396_v6, %v1867_v50  ;;  %v5244_v45 = vshll.u32 %v8391_v57, 16  ;;  %v5255_v35 = vshrl.u32 %v8393_v60, 16  ;;  %v8400_v9 = vld [vmem:[#allocation27_spill] sm:$0xff] }
 0x105   : > { %v7892_v12 = vsel %vm2107_vm0, %v3499_v48, %v3496_v5  ;;  %v3245_v28 = vpop.permute.xlu0 %3244  ;;  %v7926_v2 = vrot.slane %v5345_v38, %v6749_v15  ;;  %v5205_v20 = vsel %vm6842_vm14, %v5198_v43, %v5203_v53  ;;  %v5231_v38 = vshrl.u32 %v8400_v9, 16 }
 0x106   : > { %v3285_v0 = vsel %vm2107_vm0, %v3269_v41, %v3245_v28  ;;  %v4501_v28 = vsel %vm2177_vm2, %v6566_v56, 0  ;;  %v5254_v57 = vsel %vm6842_vm14, %v5247_v40, %v5252_v34 }
 0x107   : > { %v6076_v26 = vcombine.low %v3285_v0, %v7892_v12  ;;  %v5361_v42 = vcombine.low %v7926_v2, %v7923_v22  ;;  %v7939_v37 = vcombine.low %v7830_v32, %v3285_v0  ;;  %v8395_v32 = vld [vmem:[#allocation28_spill] sm:$0xff] }
 0x108   : > { %v5211_v48 = vshll.u32 %v8395_v32, 16  ;;  %v5214_v5 = vshrl.u32 %v8395_v32, 16 }
 0x109   : > { %6372 = vmatmul.mubr.msk.bf16.gmra.mrb[4].mxu0 %vm2164_vm1, %v6076_v26 }
 0x10a   : > { %6379 = vmatprep.mubr.msk.bf16.mxu0 %vm2164_vm1, %v7914_v18  ;;  %v5213_v31 = vsel %vm6842_vm14, %v5206_v27, %v5211_v48  ;;  %v8402_v27 = vld [vmem:[#allocation32_spill] sm:$0xff] }
 0x10b   : > { %v5260_v60 = vshll.u32 %v8402_v27, 16  ;;  %v5411_v62 = vcombine.low %v5205_v20, %v5213_v31 }
 0x10d   : > { %v1873_v24 = vpop.permute.xlu1 %1872  ;;  %v5262_v32 = vsel %vm6842_vm14, %v5255_v35, %v5260_v60  ;;  %v5421_v34 = vrot.slane %v5411_v62, %v6749_v15  ;;  %v8403_v35 = vld [vmem:[#allocation40_spill] sm:$0xff] }
 0x10e   : > { %v1871_v47 = vpop.permute.xlu0 %1870  ;;  %v2106_v0 = vsel %vm2082_vm15, %v8398_v55, %v1873_v24  ;;  %v6565_v55 = vld [vmem:[%s8257_s3 + $0x20] ss:$0 sps:$4 sm:$0xff]  }
 0x10f   : > { %v2103_v13 = vsel %vm2082_vm15, %v8399_v36, %v1871_v47 }
 0x111   : > { %6380 = vmatmul.mubr.msk.bf16.vlgmr.msra.gmra.mrb[0].mxu0 %vm2164_vm1, %v7932_v39  ;;  %v2077_v41 = vpop.permute.xlu1 %2076 }
 0x112   : > { %6383 = vmatprep.mubr.msk.bf16.mxu0 %vm2164_vm1, %v7939_v37  ;;  %6388 = vmatpush3.bf16.msra.mxu0 %v6564_v33  ;;  %v2119_v4 = vsel %vm2107_vm0, %v2100_v14, %v2077_v41  ;;  %v2075_v63 = vpop.permute.xlu0 %2074  ;;  %v8397_v33 = vld [vmem:[#allocation29_spill] sm:$0xff]  ;;  %v6027_v14 = vcombine.low %v7771_v49, %v7790_v11 }
 0x113   : > { %6503 = vmatprep.subr.msk.bf16.mxu0 %vm2177_vm2, %v6566_v56  ;;  %v5219_v23 = vshll.u32 %v8397_v33, 16  ;;  %v2117_v50 = vsel %vm2107_vm0, %v2097_v29, %v2075_v63  ;;  %v5222_v59 = vshrl.u32 %v8397_v33, 16  ;;  %v8401_v56 = vld [vmem:[#allocation30_spill] sm:$0xff] }
 0x114   : > { %v7971_v46 = vcombine.low %v2117_v50, %v2119_v4  ;;  %v5236_v24 = vshll.u32 %v8401_v56, 16  ;;  %v5239_v7 = vshrl.u32 %v8401_v56, 16 }
 0x115   : > { %v2081_v26 = vpop.permute.xlu1 %2080  ;;  %v5221_v19 = vsel %vm6842_vm14, %v5214_v5, %v5219_v23  ;;  %v5229_v47 = vsel %vm6842_vm14, %v5222_v59, %v5227_v54  ;;  %v5414_v5 = vcombine.low %v5254_v57, %v5262_v32 }
 0x116   : > { %6390 = vmatpush3.bf16.msra.mxu0 %v4501_v28  ;;  %v2123_v3 = vsel %vm2107_vm0, %v2106_v0, %v2081_v26  ;;  %6323 = vmatprep.mubr.msk.bf16.mxu1 %vm2164_vm1, %v7971_v46  ;;  %v2079_v43 = vpop.permute.xlu0 %2078  ;;  %v5238_v53 = vsel %vm6842_vm14, %v5231_v38, %v5236_v24  ;;  %v5246_v54 = vsel %vm6842_vm14, %v5239_v7, %v5244_v45  ;;  %v8404_v26 = vld [vmem:[#allocation41_spill] sm:$0xff]  ;;  %v8405_v7 = vld [vmem:[#allocation43_spill] sm:$0xff] }
 0x117   : > { %6399 = vmatprep.subr.bf16.mxu0 %v7962_v17  ;;  %v2121_v51 = vsel %vm2107_vm0, %v2103_v13, %v2079_v43  ;;  %v5412_v48 = vcombine.low %v5221_v19, %v5229_v47  ;;  %v5413_v40 = vcombine.low %v5238_v53, %v5246_v54  ;;  %v5442_v29 = vrot.slane %v5414_v5, %v6749_v15  ;;  %v6570_v24 = vld [vmem:[%s8257_s3 + $0x2c] ss:$0 sps:$4 sm:$0xff]   ;;  %v8406_v53 = vld [vmem:[#allocation42_spill] sm:$0xff] }
 0x118   : > { %v6016_v41 = vcombine.low %v2121_v51, %v2123_v3  ;;  %v6028_v45 = vcombine.low %v7786_v58, %v2117_v50  ;;  %v6029_v20 = vcombine.low %v2119_v4, %v2121_v51  ;;  %v6568_v4 = vld [vmem:[%s8257_s3 + $0x24] sm:$0xff]   ;;  %v8055_v51 = vld [vmem:[%s8258_s4] sm:$0xf] }
 0x119   : > { %v5428_v6 = vrot.slane %v5412_v48, %v6749_v15  ;;  %v5435_v49 = vrot.slane %v5413_v40, %v6749_v15  ;;  %v3698_v11 = vpop.permute.xlu1 %3697  ;;  %v8408_v48 = vld [vmem:[#allocation45_spill] sm:$0xff] }
 0x11a   : > { %6324 = vmatmul.mubr.msk.bf16.gmra.mrb[4].mxu1 %vm2164_vm1, %v6016_v41 }
 0x11b   : > { %6331 = vmatprep.mubr.msk.bf16.mxu1 %vm2164_vm1, %v6027_v14  ;;  %v5443_v63 = vcombine.low %v5421_v34, %v5428_v6  ;;  %v5444_v28 = vcombine.low %v5435_v49, %v5442_v29 }
 0x11d   : > { %v8009_v23 = vrot.slane %v5443_v63, %v6749_v15  ;;  %v8018_v0 = vrot.slane %v5444_v28, %v6749_v15  ;;  %v2335_v13 = vpop.permute.xlu1 %2334  ;;  %v8086_v63 = vld [vmem:[%s8257_s3 + $0x60] sm:$0xff]  }
 0x11f   : > { %v3672_v33 = vpop.permute.xlu0 %3671  ;;  %v5459_v58 = vcombine.low %v8009_v23, %v8018_v0 }
 0x120   : > { %v3701_v59 = vsel %vm2082_vm15, %v8403_v35, %v3672_v33 }
 0x121   : > { %v3703_v31 = vsel %vm2107_vm0, %v3701_v59, %v3698_v11  ;;  %v6569_v11 = vld [vmem:[%s8257_s3 + $0x5c] ss:$0 sps:$4 sm:$0xff]   ;;  %v8409_v59 = vld [vmem:[#allocation46_spill] sm:$0xff] }
 0x122   : > { %v6087_v36 = vcombine.low %v7892_v12, %v3703_v31  ;;  %6332 = vmatmul.mubr.msk.bf16.vlgmr.msra.gmra.mrb[0].mxu1 %vm2164_vm1, %v6028_v45  ;;  %v2571_v12 = vsel %vm2177_vm2, %v6565_v55, 0  ;;  %v4703_v29 = vsel %vm2177_vm2, %v6569_v11, 0 }
 0x123   : > { %v2309_v50 = vpop.permute.xlu0 %2308  ;;  %6335 = vmatprep.mubr.msk.bf16.mxu1 %vm2164_vm1, %v6029_v20  ;;  %6340 = vmatpush3.bf16.msra.mxu1 %v7858_v61  ;;  %v8410_v20 = vld [vmem:[#allocation47_spill] sm:$0xff] }
 0x124   : > { %v2338_v19 = vsel %vm2082_vm15, %v8404_v26, %v2309_v50  ;;  %6384 = vmatmul.mubr.msk.bf16.gmra.mrb[4].mxu0 %vm2164_vm1, %v6087_v36  ;;  %6499 = vmatprep.subr.msk.bf16.mxu1 %vm2177_vm2, %v6565_v55 }
 0x125   : > { %v8036_v9 = vsel %vm2107_vm0, %v2338_v19, %v2335_v13  ;;  %v8411_v19 = vld [vmem:[#allocation48_spill] sm:$0xff] }
 0x126   : > { %v6030_v38 = vcombine.low %v2123_v3, %v8036_v9  ;;  %v3340_v3 = vsel %vm2177_vm2, %v6570_v24, 0 }
 0x127   : > { %6342 = vmatpush3.bf16.msra.mxu1 %v2571_v12 }
 0x128   : > { %6351 = vmatprep.subr.bf16.mxu1 %v6568_v4  ;;  %v4186_v56 = vpop.permute.xlu1 %4185 }
 0x129   : > { %v4412_v27 = vsel %vm2082_vm15, %v8406_v53, %v4186_v56  ;;  %v8413_v56 = vld [vmem:[#allocation15_spill] sm:$0xff] }
 0x12a   : > { %6336 = vmatmul.mubr.msk.bf16.gmra.mrb[4].mxu1 %vm2164_vm1, %v6030_v38  ;;  %v4184_v61 = vpop.permute.xlu0 %4183  ;;  %v8412_v38 = vld [vmem:[#allocation8_spill] sm:$0xff] }
 0x12b   : > { %6343 = vmatprep.mubr.msk.bf16.mxu1 %vm2164_vm1, %v7808_v52  ;;  %v4409_v52 = vsel %vm2082_vm15, %v8405_v7, %v4184_v61  ;;  %v5000_v61 = vshrl.u32 %v8412_v38, 16 }
 0x131   : > { %v4188_v43 = vpop.permute.xlu0 %4187 }
 0x132   : > { %v4190_v47 = vpop.permute.xlu1 %4189  ;;  %6344 = vmatmul.mubr.msk.bf16.vlgmr.msra.gmra.mrb[0].mxu1 %vm2164_vm1, %v7971_v46 }
 0x133   : > { %6347 = vmatprep.mubr.msk.bf16.mxu1 %vm2164_vm1, %v6016_v41  ;;  %6352 = vmatpush3.bf16.msra.mxu1 %v6568_v4  ;;  %v8407_v41 = vld [vmem:[#allocation44_spill] sm:$0xff]  ;;  %v4418_v40 = vsel %vm2082_vm15, %v8408_v48, %v4190_v47  ;;  %v8414_v47 = vld [vmem:[#allocation49_spill] sm:$0xff] }
 0x134   : > { %6500 = vmatprep.subr.msk.bf16.mxu1 %vm2177_vm2, %v6570_v24  ;;  %v4415_v54 = vsel %vm2082_vm15, %v8407_v41, %v4188_v43  ;;  %v5005_v24 = vshll.u32 %v8413_v56, 16  ;;  %v5008_v43 = vshrl.u32 %v8413_v56, 16  ;;  %v8416_v41 = vld [vmem:[#allocation9_spill] sm:$0xff] }
 0x135   : > { %v4392_v57 = vpop.permute.xlu0 %4391 }
 0x136   : > { %v4394_v46 = vpop.permute.xlu1 %4393  ;;  %v4432_v60 = vsel %vm2107_vm0, %v4409_v52, %v4392_v57  ;;  %v8415_v57 = vld [vmem:[#allocation16_spill] sm:$0xff] }
 0x137   : > { %v4434_v62 = vsel %vm2107_vm0, %v4412_v27, %v4394_v46  ;;  %6354 = vmatpush3.bf16.msra.mxu1 %v3340_v3  ;;  %v5013_v53 = vshll.u32 %v8415_v57, 16  ;;  %v5016_v27 = vshrl.u32 %v8415_v57, 16 }
 0x138   : > { %v6105_v14 = vcombine.low %v4432_v60, %v4434_v62  ;;  %6506 = vmatprep.subr.msk.bf16.mxu1 %vm2177_vm2, %v8055_v51  ;;  %v5021_v60 = vshll.u32 %v6759_v21, 16 }
 0x139   : > { %v4396_v32 = vpop.permute.xlu0 %4395 }
 0x13a   : > { %v4398_v34 = vpop.permute.xlu1 %4397  ;;  %6391 = vmatprep.mubr.msk.bf16.mxu0 %vm2164_vm1, %v6105_v14  ;;  %v4436_v5 = vsel %vm2107_vm0, %v4415_v54, %v4396_v32  ;;  %v5024_v14 = vshrl.u32 %v6759_v21, 16  ;;  %v5029_v54 = vshll.u32 %v8416_v41, 16  ;;  %v5023_v21 = vsel %vm6842_vm14, %v5016_v27, %v5021_v60 }
 0x13b   : > { %v8070_v6 = vsel %vm2107_vm0, %v4418_v40, %v4398_v34  ;;  %v6119_v48 = vcombine.low %v4434_v62, %v4436_v5  ;;  %v5007_v40 = vsel %vm6842_vm14, %v5000_v61, %v5005_v24  ;;  %v5015_v34 = vsel %vm6842_vm14, %v5008_v43, %v5013_v53  ;;  %v8422_v43 = vld [vmem:[#allocation50_spill] sm:$0xff] }
 0x13c   : > { %v8073_v49 = vcombine.low %v4436_v5, %v8070_v6  ;;  %v8418_v5 = vld [vmem:[#allocation33_spill] sm:$0xff] }
 0x13e   : > { %6392 = vmatmul.mubr.msk.bf16.vlgmr.msra.gmra.mrb[0].mxu0 %vm2164_vm1, %v8073_v49 }
 0x13f   : > { %6400 = vmatpush3.bf16.msra.mxu0 %v7962_v17 }
 0x140   : > { %6504 = vmatprep.subr.msk.bf16.mxu0 %vm2177_vm2, %v6569_v11  ;;  %v5031_v11 = vsel %vm6842_vm14, %v5024_v14, %v5029_v54  ;;  %v8424_v14 = vld [vmem:[#allocation19_spill] sm:$0xff] }
 0x141   : > { %v5178_v41 = vshll.u32 %v8424_v14, 16  ;;  %v5181_v54 = vshrl.u32 %v8424_v14, 16 }
 0x143   : > { %6402 = vmatpush3.bf16.msra.mxu0 %v4703_v29 }
 0x144   : > { %v4194_v28 = vpop.permute.xlu1 %4193  ;;  %6411 = vmatprep.subr.bf16.mxu0 %v8086_v63 }
 0x145   : > { %v4424_v55 = vsel %vm2082_vm15, %v8409_v59, %v4194_v28  ;;  %v8417_v28 = vld [vmem:[#allocation17_spill] sm:$0xff]  ;;  %v5265_v59 = vcombine.low %v5023_v21, %v5031_v11  ;;  %v8426_v21 = vld [vmem:[#allocation22_spill] sm:$0xff] }
 0x146   : > { %v4192_v33 = vpop.permute.xlu0 %4191  ;;  %v1026_v62 = vcombine.high %v8417_v28, %v8417_v28  ;;  %v5153_v61 = vshll.u32 %v8417_v28, 16  ;;  %v5156_v56 = vshrl.u32 %v8417_v28, 16  ;;  %v5194_v11 = vshll.u32 %v8426_v21, 16 }
 0x147   : > { %v4421_v31 = vsel %vm2082_vm15, %v8410_v20, %v4192_v33  ;;  %v5170_v33 = vshll.u32 %v8418_v5, 16  ;;  %v8420_v20 = vld [vmem:[#allocation23_spill] sm:$0xff] }
 0x148   : > { %v5165_v53 = vshrl.u32 %v1026_v62, 16 }
 0x14a   : > { %v4198_v45 = vpop.permute.xlu1 %4197 }
 0x14b   : > { %v4196_v35 = vpop.permute.xlu0 %4195  ;;  %v4430_v12 = vsel %vm2082_vm15, %v8411_v19, %v4198_v45  ;;  %v5173_v45 = vshrl.u32 %v8418_v5, 16 }
 0x14c   : > { %v4427_v3 = vsel %vm2082_vm15, %v8414_v47, %v4196_v35  ;;  %v5264_v35 = vcombine.low %v5007_v40, %v5015_v34 }
 0x14e   : > { %v4402_v17 = vpop.permute.xlu1 %4401 }
 0x14f   : > { %v4442_v36 = vsel %vm2107_vm0, %v4424_v55, %v4402_v17  ;;  %v4400_v13 = vpop.permute.xlu0 %4399  ;;  %v8419_v55 = vld [vmem:[#allocation21_spill] sm:$0xff] }
 0x150   : > { %v4440_v50 = vsel %vm2107_vm0, %v4421_v31, %v4400_v13  ;;  %v5132_v17 = vshrl.u32 %v8419_v55, 16  ;;  %v5137_v31 = vshll.u32 %v8420_v20, 16  ;;  %v5140_v13 = vshrl.u32 %v8420_v20, 16 }
 0x151   : > { %v8095_v26 = vcombine.low %v4440_v50, %v4442_v36  ;;  %v6120_v24 = vcombine.low %v8070_v6, %v4440_v50  ;;  %v8425_v50 = vld [vmem:[#allocation20_spill] sm:$0xff]  ;;  %v5172_v20 = vsel %vm6842_vm14, %v5165_v53, %v5170_v33 }
 0x152   : > { %v4406_v4 = vpop.permute.xlu1 %4405  ;;  %v5186_v40 = vshll.u32 %v8425_v50, 16  ;;  %v5189_v34 = vshrl.u32 %v8425_v50, 16  ;;  %v5139_v5 = vsel %vm6842_vm14, %v5132_v17, %v5137_v31 }
 0x153   : > { %v8105_v7 = vsel %vm2107_vm0, %v4430_v12, %v4406_v4  ;;  %6395 = vmatprep.mubr.msk.bf16.mxu0 %vm2164_vm1, %v8095_v26  ;;  %v4404_v52 = vpop.permute.xlu0 %4403  ;;  %v8421_v12 = vld [vmem:[#allocation24_spill] sm:$0xff] }
 0x154   : > { %v4444_v46 = vsel %vm2107_vm0, %v4427_v3, %v4404_v52  ;;  %v5145_v4 = vshll.u32 %v8421_v12, 16  ;;  %v5148_v38 = vshrl.u32 %v8421_v12, 16  ;;  %v6572_v3 = vld [vmem:[%s8257_s3 + $0x68] ss:$0 sps:$4 sm:$0xff]   ;;  %v8423_v52 = vld [vmem:[#allocation18_spill] sm:$0xff]  ;;  %v5180_v12 = vsel %vm6842_vm14, %v5173_v45, %v5178_v41 }
 0x155   : > { %v8116_v32 = vcombine.low %v4444_v46, %v8105_v7  ;;  %v5161_v57 = vshll.u32 %v8423_v52, 16  ;;  %v6121_v27 = vcombine.low %v4442_v36, %v4444_v46  ;;  %v5274_v36 = vrot.slane %v5264_v35, %v6749_v15 }
 0x156   : > { %v2537_v29 = vpop.permute.xlu1 %2536  ;;  %v5281_v46 = vrot.slane %v5265_v59, %v6749_v15  ;;  %v4893_v62 = vsel %vm2177_vm2, %v6572_v3, 0  ;;  %v5147_v55 = vsel %vm6842_vm14, %v5140_v13, %v5145_v4  ;;  %v5155_v35 = vsel %vm6842_vm14, %v5148_v38, %v5153_v61 }
 0x157   : > { %6396 = vmatmul.mubr.msk.bf16.gmra.mrb[4].mxu0 %vm2164_vm1, %v8116_v32  ;;  %v5163_v59 = vsel %vm6842_vm14, %v5156_v56, %v5161_v57  ;;  %v5188_v17 = vsel %vm6842_vm14, %v5181_v54, %v5186_v40  ;;  %v5196_v31 = vsel %vm6842_vm14, %v5189_v34, %v5194_v11  ;;  %v5362_v38 = vcombine.low %v5139_v5, %v5147_v55 }
 0x158   : > { %6403 = vmatprep.mubr.msk.bf16.mxu0 %vm2164_vm1, %v6119_v48  ;;  %v5296_v4 = vcombine.low %v5274_v36, %v5281_v46  ;;  %v5363_v56 = vcombine.low %v5155_v35, %v5163_v59  ;;  %v5364_v33 = vcombine.low %v5172_v20, %v5180_v12  ;;  %v5473_v45 = vsel %vm2177_vm2, %v8055_v51, 0 }
 0x159   : > { %v5372_v52 = vrot.slane %v5362_v38, %v6749_v15 }
 0x15a   : > { %v3231_v6 = vpop.permute.xlu1 %3230  ;;  %v5386_v51 = vrot.slane %v5364_v33, %v6749_v15 }
 0x15c   : > { %v2511_v19 = vpop.permute.xlu0 %2510 }
 0x15d   : > { %v2540_v47 = vsel %vm2082_vm15, %v8422_v43, %v2511_v19 }
 0x15e   : > { %v2542_v60 = vsel %vm2107_vm0, %v2540_v47, %v2537_v29  ;;  %v8427_v29 = vld [vmem:[#allocation51_spill] sm:$0xff]  ;;  %v5304_v47 = vrot.slane %v5296_v4, %v6749_v15 }
 0x15f   : > { %v6041_v48 = vcombine.low %v8036_v9, %v2542_v60  ;;  %6404 = vmatmul.mubr.msk.bf16.vlgmr.msra.gmra.mrb[0].mxu0 %vm2164_vm1, %v6120_v24  ;;  %v5365_v24 = vcombine.low %v5188_v17, %v5196_v31 }
 0x160   : > { %v3023_v28 = vpop.permute.xlu0 %3022  ;;  %6407 = vmatprep.mubr.msk.bf16.mxu0 %vm2164_vm1, %v6121_v27  ;;  %6412 = vmatpush3.bf16.msra.mxu0 %v8086_v63 }
 0x161   : > { %v3248_v9 = vsel %vm2082_vm15, %v8427_v29, %v3023_v28  ;;  %6348 = vmatmul.mubr.msk.bf16.gmra.mrb[4].mxu1 %vm2164_vm1, %v6041_v48  ;;  %6505 = vmatprep.subr.msk.bf16.mxu0 %vm2177_vm2, %v6572_v3  ;;  %v5311_v3 = vrot.slane %v5297_v8, %v6749_v15 }
 0x162   : > { %v3271_v63 = vsel %vm2107_vm0, %v3248_v9, %v3231_v6  ;;  %v4657_v13 = vpop.permute.xlu1 %4656 }
 0x163   : > { %v6059_v19 = vcombine.low %v3271_v63, %v7812_v44 }
 0x164   : > { %6414 = vmatpush3.bf16.msra.mxu0 %v4893_v62 }
 0x165   : > { %6355 = vmatprep.mubr.msk.bf16.mxu1 %vm2164_vm1, %v6059_v19  ;;  %v4631_v61 = vpop.permute.xlu0 %4630 }
 0x166   : > { %v4660_v44 = vsel %vm2082_vm15, %v7718_v1, %v4631_v61  ;;  %v5379_v1 = vrot.slane %v5363_v56, %v6749_v15 }
 0x167   : > { %v4662_v43 = vsel %vm2107_vm0, %v4660_v44, %v4657_v13  ;;  %v4859_v27 = vpop.permute.xlu1 %4858 }
 0x168   : > { %v6122_v10 = vcombine.low %v8105_v7, %v4662_v43  ;;  %v5393_v7 = vrot.slane %v5365_v24, %v6749_v15  ;;  %v5394_v30 = vcombine.low %v5372_v52, %v5379_v1 }
 0x169   : > { %6356 = vmatmul.mubr.msk.bf16.vlgmr.msra.gmra.mrb[0].mxu1 %vm2164_vm1, %v7914_v18  ;;  %v5312_v18 = vcombine.low %v5304_v47, %v5311_v3 }
 0x16a   : > { %6424 = vmatpush3.bf16.msra.mxu1 %v5473_v45  ;;  %6359 = vmatprep.mubr.msk.bf16.mxu1 %vm2164_vm1, %v7932_v39  ;;  %v5395_v16 = vcombine.low %v5386_v51, %v5393_v7  ;;  %v5402_v39 = vrot.slane %v5394_v30, %v6749_v15 }
 0x16b   : > { %6408 = vmatmul.mubr.msk.bf16.gmra.mrb[4].mxu0 %vm2164_vm1, %v6122_v10 }
 0x16c   : > { %6415 = vmatprep.mubr.msk.bf16.mxu0 %vm2164_vm1, %v8073_v49  ;;  %v5409_v57 = vrot.slane %v5395_v16, %v6749_v15 }
 0x16e   : > { %v4833_v8 = vpop.permute.xlu0 %4832  ;;  %v5410_v60 = vcombine.low %v5402_v39, %v5409_v57 }
 0x16f   : > { %v4862_v53 = vsel %vm2082_vm15, %v7755_v25, %v4833_v8 }
 0x170   : > { %v4864_v49 = vsel %vm2107_vm0, %v4862_v53, %v4859_v27 }
 0x171   : > { %6360 = vmatmul.mubr.msk.bf16.gmra.mrb[4].mxu1 %vm2164_vm1, %v7939_v37  ;;  %v6133_v37 = vcombine.low %v4662_v43, %v4864_v49 }
 0x172   : > { %6425 = vmatprep.mubr.msk.bf16.mxu1 %vm2082_vm15, %v5312_v18 }
 0x173   : > { %6416 = vmatmul.mubr.msk.bf16.vlgmr.msra.gmra.mrb[0].mxu0 %vm2164_vm1, %v8095_v26 }
 0x174   : > { %6419 = vmatprep.mubr.msk.bf16.mxu0 %vm2164_vm1, %v8116_v32 }
 0x179   : > { %6426 = vmatmul.mubr.msk.bf16.vlgmr.msra.gmra.mrb[8].mxu1 %vm2082_vm15, %v5361_v42 }
 0x17a   : > { %6429 = vmatprep.mubr.msk.bf16.mxu1 %vm2082_vm15, %v5410_v60 }
 0x17b   : > { %6420 = vmatmul.mubr.msk.bf16.gmra.mrb[4].mxu0 %vm2164_vm1, %v6133_v37 }
 0x181   : > { %6430 = vmatmul.mubr.msk.bf16.gmra.mrb[12].mxu1 %vm2082_vm15, %v5459_v58 }
 0x23c   : > { %v6357_v15 = vpop.f32.mrb[0].mxu1 }
 0x23d   : > { %v3376_v25 = vpop.f32.mrb[1].mxu1 }
 0x23e   : > { %v6358_v26 = vpop.f32.mrb[2].mxu1 }
 0x23f   : > { %v3379_v32 = vpop.f32.mrb[3].mxu1 }
 0x244   : > { %v6361_v14 = vpop.f32.mrb[4].mxu1 }
 0x245   : > { %v3392_v41 = vpop.f32.mrb[5].mxu1 }
 0x246   : > { %v6362_v54 = vpop.f32.mrb[6].mxu1  ;;  %v6417_v22 = vpop.f32.mrb[0].mxu0 }
 0x247   : > { %v3395_v2 = vpop.f32.mrb[7].mxu1  ;;  %v6433_v42 = vadd.f32 %v6417_v22, %v6357_v15  ;;  %v4929_v48 = vpop.f32.mrb[1].mxu0 }
 0x248   : > { %v6434_v6 = vadd.f32 %v4929_v48, %v3376_v25  ;;  %v6418_v50 = vpop.f32.mrb[2].mxu0 }
 0x249   : > { %v6435_v40 = vadd.f32 %v6418_v50, %v6358_v26  ;;  %v4932_v34 = vpop.f32.mrb[3].mxu0  ;;  %v5556_v29 = vmul.f32 %v6433_v42, %v6433_v42 }
 0x24a   : > { %v6436_v23 = vadd.f32 %v4932_v34, %v3379_v32  ;;  %v5554_v58 = vmul.f32 %v6434_v6, %v6434_v6 }
 0x24b   : > { %v6218_v0 = vpack.c.bf16 %v6435_v40, %v6433_v42  ;;  %v5557_v63 = vmul.f32 %v6435_v40, %v6435_v40 }
 0x24c   : > { %v5541_v21 = vadd.f32 %v6436_v23, %v6434_v6  ;;  %v5555_v11 = vmul.f32 %v6436_v23, %v6436_v23  ;;  %v6213_v28 = vpack.c.bf16 %v6436_v23, %v6434_v6  ;;  %v6427_v36 = vpop.f32.mrb[8].mxu1 }
 0x24d   : > { %6250 = vst [vmem:[%s6734_s12 + $0x8] sm:$0xff] %v6218_v0   ;;  %v5509_v46 = vpop.f32.mrb[9].mxu1  ;;  %v5595_v61 = vmul.f32 %v6427_v36, %v6427_v36 }
 0x24e   : > { %v5542_v9 = vadd.f32 %v6433_v42, %v5541_v21  ;;  %v5562_v62 = vadd.f32 %v5555_v11, %v5554_v58  ;;  %6214 = vst [vmem:[%s6734_s12] sm:$0xff] %v6213_v28   ;;  %v6428_v5 = vpop.f32.mrb[10].mxu1  ;;  %v6421_v55 = vpop.f32.mrb[4].mxu0  ;;  %v5593_v35 = vmul.f32 %v5509_v46, %v5509_v46 }
 0x24f   : > { %v6238_v59 = vpack.c.bf16 %v6428_v5, %v6427_v36  ;;  %v6437_v20 = vadd.f32 %v6421_v55, %v6361_v14  ;;  %v5512_v19 = vpop.f32.mrb[11].mxu1  ;;  %v4945_v12 = vpop.f32.mrb[5].mxu0  ;;  %v5596_v3 = vmul.f32 %v6428_v5, %v6428_v5 }
 0x250   : > { %v5563_v17 = vadd.f32 %v5562_v62, %v5556_v29  ;;  %v5580_v31 = vadd.f32 %v5512_v19, %v5509_v46  ;;  %v5594_v13 = vmul.f32 %v5512_v19, %v5512_v19  ;;  %v6233_v4 = vpack.c.bf16 %v5512_v19, %v5509_v46  ;;  %v6422_v38 = vpop.f32.mrb[6].mxu0 }
 0x251   : > { %6253 = vst [vmem:[%s6739_s18 + $0x8] sm:$0xff] %v6238_v59   ;;  %v6438_v56 = vadd.f32 %v4945_v12, %v3392_v41  ;;  %v5543_v33 = vadd.f32 %v6435_v40, %v5542_v9  ;;  %v6439_v24 = vadd.f32 %v6422_v38, %v6362_v54  ;;  %v4948_v44 = vpop.f32.mrb[7].mxu0  ;;  %v5560_v15 = vmul.f32 %v6437_v20, %v6437_v20 }
 0x252   : > { %v5581_v45 = vadd.f32 %v6427_v36, %v5580_v31  ;;  %v5601_v43 = vadd.f32 %v5594_v13, %v5593_v35  ;;  %6234 = vst [vmem:[%s6739_s18] sm:$0xff] %v6233_v4   ;;  %v5564_v10 = vadd.f32 %v5563_v17, %v5557_v63  ;;  %v6440_v47 = vadd.f32 %v4948_v44, %v3395_v2 }
 0x253   : > { %v5544_v52 = vadd.f32 %v6438_v56, %v5543_v33  ;;  %v5558_v1 = vmul.f32 %v6438_v56, %v6438_v56  ;;  %v6228_v51 = vpack.c.bf16 %v6439_v24, %v6437_v20  ;;  %v5561_v42 = vmul.f32 %v6439_v24, %v6439_v24  ;;  %v5540_v33 = vld [vmem:[%s6711_s30] sm:$0x3] }
 0x254   : > { %v5602_v7 = vadd.f32 %v5601_v43, %v5595_v61  ;;  %v5559_v18 = vmul.f32 %v6440_v47, %v6440_v47  ;;  %v6223_v30 = vpack.c.bf16 %v6440_v47, %v6438_v56  ;;  %v6431_v16 = vpop.f32.mrb[12].mxu1  ;;  %v5582_v8 = vadd.f32 %v6428_v5, %v5581_v45  ;;  %v5579_v43 = vld [vmem:[%s6721_s21] sm:$0x3] }
 0x255   : > { %v5565_v39 = vadd.f32 %v5564_v10, %v5558_v1  ;;  %6252 = vst [vmem:[%s6734_s12 + $0x18] sm:$0xff] %v6228_v51   ;;  %v5545_v57 = vadd.f32 %v6440_v47, %v5544_v52  ;;  %v5525_v53 = vpop.f32.mrb[13].mxu1  ;;  %v5599_v50 = vmul.f32 %v6431_v16, %v6431_v16 }
 0x256   : > { %6251 = vst [vmem:[%s6734_s12 + $0x10] sm:$0xff] %v6223_v30   ;;  %v5583_v27 = vadd.f32 %v5582_v8, %v5525_v53  ;;  %v5597_v49 = vmul.f32 %v5525_v53, %v5525_v53  ;;  %v5603_v60 = vadd.f32 %v5602_v7, %v5596_v3  ;;  %v6432_v37 = vpop.f32.mrb[14].mxu1 }
 0x257   : > { %v5546_v25 = vadd.f32 %v6437_v20, %v5545_v57  ;;  %v5566_v26 = vadd.f32 %v5565_v39, %v5559_v18  ;;  %v6248_v32 = vpack.c.bf16 %v6432_v37, %v6431_v16  ;;  %v5528_v14 = vpop.f32.mrb[15].mxu1  ;;  %v5600_v58 = vmul.f32 %v6432_v37, %v6432_v37 }
 0x258   : > { %v5604_v41 = vadd.f32 %v5603_v60, %v5597_v49  ;;  %v5584_v54 = vadd.f32 %v5583_v27, %v5528_v14  ;;  %v5598_v22 = vmul.f32 %v5528_v14, %v5528_v14  ;;  %v6243_v2 = vpack.c.bf16 %v5528_v14, %v5525_v53 }
 0x259   : > { %v5547_v48 = vadd.f32 %v6439_v24, %v5546_v25  ;;  %v5567_v6 = vadd.f32 %v5566_v26, %v5560_v15  ;;  %6255 = vst [vmem:[%s6739_s18 + $0x18] sm:$0xff] %v6248_v32  }
 0x25a   : > { %v5585_v40 = vadd.f32 %v6431_v16, %v5584_v54  ;;  %v5605_v34 = vadd.f32 %v5604_v41, %v5598_v22  ;;  %6254 = vst [vmem:[%s6739_s18 + $0x10] sm:$0xff] %v6243_v2  }
 0x25b   : > { %v5548_v23 = vrot.slane %v5547_v48, 4  ;;  %v5568_v0 = vadd.f32 %v5567_v6, %v5561_v42 }
 0x25c   : > { %v5586_v21 = vadd.f32 %v6432_v37, %v5585_v40  ;;  %v5606_v11 = vadd.f32 %v5605_v34, %v5599_v50 }
 0x25d   : > { %v5549_v28 = vadd.f32 %v5548_v23, %v5547_v48  ;;  %v5569_v36 = vrot.slane %v5568_v0, 4 }
 0x25e   : > { %v5587_v46 = vrot.slane %v5586_v21, 4  ;;  %v5607_v29 = vadd.f32 %v5606_v11, %v5600_v58 }
 0x25f   : > { %v5550_v9 = vrot.slane %v5549_v28, 2  ;;  %v5570_v62 = vadd.f32 %v5569_v36, %v5568_v0 }
 0x260   : > { %v5588_v5 = vadd.f32 %v5587_v46, %v5586_v21  ;;  %v5608_v55 = vrot.slane %v5607_v29, 4 }
 0x261   : > { %v5551_v63 = vadd.f32 %v5550_v9, %v5549_v28  ;;  %v5571_v35 = vrot.slane %v5570_v62, 2 }
 0x262   : > { %v5589_v59 = vrot.slane %v5588_v5, 2  ;;  %v5609_v20 = vadd.f32 %v5608_v55, %v5607_v29 }
 0x263   : > { %v5552_v19 = vrot.slane %v5551_v63, 1  ;;  %v5572_v12 = vadd.f32 %v5571_v35, %v5570_v62 }
 0x264   : > { %v5590_v17 = vadd.f32 %v5589_v59, %v5588_v5  ;;  %v5610_v31 = vrot.slane %v5609_v20, 2 }
 0x265   : > { %v5573_v13 = vrot.slane %v5572_v12, 1  ;;  %v5553_v61 = vadd.f32 %v5552_v19, %v5551_v63 }
 0x266   : > { %v5591_v4 = vrot.slane %v5590_v17, 1  ;;  %v5611_v38 = vadd.f32 %v5610_v31, %v5609_v20 }
 0x267   : > { %v5574_v56 = vadd.f32 %v5573_v13, %v5572_v12 }
 0x268   : > { %v5612_v24 = vrot.slane %v5611_v38, 1  ;;  %v5592_v10 = vadd.f32 %v5591_v4, %v5590_v17 }
 0x269   : > { %v5576_v44 = vsel %vm5575_vm3, %v5553_v61, %v5574_v56 }
 0x26a   : > { %v5577_v45 = vadd.f32 %v5576_v44, %v5540_v33  ;;  %v5613_v47 = vadd.f32 %v5612_v24, %v5611_v38 }
 0x26c   : > { %5578 = vst [vmem:[%s6711_s30] sm:$0x3] %v5577_v45  ;;  %v5614_v3 = vsel %vm5575_vm3, %v5592_v10, %v5613_v47 }
 0x26d   : > { %v5615_v52 = vadd.f32 %v5614_v3, %v5579_v43 }
 0x26f   : > { %5616 = vst [vmem:[%s6721_s21] sm:$0x3] %v5615_v52 }
 0x270 PF: > { %s8428_s12 = sld [smem:[#allocation5_spill]]  ;;  %s8429_s27 = sld [smem:[#allocation3_spill]] }
 0x271   : > { %s8430_s28 = sld [smem:[#allocation4_spill]]  ;;  %s8431_s29 = sld [smem:[#allocation6_spill]] }
 0x272   : > { %s8432_s30 = sld [smem:[#allocation7_spill]] }
 0x276   : > { %s19_s9 = sadd.s32 1, %s8428_s12  }
 0x277   : > { %p16_p11 = scmp.ge.s32.totalorder %s19_s9, 18  }
 0x279   :  { %18 = sbr.rel (!%p16_p11) target bundleno = 4 (0x4), region = 124 }

</bundles_post_ra>
